<compile_context>
chip_gen: v6e
topology: v6e:2x2x1
jax: 0.10.0
libtpu: 0.0.40
codegen_flags: <defaults>
</compile_context>

<pallas_src>
import functools

import numpy as np
import jax
import jax.numpy as jnp
from jax import lax
from jax.experimental import pallas as pl
from jax.experimental.pallas import tpu as pltpu

BN_EPS = 1e-5
LANE = 128
KSIZE = 5
STRIDE = 2


def conv2d_size_out(size, kernel_size=KSIZE, stride=STRIDE):
    return (size - (kernel_size - 1) - 1) // stride + 1


def _round_up(x, m):
    return ((x + m - 1) // m) * m


# ---------------------------------------------------------------------------
# Host-side (one-off, numpy) constant builders: fold all conv structure into
# dense matrices so the kernel body is nothing but 2-D MXU matmuls.
# ---------------------------------------------------------------------------

def _band_matrices(w_oihw, w_in, w_out, pad_in, pad_out):
    """M[di, w*C_in+ci, wo*C_out+co] = w_oihw[co, ci, di, w - 2*wo] (else 0).

    With an activation row stored as (w, c)-interleaved lanes, the stride-2
    5-tap conv along W for kernel-row tap `di` is exactly `row_slab @ M[di]`.
    """
    c_out, c_in, kh, kw = w_oihw.shape
    m = np.zeros((kh, pad_in, pad_out), np.float32)
    for di in range(kh):
        for dj in range(kw):
            blk = np.asarray(w_oihw[:, :, di, dj], np.float32).T      # (C_in, C_out)
            for wo in range(w_out):
                wi = STRIDE * wo + dj
                m[di, wi * c_in:(wi + 1) * c_in, wo * c_out:(wo + 1) * c_out] = blk
    return m


def _collapse_matrix(w_out, c_out, pad_out):
    """(pad_out, c_out) 0/1 matrix: sums the (w, c)-interleaved lanes per channel."""
    p = np.zeros((pad_out, c_out), np.float32)
    eye = np.eye(c_out, dtype=np.float32)
    for wo in range(w_out):
        p[wo * c_out:(wo + 1) * c_out, :] = eye
    return p


def _parity_select(h_out):
    """(ceil(h/2), h) 0/1 matrices picking even / odd rows (odd block zero-padded)."""
    he = (h_out + 1) // 2
    se = np.zeros((he, h_out), np.float32)
    so = np.zeros((he, h_out), np.float32)
    for q in range(he):
        se[q, 2 * q] = 1.0
        if 2 * q + 1 < h_out:
            so[q, 2 * q + 1] = 1.0
    return se, so


def _head_matrices(head_w, head_b, h3, w3, c3, pad3, out_pad):
    """Permute the torch-order (c, h, w) flattened head weight to the kernel's
    (h, (w, c)) feature layout and pad the output dim to `out_pad` lanes."""
    outs = head_w.shape[1]
    wt = np.asarray(head_w, np.float32).reshape(c3, h3, w3, outs)      # (c, h, w, o)
    wk = np.zeros((h3, pad3, out_pad), np.float32)
    for hh in range(h3):
        blk = np.transpose(wt[:, hh, :, :], (1, 0, 2)).reshape(w3 * c3, outs)
        wk[hh, :w3 * c3, :outs] = blk
    hb = np.zeros((1, out_pad), np.float32)
    hb[0, :outs] = np.asarray(head_b, np.float32)
    return wk, hb


# ---------------------------------------------------------------------------
# The fused Pallas kernel
# ---------------------------------------------------------------------------

def _dqn_kernel(x_ref,
                m1_ref, p1_ref, p1t_ref, g1_ref, bt1_ref, se1_ref, so1_ref,
                m2_ref, p2_ref, p2t_ref, g2_ref, bt2_ref, se2_ref, so2_ref,
                m3_ref, p3_ref, p3t_ref, g3_ref, bt3_ref,
                hw_ref, hb_ref,
                o_ref,
                a2_ref, a3_ref,
                *, n, conv_dims):
    """Entire DQN forward in one kernel; activations stay in VMEM (a2/a3 scratch)."""

    def conv_bn_relu(read_block, m_ref, p_ref, pt_ref, g_ref, bt_ref, h_out, w_out):
        # ---- conv: sum over the 5 kernel-row taps of dense  slab @ M[di] ----
        accs = [None] * n
        for di in range(KSIZE):
            m_di = m_ref[di]                          # (pad_in, pad_out)
            q0 = di // 2                              # row offset inside the parity block
            for bi in range(n):
                blk = read_block(bi, di % 2)          # (He_in, pad_in) parity block
                slab = blk[q0:q0 + h_out, :]          # contiguous rows, no strided access
                y = jnp.dot(slab, m_di, preferred_element_type=jnp.float32)
                accs[bi] = y if accs[bi] is None else accs[bi] + y

        # ---- train-mode BatchNorm over all (batch, h, w) positions, one pass ----
        # (conv bias omitted on purpose: it is exactly cancelled by the mean.)
        s = ss = None
        for r in accs:
            rs = jnp.sum(r, axis=0, keepdims=True)
            rq = jnp.sum(r * r, axis=0, keepdims=True)
            s = rs if s is None else s + rs
            ss = rq if ss is None else ss + rq
        inv_cnt = 1.0 / float(n * h_out * w_out)
        ch_sum = jnp.dot(s, p_ref[...], preferred_element_type=jnp.float32)   # (1, C)
        ch_ssq = jnp.dot(ss, p_ref[...], preferred_element_type=jnp.float32)  # (1, C)
        mean = ch_sum * inv_cnt
        var = ch_ssq * inv_cnt - mean * mean
        scale_c = g_ref[...] * lax.rsqrt(var + BN_EPS)
        shift_c = bt_ref[...] - mean * scale_c
        scale_w = jnp.dot(scale_c, pt_ref[...], preferred_element_type=jnp.float32)  # (1, WoC)
        shift_w = jnp.dot(shift_c, pt_ref[...], preferred_element_type=jnp.float32)
        return [jnp.maximum(r * scale_w + shift_w, 0.0) for r in accs]

    (h1, w1), (h2, w2), (h3, w3) = conv_dims

    # ----- layer 1 (reads the parity-split, lane-padded input image) -----
    y1 = conv_bn_relu(lambda bi, p: x_ref[bi * 2 + p],
                      m1_ref, p1_ref, p1t_ref, g1_ref, bt1_ref, h1, w1)
    for bi in range(n):   # store parity-split so layer 2 reads contiguous slabs
        a2_ref[bi * 2] = jnp.dot(se1_ref[...], y1[bi], preferred_element_type=jnp.float32)
        a2_ref[bi * 2 + 1] = jnp.dot(so1_ref[...], y1[bi], preferred_element_type=jnp.float32)

    # ----- layer 2 -----
    y2 = conv_bn_relu(lambda bi, p: a2_ref[bi * 2 + p],
                      m2_ref, p2_ref, p2t_ref, g2_ref, bt2_ref, h2, w2)
    for bi in range(n):
        a3_ref[bi * 2] = jnp.dot(se2_ref[...], y2[bi], preferred_element_type=jnp.float32)
        a3_ref[bi * 2 + 1] = jnp.dot(so2_ref[...], y2[bi], preferred_element_type=jnp.float32)

    # ----- layer 3 -----
    y3 = conv_bn_relu(lambda bi, p: a3_ref[bi * 2 + p],
                      m3_ref, p3_ref, p3t_ref, g3_ref, bt3_ref, h3, w3)

    # ----- head: features are already in (h, (w, c)) order; the head weight
    # rows were permuted on the host to match PyTorch's (c, h, w) flatten. -----
    for bi in range(n):
        out_row = hb_ref[...]                                     # (1, out_pad)
        for hh in range(h3):
            out_row = out_row + jnp.dot(y3[bi][hh:hh + 1, :], hw_ref[hh],
                                        preferred_element_type=jnp.float32)
        o_ref[bi] = out_row


# ---------------------------------------------------------------------------
# Wrapper: weight preparation + jitted forward
# ---------------------------------------------------------------------------

def build_dqn_forward(params, h, w, outputs):
    """Returns a jitted forward(x_nchw) -> (N, outputs) using one fused Pallas kernel."""
    chans = (3, 16, 32, 32)
    hs = [h]
    ws = [w]
    for _ in range(3):
        hs.append(conv2d_size_out(hs[-1]))
        ws.append(conv2d_size_out(ws[-1]))
    assert hs[3] >= 1 and ws[3] >= 1, "input too small for three 5x5/stride-2 convs"
    pads = tuple(_round_up(ws[i] * chans[i], LANE) for i in range(4))
    hes = tuple((hs[i] + 1) // 2 for i in range(4))
    out_pad = _round_up(outputs, LANE)

    conv_w = (params["conv1_w"], params["conv2_w"], params["conv3_w"])
    bn_g = (params["bn1_g"], params["bn2_g"], params["bn3_g"])
    bn_b = (params["bn1_b"], params["bn2_b"], params["bn3_b"])
    # NOTE: conv biases (params["convX_b"]) are intentionally NOT passed to the
    # kernel: a per-channel constant added before train-mode BatchNorm is
    # exactly cancelled by the batch-mean subtraction (perf-review item).

    consts = []
    for li in range(3):
        w_np = np.asarray(conv_w[li], np.float32)
        consts.append(_band_matrices(w_np, ws[li], ws[li + 1], pads[li], pads[li + 1]))
        p = _collapse_matrix(ws[li + 1], chans[li + 1], pads[li + 1])
        consts.append(p)
        consts.append(np.ascontiguousarray(p.T))
        consts.append(np.asarray(bn_g[li], np.float32).reshape(1, -1))
        consts.append(np.asarray(bn_b[li], np.float32).reshape(1, -1))
        if li < 2:
            se, so = _parity_select(hs[li + 1])
            consts.append(se)
            consts.append(so)
    wk, hb = _head_matrices(np.asarray(params["head_w"], np.float32),
                            np.asarray(params["head_b"], np.float32),
                            hs[3], ws[3], chans[3], pads[3], out_pad)
    consts.append(wk)
    consts.append(hb)
    consts = [jnp.asarray(c) for c in consts]

    conv_dims = ((hs[1], ws[1]), (hs[2], ws[2]), (hs[3], ws[3]))
    wc0 = ws[0] * chans[0]

    def forward(x_nchw):
        n = x_nchw.shape[0]
        # NCHW -> rows of (w, c)-interleaved lanes, split by row parity, lane-padded.
        xh = jnp.transpose(x_nchw, (0, 2, 3, 1)).reshape(n, hs[0], wc0)
        even = xh[:, 0::2, :]
        odd = xh[:, 1::2, :]
        if odd.shape[1] < hes[0]:
            odd = jnp.pad(odd, ((0, 0), (0, hes[0] - odd.shape[1]), (0, 0)))
        xsplit = jnp.stack([even, odd], axis=1).reshape(n * 2, hes[0], wc0)
        xsplit = jnp.pad(xsplit, ((0, 0), (0, 0), (0, pads[0] - wc0)))

        kernel = functools.partial(_dqn_kernel, n=n, conv_dims=conv_dims)
        out = pl.pallas_call(
            kernel,
            out_shape=jax.ShapeDtypeStruct((n, 1, out_pad), jnp.float32),
            scratch_shapes=[
                pltpu.VMEM((2 * n, hes[1], pads[1]), jnp.float32),  # layer-1 -> layer-2 acts
                pltpu.VMEM((2 * n, hes[2], pads[2]), jnp.float32),  # layer-2 -> layer-3 acts
            ],
        )(xsplit, *consts)
        return out.reshape(n, out_pad)[:, :outputs]

    # TODO(synk): for training-scale batches (N >= 32) add an M-dimension grid
    # with BlockSpec tiling + two-phase BN accumulation (per perf review);
    # at the small batch sizes used here everything fits comfortably in VMEM.
    return jax.jit(forward)


# ---------------------------------------------------------------------------
# Deterministic synthetic parameters (PyTorch layouts)
# ---------------------------------------------------------------------------

def init_params(key, h, w, outputs):
    convw = conv2d_size_out(conv2d_size_out(conv2d_size_out(w)))
    convh = conv2d_size_out(conv2d_size_out(conv2d_size_out(h)))
    linear_in = convw * convh * 32
    keys = jax.random.split(key, 8)

    def nrm(k, shape, scale=0.05):
        return scale * jax.random.normal(k, shape, dtype=jnp.float32)

    return {
        # conv weights in PyTorch (C_out, C_in, kh, kw) layout
        "conv1_w": nrm(keys[0], (16, 3, 5, 5)),
        "conv1_b": nrm(keys[1], (16,)),   # cancelled by train-mode BN (unused in kernel)
        "bn1_g": jnp.ones((16,), jnp.float32),
        "bn1_b": jnp.zeros((16,), jnp.float32),
        "conv2_w": nrm(keys[2], (32, 16, 5, 5)),
        "conv2_b": nrm(keys[3], (32,)),   # cancelled
        "bn2_g": jnp.ones((32,), jnp.float32),
        "bn2_b": jnp.zeros((32,), jnp.float32),
        "conv3_w": nrm(keys[4], (32, 32, 5, 5)),
        "conv3_b": nrm(keys[5], (32,)),   # cancelled
        "bn3_g": jnp.ones((32,), jnp.float32),
        "bn3_b": jnp.zeros((32,), jnp.float32),
        # head weight stored as (linear_in, outputs); rows follow PyTorch's
        # (c, h, w) flatten order of the NCHW feature map (== head.weight.T).
        "head_w": nrm(keys[6], (linear_in, outputs)),
        "head_b": nrm(keys[7], (outputs,)),
    }


if __name__ == "__main__":
    # Shapes consistent with the module: 40x40 screen -> 2x2x32 features -> 4 actions.
    N, H, W, OUTPUTS = 2, 40, 40, 4
    key = jax.random.PRNGKey(0)
    k_x, k_p = jax.random.split(key)
    x = jax.random.normal(k_x, (N, 3, H, W), dtype=jnp.float32)   # NCHW input, like PyTorch
    params = init_params(k_p, H, W, OUTPUTS)

    forward = build_dqn_forward(params, H, W, OUTPUTS)
    out = jax.block_until_ready(forward(x))
    assert out.shape == (N, OUTPUTS), out.shape
    print("KERNEL_OK")
</pallas_src>

<mosaic_0001>
module attributes {stable_mosaic.version = 11 : i64} {
  func.func @_dqn_kernel(%arg0: memref<4x20x128xf32, #tpu.memory_space<vmem>>, %arg1: memref<5x128x384xf32, #tpu.memory_space<vmem>>, %arg2: memref<384x16xf32, #tpu.memory_space<vmem>>, %arg3: memref<16x384xf32, #tpu.memory_space<vmem>>, %arg4: memref<1x16xf32, #tpu.memory_space<vmem>>, %arg5: memref<1x16xf32, #tpu.memory_space<vmem>>, %arg6: memref<9x18xf32, #tpu.memory_space<vmem>>, %arg7: memref<9x18xf32, #tpu.memory_space<vmem>>, %arg8: memref<5x384x256xf32, #tpu.memory_space<vmem>>, %arg9: memref<256x32xf32, #tpu.memory_space<vmem>>, %arg10: memref<32x256xf32, #tpu.memory_space<vmem>>, %arg11: memref<1x32xf32, #tpu.memory_space<vmem>>, %arg12: memref<1x32xf32, #tpu.memory_space<vmem>>, %arg13: memref<4x7xf32, #tpu.memory_space<vmem>>, %arg14: memref<4x7xf32, #tpu.memory_space<vmem>>, %arg15: memref<5x256x128xf32, #tpu.memory_space<vmem>>, %arg16: memref<128x32xf32, #tpu.memory_space<vmem>>, %arg17: memref<32x128xf32, #tpu.memory_space<vmem>>, %arg18: memref<1x32xf32, #tpu.memory_space<vmem>>, %arg19: memref<1x32xf32, #tpu.memory_space<vmem>>, %arg20: memref<2x128x128xf32, #tpu.memory_space<vmem>>, %arg21: memref<1x128xf32, #tpu.memory_space<vmem>>, %arg22: memref<2x1x128xf32, #tpu.memory_space<vmem>>, %arg23: memref<4x9x384xf32, #tpu.memory_space<vmem>>, %arg24: memref<4x4x256xf32, #tpu.memory_space<vmem>>) attributes {dimension_semantics = [], scalar_prefetch = 0 : i64, scratch_operands = 2 : i64, tpu.core_type = #tpu.core_type<tc>} {
    %c0 = arith.constant 0 : index
    %c0_0 = arith.constant 0 : index
    %c0_1 = arith.constant 0 : index
    %0 = vector.load %arg1[%c0, %c0_0, %c0_1] : memref<5x128x384xf32, #tpu.memory_space<vmem>>, vector<1x128x384xf32>
    %1 = vector.shape_cast %0 : vector<1x128x384xf32> to vector<128x384xf32>
    %c0_2 = arith.constant 0 : index
    %c0_3 = arith.constant 0 : index
    %c0_4 = arith.constant 0 : index
    %2 = vector.load %arg0[%c0_2, %c0_3, %c0_4] : memref<4x20x128xf32, #tpu.memory_space<vmem>>, vector<1x20x128xf32>
    %3 = vector.shape_cast %2 : vector<1x20x128xf32> to vector<20x128xf32>
    %4 = vector.extract_strided_slice %3 {offsets = [0, 0], sizes = [18, 128], strides = [1, 1]} : vector<20x128xf32> to vector<18x128xf32>
    %cst = arith.constant dense<0.000000e+00> : vector<18x384xf32>
    %5 = tpu.matmul %4, %1, %cst {dimension_numbers = #tpu.dot_dimension_numbers<[1], [0], [0], [1], [0, 0, 1, 1], [], []>} : vector<18x128xf32>, vector<128x384xf32>, vector<18x384xf32> -> vector<18x384xf32>
    %c2 = arith.constant 2 : index
    %c0_5 = arith.constant 0 : index
    %c0_6 = arith.constant 0 : index
    %6 = vector.load %arg0[%c2, %c0_5, %c0_6] : memref<4x20x128xf32, #tpu.memory_space<vmem>>, vector<1x20x128xf32>
    %7 = vector.shape_cast %6 : vector<1x20x128xf32> to vector<20x128xf32>
    %8 = vector.extract_strided_slice %7 {offsets = [0, 0], sizes = [18, 128], strides = [1, 1]} : vector<20x128xf32> to vector<18x128xf32>
    %cst_7 = arith.constant dense<0.000000e+00> : vector<18x384xf32>
    %9 = tpu.matmul %8, %1, %cst_7 {dimension_numbers = #tpu.dot_dimension_numbers<[1], [0], [0], [1], [0, 0, 1, 1], [], []>} : vector<18x128xf32>, vector<128x384xf32>, vector<18x384xf32> -> vector<18x384xf32>
    %c1 = arith.constant 1 : index
    %c0_8 = arith.constant 0 : index
    %c0_9 = arith.constant 0 : index
    %10 = vector.load %arg1[%c1, %c0_8, %c0_9] : memref<5x128x384xf32, #tpu.memory_space<vmem>>, vector<1x128x384xf32>
    %11 = vector.shape_cast %10 : vector<1x128x384xf32> to vector<128x384xf32>
    %c1_10 = arith.constant 1 : index
    %c0_11 = arith.constant 0 : index
    %c0_12 = arith.constant 0 : index
    %12 = vector.load %arg0[%c1_10, %c0_11, %c0_12] : memref<4x20x128xf32, #tpu.memory_space<vmem>>, vector<1x20x128xf32>
    %13 = vector.shape_cast %12 : vector<1x20x128xf32> to vector<20x128xf32>
    %14 = vector.extract_strided_slice %13 {offsets = [0, 0], sizes = [18, 128], strides = [1, 1]} : vector<20x128xf32> to vector<18x128xf32>
    %cst_13 = arith.constant dense<0.000000e+00> : vector<18x384xf32>
    %15 = tpu.matmul %14, %11, %cst_13 {dimension_numbers = #tpu.dot_dimension_numbers<[1], [0], [0], [1], [0, 0, 1, 1], [], []>} : vector<18x128xf32>, vector<128x384xf32>, vector<18x384xf32> -> vector<18x384xf32>
    %16 = arith.addf %5, %15 : vector<18x384xf32>
    %c3 = arith.constant 3 : index
    %c0_14 = arith.constant 0 : index
    %c0_15 = arith.constant 0 : index
    %17 = vector.load %arg0[%c3, %c0_14, %c0_15] : memref<4x20x128xf32, #tpu.memory_space<vmem>>, vector<1x20x128xf32>
    %18 = vector.shape_cast %17 : vector<1x20x128xf32> to vector<20x128xf32>
    %19 = vector.extract_strided_slice %18 {offsets = [0, 0], sizes = [18, 128], strides = [1, 1]} : vector<20x128xf32> to vector<18x128xf32>
    %cst_16 = arith.constant dense<0.000000e+00> : vector<18x384xf32>
    %20 = tpu.matmul %19, %11, %cst_16 {dimension_numbers = #tpu.dot_dimension_numbers<[1], [0], [0], [1], [0, 0, 1, 1], [], []>} : vector<18x128xf32>, vector<128x384xf32>, vector<18x384xf32> -> vector<18x384xf32>
    %21 = arith.addf %9, %20 : vector<18x384xf32>
    %c2_17 = arith.constant 2 : index
    %c0_18 = arith.constant 0 : index
    %c0_19 = arith.constant 0 : index
    %22 = vector.load %arg1[%c2_17, %c0_18, %c0_19] : memref<5x128x384xf32, #tpu.memory_space<vmem>>, vector<1x128x384xf32>
    %23 = vector.shape_cast %22 : vector<1x128x384xf32> to vector<128x384xf32>
    %c0_20 = arith.constant 0 : index
    %c0_21 = arith.constant 0 : index
    %c0_22 = arith.constant 0 : index
    %24 = vector.load %arg0[%c0_20, %c0_21, %c0_22] : memref<4x20x128xf32, #tpu.memory_space<vmem>>, vector<1x20x128xf32>
    %25 = vector.shape_cast %24 : vector<1x20x128xf32> to vector<20x128xf32>
    %26 = vector.extract_strided_slice %25 {offsets = [1, 0], sizes = [18, 128], strides = [1, 1]} : vector<20x128xf32> to vector<18x128xf32>
    %cst_23 = arith.constant dense<0.000000e+00> : vector<18x384xf32>
    %27 = tpu.matmul %26, %23, %cst_23 {dimension_numbers = #tpu.dot_dimension_numbers<[1], [0], [0], [1], [0, 0, 1, 1], [], []>} : vector<18x128xf32>, vector<128x384xf32>, vector<18x384xf32> -> vector<18x384xf32>
    %28 = arith.addf %16, %27 : vector<18x384xf32>
    %c2_24 = arith.constant 2 : index
    %c0_25 = arith.constant 0 : index
    %c0_26 = arith.constant 0 : index
    %29 = vector.load %arg0[%c2_24, %c0_25, %c0_26] : memref<4x20x128xf32, #tpu.memory_space<vmem>>, vector<1x20x128xf32>
    %30 = vector.shape_cast %29 : vector<1x20x128xf32> to vector<20x128xf32>
    %31 = vector.extract_strided_slice %30 {offsets = [1, 0], sizes = [18, 128], strides = [1, 1]} : vector<20x128xf32> to vector<18x128xf32>
    %cst_27 = arith.constant dense<0.000000e+00> : vector<18x384xf32>
    %32 = tpu.matmul %31, %23, %cst_27 {dimension_numbers = #tpu.dot_dimension_numbers<[1], [0], [0], [1], [0, 0, 1, 1], [], []>} : vector<18x128xf32>, vector<128x384xf32>, vector<18x384xf32> -> vector<18x384xf32>
    %33 = arith.addf %21, %32 : vector<18x384xf32>
    %c3_28 = arith.constant 3 : index
    %c0_29 = arith.constant 0 : index
    %c0_30 = arith.constant 0 : index
    %34 = vector.load %arg1[%c3_28, %c0_29, %c0_30] : memref<5x128x384xf32, #tpu.memory_space<vmem>>, vector<1x128x384xf32>
    %35 = vector.shape_cast %34 : vector<1x128x384xf32> to vector<128x384xf32>
    %c1_31 = arith.constant 1 : index
    %c0_32 = arith.constant 0 : index
    %c0_33 = arith.constant 0 : index
    %36 = vector.load %arg0[%c1_31, %c0_32, %c0_33] : memref<4x20x128xf32, #tpu.memory_space<vmem>>, vector<1x20x128xf32>
    %37 = vector.shape_cast %36 : vector<1x20x128xf32> to vector<20x128xf32>
    %38 = vector.extract_strided_slice %37 {offsets = [1, 0], sizes = [18, 128], strides = [1, 1]} : vector<20x128xf32> to vector<18x128xf32>
    %cst_34 = arith.constant dense<0.000000e+00> : vector<18x384xf32>
    %39 = tpu.matmul %38, %35, %cst_34 {dimension_numbers = #tpu.dot_dimension_numbers<[1], [0], [0], [1], [0, 0, 1, 1], [], []>} : vector<18x128xf32>, vector<128x384xf32>, vector<18x384xf32> -> vector<18x384xf32>
    %40 = arith.addf %28, %39 : vector<18x384xf32>
    %c3_35 = arith.constant 3 : index
    %c0_36 = arith.constant 0 : index
    %c0_37 = arith.constant 0 : index
    %41 = vector.load %arg0[%c3_35, %c0_36, %c0_37] : memref<4x20x128xf32, #tpu.memory_space<vmem>>, vector<1x20x128xf32>
    %42 = vector.shape_cast %41 : vector<1x20x128xf32> to vector<20x128xf32>
    %43 = vector.extract_strided_slice %42 {offsets = [1, 0], sizes = [18, 128], strides = [1, 1]} : vector<20x128xf32> to vector<18x128xf32>
    %cst_38 = arith.constant dense<0.000000e+00> : vector<18x384xf32>
    %44 = tpu.matmul %43, %35, %cst_38 {dimension_numbers = #tpu.dot_dimension_numbers<[1], [0], [0], [1], [0, 0, 1, 1], [], []>} : vector<18x128xf32>, vector<128x384xf32>, vector<18x384xf32> -> vector<18x384xf32>
    %45 = arith.addf %33, %44 : vector<18x384xf32>
    %c4 = arith.constant 4 : index
    %c0_39 = arith.constant 0 : index
    %c0_40 = arith.constant 0 : index
    %46 = vector.load %arg1[%c4, %c0_39, %c0_40] : memref<5x128x384xf32, #tpu.memory_space<vmem>>, vector<1x128x384xf32>
    %47 = vector.shape_cast %46 : vector<1x128x384xf32> to vector<128x384xf32>
    %c0_41 = arith.constant 0 : index
    %c0_42 = arith.constant 0 : index
    %c0_43 = arith.constant 0 : index
    %48 = vector.load %arg0[%c0_41, %c0_42, %c0_43] : memref<4x20x128xf32, #tpu.memory_space<vmem>>, vector<1x20x128xf32>
    %49 = vector.shape_cast %48 : vector<1x20x128xf32> to vector<20x128xf32>
    %50 = vector.extract_strided_slice %49 {offsets = [2, 0], sizes = [18, 128], strides = [1, 1]} : vector<20x128xf32> to vector<18x128xf32>
    %cst_44 = arith.constant dense<0.000000e+00> : vector<18x384xf32>
    %51 = tpu.matmul %50, %47, %cst_44 {dimension_numbers = #tpu.dot_dimension_numbers<[1], [0], [0], [1], [0, 0, 1, 1], [], []>} : vector<18x128xf32>, vector<128x384xf32>, vector<18x384xf32> -> vector<18x384xf32>
    %52 = arith.addf %40, %51 : vector<18x384xf32>
    %c2_45 = arith.constant 2 : index
    %c0_46 = arith.constant 0 : index
    %c0_47 = arith.constant 0 : index
    %53 = vector.load %arg0[%c2_45, %c0_46, %c0_47] : memref<4x20x128xf32, #tpu.memory_space<vmem>>, vector<1x20x128xf32>
    %54 = vector.shape_cast %53 : vector<1x20x128xf32> to vector<20x128xf32>
    %55 = vector.extract_strided_slice %54 {offsets = [2, 0], sizes = [18, 128], strides = [1, 1]} : vector<20x128xf32> to vector<18x128xf32>
    %cst_48 = arith.constant dense<0.000000e+00> : vector<18x384xf32>
    %56 = tpu.matmul %55, %47, %cst_48 {dimension_numbers = #tpu.dot_dimension_numbers<[1], [0], [0], [1], [0, 0, 1, 1], [], []>} : vector<18x128xf32>, vector<128x384xf32>, vector<18x384xf32> -> vector<18x384xf32>
    %57 = arith.addf %45, %56 : vector<18x384xf32>
    %cst_49 = arith.constant dense<0.000000e+00> : vector<384xf32>
    %58 = vector.multi_reduction <add>, %52, %cst_49 [0] : vector<18x384xf32> to vector<384xf32>
    %59 = vector.shape_cast %58 : vector<384xf32> to vector<1x384xf32>
    %60 = arith.mulf %52, %52 : vector<18x384xf32>
    %cst_50 = arith.constant dense<0.000000e+00> : vector<384xf32>
    %61 = vector.multi_reduction <add>, %60, %cst_50 [0] : vector<18x384xf32> to vector<384xf32>
    %62 = vector.shape_cast %61 : vector<384xf32> to vector<1x384xf32>
    %cst_51 = arith.constant dense<0.000000e+00> : vector<384xf32>
    %63 = vector.multi_reduction <add>, %57, %cst_51 [0] : vector<18x384xf32> to vector<384xf32>
    %64 = vector.shape_cast %63 : vector<384xf32> to vector<1x384xf32>
    %65 = arith.mulf %57, %57 : vector<18x384xf32>
    %cst_52 = arith.constant dense<0.000000e+00> : vector<384xf32>
    %66 = vector.multi_reduction <add>, %65, %cst_52 [0] : vector<18x384xf32> to vector<384xf32>
    %67 = vector.shape_cast %66 : vector<384xf32> to vector<1x384xf32>
    %68 = arith.addf %59, %64 : vector<1x384xf32>
    %69 = arith.addf %62, %67 : vector<1x384xf32>
    %c0_53 = arith.constant 0 : index
    %c0_54 = arith.constant 0 : index
    %70 = vector.load %arg2[%c0_53, %c0_54] : memref<384x16xf32, #tpu.memory_space<vmem>>, vector<384x16xf32>
    %cst_55 = arith.constant dense<0.000000e+00> : vector<1x16xf32>
    %71 = tpu.matmul %68, %70, %cst_55 {dimension_numbers = #tpu.dot_dimension_numbers<[1], [0], [0], [1], [0, 0, 1, 1], [], []>} : vector<1x384xf32>, vector<384x16xf32>, vector<1x16xf32> -> vector<1x16xf32>
    %c0_56 = arith.constant 0 : index
    %c0_57 = arith.constant 0 : index
    %72 = vector.load %arg2[%c0_56, %c0_57] : memref<384x16xf32, #tpu.memory_space<vmem>>, vector<384x16xf32>
    %cst_58 = arith.constant dense<0.000000e+00> : vector<1x16xf32>
    %73 = tpu.matmul %69, %72, %cst_58 {dimension_numbers = #tpu.dot_dimension_numbers<[1], [0], [0], [1], [0, 0, 1, 1], [], []>} : vector<1x384xf32>, vector<384x16xf32>, vector<1x16xf32> -> vector<1x16xf32>
    %cst_59 = arith.constant 0.00154320989 : f32
    %74 = vector.broadcast %cst_59 : f32 to vector<1x16xf32>
    %75 = arith.mulf %71, %74 : vector<1x16xf32>
    %cst_60 = arith.constant 0.00154320989 : f32
    %76 = vector.broadcast %cst_60 : f32 to vector<1x16xf32>
    %77 = arith.mulf %73, %76 : vector<1x16xf32>
    %78 = arith.mulf %75, %75 : vector<1x16xf32>
    %79 = arith.subf %77, %78 : vector<1x16xf32>
    %c0_61 = arith.constant 0 : index
    %c0_62 = arith.constant 0 : index
    %80 = vector.load %arg4[%c0_61, %c0_62] : memref<1x16xf32, #tpu.memory_space<vmem>>, vector<1x16xf32>
    %cst_63 = arith.constant 9.99999974E-6 : f32
    %81 = vector.broadcast %cst_63 : f32 to vector<1x16xf32>
    %82 = arith.addf %79, %81 : vector<1x16xf32>
    %83 = math.rsqrt %82 : vector<1x16xf32>
    %84 = arith.mulf %80, %83 : vector<1x16xf32>
    %c0_64 = arith.constant 0 : index
    %c0_65 = arith.constant 0 : index
    %85 = vector.load %arg5[%c0_64, %c0_65] : memref<1x16xf32, #tpu.memory_space<vmem>>, vector<1x16xf32>
    %86 = arith.mulf %75, %84 : vector<1x16xf32>
    %87 = arith.subf %85, %86 : vector<1x16xf32>
    %c0_66 = arith.constant 0 : index
    %c0_67 = arith.constant 0 : index
    %88 = vector.load %arg3[%c0_66, %c0_67] : memref<16x384xf32, #tpu.memory_space<vmem>>, vector<16x384xf32>
    %cst_68 = arith.constant dense<0.000000e+00> : vector<1x384xf32>
    %89 = tpu.matmul %84, %88, %cst_68 {dimension_numbers = #tpu.dot_dimension_numbers<[1], [0], [0], [1], [0, 0, 1, 1], [], []>} : vector<1x16xf32>, vector<16x384xf32>, vector<1x384xf32> -> vector<1x384xf32>
    %c0_69 = arith.constant 0 : index
    %c0_70 = arith.constant 0 : index
    %90 = vector.load %arg3[%c0_69, %c0_70] : memref<16x384xf32, #tpu.memory_space<vmem>>, vector<16x384xf32>
    %cst_71 = arith.constant dense<0.000000e+00> : vector<1x384xf32>
    %91 = tpu.matmul %87, %90, %cst_71 {dimension_numbers = #tpu.dot_dimension_numbers<[1], [0], [0], [1], [0, 0, 1, 1], [], []>} : vector<1x16xf32>, vector<16x384xf32>, vector<1x384xf32> -> vector<1x384xf32>
    %92 = vector.broadcast %89 : vector<1x384xf32> to vector<18x384xf32>
    %93 = arith.mulf %52, %92 : vector<18x384xf32>
    %94 = vector.broadcast %91 : vector<1x384xf32> to vector<18x384xf32>
    %95 = arith.addf %93, %94 : vector<18x384xf32>
    %cst_72 = arith.constant 0.000000e+00 : f32
    %96 = vector.broadcast %cst_72 : f32 to vector<18x384xf32>
    %97 = arith.maximumf %95, %96 : vector<18x384xf32>
    %98 = vector.broadcast %89 : vector<1x384xf32> to vector<18x384xf32>
    %99 = arith.mulf %57, %98 : vector<18x384xf32>
    %100 = vector.broadcast %91 : vector<1x384xf32> to vector<18x384xf32>
    %101 = arith.addf %99, %100 : vector<18x384xf32>
    %cst_73 = arith.constant 0.000000e+00 : f32
    %102 = vector.broadcast %cst_73 : f32 to vector<18x384xf32>
    %103 = arith.maximumf %101, %102 : vector<18x384xf32>
    %c0_74 = arith.constant 0 : index
    %c0_75 = arith.constant 0 : index
    %104 = vector.load %arg6[%c0_74, %c0_75] : memref<9x18xf32, #tpu.memory_space<vmem>>, vector<9x18xf32>
    %cst_76 = arith.constant dense<0.000000e+00> : vector<9x384xf32>
    %105 = tpu.matmul %104, %97, %cst_76 {dimension_numbers = #tpu.dot_dimension_numbers<[1], [0], [0], [1], [0, 0, 1, 1], [], []>} : vector<9x18xf32>, vector<18x384xf32>, vector<9x384xf32> -> vector<9x384xf32>
    %c0_77 = arith.constant 0 : index
    %c0_78 = arith.constant 0 : index
    %c0_79 = arith.constant 0 : index
    %106 = vector.load %arg23[%c0_77, %c0_78, %c0_79] : memref<4x9x384xf32, #tpu.memory_space<vmem>>, vector<1x9x384xf32>
    %107 = vector.shape_cast %106 : vector<1x9x384xf32> to vector<9x384xf32>
    %108 = vector.shape_cast %105 : vector<9x384xf32> to vector<1x9x384xf32>
    tpu.vector_store %arg23[%c0_77, %c0_78, %c0_79], %108 {strides = array<i32>} : memref<4x9x384xf32, #tpu.memory_space<vmem>>, vector<1x9x384xf32>,
    %c0_80 = arith.constant 0 : index
    %c0_81 = arith.constant 0 : index
    %109 = vector.load %arg7[%c0_80, %c0_81] : memref<9x18xf32, #tpu.memory_space<vmem>>, vector<9x18xf32>
    %cst_82 = arith.constant dense<0.000000e+00> : vector<9x384xf32>
    %110 = tpu.matmul %109, %97, %cst_82 {dimension_numbers = #tpu.dot_dimension_numbers<[1], [0], [0], [1], [0, 0, 1, 1], [], []>} : vector<9x18xf32>, vector<18x384xf32>, vector<9x384xf32> -> vector<9x384xf32>
    %c1_83 = arith.constant 1 : index
    %c0_84 = arith.constant 0 : index
    %c0_85 = arith.constant 0 : index
    %111 = vector.load %arg23[%c1_83, %c0_84, %c0_85] : memref<4x9x384xf32, #tpu.memory_space<vmem>>, vector<1x9x384xf32>
    %112 = vector.shape_cast %111 : vector<1x9x384xf32> to vector<9x384xf32>
    %113 = vector.shape_cast %110 : vector<9x384xf32> to vector<1x9x384xf32>
    tpu.vector_store %arg23[%c1_83, %c0_84, %c0_85], %113 {strides = array<i32>} : memref<4x9x384xf32, #tpu.memory_space<vmem>>, vector<1x9x384xf32>,
    %c0_86 = arith.constant 0 : index
    %c0_87 = arith.constant 0 : index
    %114 = vector.load %arg6[%c0_86, %c0_87] : memref<9x18xf32, #tpu.memory_space<vmem>>, vector<9x18xf32>
    %cst_88 = arith.constant dense<0.000000e+00> : vector<9x384xf32>
    %115 = tpu.matmul %114, %103, %cst_88 {dimension_numbers = #tpu.dot_dimension_numbers<[1], [0], [0], [1], [0, 0, 1, 1], [], []>} : vector<9x18xf32>, vector<18x384xf32>, vector<9x384xf32> -> vector<9x384xf32>
    %c2_89 = arith.constant 2 : index
    %c0_90 = arith.constant 0 : index
    %c0_91 = arith.constant 0 : index
    %116 = vector.load %arg23[%c2_89, %c0_90, %c0_91] : memref<4x9x384xf32, #tpu.memory_space<vmem>>, vector<1x9x384xf32>
    %117 = vector.shape_cast %116 : vector<1x9x384xf32> to vector<9x384xf32>
    %118 = vector.shape_cast %115 : vector<9x384xf32> to vector<1x9x384xf32>
    tpu.vector_store %arg23[%c2_89, %c0_90, %c0_91], %118 {strides = array<i32>} : memref<4x9x384xf32, #tpu.memory_space<vmem>>, vector<1x9x384xf32>,
    %c0_92 = arith.constant 0 : index
    %c0_93 = arith.constant 0 : index
    %119 = vector.load %arg7[%c0_92, %c0_93] : memref<9x18xf32, #tpu.memory_space<vmem>>, vector<9x18xf32>
    %cst_94 = arith.constant dense<0.000000e+00> : vector<9x384xf32>
    %120 = tpu.matmul %119, %103, %cst_94 {dimension_numbers = #tpu.dot_dimension_numbers<[1], [0], [0], [1], [0, 0, 1, 1], [], []>} : vector<9x18xf32>, vector<18x384xf32>, vector<9x384xf32> -> vector<9x384xf32>
    %c3_95 = arith.constant 3 : index
    %c0_96 = arith.constant 0 : index
    %c0_97 = arith.constant 0 : index
    %121 = vector.load %arg23[%c3_95, %c0_96, %c0_97] : memref<4x9x384xf32, #tpu.memory_space<vmem>>, vector<1x9x384xf32>
    %122 = vector.shape_cast %121 : vector<1x9x384xf32> to vector<9x384xf32>
    %123 = vector.shape_cast %120 : vector<9x384xf32> to vector<1x9x384xf32>
    tpu.vector_store %arg23[%c3_95, %c0_96, %c0_97], %123 {strides = array<i32>} : memref<4x9x384xf32, #tpu.memory_space<vmem>>, vector<1x9x384xf32>,
    %c0_98 = arith.constant 0 : index
    %c0_99 = arith.constant 0 : index
    %c0_100 = arith.constant 0 : index
    %124 = vector.load %arg8[%c0_98, %c0_99, %c0_100] : memref<5x384x256xf32, #tpu.memory_space<vmem>>, vector<1x384x256xf32>
    %125 = vector.shape_cast %124 : vector<1x384x256xf32> to vector<384x256xf32>
    %c0_101 = arith.constant 0 : index
    %c0_102 = arith.constant 0 : index
    %c0_103 = arith.constant 0 : index
    %126 = vector.load %arg23[%c0_101, %c0_102, %c0_103] : memref<4x9x384xf32, #tpu.memory_space<vmem>>, vector<1x9x384xf32>
    %127 = vector.shape_cast %126 : vector<1x9x384xf32> to vector<9x384xf32>
    %128 = vector.extract_strided_slice %127 {offsets = [0, 0], sizes = [7, 384], strides = [1, 1]} : vector<9x384xf32> to vector<7x384xf32>
    %cst_104 = arith.constant dense<0.000000e+00> : vector<7x256xf32>
    %129 = tpu.matmul %128, %125, %cst_104 {dimension_numbers = #tpu.dot_dimension_numbers<[1], [0], [0], [1], [0, 0, 1, 1], [], []>} : vector<7x384xf32>, vector<384x256xf32>, vector<7x256xf32> -> vector<7x256xf32>
    %c2_105 = arith.constant 2 : index
    %c0_106 = arith.constant 0 : index
    %c0_107 = arith.constant 0 : index
    %130 = vector.load %arg23[%c2_105, %c0_106, %c0_107] : memref<4x9x384xf32, #tpu.memory_space<vmem>>, vector<1x9x384xf32>
    %131 = vector.shape_cast %130 : vector<1x9x384xf32> to vector<9x384xf32>
    %132 = vector.extract_strided_slice %131 {offsets = [0, 0], sizes = [7, 384], strides = [1, 1]} : vector<9x384xf32> to vector<7x384xf32>
    %cst_108 = arith.constant dense<0.000000e+00> : vector<7x256xf32>
    %133 = tpu.matmul %132, %125, %cst_108 {dimension_numbers = #tpu.dot_dimension_numbers<[1], [0], [0], [1], [0, 0, 1, 1], [], []>} : vector<7x384xf32>, vector<384x256xf32>, vector<7x256xf32> -> vector<7x256xf32>
    %c1_109 = arith.constant 1 : index
    %c0_110 = arith.constant 0 : index
    %c0_111 = arith.constant 0 : index
    %134 = vector.load %arg8[%c1_109, %c0_110, %c0_111] : memref<5x384x256xf32, #tpu.memory_space<vmem>>, vector<1x384x256xf32>
    %135 = vector.shape_cast %134 : vector<1x384x256xf32> to vector<384x256xf32>
    %c1_112 = arith.constant 1 : index
    %c0_113 = arith.constant 0 : index
    %c0_114 = arith.constant 0 : index
    %136 = vector.load %arg23[%c1_112, %c0_113, %c0_114] : memref<4x9x384xf32, #tpu.memory_space<vmem>>, vector<1x9x384xf32>
    %137 = vector.shape_cast %136 : vector<1x9x384xf32> to vector<9x384xf32>
    %138 = vector.extract_strided_slice %137 {offsets = [0, 0], sizes = [7, 384], strides = [1, 1]} : vector<9x384xf32> to vector<7x384xf32>
    %cst_115 = arith.constant dense<0.000000e+00> : vector<7x256xf32>
    %139 = tpu.matmul %138, %135, %cst_115 {dimension_numbers = #tpu.dot_dimension_numbers<[1], [0], [0], [1], [0, 0, 1, 1], [], []>} : vector<7x384xf32>, vector<384x256xf32>, vector<7x256xf32> -> vector<7x256xf32>
    %140 = arith.addf %129, %139 : vector<7x256xf32>
    %c3_116 = arith.constant 3 : index
    %c0_117 = arith.constant 0 : index
    %c0_118 = arith.constant 0 : index
    %141 = vector.load %arg23[%c3_116, %c0_117, %c0_118] : memref<4x9x384xf32, #tpu.memory_space<vmem>>, vector<1x9x384xf32>
    %142 = vector.shape_cast %141 : vector<1x9x384xf32> to vector<9x384xf32>
    %143 = vector.extract_strided_slice %142 {offsets = [0, 0], sizes = [7, 384], strides = [1, 1]} : vector<9x384xf32> to vector<7x384xf32>
    %cst_119 = arith.constant dense<0.000000e+00> : vector<7x256xf32>
    %144 = tpu.matmul %143, %135, %cst_119 {dimension_numbers = #tpu.dot_dimension_numbers<[1], [0], [0], [1], [0, 0, 1, 1], [], []>} : vector<7x384xf32>, vector<384x256xf32>, vector<7x256xf32> -> vector<7x256xf32>
    %145 = arith.addf %133, %144 : vector<7x256xf32>
    %c2_120 = arith.constant 2 : index
    %c0_121 = arith.constant 0 : index
    %c0_122 = arith.constant 0 : index
    %146 = vector.load %arg8[%c2_120, %c0_121, %c0_122] : memref<5x384x256xf32, #tpu.memory_space<vmem>>, vector<1x384x256xf32>
    %147 = vector.shape_cast %146 : vector<1x384x256xf32> to vector<384x256xf32>
    %c0_123 = arith.constant 0 : index
    %c0_124 = arith.constant 0 : index
    %c0_125 = arith.constant 0 : index
    %148 = vector.load %arg23[%c0_123, %c0_124, %c0_125] : memref<4x9x384xf32, #tpu.memory_space<vmem>>, vector<1x9x384xf32>
    %149 = vector.shape_cast %148 : vector<1x9x384xf32> to vector<9x384xf32>
    %150 = vector.extract_strided_slice %149 {offsets = [1, 0], sizes = [7, 384], strides = [1, 1]} : vector<9x384xf32> to vector<7x384xf32>
    %cst_126 = arith.constant dense<0.000000e+00> : vector<7x256xf32>
    %151 = tpu.matmul %150, %147, %cst_126 {dimension_numbers = #tpu.dot_dimension_numbers<[1], [0], [0], [1], [0, 0, 1, 1], [], []>} : vector<7x384xf32>, vector<384x256xf32>, vector<7x256xf32> -> vector<7x256xf32>
    %152 = arith.addf %140, %151 : vector<7x256xf32>
    %c2_127 = arith.constant 2 : index
    %c0_128 = arith.constant 0 : index
    %c0_129 = arith.constant 0 : index
    %153 = vector.load %arg23[%c2_127, %c0_128, %c0_129] : memref<4x9x384xf32, #tpu.memory_space<vmem>>, vector<1x9x384xf32>
    %154 = vector.shape_cast %153 : vector<1x9x384xf32> to vector<9x384xf32>
    %155 = vector.extract_strided_slice %154 {offsets = [1, 0], sizes = [7, 384], strides = [1, 1]} : vector<9x384xf32> to vector<7x384xf32>
    %cst_130 = arith.constant dense<0.000000e+00> : vector<7x256xf32>
    %156 = tpu.matmul %155, %147, %cst_130 {dimension_numbers = #tpu.dot_dimension_numbers<[1], [0], [0], [1], [0, 0, 1, 1], [], []>} : vector<7x384xf32>, vector<384x256xf32>, vector<7x256xf32> -> vector<7x256xf32>
    %157 = arith.addf %145, %156 : vector<7x256xf32>
    %c3_131 = arith.constant 3 : index
    %c0_132 = arith.constant 0 : index
    %c0_133 = arith.constant 0 : index
    %158 = vector.load %arg8[%c3_131, %c0_132, %c0_133] : memref<5x384x256xf32, #tpu.memory_space<vmem>>, vector<1x384x256xf32>
    %159 = vector.shape_cast %158 : vector<1x384x256xf32> to vector<384x256xf32>
    %c1_134 = arith.constant 1 : index
    %c0_135 = arith.constant 0 : index
    %c0_136 = arith.constant 0 : index
    %160 = vector.load %arg23[%c1_134, %c0_135, %c0_136] : memref<4x9x384xf32, #tpu.memory_space<vmem>>, vector<1x9x384xf32>
    %161 = vector.shape_cast %160 : vector<1x9x384xf32> to vector<9x384xf32>
    %162 = vector.extract_strided_slice %161 {offsets = [1, 0], sizes = [7, 384], strides = [1, 1]} : vector<9x384xf32> to vector<7x384xf32>
    %cst_137 = arith.constant dense<0.000000e+00> : vector<7x256xf32>
    %163 = tpu.matmul %162, %159, %cst_137 {dimension_numbers = #tpu.dot_dimension_numbers<[1], [0], [0], [1], [0, 0, 1, 1], [], []>} : vector<7x384xf32>, vector<384x256xf32>, vector<7x256xf32> -> vector<7x256xf32>
    %164 = arith.addf %152, %163 : vector<7x256xf32>
    %c3_138 = arith.constant 3 : index
    %c0_139 = arith.constant 0 : index
    %c0_140 = arith.constant 0 : index
    %165 = vector.load %arg23[%c3_138, %c0_139, %c0_140] : memref<4x9x384xf32, #tpu.memory_space<vmem>>, vector<1x9x384xf32>
    %166 = vector.shape_cast %165 : vector<1x9x384xf32> to vector<9x384xf32>
    %167 = vector.extract_strided_slice %166 {offsets = [1, 0], sizes = [7, 384], strides = [1, 1]} : vector<9x384xf32> to vector<7x384xf32>
    %cst_141 = arith.constant dense<0.000000e+00> : vector<7x256xf32>
    %168 = tpu.matmul %167, %159, %cst_141 {dimension_numbers = #tpu.dot_dimension_numbers<[1], [0], [0], [1], [0, 0, 1, 1], [], []>} : vector<7x384xf32>, vector<384x256xf32>, vector<7x256xf32> -> vector<7x256xf32>
    %169 = arith.addf %157, %168 : vector<7x256xf32>
    %c4_142 = arith.constant 4 : index
    %c0_143 = arith.constant 0 : index
    %c0_144 = arith.constant 0 : index
    %170 = vector.load %arg8[%c4_142, %c0_143, %c0_144] : memref<5x384x256xf32, #tpu.memory_space<vmem>>, vector<1x384x256xf32>
    %171 = vector.shape_cast %170 : vector<1x384x256xf32> to vector<384x256xf32>
    %c0_145 = arith.constant 0 : index
    %c0_146 = arith.constant 0 : index
    %c0_147 = arith.constant 0 : index
    %172 = vector.load %arg23[%c0_145, %c0_146, %c0_147] : memref<4x9x384xf32, #tpu.memory_space<vmem>>, vector<1x9x384xf32>
    %173 = vector.shape_cast %172 : vector<1x9x384xf32> to vector<9x384xf32>
    %174 = vector.extract_strided_slice %173 {offsets = [2, 0], sizes = [7, 384], strides = [1, 1]} : vector<9x384xf32> to vector<7x384xf32>
    %cst_148 = arith.constant dense<0.000000e+00> : vector<7x256xf32>
    %175 = tpu.matmul %174, %171, %cst_148 {dimension_numbers = #tpu.dot_dimension_numbers<[1], [0], [0], [1], [0, 0, 1, 1], [], []>} : vector<7x384xf32>, vector<384x256xf32>, vector<7x256xf32> -> vector<7x256xf32>
    %176 = arith.addf %164, %175 : vector<7x256xf32>
    %c2_149 = arith.constant 2 : index
    %c0_150 = arith.constant 0 : index
    %c0_151 = arith.constant 0 : index
    %177 = vector.load %arg23[%c2_149, %c0_150, %c0_151] : memref<4x9x384xf32, #tpu.memory_space<vmem>>, vector<1x9x384xf32>
    %178 = vector.shape_cast %177 : vector<1x9x384xf32> to vector<9x384xf32>
    %179 = vector.extract_strided_slice %178 {offsets = [2, 0], sizes = [7, 384], strides = [1, 1]} : vector<9x384xf32> to vector<7x384xf32>
    %cst_152 = arith.constant dense<0.000000e+00> : vector<7x256xf32>
    %180 = tpu.matmul %179, %171, %cst_152 {dimension_numbers = #tpu.dot_dimension_numbers<[1], [0], [0], [1], [0, 0, 1, 1], [], []>} : vector<7x384xf32>, vector<384x256xf32>, vector<7x256xf32> -> vector<7x256xf32>
    %181 = arith.addf %169, %180 : vector<7x256xf32>
    %cst_153 = arith.constant dense<0.000000e+00> : vector<256xf32>
    %182 = vector.multi_reduction <add>, %176, %cst_153 [0] : vector<7x256xf32> to vector<256xf32>
    %183 = vector.shape_cast %182 : vector<256xf32> to vector<1x256xf32>
    %184 = arith.mulf %176, %176 : vector<7x256xf32>
    %cst_154 = arith.constant dense<0.000000e+00> : vector<256xf32>
    %185 = vector.multi_reduction <add>, %184, %cst_154 [0] : vector<7x256xf32> to vector<256xf32>
    %186 = vector.shape_cast %185 : vector<256xf32> to vector<1x256xf32>
    %cst_155 = arith.constant dense<0.000000e+00> : vector<256xf32>
    %187 = vector.multi_reduction <add>, %181, %cst_155 [0] : vector<7x256xf32> to vector<256xf32>
    %188 = vector.shape_cast %187 : vector<256xf32> to vector<1x256xf32>
    %189 = arith.mulf %181, %181 : vector<7x256xf32>
    %cst_156 = arith.constant dense<0.000000e+00> : vector<256xf32>
    %190 = vector.multi_reduction <add>, %189, %cst_156 [0] : vector<7x256xf32> to vector<256xf32>
    %191 = vector.shape_cast %190 : vector<256xf32> to vector<1x256xf32>
    %192 = arith.addf %183, %188 : vector<1x256xf32>
    %193 = arith.addf %186, %191 : vector<1x256xf32>
    %c0_157 = arith.constant 0 : index
    %c0_158 = arith.constant 0 : index
    %194 = vector.load %arg9[%c0_157, %c0_158] : memref<256x32xf32, #tpu.memory_space<vmem>>, vector<256x32xf32>
    %cst_159 = arith.constant dense<0.000000e+00> : vector<1x32xf32>
    %195 = tpu.matmul %192, %194, %cst_159 {dimension_numbers = #tpu.dot_dimension_numbers<[1], [0], [0], [1], [0, 0, 1, 1], [], []>} : vector<1x256xf32>, vector<256x32xf32>, vector<1x32xf32> -> vector<1x32xf32>
    %c0_160 = arith.constant 0 : index
    %c0_161 = arith.constant 0 : index
    %196 = vector.load %arg9[%c0_160, %c0_161] : memref<256x32xf32, #tpu.memory_space<vmem>>, vector<256x32xf32>
    %cst_162 = arith.constant dense<0.000000e+00> : vector<1x32xf32>
    %197 = tpu.matmul %193, %196, %cst_162 {dimension_numbers = #tpu.dot_dimension_numbers<[1], [0], [0], [1], [0, 0, 1, 1], [], []>} : vector<1x256xf32>, vector<256x32xf32>, vector<1x32xf32> -> vector<1x32xf32>
    %cst_163 = arith.constant 0.0102040814 : f32
    %198 = vector.broadcast %cst_163 : f32 to vector<1x32xf32>
    %199 = arith.mulf %195, %198 : vector<1x32xf32>
    %cst_164 = arith.constant 0.0102040814 : f32
    %200 = vector.broadcast %cst_164 : f32 to vector<1x32xf32>
    %201 = arith.mulf %197, %200 : vector<1x32xf32>
    %202 = arith.mulf %199, %199 : vector<1x32xf32>
    %203 = arith.subf %201, %202 : vector<1x32xf32>
    %c0_165 = arith.constant 0 : index
    %c0_166 = arith.constant 0 : index
    %204 = vector.load %arg11[%c0_165, %c0_166] : memref<1x32xf32, #tpu.memory_space<vmem>>, vector<1x32xf32>
    %cst_167 = arith.constant 9.99999974E-6 : f32
    %205 = vector.broadcast %cst_167 : f32 to vector<1x32xf32>
    %206 = arith.addf %203, %205 : vector<1x32xf32>
    %207 = math.rsqrt %206 : vector<1x32xf32>
    %208 = arith.mulf %204, %207 : vector<1x32xf32>
    %c0_168 = arith.constant 0 : index
    %c0_169 = arith.constant 0 : index
    %209 = vector.load %arg12[%c0_168, %c0_169] : memref<1x32xf32, #tpu.memory_space<vmem>>, vector<1x32xf32>
    %210 = arith.mulf %199, %208 : vector<1x32xf32>
    %211 = arith.subf %209, %210 : vector<1x32xf32>
    %c0_170 = arith.constant 0 : index
    %c0_171 = arith.constant 0 : index
    %212 = vector.load %arg10[%c0_170, %c0_171] : memref<32x256xf32, #tpu.memory_space<vmem>>, vector<32x256xf32>
    %cst_172 = arith.constant dense<0.000000e+00> : vector<1x256xf32>
    %213 = tpu.matmul %208, %212, %cst_172 {dimension_numbers = #tpu.dot_dimension_numbers<[1], [0], [0], [1], [0, 0, 1, 1], [], []>} : vector<1x32xf32>, vector<32x256xf32>, vector<1x256xf32> -> vector<1x256xf32>
    %c0_173 = arith.constant 0 : index
    %c0_174 = arith.constant 0 : index
    %214 = vector.load %arg10[%c0_173, %c0_174] : memref<32x256xf32, #tpu.memory_space<vmem>>, vector<32x256xf32>
    %cst_175 = arith.constant dense<0.000000e+00> : vector<1x256xf32>
    %215 = tpu.matmul %211, %214, %cst_175 {dimension_numbers = #tpu.dot_dimension_numbers<[1], [0], [0], [1], [0, 0, 1, 1], [], []>} : vector<1x32xf32>, vector<32x256xf32>, vector<1x256xf32> -> vector<1x256xf32>
    %216 = vector.broadcast %213 : vector<1x256xf32> to vector<7x256xf32>
    %217 = arith.mulf %176, %216 : vector<7x256xf32>
    %218 = vector.broadcast %215 : vector<1x256xf32> to vector<7x256xf32>
    %219 = arith.addf %217, %218 : vector<7x256xf32>
    %cst_176 = arith.constant 0.000000e+00 : f32
    %220 = vector.broadcast %cst_176 : f32 to vector<7x256xf32>
    %221 = arith.maximumf %219, %220 : vector<7x256xf32>
    %222 = vector.broadcast %213 : vector<1x256xf32> to vector<7x256xf32>
    %223 = arith.mulf %181, %222 : vector<7x256xf32>
    %224 = vector.broadcast %215 : vector<1x256xf32> to vector<7x256xf32>
    %225 = arith.addf %223, %224 : vector<7x256xf32>
    %cst_177 = arith.constant 0.000000e+00 : f32
    %226 = vector.broadcast %cst_177 : f32 to vector<7x256xf32>
    %227 = arith.maximumf %225, %226 : vector<7x256xf32>
    %c0_178 = arith.constant 0 : index
    %c0_179 = arith.constant 0 : index
    %228 = vector.load %arg13[%c0_178, %c0_179] : memref<4x7xf32, #tpu.memory_space<vmem>>, vector<4x7xf32>
    %cst_180 = arith.constant dense<0.000000e+00> : vector<4x256xf32>
    %229 = tpu.matmul %228, %221, %cst_180 {dimension_numbers = #tpu.dot_dimension_numbers<[1], [0], [0], [1], [0, 0, 1, 1], [], []>} : vector<4x7xf32>, vector<7x256xf32>, vector<4x256xf32> -> vector<4x256xf32>
    %c0_181 = arith.constant 0 : index
    %c0_182 = arith.constant 0 : index
    %c0_183 = arith.constant 0 : index
    %230 = vector.load %arg24[%c0_181, %c0_182, %c0_183] : memref<4x4x256xf32, #tpu.memory_space<vmem>>, vector<1x4x256xf32>
    %231 = vector.shape_cast %230 : vector<1x4x256xf32> to vector<4x256xf32>
    %232 = vector.shape_cast %229 : vector<4x256xf32> to vector<1x4x256xf32>
    tpu.vector_store %arg24[%c0_181, %c0_182, %c0_183], %232 {strides = array<i32>} : memref<4x4x256xf32, #tpu.memory_space<vmem>>, vector<1x4x256xf32>,
    %c0_184 = arith.constant 0 : index
    %c0_185 = arith.constant 0 : index
    %233 = vector.load %arg14[%c0_184, %c0_185] : memref<4x7xf32, #tpu.memory_space<vmem>>, vector<4x7xf32>
    %cst_186 = arith.constant dense<0.000000e+00> : vector<4x256xf32>
    %234 = tpu.matmul %233, %221, %cst_186 {dimension_numbers = #tpu.dot_dimension_numbers<[1], [0], [0], [1], [0, 0, 1, 1], [], []>} : vector<4x7xf32>, vector<7x256xf32>, vector<4x256xf32> -> vector<4x256xf32>
    %c1_187 = arith.constant 1 : index
    %c0_188 = arith.constant 0 : index
    %c0_189 = arith.constant 0 : index
    %235 = vector.load %arg24[%c1_187, %c0_188, %c0_189] : memref<4x4x256xf32, #tpu.memory_space<vmem>>, vector<1x4x256xf32>
    %236 = vector.shape_cast %235 : vector<1x4x256xf32> to vector<4x256xf32>
    %237 = vector.shape_cast %234 : vector<4x256xf32> to vector<1x4x256xf32>
    tpu.vector_store %arg24[%c1_187, %c0_188, %c0_189], %237 {strides = array<i32>} : memref<4x4x256xf32, #tpu.memory_space<vmem>>, vector<1x4x256xf32>,
    %c0_190 = arith.constant 0 : index
    %c0_191 = arith.constant 0 : index
    %238 = vector.load %arg13[%c0_190, %c0_191] : memref<4x7xf32, #tpu.memory_space<vmem>>, vector<4x7xf32>
    %cst_192 = arith.constant dense<0.000000e+00> : vector<4x256xf32>
    %239 = tpu.matmul %238, %227, %cst_192 {dimension_numbers = #tpu.dot_dimension_numbers<[1], [0], [0], [1], [0, 0, 1, 1], [], []>} : vector<4x7xf32>, vector<7x256xf32>, vector<4x256xf32> -> vector<4x256xf32>
    %c2_193 = arith.constant 2 : index
    %c0_194 = arith.constant 0 : index
    %c0_195 = arith.constant 0 : index
    %240 = vector.load %arg24[%c2_193, %c0_194, %c0_195] : memref<4x4x256xf32, #tpu.memory_space<vmem>>, vector<1x4x256xf32>
    %241 = vector.shape_cast %240 : vector<1x4x256xf32> to vector<4x256xf32>
    %242 = vector.shape_cast %239 : vector<4x256xf32> to vector<1x4x256xf32>
    tpu.vector_store %arg24[%c2_193, %c0_194, %c0_195], %242 {strides = array<i32>} : memref<4x4x256xf32, #tpu.memory_space<vmem>>, vector<1x4x256xf32>,
    %c0_196 = arith.constant 0 : index
    %c0_197 = arith.constant 0 : index
    %243 = vector.load %arg14[%c0_196, %c0_197] : memref<4x7xf32, #tpu.memory_space<vmem>>, vector<4x7xf32>
    %cst_198 = arith.constant dense<0.000000e+00> : vector<4x256xf32>
    %244 = tpu.matmul %243, %227, %cst_198 {dimension_numbers = #tpu.dot_dimension_numbers<[1], [0], [0], [1], [0, 0, 1, 1], [], []>} : vector<4x7xf32>, vector<7x256xf32>, vector<4x256xf32> -> vector<4x256xf32>
    %c3_199 = arith.constant 3 : index
    %c0_200 = arith.constant 0 : index
    %c0_201 = arith.constant 0 : index
    %245 = vector.load %arg24[%c3_199, %c0_200, %c0_201] : memref<4x4x256xf32, #tpu.memory_space<vmem>>, vector<1x4x256xf32>
    %246 = vector.shape_cast %245 : vector<1x4x256xf32> to vector<4x256xf32>
    %247 = vector.shape_cast %244 : vector<4x256xf32> to vector<1x4x256xf32>
    tpu.vector_store %arg24[%c3_199, %c0_200, %c0_201], %247 {strides = array<i32>} : memref<4x4x256xf32, #tpu.memory_space<vmem>>, vector<1x4x256xf32>,
    %c0_202 = arith.constant 0 : index
    %c0_203 = arith.constant 0 : index
    %c0_204 = arith.constant 0 : index
    %248 = vector.load %arg15[%c0_202, %c0_203, %c0_204] : memref<5x256x128xf32, #tpu.memory_space<vmem>>, vector<1x256x128xf32>
    %249 = vector.shape_cast %248 : vector<1x256x128xf32> to vector<256x128xf32>
    %c0_205 = arith.constant 0 : index
    %c0_206 = arith.constant 0 : index
    %c0_207 = arith.constant 0 : index
    %250 = vector.load %arg24[%c0_205, %c0_206, %c0_207] : memref<4x4x256xf32, #tpu.memory_space<vmem>>, vector<1x4x256xf32>
    %251 = vector.shape_cast %250 : vector<1x4x256xf32> to vector<4x256xf32>
    %252 = vector.extract_strided_slice %251 {offsets = [0, 0], sizes = [2, 256], strides = [1, 1]} : vector<4x256xf32> to vector<2x256xf32>
    %cst_208 = arith.constant dense<0.000000e+00> : vector<2x128xf32>
    %253 = tpu.matmul %252, %249, %cst_208 {dimension_numbers = #tpu.dot_dimension_numbers<[1], [0], [0], [1], [0, 0, 1, 1], [], []>} : vector<2x256xf32>, vector<256x128xf32>, vector<2x128xf32> -> vector<2x128xf32>
    %c2_209 = arith.constant 2 : index
    %c0_210 = arith.constant 0 : index
    %c0_211 = arith.constant 0 : index
    %254 = vector.load %arg24[%c2_209, %c0_210, %c0_211] : memref<4x4x256xf32, #tpu.memory_space<vmem>>, vector<1x4x256xf32>
    %255 = vector.shape_cast %254 : vector<1x4x256xf32> to vector<4x256xf32>
    %256 = vector.extract_strided_slice %255 {offsets = [0, 0], sizes = [2, 256], strides = [1, 1]} : vector<4x256xf32> to vector<2x256xf32>
    %cst_212 = arith.constant dense<0.000000e+00> : vector<2x128xf32>
    %257 = tpu.matmul %256, %249, %cst_212 {dimension_numbers = #tpu.dot_dimension_numbers<[1], [0], [0], [1], [0, 0, 1, 1], [], []>} : vector<2x256xf32>, vector<256x128xf32>, vector<2x128xf32> -> vector<2x128xf32>
    %c1_213 = arith.constant 1 : index
    %c0_214 = arith.constant 0 : index
    %c0_215 = arith.constant 0 : index
    %258 = vector.load %arg15[%c1_213, %c0_214, %c0_215] : memref<5x256x128xf32, #tpu.memory_space<vmem>>, vector<1x256x128xf32>
    %259 = vector.shape_cast %258 : vector<1x256x128xf32> to vector<256x128xf32>
    %c1_216 = arith.constant 1 : index
    %c0_217 = arith.constant 0 : index
    %c0_218 = arith.constant 0 : index
    %260 = vector.load %arg24[%c1_216, %c0_217, %c0_218] : memref<4x4x256xf32, #tpu.memory_space<vmem>>, vector<1x4x256xf32>
    %261 = vector.shape_cast %260 : vector<1x4x256xf32> to vector<4x256xf32>
    %262 = vector.extract_strided_slice %261 {offsets = [0, 0], sizes = [2, 256], strides = [1, 1]} : vector<4x256xf32> to vector<2x256xf32>
    %cst_219 = arith.constant dense<0.000000e+00> : vector<2x128xf32>
    %263 = tpu.matmul %262, %259, %cst_219 {dimension_numbers = #tpu.dot_dimension_numbers<[1], [0], [0], [1], [0, 0, 1, 1], [], []>} : vector<2x256xf32>, vector<256x128xf32>, vector<2x128xf32> -> vector<2x128xf32>
    %264 = arith.addf %253, %263 : vector<2x128xf32>
    %c3_220 = arith.constant 3 : index
    %c0_221 = arith.constant 0 : index
    %c0_222 = arith.constant 0 : index
    %265 = vector.load %arg24[%c3_220, %c0_221, %c0_222] : memref<4x4x256xf32, #tpu.memory_space<vmem>>, vector<1x4x256xf32>
    %266 = vector.shape_cast %265 : vector<1x4x256xf32> to vector<4x256xf32>
    %267 = vector.extract_strided_slice %266 {offsets = [0, 0], sizes = [2, 256], strides = [1, 1]} : vector<4x256xf32> to vector<2x256xf32>
    %cst_223 = arith.constant dense<0.000000e+00> : vector<2x128xf32>
    %268 = tpu.matmul %267, %259, %cst_223 {dimension_numbers = #tpu.dot_dimension_numbers<[1], [0], [0], [1], [0, 0, 1, 1], [], []>} : vector<2x256xf32>, vector<256x128xf32>, vector<2x128xf32> -> vector<2x128xf32>
    %269 = arith.addf %257, %268 : vector<2x128xf32>
    %c2_224 = arith.constant 2 : index
    %c0_225 = arith.constant 0 : index
    %c0_226 = arith.constant 0 : index
    %270 = vector.load %arg15[%c2_224, %c0_225, %c0_226] : memref<5x256x128xf32, #tpu.memory_space<vmem>>, vector<1x256x128xf32>
    %271 = vector.shape_cast %270 : vector<1x256x128xf32> to vector<256x128xf32>
    %c0_227 = arith.constant 0 : index
    %c0_228 = arith.constant 0 : index
    %c0_229 = arith.constant 0 : index
    %272 = vector.load %arg24[%c0_227, %c0_228, %c0_229] : memref<4x4x256xf32, #tpu.memory_space<vmem>>, vector<1x4x256xf32>
    %273 = vector.shape_cast %272 : vector<1x4x256xf32> to vector<4x256xf32>
    %274 = vector.extract_strided_slice %273 {offsets = [1, 0], sizes = [2, 256], strides = [1, 1]} : vector<4x256xf32> to vector<2x256xf32>
    %cst_230 = arith.constant dense<0.000000e+00> : vector<2x128xf32>
    %275 = tpu.matmul %274, %271, %cst_230 {dimension_numbers = #tpu.dot_dimension_numbers<[1], [0], [0], [1], [0, 0, 1, 1], [], []>} : vector<2x256xf32>, vector<256x128xf32>, vector<2x128xf32> -> vector<2x128xf32>
    %276 = arith.addf %264, %275 : vector<2x128xf32>
    %c2_231 = arith.constant 2 : index
    %c0_232 = arith.constant 0 : index
    %c0_233 = arith.constant 0 : index
    %277 = vector.load %arg24[%c2_231, %c0_232, %c0_233] : memref<4x4x256xf32, #tpu.memory_space<vmem>>, vector<1x4x256xf32>
    %278 = vector.shape_cast %277 : vector<1x4x256xf32> to vector<4x256xf32>
    %279 = vector.extract_strided_slice %278 {offsets = [1, 0], sizes = [2, 256], strides = [1, 1]} : vector<4x256xf32> to vector<2x256xf32>
    %cst_234 = arith.constant dense<0.000000e+00> : vector<2x128xf32>
    %280 = tpu.matmul %279, %271, %cst_234 {dimension_numbers = #tpu.dot_dimension_numbers<[1], [0], [0], [1], [0, 0, 1, 1], [], []>} : vector<2x256xf32>, vector<256x128xf32>, vector<2x128xf32> -> vector<2x128xf32>
    %281 = arith.addf %269, %280 : vector<2x128xf32>
    %c3_235 = arith.constant 3 : index
    %c0_236 = arith.constant 0 : index
    %c0_237 = arith.constant 0 : index
    %282 = vector.load %arg15[%c3_235, %c0_236, %c0_237] : memref<5x256x128xf32, #tpu.memory_space<vmem>>, vector<1x256x128xf32>
    %283 = vector.shape_cast %282 : vector<1x256x128xf32> to vector<256x128xf32>
    %c1_238 = arith.constant 1 : index
    %c0_239 = arith.constant 0 : index
    %c0_240 = arith.constant 0 : index
    %284 = vector.load %arg24[%c1_238, %c0_239, %c0_240] : memref<4x4x256xf32, #tpu.memory_space<vmem>>, vector<1x4x256xf32>
    %285 = vector.shape_cast %284 : vector<1x4x256xf32> to vector<4x256xf32>
    %286 = vector.extract_strided_slice %285 {offsets = [1, 0], sizes = [2, 256], strides = [1, 1]} : vector<4x256xf32> to vector<2x256xf32>
    %cst_241 = arith.constant dense<0.000000e+00> : vector<2x128xf32>
    %287 = tpu.matmul %286, %283, %cst_241 {dimension_numbers = #tpu.dot_dimension_numbers<[1], [0], [0], [1], [0, 0, 1, 1], [], []>} : vector<2x256xf32>, vector<256x128xf32>, vector<2x128xf32> -> vector<2x128xf32>
    %288 = arith.addf %276, %287 : vector<2x128xf32>
    %c3_242 = arith.constant 3 : index
    %c0_243 = arith.constant 0 : index
    %c0_244 = arith.constant 0 : index
    %289 = vector.load %arg24[%c3_242, %c0_243, %c0_244] : memref<4x4x256xf32, #tpu.memory_space<vmem>>, vector<1x4x256xf32>
    %290 = vector.shape_cast %289 : vector<1x4x256xf32> to vector<4x256xf32>
    %291 = vector.extract_strided_slice %290 {offsets = [1, 0], sizes = [2, 256], strides = [1, 1]} : vector<4x256xf32> to vector<2x256xf32>
    %cst_245 = arith.constant dense<0.000000e+00> : vector<2x128xf32>
    %292 = tpu.matmul %291, %283, %cst_245 {dimension_numbers = #tpu.dot_dimension_numbers<[1], [0], [0], [1], [0, 0, 1, 1], [], []>} : vector<2x256xf32>, vector<256x128xf32>, vector<2x128xf32> -> vector<2x128xf32>
    %293 = arith.addf %281, %292 : vector<2x128xf32>
    %c4_246 = arith.constant 4 : index
    %c0_247 = arith.constant 0 : index
    %c0_248 = arith.constant 0 : index
    %294 = vector.load %arg15[%c4_246, %c0_247, %c0_248] : memref<5x256x128xf32, #tpu.memory_space<vmem>>, vector<1x256x128xf32>
    %295 = vector.shape_cast %294 : vector<1x256x128xf32> to vector<256x128xf32>
    %c0_249 = arith.constant 0 : index
    %c0_250 = arith.constant 0 : index
    %c0_251 = arith.constant 0 : index
    %296 = vector.load %arg24[%c0_249, %c0_250, %c0_251] : memref<4x4x256xf32, #tpu.memory_space<vmem>>, vector<1x4x256xf32>
    %297 = vector.shape_cast %296 : vector<1x4x256xf32> to vector<4x256xf32>
    %298 = vector.extract_strided_slice %297 {offsets = [2, 0], sizes = [2, 256], strides = [1, 1]} : vector<4x256xf32> to vector<2x256xf32>
    %cst_252 = arith.constant dense<0.000000e+00> : vector<2x128xf32>
    %299 = tpu.matmul %298, %295, %cst_252 {dimension_numbers = #tpu.dot_dimension_numbers<[1], [0], [0], [1], [0, 0, 1, 1], [], []>} : vector<2x256xf32>, vector<256x128xf32>, vector<2x128xf32> -> vector<2x128xf32>
    %300 = arith.addf %288, %299 : vector<2x128xf32>
    %c2_253 = arith.constant 2 : index
    %c0_254 = arith.constant 0 : index
    %c0_255 = arith.constant 0 : index
    %301 = vector.load %arg24[%c2_253, %c0_254, %c0_255] : memref<4x4x256xf32, #tpu.memory_space<vmem>>, vector<1x4x256xf32>
    %302 = vector.shape_cast %301 : vector<1x4x256xf32> to vector<4x256xf32>
    %303 = vector.extract_strided_slice %302 {offsets = [2, 0], sizes = [2, 256], strides = [1, 1]} : vector<4x256xf32> to vector<2x256xf32>
    %cst_256 = arith.constant dense<0.000000e+00> : vector<2x128xf32>
    %304 = tpu.matmul %303, %295, %cst_256 {dimension_numbers = #tpu.dot_dimension_numbers<[1], [0], [0], [1], [0, 0, 1, 1], [], []>} : vector<2x256xf32>, vector<256x128xf32>, vector<2x128xf32> -> vector<2x128xf32>
    %305 = arith.addf %293, %304 : vector<2x128xf32>
    %cst_257 = arith.constant dense<0.000000e+00> : vector<128xf32>
    %306 = vector.multi_reduction <add>, %300, %cst_257 [0] : vector<2x128xf32> to vector<128xf32>
    %307 = vector.shape_cast %306 : vector<128xf32> to vector<1x128xf32>
    %308 = arith.mulf %300, %300 : vector<2x128xf32>
    %cst_258 = arith.constant dense<0.000000e+00> : vector<128xf32>
    %309 = vector.multi_reduction <add>, %308, %cst_258 [0] : vector<2x128xf32> to vector<128xf32>
    %310 = vector.shape_cast %309 : vector<128xf32> to vector<1x128xf32>
    %cst_259 = arith.constant dense<0.000000e+00> : vector<128xf32>
    %311 = vector.multi_reduction <add>, %305, %cst_259 [0] : vector<2x128xf32> to vector<128xf32>
    %312 = vector.shape_cast %311 : vector<128xf32> to vector<1x128xf32>
    %313 = arith.mulf %305, %305 : vector<2x128xf32>
    %cst_260 = arith.constant dense<0.000000e+00> : vector<128xf32>
    %314 = vector.multi_reduction <add>, %313, %cst_260 [0] : vector<2x128xf32> to vector<128xf32>
    %315 = vector.shape_cast %314 : vector<128xf32> to vector<1x128xf32>
    %316 = arith.addf %307, %312 : vector<1x128xf32>
    %317 = arith.addf %310, %315 : vector<1x128xf32>
    %c0_261 = arith.constant 0 : index
    %c0_262 = arith.constant 0 : index
    %318 = vector.load %arg16[%c0_261, %c0_262] : memref<128x32xf32, #tpu.memory_space<vmem>>, vector<128x32xf32>
    %cst_263 = arith.constant dense<0.000000e+00> : vector<1x32xf32>
    %319 = tpu.matmul %316, %318, %cst_263 {dimension_numbers = #tpu.dot_dimension_numbers<[1], [0], [0], [1], [0, 0, 1, 1], [], []>} : vector<1x128xf32>, vector<128x32xf32>, vector<1x32xf32> -> vector<1x32xf32>
    %c0_264 = arith.constant 0 : index
    %c0_265 = arith.constant 0 : index
    %320 = vector.load %arg16[%c0_264, %c0_265] : memref<128x32xf32, #tpu.memory_space<vmem>>, vector<128x32xf32>
    %cst_266 = arith.constant dense<0.000000e+00> : vector<1x32xf32>
    %321 = tpu.matmul %317, %320, %cst_266 {dimension_numbers = #tpu.dot_dimension_numbers<[1], [0], [0], [1], [0, 0, 1, 1], [], []>} : vector<1x128xf32>, vector<128x32xf32>, vector<1x32xf32> -> vector<1x32xf32>
    %cst_267 = arith.constant 1.250000e-01 : f32
    %322 = vector.broadcast %cst_267 : f32 to vector<1x32xf32>
    %323 = arith.mulf %319, %322 : vector<1x32xf32>
    %cst_268 = arith.constant 1.250000e-01 : f32
    %324 = vector.broadcast %cst_268 : f32 to vector<1x32xf32>
    %325 = arith.mulf %321, %324 : vector<1x32xf32>
    %326 = arith.mulf %323, %323 : vector<1x32xf32>
    %327 = arith.subf %325, %326 : vector<1x32xf32>
    %c0_269 = arith.constant 0 : index
    %c0_270 = arith.constant 0 : index
    %328 = vector.load %arg18[%c0_269, %c0_270] : memref<1x32xf32, #tpu.memory_space<vmem>>, vector<1x32xf32>
    %cst_271 = arith.constant 9.99999974E-6 : f32
    %329 = vector.broadcast %cst_271 : f32 to vector<1x32xf32>
    %330 = arith.addf %327, %329 : vector<1x32xf32>
    %331 = math.rsqrt %330 : vector<1x32xf32>
    %332 = arith.mulf %328, %331 : vector<1x32xf32>
    %c0_272 = arith.constant 0 : index
    %c0_273 = arith.constant 0 : index
    %333 = vector.load %arg19[%c0_272, %c0_273] : memref<1x32xf32, #tpu.memory_space<vmem>>, vector<1x32xf32>
    %334 = arith.mulf %323, %332 : vector<1x32xf32>
    %335 = arith.subf %333, %334 : vector<1x32xf32>
    %c0_274 = arith.constant 0 : index
    %c0_275 = arith.constant 0 : index
    %336 = vector.load %arg17[%c0_274, %c0_275] : memref<32x128xf32, #tpu.memory_space<vmem>>, vector<32x128xf32>
    %cst_276 = arith.constant dense<0.000000e+00> : vector<1x128xf32>
    %337 = tpu.matmul %332, %336, %cst_276 {dimension_numbers = #tpu.dot_dimension_numbers<[1], [0], [0], [1], [0, 0, 1, 1], [], []>} : vector<1x32xf32>, vector<32x128xf32>, vector<1x128xf32> -> vector<1x128xf32>
    %c0_277 = arith.constant 0 : index
    %c0_278 = arith.constant 0 : index
    %338 = vector.load %arg17[%c0_277, %c0_278] : memref<32x128xf32, #tpu.memory_space<vmem>>, vector<32x128xf32>
    %cst_279 = arith.constant dense<0.000000e+00> : vector<1x128xf32>
    %339 = tpu.matmul %335, %338, %cst_279 {dimension_numbers = #tpu.dot_dimension_numbers<[1], [0], [0], [1], [0, 0, 1, 1], [], []>} : vector<1x32xf32>, vector<32x128xf32>, vector<1x128xf32> -> vector<1x128xf32>
    %340 = vector.broadcast %337 : vector<1x128xf32> to vector<2x128xf32>
    %341 = arith.mulf %300, %340 : vector<2x128xf32>
    %342 = vector.broadcast %339 : vector<1x128xf32> to vector<2x128xf32>
    %343 = arith.addf %341, %342 : vector<2x128xf32>
    %cst_280 = arith.constant 0.000000e+00 : f32
    %344 = vector.broadcast %cst_280 : f32 to vector<2x128xf32>
    %345 = arith.maximumf %343, %344 : vector<2x128xf32>
    %346 = vector.broadcast %337 : vector<1x128xf32> to vector<2x128xf32>
    %347 = arith.mulf %305, %346 : vector<2x128xf32>
    %348 = vector.broadcast %339 : vector<1x128xf32> to vector<2x128xf32>
    %349 = arith.addf %347, %348 : vector<2x128xf32>
    %cst_281 = arith.constant 0.000000e+00 : f32
    %350 = vector.broadcast %cst_281 : f32 to vector<2x128xf32>
    %351 = arith.maximumf %349, %350 : vector<2x128xf32>
    %c0_282 = arith.constant 0 : index
    %c0_283 = arith.constant 0 : index
    %352 = vector.load %arg21[%c0_282, %c0_283] : memref<1x128xf32, #tpu.memory_space<vmem>>, vector<1x128xf32>
    %353 = vector.extract_strided_slice %345 {offsets = [0, 0], sizes = [1, 128], strides = [1, 1]} : vector<2x128xf32> to vector<1x128xf32>
    %c0_284 = arith.constant 0 : index
    %c0_285 = arith.constant 0 : index
    %c0_286 = arith.constant 0 : index
    %354 = vector.load %arg20[%c0_284, %c0_285, %c0_286] : memref<2x128x128xf32, #tpu.memory_space<vmem>>, vector<1x128x128xf32>
    %355 = vector.shape_cast %354 : vector<1x128x128xf32> to vector<128x128xf32>
    %cst_287 = arith.constant dense<0.000000e+00> : vector<1x128xf32>
    %356 = tpu.matmul %353, %355, %cst_287 {dimension_numbers = #tpu.dot_dimension_numbers<[1], [0], [0], [1], [0, 0, 1, 1], [], []>} : vector<1x128xf32>, vector<128x128xf32>, vector<1x128xf32> -> vector<1x128xf32>
    %357 = arith.addf %352, %356 : vector<1x128xf32>
    %358 = vector.extract_strided_slice %345 {offsets = [1, 0], sizes = [1, 128], strides = [1, 1]} : vector<2x128xf32> to vector<1x128xf32>
    %c1_288 = arith.constant 1 : index
    %c0_289 = arith.constant 0 : index
    %c0_290 = arith.constant 0 : index
    %359 = vector.load %arg20[%c1_288, %c0_289, %c0_290] : memref<2x128x128xf32, #tpu.memory_space<vmem>>, vector<1x128x128xf32>
    %360 = vector.shape_cast %359 : vector<1x128x128xf32> to vector<128x128xf32>
    %cst_291 = arith.constant dense<0.000000e+00> : vector<1x128xf32>
    %361 = tpu.matmul %358, %360, %cst_291 {dimension_numbers = #tpu.dot_dimension_numbers<[1], [0], [0], [1], [0, 0, 1, 1], [], []>} : vector<1x128xf32>, vector<128x128xf32>, vector<1x128xf32> -> vector<1x128xf32>
    %362 = arith.addf %357, %361 : vector<1x128xf32>
    %c0_292 = arith.constant 0 : index
    %c0_293 = arith.constant 0 : index
    %c0_294 = arith.constant 0 : index
    %363 = vector.load %arg22[%c0_292, %c0_293, %c0_294] : memref<2x1x128xf32, #tpu.memory_space<vmem>>, vector<1x1x128xf32>
    %364 = vector.shape_cast %363 : vector<1x1x128xf32> to vector<1x128xf32>
    %365 = vector.shape_cast %362 : vector<1x128xf32> to vector<1x1x128xf32>
    tpu.vector_store %arg22[%c0_292, %c0_293, %c0_294], %365 {strides = array<i32>} : memref<2x1x128xf32, #tpu.memory_space<vmem>>, vector<1x1x128xf32>,
    %c0_295 = arith.constant 0 : index
    %c0_296 = arith.constant 0 : index
    %366 = vector.load %arg21[%c0_295, %c0_296] : memref<1x128xf32, #tpu.memory_space<vmem>>, vector<1x128xf32>
    %367 = vector.extract_strided_slice %351 {offsets = [0, 0], sizes = [1, 128], strides = [1, 1]} : vector<2x128xf32> to vector<1x128xf32>
    %c0_297 = arith.constant 0 : index
    %c0_298 = arith.constant 0 : index
    %c0_299 = arith.constant 0 : index
    %368 = vector.load %arg20[%c0_297, %c0_298, %c0_299] : memref<2x128x128xf32, #tpu.memory_space<vmem>>, vector<1x128x128xf32>
    %369 = vector.shape_cast %368 : vector<1x128x128xf32> to vector<128x128xf32>
    %cst_300 = arith.constant dense<0.000000e+00> : vector<1x128xf32>
    %370 = tpu.matmul %367, %369, %cst_300 {dimension_numbers = #tpu.dot_dimension_numbers<[1], [0], [0], [1], [0, 0, 1, 1], [], []>} : vector<1x128xf32>, vector<128x128xf32>, vector<1x128xf32> -> vector<1x128xf32>
    %371 = arith.addf %366, %370 : vector<1x128xf32>
    %372 = vector.extract_strided_slice %351 {offsets = [1, 0], sizes = [1, 128], strides = [1, 1]} : vector<2x128xf32> to vector<1x128xf32>
    %c1_301 = arith.constant 1 : index
    %c0_302 = arith.constant 0 : index
    %c0_303 = arith.constant 0 : index
    %373 = vector.load %arg20[%c1_301, %c0_302, %c0_303] : memref<2x128x128xf32, #tpu.memory_space<vmem>>, vector<1x128x128xf32>
    %374 = vector.shape_cast %373 : vector<1x128x128xf32> to vector<128x128xf32>
    %cst_304 = arith.constant dense<0.000000e+00> : vector<1x128xf32>
    %375 = tpu.matmul %372, %374, %cst_304 {dimension_numbers = #tpu.dot_dimension_numbers<[1], [0], [0], [1], [0, 0, 1, 1], [], []>} : vector<1x128xf32>, vector<128x128xf32>, vector<1x128xf32> -> vector<1x128xf32>
    %376 = arith.addf %371, %375 : vector<1x128xf32>
    %c1_305 = arith.constant 1 : index
    %c0_306 = arith.constant 0 : index
    %c0_307 = arith.constant 0 : index
    %377 = vector.load %arg22[%c1_305, %c0_306, %c0_307] : memref<2x1x128xf32, #tpu.memory_space<vmem>>, vector<1x1x128xf32>
    %378 = vector.shape_cast %377 : vector<1x1x128xf32> to vector<1x128xf32>
    %379 = vector.shape_cast %376 : vector<1x128xf32> to vector<1x1x128xf32>
    tpu.vector_store %arg22[%c1_305, %c0_306, %c0_307], %379 {strides = array<i32>} : memref<2x1x128xf32, #tpu.memory_space<vmem>>, vector<1x1x128xf32>,
    return
  }
}

</mosaic_0001>

<bundles_post_ra>
// kernel: forward.1
= control target key start
LH: loop header
LB: loop body
LE: loop exit
PB: predicated region body
PF: predicated region fallthrough
CT: control target
= control target key end

     0   :  { %s16563_s0 = inlined_call_operand.vmem [shape: f32[4,20,128], index: 0, kind: input, shape index: {}]   ;;  %s16564_s1 = inlined_call_operand.vmem [shape: f32[5,128,384], index: 1, kind: input, shape index: {}]   ;;  %s16565_s2 = inlined_call_operand.hbm [shape: f32[384,16], index: 2, kind: input, shape index: {}]   ;;  %s16566_s3 = inlined_call_operand.hbm [shape: f32[16,384], index: 3, kind: input, shape index: {}]   ;;  %s16567_s4 = inlined_call_operand.vmem [shape: f32[1,16], index: 4, kind: input, shape index: {}]   ;;  %s16568_s5 = inlined_call_operand.vmem [shape: f32[1,16], index: 5, kind: input, shape index: {}]   ;;  %s16569_s6 = inlined_call_operand.hbm [shape: f32[9,18], index: 6, kind: input, shape index: {}]   ;;  %s16570_s7 = inlined_call_operand.hbm [shape: f32[9,18], index: 7, kind: input, shape index: {}]   ;;  %s16571_s8 = inlined_call_operand.hbm [shape: f32[5,384,256], index: 8, kind: input, shape index: {}]   ;;  %s16572_s9 = inlined_call_operand.hbm [shape: f32[256,32], index: 9, kind: input, shape index: {}]   ;;  %s16573_s10 = inlined_call_operand.hbm [shape: f32[32,256], index: 10, kind: input, shape index: {}]   ;;  %s16574_s11 = inlined_call_operand.vmem [shape: f32[1,32], index: 11, kind: input, shape index: {}, may-alias: {11,18}]   ;;  %s16575_s12 = inlined_call_operand.vmem [shape: f32[1,32], index: 12, kind: input, shape index: {}, may-alias: {12,19}]   ;;  %s16576_s13 = inlined_call_operand.hbm [shape: f32[4,7], index: 13, kind: input, shape index: {}]   ;;  %s16577_s14 = inlined_call_operand.hbm [shape: f32[4,7], index: 14, kind: input, shape index: {}]   ;;  %s16578_s15 = inlined_call_operand.vmem [shape: f32[5,256,128], index: 15, kind: input, shape index: {}]   ;;  %s16579_s16 = inlined_call_operand.hbm [shape: f32[128,32], index: 16, kind: input, shape index: {}]   ;;  %s16580_s17 = inlined_call_operand.hbm [shape: f32[32,128], index: 17, kind: input, shape index: {}]   ;;  %s16581_s18 = inlined_call_operand.vmem [shape: f32[1,32], index: 18, kind: input, shape index: {}, may-alias: {11,18}]   ;;  %s16582_s19 = inlined_call_operand.vmem [shape: f32[1,32], index: 19, kind: input, shape index: {}, may-alias: {12,19}]   ;;  %s16583_s20 = inlined_call_operand.hbm [shape: f32[2,128,128], index: 20, kind: input, shape index: {}]   ;;  %s16584_s21 = inlined_call_operand.hbm [shape: f32[1,128], index: 21, kind: input, shape index: {}]   ;;  %s16585_s22 = inlined_call_operand.hbm [shape: f32[2,1,128], index: 22, kind: output, shape index: {}]  }
   0x1   :  { %16916 = sst [smem:[#allocation144_spill]] %s16563_s0 }
   0x2   :  { %16917 = sst [smem:[#allocation145_spill]] %s16564_s1 }
   0x3   :  { %16918 = sst [smem:[#allocation146_spill]] %s16565_s2 }
   0x4   :  { %16919 = sst [smem:[#allocation147_spill]] %s16566_s3 }
   0x5   :  { %16920 = sst [smem:[#allocation148_spill]] %s16567_s4 }
   0x6   :  { %16921 = sst [smem:[#allocation149_spill]] %s16568_s5 }
   0x7   :  { %16922 = sst [smem:[#allocation150_spill]] %s16569_s6 }
   0x8   :  { %27 = vsyncpa [#allocation5], 0 }
   0x9   :  { %28 = vsyncpa [#allocation8], 0 }
   0xa   :  { %29 = vsyncpa [#allocation11], 0 }
   0xb   :  { %30 = vsyncpa [#allocation14], 0 }
   0xc   :  { %31 = vsyncpa [#allocation17], 0 }
   0xd   :  { %32 = vsyncpa [#allocation20], 0 }
   0xe   :  { %33 = vsyncpa [#allocation23], 0 }
   0xf   :  { %34 = vsyncpa [#allocation6], 0  ;;  %s10544_s3 = smov [#allocation7]  }
  0x10   :  { %s56_s28 = sshll.u32 %s10544_s3, 4  ;;  %s57_s28 = int_to_ptr.vmem [resolvable:$true] %s56_s28 }
  0x11   :  { %s10256_s29 = scalar_lea.vmem %s57_s28, 768  ;;  %p10261_p1 = scmp.lt.s32.totalorder %s57_s28, %s57_s28 }
  0x12   :  { %p10257_p0 = scmp.ne.s32.totalorder %s57_s28, %s10256_s29  ;;  %p10262_p2 = scmp.lt.s32.totalorder %s10256_s29, %s10256_s29 }
  0x14   :  { %p10263_p3 = por %p10262_p2, %p10261_p1 }
  0x16   :  { %p10264_p4 = pnand %p10263_p3, %p10257_p0 }
  0x18   :  { %10267 = shalt.err (!%p10264_p4)
}
  0x19   :  { %s10545_s30 = smov 384   ;;  %s10546_s4 = smov 24  }
  0x1a   :  { %s16923_s1 = sld [smem:[#allocation147_spill]]  ;;  %s10547_s5 = smov [#allocation10]  }
  0x1b   :  { %s84_s24 = sshll.u32 %s10547_s5, 4  ;;  %s10548_s6 = smov [#allocation13]   ;;  %s85_s24 = int_to_ptr.vmem [resolvable:$true] %s84_s24 }
  0x1c   :  { %s108_s25 = sshll.u32 %s10548_s6, 4  ;;  %s10276_s26 = scalar_lea.vmem %s85_s24, 256  ;;  %s109_s25 = int_to_ptr.vmem [resolvable:$true] %s108_s25 }
  0x1d   :  { %p10277_p5 = scmp.ne.s32.totalorder %s85_s24, %s10276_s26  ;;  %p10281_p6 = scmp.lt.s32.totalorder %s85_s24, %s85_s24 }
  0x1e   :  { %p10282_p7 = scmp.lt.s32.totalorder %s10276_s26, %s10276_s26 }
  0x20   :  { %62 = dma.hbm_to_vmem [thread:$0]  %s16923_s1, 768, %s57_s28, [#allocation8], %s10545_s30, %s10545_s30, %s10546_s4  }
  0x21   :  { %p10283_p8 = por %p10282_p7, %p10281_p6 }
  0x23   :  { %p10284_p9 = pnand %p10283_p8, %p10277_p5 }
  0x25   :  { %10287 = shalt.err (!%p10284_p9)
}
  0x26   :  { %s10549_s2 = smov 128   ;;  %s10550_s27 = smov 8  }
  0x27   :  { %90 = dma.hbm_to_vmem [thread:$0]  %s16570_s7, 256, %s85_s24, [#allocation11], %s10549_s2, %s10549_s2, %s10550_s27  }
  0x28   :  { %s10296_s28 = scalar_lea.vmem %s109_s25, 4096  ;;  %p10301_p11 = scmp.lt.s32.totalorder %s109_s25, %s109_s25 }
  0x29   :  { %p10297_p10 = scmp.ne.s32.totalorder %s109_s25, %s10296_s28  ;;  %p10302_p12 = scmp.lt.s32.totalorder %s10296_s28, %s10296_s28 }
  0x2b   :  { %p10303_p13 = por %p10302_p12, %p10301_p11 }
  0x2d   :  { %p10304_p0 = pnand %p10303_p13, %p10297_p10 }
  0x2f   :  { %10307 = shalt.err (!%p10304_p0)
}
  0x30   :  { %114 = dma.hbm_to_vmem [thread:$0]  %s16572_s9, 4096, %s109_s25, [#allocation14], %s10549_s2, %s10549_s2, %s10550_s27  }
  0x31   :  { %s10551_s0 = smov [#allocation16]   ;;  %s10552_s1 = smov [#allocation19]  }
  0x32   :  { %s137_s23 = sshll.u32 %s10551_s0, 4  ;;  %s158_s7 = sshll.u32 %s10552_s1, 4  ;;  %s138_s23 = int_to_ptr.vmem [resolvable:$true] %s137_s23  ;;  %s159_s7 = int_to_ptr.vmem [resolvable:$true] %s158_s7 }
  0x33   :  { %s10316_s5 = scalar_lea.vmem %s138_s23, 64  ;;  %p10321_p2 = scmp.lt.s32.totalorder %s138_s23, %s138_s23 }
  0x34   :  { %p10317_p1 = scmp.ne.s32.totalorder %s138_s23, %s10316_s5  ;;  %p10322_p3 = scmp.lt.s32.totalorder %s10316_s5, %s10316_s5 }
  0x36   :  { %p10323_p4 = por %p10322_p3, %p10321_p2 }
  0x38   :  { %p10324_p5 = pnand %p10323_p4, %p10317_p1 }
  0x3a   :  { %10327 = shalt.err (!%p10324_p5)
}
  0x3b   :  { %140 = dma.hbm_to_vmem [thread:$0]  %s16576_s13, 64, %s138_s23, [#allocation17]  }
  0x3c   :  { %s10336_s26 = scalar_lea.vmem %s159_s7, 2048  ;;  %p10341_p7 = scmp.lt.s32.totalorder %s159_s7, %s159_s7 }
  0x3d   :  { %p10337_p6 = scmp.ne.s32.totalorder %s159_s7, %s10336_s26  ;;  %p10342_p8 = scmp.lt.s32.totalorder %s10336_s26, %s10336_s26 }
  0x3f   :  { %p10343_p9 = por %p10342_p8, %p10341_p7 }
  0x41   :  { %p10344_p10 = pnand %p10343_p9, %p10337_p6 }
  0x43   :  { %10347 = shalt.err (!%p10344_p10)
}
  0x44   :  { %164 = dma.hbm_to_vmem [thread:$0]  %s16579_s16, 2048, %s159_s7, [#allocation20], %s10549_s2, %s10549_s2, %s10550_s27  }
  0x45   :  { %s10553_s3 = smov [#allocation22]   ;;  %s10554_s28 = smov [#allocation4]  }
  0x46   :  { %s186_s29 = sshll.u32 %s10553_s3, 4  ;;  %s44_s13 = sshll.u32 %s10554_s28, 4  ;;  %s187_s29 = int_to_ptr.vmem [resolvable:$true] %s186_s29  ;;  %s45_s13 = int_to_ptr.vmem [resolvable:$true] %s44_s13 }
  0x47   :  { %s10356_s30 = scalar_lea.vmem %s187_s29, 4096  ;;  %p10361_p12 = scmp.lt.s32.totalorder %s187_s29, %s187_s29 }
  0x48   :  { %p10357_p11 = scmp.ne.s32.totalorder %s187_s29, %s10356_s30  ;;  %p10362_p13 = scmp.lt.s32.totalorder %s10356_s30, %s10356_s30 }
  0x4a   :  { %p10363_p0 = por %p10362_p13, %p10361_p12 }
  0x4c   :  { %p10364_p1 = pnand %p10363_p0, %p10357_p11 }
  0x4e   :  { %10367 = shalt.err (!%p10364_p1)
}
  0x4f   :  { %192 = dma.hbm_to_vmem [thread:$0]  %s16583_s20, 4096, %s187_s29, [#allocation23], %s10549_s2, %s10549_s2, %s10550_s27  }
  0x50   :  { %s10376_s16 = scalar_lea.vmem %s45_s13, 6144  ;;  %p10381_p3 = scmp.lt.s32.totalorder %s45_s13, %s45_s13 }
  0x51   :  { %p10377_p2 = scmp.ne.s32.totalorder %s45_s13, %s10376_s16  ;;  %p10382_p4 = scmp.lt.s32.totalorder %s10376_s16, %s10376_s16 }
  0x53   :  { %p10383_p5 = por %p10382_p4, %p10381_p3 }
  0x55   :  { %p10384_p6 = pnand %p10383_p5, %p10377_p2 }
  0x57   :  { %10387 = shalt.err (!%p10384_p6)
}
  0x58   :  { %s16924_s7 = sld [smem:[#allocation146_spill]]  ;;  %s10555_s5 = smov [#allocation9]  }
  0x59   :  { %s72_s24 = sshll.u32 %s10555_s5, 4  ;;  %s10556_s6 = smov [#allocation12]   ;;  %s73_s24 = int_to_ptr.vmem [resolvable:$true] %s72_s24 }
  0x5a   :  { %s96_s20 = sshll.u32 %s10556_s6, 4  ;;  %s10396_s26 = scalar_lea.vmem %s73_s24, 256  ;;  %s97_s20 = int_to_ptr.vmem [resolvable:$true] %s96_s20 }
  0x5b   :  { %p10397_p7 = scmp.ne.s32.totalorder %s73_s24, %s10396_s26  ;;  %p10401_p8 = scmp.lt.s32.totalorder %s73_s24, %s73_s24 }
  0x5c   :  { %p10402_p9 = scmp.lt.s32.totalorder %s10396_s26, %s10396_s26 }
  0x5e   :  { %50 = dma.hbm_to_vmem [thread:$0]  %s16924_s7, 6144, %s45_s13, [#allocation5], %s10549_s2, %s10549_s2, %s10550_s27  }
  0x5f   :  { %p10403_p10 = por %p10402_p9, %p10401_p8 }
  0x61   :  { %p10404_p11 = pnand %p10403_p10, %p10397_p7 }
  0x63   :  { %10407 = shalt.err (!%p10404_p11)
}
  0x64   :  { %s16925_s3 = sld [smem:[#allocation150_spill]]  ;;  %s10416_s29 = scalar_lea.vmem %s97_s20, 61440 }
  0x65   :  { %p10417_p12 = scmp.ne.s32.totalorder %s97_s20, %s10416_s29  ;;  %p10421_p13 = scmp.lt.s32.totalorder %s97_s20, %s97_s20 }
  0x66   :  { %p10422_p0 = scmp.lt.s32.totalorder %s10416_s29, %s10416_s29 }
  0x68   :  { %p10423_p1 = por %p10422_p0, %p10421_p13 }
  0x6a   :  { %78 = dma.hbm_to_vmem [thread:$0]  %s16925_s3, 256, %s73_s24, [#allocation8], %s10549_s2, %s10549_s2, %s10550_s27  }
  0x6b   :  { %p10424_p2 = pnand %p10423_p1, %p10417_p12 }
  0x6d   :  { %10427 = shalt.err (!%p10424_p2)
}
  0x6e   :  { %s10557_s28 = smov 256   ;;  %s10558_s13 = smov 16  }
  0x6f   :  { %102 = dma.hbm_to_vmem [thread:$0]  %s16571_s8, 61440, %s97_s20, [#allocation11], %s10557_s28, %s10557_s28, %s10558_s13  }
  0x70   :  { %s10559_s0 = smov [#allocation15]   ;;  %s10560_s23 = smov [#allocation18]  }
  0x71   :  { %s120_s16 = sshll.u32 %s10559_s0, 4  ;;  %s147_s1 = sshll.u32 %s10560_s23, 4  ;;  %s121_s16 = int_to_ptr.vmem [resolvable:$true] %s120_s16  ;;  %s148_s1 = int_to_ptr.vmem [resolvable:$true] %s147_s1 }
  0x72   :  { %s10436_s7 = scalar_lea.vmem %s121_s16, 1024  ;;  %p10441_p4 = scmp.lt.s32.totalorder %s121_s16, %s121_s16 }
  0x73   :  { %p10437_p3 = scmp.ne.s32.totalorder %s121_s16, %s10436_s7  ;;  %p10442_p5 = scmp.lt.s32.totalorder %s10436_s7, %s10436_s7 }
  0x75   :  { %p10443_p6 = por %p10442_p5, %p10441_p4 }
  0x77   :  { %p10444_p7 = pnand %p10443_p6, %p10437_p3 }
  0x79   :  { %10447 = shalt.err (!%p10444_p7)
}
  0x7a   :  { %126 = dma.hbm_to_vmem [thread:$0]  %s16573_s10, 1024, %s121_s16, [#allocation14], %s10557_s28, %s10557_s28, %s10558_s13  }
  0x7b   :  { %s10456_s6 = scalar_lea.vmem %s148_s1, 64  ;;  %p10461_p9 = scmp.lt.s32.totalorder %s148_s1, %s148_s1 }
  0x7c   :  { %p10457_p8 = scmp.ne.s32.totalorder %s148_s1, %s10456_s6  ;;  %p10462_p10 = scmp.lt.s32.totalorder %s10456_s6, %s10456_s6 }
  0x7e   :  { %p10463_p11 = por %p10462_p10, %p10461_p9 }
  0x80   :  { %p10464_p12 = pnand %p10463_p11, %p10457_p8 }
  0x82   :  { %10467 = shalt.err (!%p10464_p12)
}
  0x83   :  { %150 = dma.hbm_to_vmem [thread:$0]  %s16577_s14, 64, %s148_s1, [#allocation17]  }
  0x84   :  { %s10561_s26 = smov [#allocation21]   ;;  %s10562_s25 = smov [#allocation24]  }
  0x85   :  { %s170_s9 = sshll.u32 %s10561_s26, 4  ;;  %s199_s3 = sshll.u32 %s10562_s25, 4  ;;  %s171_s9 = int_to_ptr.vmem [resolvable:$true] %s170_s9  ;;  %s200_s3 = int_to_ptr.vmem [resolvable:$true] %s199_s3 }
  0x86   :  { %s10476_s29 = scalar_lea.vmem %s171_s9, 512  ;;  %p10481_p0 = scmp.lt.s32.totalorder %s171_s9, %s171_s9 }
  0x87   :  { %p10477_p13 = scmp.ne.s32.totalorder %s171_s9, %s10476_s29  ;;  %p10482_p1 = scmp.lt.s32.totalorder %s10476_s29, %s10476_s29 }
  0x89   :  { %p10483_p2 = por %p10482_p1, %p10481_p0 }
  0x8b   :  { %p10484_p3 = pnand %p10483_p2, %p10477_p13 }
  0x8d   :  { %10487 = shalt.err (!%p10484_p3)
}
  0x8e   :  { %176 = dma.hbm_to_vmem [thread:$0]  %s16580_s17, 512, %s171_s9, [#allocation20], %s10549_s2, %s10549_s2, %s10550_s27  }
  0x8f   :  { %s10496_s14 = scalar_lea.vmem %s200_s3, 16  ;;  %s10500_s30 = scalar_lea.vmem %s200_s3, 32 }
  0x90   :  { %p10497_p4 = scmp.ne.s32.totalorder %s200_s3, %s10496_s14  ;;  %p10501_p5 = scmp.lt.s32.totalorder %s200_s3, %s200_s3 }
  0x91   :  { %p10502_p6 = scmp.lt.s32.totalorder %s10500_s30, %s10496_s14 }
  0x93   :  { %p10503_p7 = por %p10502_p6, %p10501_p5 }
  0x95   :  { %p10504_p8 = pnand %p10503_p7, %p10497_p4 }
  0x97   :  { %10507 = shalt.err (!%p10504_p8)
}
  0x98   :  { %202 = dma.hbm_to_vmem [thread:$0]  %s16584_s21, 16, %s200_s3, [#allocation23]  }
  0x99   :  { %10528 = dma.done.wait [#allocation5], 6144  }
  0x9a   :  { %10529 = vsyncadd [#allocation5], 4294961152 }
  0x9b   :  { %10530 = dma.done.wait [#allocation8], 1024  }
  0x9c   :  { %10531 = vsyncadd [#allocation8], 4294966272 }
  0x9d   :  { %10532 = dma.done.wait [#allocation11], 61696  }
  0x9e   :  { %10533 = vsyncadd [#allocation11], 4294905600 }
  0x9f   :  { %10534 = dma.done.wait [#allocation14], 5120  }
  0xa0   :  { %10535 = vsyncadd [#allocation14], 4294962176 }
  0xa1   :  { %10536 = dma.done.wait [#allocation17], 128  }
  0xa2   :  { %10537 = vsyncadd [#allocation17], 4294967168 }
  0xa3   :  { %10538 = dma.done.wait [#allocation20], 2560  }
  0xa4   :  { %10539 = vsyncadd [#allocation20], 4294964736 }
  0xa5   :  { %10540 = dma.done.wait [#allocation23], 4112  }
  0xa6   :  { %10541 = vsyncadd [#allocation23], 4294963184  ;;  %v16604_v0 = vmov 0.0   ;;  %vm10564_vm0 = vmmov 0   ;;  %s16926_s2 = sld [smem:[#allocation145_spill]]  ;;  %vm1058_vm1 = vcmask 1046528  }
  0xa7   :  { %9435 = vmatprep.subr.mxu1 %v16604_v0  ;;  %414 = vmatprep.mubr.f32.mxu0 %v16604_v0  ;;  %s16927_s7 = sld [smem:[#allocation144_spill]]  ;;  %vm1886_vm2 = vcmask 1045504   ;;  %vm2248_vm3 = vcmask 1041408   ;;  %vm2725_vm4 = vcmask 130048   ;;  %vm3094_vm5 = vcmask 146432  }
  0xa8   :  { %9467 = vmatprep.mubr.msk.f32.mxu1 %vm10564_vm0, %v16604_v0  ;;  %s17128_s23 = sld [smem:[#allocation148_spill]]  ;;  %vm6033_vm6 = vcmask 261120   ;;  %vm6211_vm7 = vcmask 56320  }
  0xa9   :  { %s17129_s24 = sld [smem:[#allocation149_spill]] }
  0xac   :  { %v10751_v1 = vld [vmem:[%s16926_s2 + $0x2f0] sm:$0xff]  ;;  %v10756_v2 = vld [vmem:[%s16926_s2 + $0x2f8] sm:$0xff]  ;;  %v10761_v3 = vld [vmem:[%s16926_s2 + $0x2e8] sm:$0xff] }
  0xad   :  { %350 = vmatprep.subr.mxu0 %v10751_v1  ;;  %9436 = vmatpush3.msra.mxu1 %v10756_v2  ;;  %v10768_v4 = vld [vmem:[%s16926_s2 + $0x2d8] sm:$0xff]  ;;  %v10773_v5 = vld [vmem:[%s16926_s2 + $0x2e0] sm:$0xff]  ;;  %v10778_v6 = vld [vmem:[%s16926_s2 + $0x2d0] sm:$0xff] }
  0xae   :  { %351 = vmatpush1.msra.mxu0 %v10761_v3  ;;  %9437 = vmatprep.subr.mxu1 %v16604_v0  ;;  %v10785_v7 = vld [vmem:[%s16926_s2 + $0x2c0] sm:$0xff]  ;;  %v10790_v8 = vld [vmem:[%s16926_s2 + $0x2c8] sm:$0xff]  ;;  %v10797_v9 = vld [vmem:[%s16926_s2 + $0x2b8] sm:$0xff] }
  0xaf   :  { %352 = vmatprep.subr.mxu0 %v10768_v4  ;;  %9438 = vmatpush3.msra.mxu1 %v10773_v5  ;;  %v10804_v10 = vld [vmem:[%s16926_s2 + $0x2a8] sm:$0xff]  ;;  %v10809_v11 = vld [vmem:[%s16926_s2 + $0x2b0] sm:$0xff]  ;;  %v10816_v12 = vld [vmem:[%s16926_s2 + $0x2a0] sm:$0xff] }
  0xb0   :  { %353 = vmatpush1.msra.mxu0 %v10778_v6  ;;  %9439 = vmatprep.subr.mxu1 %v16604_v0  ;;  %v10823_v13 = vld [vmem:[%s16926_s2 + $0x290] sm:$0xff]  ;;  %v10828_v14 = vld [vmem:[%s16926_s2 + $0x298] sm:$0xff]  ;;  %v10835_v15 = vld [vmem:[%s16926_s2 + $0x288] sm:$0xff] }
  0xb1   :  { %354 = vmatprep.subr.mxu0 %v10785_v7  ;;  %9440 = vmatpush3.msra.mxu1 %v10790_v8  ;;  %v10842_v16 = vld [vmem:[%s16926_s2 + $0x278] sm:$0xff]  ;;  %v10847_v17 = vld [vmem:[%s16926_s2 + $0x280] sm:$0xff]  ;;  %v10854_v18 = vld [vmem:[%s16926_s2 + $0x270] sm:$0xff] }
  0xb2   :  { %355 = vmatpush1.msra.mxu0 %v10797_v9  ;;  %9441 = vmatprep.subr.mxu1 %v16604_v0  ;;  %v10861_v19 = vld [vmem:[%s16926_s2 + $0x260] sm:$0xff]  ;;  %v10866_v20 = vld [vmem:[%s16926_s2 + $0x268] sm:$0xff]  ;;  %v10873_v21 = vld [vmem:[%s16926_s2 + $0x258] sm:$0xff] }
  0xb3   :  { %356 = vmatprep.subr.mxu0 %v10804_v10  ;;  %9442 = vmatpush3.msra.mxu1 %v10809_v11  ;;  %v10880_v22 = vld [vmem:[%s16926_s2 + $0x248] sm:$0xff]  ;;  %v10885_v23 = vld [vmem:[%s16926_s2 + $0x250] sm:$0xff]  ;;  %v10892_v24 = vld [vmem:[%s16926_s2 + $0x240] sm:$0xff] }
  0xb4   :  { %357 = vmatpush1.msra.mxu0 %v10816_v12  ;;  %9443 = vmatprep.subr.mxu1 %v16604_v0  ;;  %v10899_v25 = vld [vmem:[%s16926_s2 + $0x230] sm:$0xff]  ;;  %v10904_v26 = vld [vmem:[%s16926_s2 + $0x238] sm:$0xff]  ;;  %v10911_v27 = vld [vmem:[%s16926_s2 + $0x228] sm:$0xff] }
  0xb5   :  { %358 = vmatprep.subr.mxu0 %v10823_v13  ;;  %9444 = vmatpush3.msra.mxu1 %v10828_v14  ;;  %v10918_v28 = vld [vmem:[%s16926_s2 + $0x218] sm:$0xff]  ;;  %v10923_v29 = vld [vmem:[%s16926_s2 + $0x220] sm:$0xff]  ;;  %v10930_v30 = vld [vmem:[%s16926_s2 + $0x210] sm:$0xff] }
  0xb6   :  { %359 = vmatpush1.msra.mxu0 %v10835_v15  ;;  %9445 = vmatprep.subr.mxu1 %v16604_v0  ;;  %v10937_v31 = vld [vmem:[%s16926_s2 + $0x200] sm:$0xff]  ;;  %v10942_v32 = vld [vmem:[%s16926_s2 + $0x208] sm:$0xff]  ;;  %v10949_v33 = vld [vmem:[%s16926_s2 + $0x1f8] sm:$0xff] }
  0xb7   :  { %360 = vmatprep.subr.mxu0 %v10842_v16  ;;  %9446 = vmatpush3.msra.mxu1 %v10847_v17  ;;  %v10956_v34 = vld [vmem:[%s16926_s2 + $0x1e8] sm:$0xff]  ;;  %v10961_v35 = vld [vmem:[%s16926_s2 + $0x1f0] sm:$0xff]  ;;  %v10968_v36 = vld [vmem:[%s16926_s2 + $0x1e0] sm:$0xff] }
  0xb8   :  { %361 = vmatpush1.msra.mxu0 %v10854_v18  ;;  %9447 = vmatprep.subr.mxu1 %v16604_v0  ;;  %v10975_v37 = vld [vmem:[%s16926_s2 + $0x1d0] sm:$0xff]  ;;  %v10980_v38 = vld [vmem:[%s16926_s2 + $0x1d8] sm:$0xff]  ;;  %v10987_v39 = vld [vmem:[%s16926_s2 + $0x1c8] sm:$0xff] }
  0xb9   :  { %362 = vmatprep.subr.mxu0 %v10861_v19  ;;  %9448 = vmatpush3.msra.mxu1 %v10866_v20  ;;  %v10994_v40 = vld [vmem:[%s16926_s2 + $0x1b8] sm:$0xff]  ;;  %v10999_v41 = vld [vmem:[%s16926_s2 + $0x1c0] sm:$0xff]  ;;  %v11006_v42 = vld [vmem:[%s16926_s2 + $0x1b0] sm:$0xff] }
  0xba   :  { %363 = vmatpush1.msra.mxu0 %v10873_v21  ;;  %9449 = vmatprep.subr.mxu1 %v16604_v0  ;;  %v11013_v43 = vld [vmem:[%s16926_s2 + $0x1a0] sm:$0xff]  ;;  %v11018_v44 = vld [vmem:[%s16926_s2 + $0x1a8] sm:$0xff]  ;;  %v11025_v45 = vld [vmem:[%s16926_s2 + $0x198] sm:$0xff] }
  0xbb   :  { %364 = vmatprep.subr.mxu0 %v10880_v22  ;;  %9450 = vmatpush3.msra.mxu1 %v10885_v23  ;;  %v11032_v46 = vld [vmem:[%s16926_s2 + $0x188] sm:$0xff]  ;;  %v11037_v47 = vld [vmem:[%s16926_s2 + $0x190] sm:$0xff]  ;;  %v11044_v48 = vld [vmem:[%s16926_s2 + $0x180] sm:$0xff] }
  0xbc   :  { %365 = vmatpush1.msra.mxu0 %v10892_v24  ;;  %9451 = vmatprep.subr.mxu1 %v16604_v0  ;;  %v11051_v49 = vld [vmem:[%s16927_s7 + $0x18] sm:$0xff]  ;;  %v11058_v50 = vld [vmem:[%s16926_s2 + $0x170] sm:$0xff]  ;;  %v11070_v52 = vld [vmem:[%s16926_s2 + $0x168] sm:$0xff] }
  0xbd   :  { %366 = vmatprep.subr.mxu0 %v10899_v25  ;;  %9452 = vmatpush3.msra.mxu1 %v10904_v26  ;;  %16928 = vst [vmem:[#allocation34_spill] sm:$0xff] %v11051_v49  ;;  %v11063_v51 = vld [vmem:[%s16926_s2 + $0x178] sm:$0xff]  ;;  %v11082_v54 = vld [vmem:[%s16926_s2 + $0x160] sm:$0xff]  ;;  %v11089_v55 = vld [vmem:[%s16926_s2 + $0x150] sm:$0xff] }
  0xbe   :  { %367 = vmatpush1.msra.mxu0 %v10911_v27  ;;  %9453 = vmatprep.subr.mxu1 %v16604_v0  ;;  %v11077_v53 = vld [vmem:[%s16926_s2 + $0x158] sm:$0xff]  ;;  %16929 = vst [vmem:[#allocation35_spill] sm:$0xff] %v11089_v55  ;;  %v11096_v56 = vld [vmem:[%s16926_s2 + $0x140] sm:$0xff]  ;;  %v11101_v57 = vld [vmem:[%s16926_s2 + $0x148] sm:$0xff] }
  0xbf   :  { %368 = vmatprep.subr.mxu0 %v10918_v28  ;;  %9454 = vmatpush3.msra.mxu1 %v10923_v29  ;;  %16930 = vst [vmem:[#allocation36_spill] sm:$0xff] %v11096_v56  ;;  %16931 = vst [vmem:[#allocation37_spill] sm:$0xff] %v11101_v57  ;;  %v11108_v58 = vld [vmem:[%s16926_s2 + $0x138] sm:$0xff]  ;;  %v11115_v59 = vld [vmem:[%s16926_s2 + $0x128] sm:$0xff] }
  0xc0   :  { %369 = vmatpush1.msra.mxu0 %v10930_v30  ;;  %9455 = vmatprep.subr.mxu1 %v16604_v0  ;;  %16932 = vst [vmem:[#allocation38_spill] sm:$0xff] %v11108_v58  ;;  %16933 = vst [vmem:[#allocation39_spill] sm:$0xff] %v11115_v59  ;;  %v11120_v60 = vld [vmem:[%s16926_s2 + $0x130] sm:$0xff]  ;;  %v11127_v61 = vld [vmem:[%s16926_s2 + $0x120] sm:$0xff] }
  0xc1   :  { %370 = vmatprep.subr.mxu0 %v10937_v31  ;;  %9456 = vmatpush3.msra.mxu1 %v10942_v32  ;;  %16934 = vst [vmem:[#allocation40_spill] sm:$0xff] %v11120_v60  ;;  %16935 = vst [vmem:[#allocation41_spill] sm:$0xff] %v11127_v61  ;;  %v11134_v62 = vld [vmem:[%s16926_s2 + $0x110] sm:$0xff]  ;;  %v11139_v63 = vld [vmem:[%s16926_s2 + $0x118] sm:$0xff] }
  0xc2   :  { %371 = vmatpush1.msra.mxu0 %v10949_v33  ;;  %9457 = vmatprep.subr.mxu1 %v16604_v0  ;;  %16936 = vst [vmem:[#allocation42_spill] sm:$0xff] %v11134_v62  ;;  %16937 = vst [vmem:[#allocation43_spill] sm:$0xff] %v11139_v63 }
  0xc3   :  { %372 = vmatprep.subr.mxu0 %v10956_v34  ;;  %9458 = vmatpush3.msra.mxu1 %v10961_v35 }
  0xc4   :  { %373 = vmatpush1.msra.mxu0 %v10968_v36  ;;  %9459 = vmatprep.subr.mxu1 %v16604_v0 }
  0xc5   :  { %374 = vmatprep.subr.mxu0 %v10975_v37  ;;  %9460 = vmatpush3.msra.mxu1 %v10980_v38 }
  0xc6   :  { %375 = vmatpush1.msra.mxu0 %v10987_v39  ;;  %9461 = vmatprep.subr.mxu1 %v16604_v0 }
  0xc7   :  { %376 = vmatprep.subr.mxu0 %v10994_v40  ;;  %9462 = vmatpush3.msra.mxu1 %v10999_v41 }
  0xc8   :  { %377 = vmatpush1.msra.mxu0 %v11006_v42  ;;  %9463 = vmatprep.subr.mxu1 %v16604_v0 }
  0xc9   :  { %378 = vmatprep.subr.mxu0 %v11013_v43  ;;  %9464 = vmatpush3.msra.mxu1 %v11018_v44 }
  0xca   :  { %379 = vmatpush1.msra.mxu0 %v11025_v45  ;;  %9465 = vmatprep.subr.mxu1 %v16604_v0 }
  0xcb   :  { %380 = vmatprep.subr.mxu0 %v11032_v46  ;;  %9466 = vmatpush3.msra.mxu1 %v11037_v47 }
  0xcc   :  { %381 = vmatpush1.msra.mxu0 %v11044_v48  ;;  %9476 = vmatprep.subr.mxu1 %v16604_v0 }
  0xcd   :  { %415 = vmatmul.mubr.f32.vlgmr.msra.gmra.mxu0 %v11051_v49  ;;  %9468 = vmatmul.mubr.f32.vlgmr.msra.gmra.mxu1 %v11051_v49  ;;  %v11146_v49 = vld [vmem:[%s16926_s2 + $0x108] sm:$0xff] }
  0xce   :  { %513 = vmatprep.subr.mxu0 %v11058_v50  ;;  %9477 = vmatpush3.msra.mxu1 %v11063_v51  ;;  %16938 = vst [vmem:[#allocation44_spill] sm:$0xff] %v11146_v49 }
  0xcf   :  { %514 = vmatpush1.msra.mxu0 %v11070_v52  ;;  %9478 = vmatprep.subr.mxu1 %v16604_v0 }
  0xd0   :  { %515 = vmatprep.subr.mxu0 %v11077_v53  ;;  %9479 = vmatpush3.msra.mxu1 %v11082_v54 }
  0xd1   :  { %516 = vmatpush1.msra.mxu0 %v11089_v55  ;;  %9480 = vmatprep.subr.mxu1 %v16604_v0  ;;  %v11281_v55 = vld [vmem:[%s16926_s2 + $0x68] sm:$0xff] }
  0xd2   :  { %517 = vmatprep.subr.mxu0 %v11096_v56  ;;  %9481 = vmatpush3.msra.mxu1 %v11101_v57  ;;  %v11263_v57 = vld [vmem:[%s16926_s2 + $0x88] sm:$0xff]  ;;  %16959 = vst [vmem:[#allocation64_spill] sm:$0xff] %v11281_v55 }
  0xd3   :  { %518 = vmatpush1.msra.mxu0 %v11108_v58  ;;  %9482 = vmatprep.subr.mxu1 %v16604_v0  ;;  %v11153_v58 = vld [vmem:[%s16926_s2 + $0xf8] sm:$0xff]  ;;  %16957 = vst [vmem:[#allocation62_spill] sm:$0xff] %v11263_v57 }
  0xd4   :  { %519 = vmatprep.subr.mxu0 %v11115_v59  ;;  %9483 = vmatpush3.msra.mxu1 %v11120_v60  ;;  %16939 = vst [vmem:[#allocation45_spill] sm:$0xff] %v11153_v58  ;;  %v11158_v59 = vld [vmem:[%s16926_s2 + $0x100] sm:$0xff] }
  0xd5   :  { %520 = vmatpush1.msra.mxu0 %v11127_v61  ;;  %9484 = vmatprep.subr.mxu1 %v16604_v0  ;;  %16940 = vst [vmem:[#allocation46_spill] sm:$0xff] %v11158_v59  ;;  %v11165_v61 = vld [vmem:[%s16926_s2 + $0xf0] sm:$0xff]  ;;  %v11172_v60 = vld [vmem:[%s16926_s2 + $0xe0] sm:$0xff] }
  0xd6   :  { %521 = vmatprep.subr.mxu0 %v11134_v62  ;;  %9485 = vmatpush3.msra.mxu1 %v11139_v63  ;;  %16941 = vst [vmem:[#allocation47_spill] sm:$0xff] %v11165_v61  ;;  %16942 = vst [vmem:[#allocation48_spill] sm:$0xff] %v11172_v60  ;;  %v11177_v62 = vld [vmem:[%s16926_s2 + $0xe8] sm:$0xff] }
  0xd7   :  { %522 = vmatpush1.msra.mxu0 %v11146_v49  ;;  %9486 = vmatprep.subr.mxu1 %v16604_v0  ;;  %16943 = vst [vmem:[#allocation49_spill] sm:$0xff] %v11177_v62  ;;  %v11184_v49 = vld [vmem:[%s16926_s2 + $0xd8] sm:$0xff]  ;;  %v11191_v63 = vld [vmem:[%s16926_s2 + $0xc8] sm:$0xff] }
  0xd8   :  { %523 = vmatprep.subr.mxu0 %v11153_v58  ;;  %9487 = vmatpush3.msra.mxu1 %v11158_v59  ;;  %16944 = vst [vmem:[#allocation50_spill] sm:$0xff] %v11184_v49  ;;  %16945 = vst [vmem:[#allocation51_spill] sm:$0xff] %v11191_v63  ;;  %v11196_v58 = vld [vmem:[%s16926_s2 + $0xd0] sm:$0xff] }
  0xd9   :  { %524 = vmatpush1.msra.mxu0 %v11165_v61  ;;  %9488 = vmatprep.subr.mxu1 %v16604_v0  ;;  %16946 = vst [vmem:[#allocation52_spill] sm:$0xff] %v11196_v58  ;;  %v11203_v61 = vld [vmem:[%s16926_s2 + $0xc0] sm:$0xff]  ;;  %v11210_v59 = vld [vmem:[%s16926_s2 + $0xb0] sm:$0xff] }
  0xda   :  { %525 = vmatprep.subr.mxu0 %v11172_v60  ;;  %9489 = vmatpush3.msra.mxu1 %v11177_v62  ;;  %16947 = vst [vmem:[#allocation53_spill] sm:$0xff] %v11203_v61  ;;  %16948 = vst [vmem:[#allocation54_spill] sm:$0xff] %v11210_v59  ;;  %v11215_v60 = vld [vmem:[%s16926_s2 + $0xb8] sm:$0xff] }
  0xdb   :  { %526 = vmatpush1.msra.mxu0 %v11184_v49  ;;  %9490 = vmatprep.subr.mxu1 %v16604_v0  ;;  %16949 = vst [vmem:[#allocation55_spill] sm:$0xff] %v11215_v60  ;;  %v11222_v49 = vld [vmem:[%s16926_s2 + $0xa8] sm:$0xff]  ;;  %v11229_v62 = vld [vmem:[%s16926_s2 + $0x98] sm:$0xff] }
  0xdc   :  { %527 = vmatprep.subr.mxu0 %v11191_v63  ;;  %9491 = vmatpush3.msra.mxu1 %v11196_v58  ;;  %16950 = vst [vmem:[#allocation56_spill] sm:$0xff] %v11222_v49  ;;  %16951 = vst [vmem:[#allocation57_spill] sm:$0xff] %v11229_v62  ;;  %v11234_v63 = vld [vmem:[%s16926_s2 + $0xa0] sm:$0xff]  ;;  %v11251_v58 = vld [vmem:[%s16927_s7 + $0x8] sm:$0xff] }
  0xdd   :  { %528 = vmatpush1.msra.mxu0 %v11203_v61  ;;  %9492 = vmatprep.subr.mxu1 %v16604_v0  ;;  %16952 = vst [vmem:[#allocation58_spill] sm:$0xff] %v11234_v63  ;;  %v11241_v61 = vld [vmem:[%s16926_s2 + $0x90] sm:$0xff]  ;;  %v11246_v0 = vld [vmem:[%s16927_s7] sm:$0xff]  ;;  %16954 = vst [vmem:[#allocation60_spill] sm:$0xff] %v11251_v58 }
  0xde   :  { %529 = vmatprep.subr.mxu0 %v11210_v59  ;;  %9493 = vmatpush3.msra.mxu1 %v11215_v60  ;;  %16953 = vst [vmem:[#allocation59_spill] sm:$0xff] %v11241_v61  ;;  %v16955_v59 = vmov 0.0   ;;  %v11258_v60 = vld [vmem:[%s16926_s2 + $0x80] sm:$0xff]  ;;  %v1059_v56 = vrot.slane %v11246_v0, 1 }
  0xdf   :  { %530 = vmatpush1.msra.mxu0 %v11222_v49  ;;  %9494 = vmatprep.subr.mxu1 %v16955_v59  ;;  %16956 = vst [vmem:[#allocation61_spill] sm:$0xff] %v11258_v60  ;;  %v11272_v49 = vld [vmem:[%s16926_s2 + $0x78] sm:$0xff] }
  0xe0   :  { %531 = vmatprep.subr.mxu0 %v11229_v62  ;;  %9495 = vmatpush3.msra.mxu1 %v11234_v63  ;;  %16958 = vst [vmem:[#allocation63_spill] sm:$0xff] %v11272_v49  ;;  %v11286_v63 = vld [vmem:[%s16926_s2 + $0x70] sm:$0xff] }
  0xe1   :  { %532 = vmatpush1.msra.mxu0 %v11241_v61  ;;  %9496 = vmatprep.subr.mxu1 %v16955_v59  ;;  %16960 = vst [vmem:[#allocation65_spill] sm:$0xff] %v11286_v63  ;;  %v11313_v62 = vld [vmem:[%s16926_s2 + $0x50] sm:$0xff] }
  0xe2   :  { %533 = vmatprep.subr.mxu0 %v11258_v60  ;;  %9497 = vmatpush3.msra.mxu1 %v11263_v57  ;;  %v11293_v60 = vld [vmem:[%s16927_s7 + $0x20] sm:$0xff]  ;;  %v16961_v57 = vrot.slane %v11251_v58, 1  ;;  %16964 = vst [vmem:[#allocation68_spill] sm:$0xff] %v11313_v62 }
  0xe3   :  { %534 = vmatpush1.msra.mxu0 %v11272_v49  ;;  %9498 = vmatprep.subr.mxu1 %v16955_v59  ;;  %v11306_v49 = vld [vmem:[%s16926_s2 + $0x60] sm:$0xff] }
  0xe4   :  { %v11298_v61 = vsel %vm1058_vm1, %v1059_v56, %v16961_v57  ;;  %420 = vmatprep.mubr.f32.mxu0 %v16955_v59  ;;  %9470 = vmatprep.mubr.msk.f32.mxu1 %vm10564_vm0, %v16955_v59  ;;  %16963 = vst [vmem:[#allocation67_spill] sm:$0xff] %v11306_v49  ;;  %v11318_v56 = vld [vmem:[%s16926_s2 + $0x58] sm:$0xff]  ;;  %v11325_v57 = vld [vmem:[%s16926_s2 + $0x48] sm:$0xff] }
  0xe5   :  { %16962 = vst [vmem:[#allocation66_spill] sm:$0xff] %v11298_v61  ;;  %535 = vmatprep.subr.mxu0 %v11281_v55  ;;  %9499 = vmatpush3.msra.mxu1 %v11286_v63  ;;  %16965 = vst [vmem:[#allocation69_spill] sm:$0xff] %v11318_v56  ;;  %v11334_v61 = vld [vmem:[%s16926_s2 + $0x38] sm:$0xff]  ;;  %v11339_v63 = vld [vmem:[%s16926_s2 + $0x40] sm:$0xff] }
  0xe6   :  { %421 = vmatmul.mubr.f32.gmra.mxu0 %v11293_v60  ;;  %9471 = vmatmul.mubr.f32.gmra.mxu1 %v11293_v60  ;;  %16966 = vst [vmem:[#allocation70_spill] sm:$0xff] %v11325_v57  ;;  %16967 = vst [vmem:[#allocation71_spill] sm:$0xff] %v11334_v61  ;;  %v11385_v55 = vld [vmem:[%s16926_s2 + $0x10] sm:$0xff] }
  0xe7   :  { %536 = vmatpush1.msra.mxu0 %v11306_v49  ;;  %9500 = vmatprep.subr.mxu1 %v16955_v59  ;;  %16968 = vst [vmem:[#allocation72_spill] sm:$0xff] %v11339_v63  ;;  %v11366_v49 = vld [vmem:[%s16926_s2 + $0x28] sm:$0xff] }
  0xe8   :  { %537 = vmatprep.subr.mxu0 %v11313_v62  ;;  %9501 = vmatpush3.msra.mxu1 %v11318_v56  ;;  %v11346_v62 = vld [vmem:[%s16927_s7 + $0x28] sm:$0xf]  ;;  %v11354_v56 = vld [vmem:[%s16926_s2 + $0x30] sm:$0xff] }
  0xe9   :  { %538 = vmatpush1.msra.mxu0 %v11325_v57  ;;  %9502 = vmatprep.subr.mxu1 %v16955_v59  ;;  %16969 = vst [vmem:[#allocation73_spill] sm:$0xff] %v11354_v56  ;;  %v11361_v57 = vld [vmem:[%s16926_s2 + $0x20] sm:$0xff] }
  0xea   :  { %426 = vmatprep.mubr.f32.mxu0 %v16955_v59  ;;  %9473 = vmatprep.mubr.msk.f32.mxu1 %vm10564_vm0, %v16955_v59 }
  0xeb   :  { %539 = vmatprep.subr.mxu0 %v11334_v61  ;;  %9503 = vmatpush3.msra.mxu1 %v11339_v63  ;;  %v11373_v61 = vld [vmem:[%s16926_s2 + $0x18] sm:$0xff]  ;;  %v11380_v63 = vld [vmem:[%s16926_s2 + $0x8] sm:$0xff] }
  0xec   :  { %427 = vmatmul.mubr.f32.gmra.mxu0 %v11346_v62  ;;  %9474 = vmatmul.mubr.f32.gmra.mxu1 %v11346_v62 }
  0xed   :  { %540 = vmatpush1.msra.mxu0 %v11354_v56  ;;  %9504 = vmatprep.subr.mxu1 %v16955_v59  ;;  %v11392_v56 = vld [vmem:[%s16926_s2] sm:$0xff] }
  0xee   :  { %541 = vmatprep.subr.mxu0 %v11361_v57  ;;  %9505 = vmatpush3.msra.mxu1 %v11366_v49 }
  0xef   :  { %542 = vmatpush1.msra.mxu0 %v11373_v61  ;;  %9506 = vmatprep.subr.mxu1 %v16955_v59 }
  0xf0   :  { %543 = vmatprep.subr.mxu0 %v11380_v63  ;;  %9507 = vmatpush3.msra.mxu1 %v11385_v55 }
  0xf1   :  { %9508 = vmatprep.mubr.msk.f32.mxu1 %vm10564_vm0, %v16955_v59  ;;  %544 = vmatpush1.msra.mxu0 %v11392_v56 }
  0xf2   :  { %577 = vmatprep.mubr.f32.mxu0 %v16955_v59  ;;  %9509 = vmatmul.mubr.f32.vlgmr.msra.gmra.mxu1 %v11246_v0 }
  0xf3   :  { %9517 = vmatprep.subr.mxu1 %v16955_v59  ;;  %578 = vmatmul.mubr.f32.vlgmr.msra.gmra.mxu0 %v11246_v0 }
  0xf4   :  { %680 = vmatprep.subr.mxu0 %v10751_v1  ;;  %9518 = vmatpush3.msra.mxu1 %v10756_v2  ;;  %v11425_v1 = vld [vmem:[%s16927_s7 + $0x10] sm:$0xf]  ;;  %v8256_v2 = vld [vmem:[%s16927_s7 + $0x48] sm:$0xff] }
  0xf5   :  { %681 = vmatpush1.msra.mxu0 %v10761_v3  ;;  %9519 = vmatprep.subr.mxu1 %v16955_v59  ;;  %v16970_v3 = vld [vmem:[#allocation35_spill] sm:$0xff] }
  0xf6   :  { %9511 = vmatprep.mubr.msk.f32.mxu1 %vm10564_vm0, %v16955_v59  ;;  %682 = vmatprep.subr.mxu0 %v10768_v4  ;;  %v16971_v4 = vld [vmem:[#allocation36_spill] sm:$0xff] }
  0xf7   :  { %9520 = vmatpush3.msra.mxu1 %v10773_v5  ;;  %583 = vmatprep.mubr.f32.mxu0 %v16955_v59  ;;  %v16972_v5 = vld [vmem:[#allocation37_spill] sm:$0xff] }
  0xf8   :  { %9512 = vmatmul.mubr.f32.gmra.mxu1 %v11251_v58  ;;  %683 = vmatpush1.msra.mxu0 %v10778_v6  ;;  %v16973_v6 = vld [vmem:[#allocation38_spill] sm:$0xff] }
  0xf9   :  { %9521 = vmatprep.subr.mxu1 %v16955_v59  ;;  %584 = vmatmul.mubr.f32.gmra.mxu0 %v11251_v58 }
  0xfa   :  { %684 = vmatprep.subr.mxu0 %v10785_v7  ;;  %9522 = vmatpush3.msra.mxu1 %v10790_v8  ;;  %v16974_v7 = vld [vmem:[#allocation39_spill] sm:$0xff]  ;;  %v16975_v8 = vld [vmem:[#allocation40_spill] sm:$0xff] }
  0xfb   :  { %685 = vmatpush1.msra.mxu0 %v10797_v9  ;;  %9523 = vmatprep.subr.mxu1 %v16955_v59  ;;  %v16976_v9 = vld [vmem:[#allocation41_spill] sm:$0xff] }
  0xfc   :  { %9514 = vmatprep.mubr.msk.f32.mxu1 %vm10564_vm0, %v16955_v59  ;;  %686 = vmatprep.subr.mxu0 %v10804_v10  ;;  %v16977_v10 = vld [vmem:[#allocation42_spill] sm:$0xff] }
  0xfd   :  { %9524 = vmatpush3.msra.mxu1 %v10809_v11  ;;  %589 = vmatprep.mubr.f32.mxu0 %v16955_v59  ;;  %v16978_v11 = vld [vmem:[#allocation43_spill] sm:$0xff] }
  0xfe   :  { %9515 = vmatmul.mubr.f32.gmra.mxu1 %v11425_v1  ;;  %687 = vmatpush1.msra.mxu0 %v10816_v12  ;;  %v16979_v12 = vld [vmem:[#allocation44_spill] sm:$0xff] }
  0xff   :  { %9525 = vmatprep.subr.mxu1 %v16955_v59  ;;  %590 = vmatmul.mubr.f32.gmra.mxu0 %v11425_v1 }
 0x100   :  { %688 = vmatprep.subr.mxu0 %v10823_v13  ;;  %9526 = vmatpush3.msra.mxu1 %v10828_v14  ;;  %v16980_v13 = vld [vmem:[#allocation45_spill] sm:$0xff]  ;;  %v16981_v14 = vld [vmem:[#allocation46_spill] sm:$0xff] }
 0x101   :  { %689 = vmatpush1.msra.mxu0 %v10835_v15  ;;  %9527 = vmatprep.subr.mxu1 %v16955_v59  ;;  %v16982_v15 = vld [vmem:[#allocation47_spill] sm:$0xff] }
 0x102   :  { %690 = vmatprep.subr.mxu0 %v10842_v16  ;;  %9528 = vmatpush3.msra.mxu1 %v10847_v17  ;;  %v16983_v16 = vld [vmem:[#allocation48_spill] sm:$0xff]  ;;  %v16984_v17 = vld [vmem:[#allocation49_spill] sm:$0xff] }
 0x103   :  { %691 = vmatpush1.msra.mxu0 %v10854_v18  ;;  %9529 = vmatprep.subr.mxu1 %v16955_v59  ;;  %v16985_v18 = vld [vmem:[#allocation50_spill] sm:$0xff] }
 0x104   :  { %692 = vmatprep.subr.mxu0 %v10861_v19  ;;  %9530 = vmatpush3.msra.mxu1 %v10866_v20  ;;  %v16986_v19 = vld [vmem:[#allocation51_spill] sm:$0xff]  ;;  %v16987_v20 = vld [vmem:[#allocation52_spill] sm:$0xff] }
 0x105   :  { %693 = vmatpush1.msra.mxu0 %v10873_v21  ;;  %9531 = vmatprep.subr.mxu1 %v16955_v59  ;;  %v16988_v21 = vld [vmem:[#allocation53_spill] sm:$0xff] }
 0x106   :  { %694 = vmatprep.subr.mxu0 %v10880_v22  ;;  %9532 = vmatpush3.msra.mxu1 %v10885_v23  ;;  %v16989_v22 = vld [vmem:[#allocation54_spill] sm:$0xff]  ;;  %v16990_v23 = vld [vmem:[#allocation55_spill] sm:$0xff] }
 0x107   :  { %695 = vmatpush1.msra.mxu0 %v10892_v24  ;;  %9533 = vmatprep.subr.mxu1 %v16955_v59  ;;  %v16991_v24 = vld [vmem:[#allocation34_spill] sm:$0xff] }
 0x108   :  { %696 = vmatprep.subr.mxu0 %v10899_v25  ;;  %9534 = vmatpush3.msra.mxu1 %v10904_v26  ;;  %v1474_v25 = vrot.slane %v16991_v24, 1  ;;  %v1475_v26 = vrot.slane %v11293_v60, 1  ;;  %v11643_v60 = vld [vmem:[%s16926_s2 + $0x440] sm:$0xff]  ;;  %v11824_v24 = vld [vmem:[%s16926_s2 + $0x368] sm:$0xff] }
 0x109   :  { %697 = vmatpush1.msra.mxu0 %v10911_v27  ;;  %9535 = vmatprep.subr.mxu1 %v16955_v59  ;;  %v16992_v27 = vld [vmem:[#allocation56_spill] sm:$0xff] }
 0x10a   :  { %698 = vmatprep.subr.mxu0 %v10918_v28  ;;  %9536 = vmatpush3.msra.mxu1 %v10923_v29  ;;  %v16993_v28 = vld [vmem:[#allocation57_spill] sm:$0xff]  ;;  %v16994_v29 = vld [vmem:[#allocation58_spill] sm:$0xff] }
 0x10b   :  { %699 = vmatpush1.msra.mxu0 %v10930_v30  ;;  %9537 = vmatprep.subr.mxu1 %v16955_v59  ;;  %v16995_v30 = vld [vmem:[#allocation59_spill] sm:$0xff] }
 0x10c   :  { %700 = vmatprep.subr.mxu0 %v10937_v31  ;;  %9538 = vmatpush3.msra.mxu1 %v10942_v32  ;;  %v16996_v31 = vld [vmem:[#allocation61_spill] sm:$0xff]  ;;  %v16997_v32 = vld [vmem:[#allocation62_spill] sm:$0xff] }
 0x10d   :  { %701 = vmatpush1.msra.mxu0 %v10949_v33  ;;  %9539 = vmatprep.subr.mxu1 %v16955_v59  ;;  %v16998_v33 = vld [vmem:[#allocation63_spill] sm:$0xff] }
 0x10e   :  { %702 = vmatprep.subr.mxu0 %v10956_v34  ;;  %9540 = vmatpush3.msra.mxu1 %v10961_v35  ;;  %v11539_v34 = vld [vmem:[%s16927_s7 + $0x50] sm:$0xff]  ;;  %v11542_v35 = vsel %vm1058_vm1, %v1474_v25, %v1475_v26 }
 0x10f   :  { %703 = vmatpush1.msra.mxu0 %v10968_v36  ;;  %9541 = vmatprep.subr.mxu1 %v16955_v59  ;;  %v11548_v36 = vrot.slane %v11346_v62, 1  ;;  %v11655_v62 = vld [vmem:[%s16926_s2 + $0x438] sm:$0xff]  ;;  %v11829_v25 = vld [vmem:[%s16926_s2 + $0x370] sm:$0xff] }
 0x110   :  { %704 = vmatprep.subr.mxu0 %v10975_v37  ;;  %9542 = vmatpush3.msra.mxu1 %v10980_v38  ;;  %v16999_v37 = vld [vmem:[#allocation64_spill] sm:$0xff]  ;;  %v17000_v38 = vld [vmem:[#allocation65_spill] sm:$0xff] }
 0x111   :  { %705 = vmatpush1.msra.mxu0 %v10987_v39  ;;  %9543 = vmatprep.subr.mxu1 %v16955_v59  ;;  %v17001_v39 = vld [vmem:[#allocation67_spill] sm:$0xff] }
 0x112   :  { %706 = vmatprep.subr.mxu0 %v10994_v40  ;;  %9544 = vmatpush3.msra.mxu1 %v10999_v41  ;;  %v17002_v40 = vld [vmem:[#allocation68_spill] sm:$0xff]  ;;  %v17003_v41 = vld [vmem:[#allocation69_spill] sm:$0xff] }
 0x113   :  { %707 = vmatpush1.msra.mxu0 %v11006_v42  ;;  %9545 = vmatprep.subr.mxu1 %v16955_v59  ;;  %v17004_v42 = vld [vmem:[#allocation70_spill] sm:$0xff] }
 0x114   :  { %708 = vmatprep.subr.mxu0 %v11013_v43  ;;  %9546 = vmatpush3.msra.mxu1 %v11018_v44  ;;  %v11563_v43 = vld [vmem:[%s16927_s7 + $0x58] sm:$0xf]  ;;  %v11567_v44 = vsel %vm1058_vm1, %v1475_v26, %v11548_v36  ;;  %v11836_v26 = vld [vmem:[%s16926_s2 + $0x360] sm:$0xff] }
 0x115   :  { %709 = vmatpush1.msra.mxu0 %v11025_v45  ;;  %9547 = vmatprep.subr.mxu1 %v16955_v59  ;;  %v17005_v45 = vld [vmem:[#allocation71_spill] sm:$0xff] }
 0x116   :  { %710 = vmatprep.subr.mxu0 %v11032_v46  ;;  %9548 = vmatpush3.msra.mxu1 %v11037_v47  ;;  %v17006_v46 = vld [vmem:[#allocation72_spill] sm:$0xff]  ;;  %v17007_v47 = vld [vmem:[#allocation73_spill] sm:$0xff] }
 0x117   :  { %711 = vmatpush1.msra.mxu0 %v11044_v48  ;;  %744 = vmatprep.mubr.f32.mxu0 %v16955_v59  ;;  %v11585_v48 = vld [vmem:[%s16927_s7 + $0x30] sm:$0xff] }
 0x118   :  { %9549 = vmatprep.mubr.msk.f32.mxu1 %vm10564_vm0, %v16955_v59  ;;  %9558 = vmatprep.subr.mxu1 %v16955_v59 }
 0x119   :  { %745 = vmatmul.mubr.f32.vlgmr.msra.gmra.mxu0 %v8256_v2  ;;  %9550 = vmatmul.mubr.f32.vlgmr.msra.gmra.mxu1 %v8256_v2  ;;  %v11681_v2 = vld [vmem:[%s16926_s2 + $0x420] sm:$0xff] }
 0x11a   :  { %843 = vmatprep.subr.mxu0 %v11058_v50  ;;  %9559 = vmatpush3.msra.mxu1 %v11063_v51  ;;  %v11600_v50 = vld [vmem:[%s16926_s2 + $0x478] sm:$0xff]  ;;  %v11607_v51 = vld [vmem:[%s16926_s2 + $0x468] sm:$0xff] }
 0x11b   :  { %844 = vmatpush1.msra.mxu0 %v11070_v52  ;;  %9560 = vmatprep.subr.mxu1 %v16955_v59  ;;  %v11614_v52 = vld [vmem:[%s16926_s2 + $0x458] sm:$0xff] }
 0x11c   :  { %845 = vmatprep.subr.mxu0 %v11077_v53  ;;  %9561 = vmatpush3.msra.mxu1 %v11082_v54  ;;  %v11621_v53 = vld [vmem:[%s16926_s2 + $0x460] sm:$0xff]  ;;  %v11628_v54 = vld [vmem:[%s16927_s7 + $0x38] sm:$0xff] }
 0x11d   :  { %846 = vmatpush1.msra.mxu0 %v16970_v3  ;;  %9562 = vmatprep.subr.mxu1 %v16955_v59  ;;  %v11691_v3 = vld [vmem:[%s16926_s2 + $0x410] sm:$0xff] }
 0x11e   :  { %847 = vmatprep.subr.mxu0 %v16971_v4  ;;  %9563 = vmatpush3.msra.mxu1 %v16972_v5  ;;  %v11696_v4 = vld [vmem:[%s16926_s2 + $0x418] sm:$0xff]  ;;  %v11703_v5 = vld [vmem:[%s16926_s2 + $0x408] sm:$0xff] }
 0x11f   :  { %848 = vmatpush1.msra.mxu0 %v16973_v6  ;;  %9564 = vmatprep.subr.mxu1 %v16955_v59  ;;  %v11710_v6 = vld [vmem:[%s16926_s2 + $0x3f8] sm:$0xff] }
 0x120   :  { %849 = vmatprep.subr.mxu0 %v16974_v7  ;;  %9565 = vmatpush3.msra.mxu1 %v16975_v8  ;;  %v11715_v7 = vld [vmem:[%s16926_s2 + $0x400] sm:$0xff]  ;;  %v11722_v8 = vld [vmem:[%s16926_s2 + $0x3f0] sm:$0xff] }
 0x121   :  { %850 = vmatpush1.msra.mxu0 %v16976_v9  ;;  %9566 = vmatprep.subr.mxu1 %v16955_v59  ;;  %v11729_v9 = vld [vmem:[%s16926_s2 + $0x3e0] sm:$0xff] }
 0x122   :  { %851 = vmatprep.subr.mxu0 %v16977_v10  ;;  %9567 = vmatpush3.msra.mxu1 %v16978_v11  ;;  %v11734_v10 = vld [vmem:[%s16926_s2 + $0x3e8] sm:$0xff]  ;;  %v11741_v11 = vld [vmem:[%s16926_s2 + $0x3d8] sm:$0xff] }
 0x123   :  { %852 = vmatpush1.msra.mxu0 %v16979_v12  ;;  %9568 = vmatprep.subr.mxu1 %v16955_v59  ;;  %v11748_v12 = vld [vmem:[%s16926_s2 + $0x3c8] sm:$0xff] }
 0x124   :  { %853 = vmatprep.subr.mxu0 %v16980_v13  ;;  %9569 = vmatpush3.msra.mxu1 %v16981_v14  ;;  %v11753_v13 = vld [vmem:[%s16926_s2 + $0x3d0] sm:$0xff]  ;;  %v11760_v14 = vld [vmem:[%s16926_s2 + $0x3c0] sm:$0xff] }
 0x125   :  { %854 = vmatpush1.msra.mxu0 %v16982_v15  ;;  %9570 = vmatprep.subr.mxu1 %v16955_v59  ;;  %v11767_v15 = vld [vmem:[%s16926_s2 + $0x3b0] sm:$0xff] }
 0x126   :  { %855 = vmatprep.subr.mxu0 %v16983_v16  ;;  %9571 = vmatpush3.msra.mxu1 %v16984_v17  ;;  %v11772_v16 = vld [vmem:[%s16926_s2 + $0x3b8] sm:$0xff]  ;;  %v11779_v17 = vld [vmem:[%s16926_s2 + $0x3a8] sm:$0xff] }
 0x127   :  { %856 = vmatpush1.msra.mxu0 %v16985_v18  ;;  %9572 = vmatprep.subr.mxu1 %v16955_v59  ;;  %v11786_v18 = vld [vmem:[%s16926_s2 + $0x398] sm:$0xff] }
 0x128   :  { %857 = vmatprep.subr.mxu0 %v16986_v19  ;;  %9573 = vmatpush3.msra.mxu1 %v16987_v20  ;;  %v11791_v19 = vld [vmem:[%s16926_s2 + $0x3a0] sm:$0xff]  ;;  %v11798_v20 = vld [vmem:[%s16926_s2 + $0x390] sm:$0xff] }
 0x129   :  { %858 = vmatpush1.msra.mxu0 %v16988_v21  ;;  %9574 = vmatprep.subr.mxu1 %v16955_v59  ;;  %v11805_v21 = vld [vmem:[%s16926_s2 + $0x380] sm:$0xff] }
 0x12a   :  { %859 = vmatprep.subr.mxu0 %v16989_v22  ;;  %9575 = vmatpush3.msra.mxu1 %v16990_v23  ;;  %v11810_v22 = vld [vmem:[%s16926_s2 + $0x388] sm:$0xff]  ;;  %v11817_v23 = vld [vmem:[%s16926_s2 + $0x378] sm:$0xff] }
 0x12b   :  { %860 = vmatpush1.msra.mxu0 %v16992_v27  ;;  %9576 = vmatprep.subr.mxu1 %v16955_v59  ;;  %v11843_v27 = vld [vmem:[%s16926_s2 + $0x350] sm:$0xff] }
 0x12c   :  { %861 = vmatprep.subr.mxu0 %v16993_v28  ;;  %9577 = vmatpush3.msra.mxu1 %v16994_v29  ;;  %v11848_v28 = vld [vmem:[%s16926_s2 + $0x358] sm:$0xff]  ;;  %v11855_v29 = vld [vmem:[%s16926_s2 + $0x348] sm:$0xff] }
 0x12d   :  { %862 = vmatpush1.msra.mxu0 %v16995_v30  ;;  %9578 = vmatprep.subr.mxu1 %v16955_v59  ;;  %v11862_v30 = vld [vmem:[%s16926_s2 + $0x338] sm:$0xff] }
 0x12e   :  { %863 = vmatprep.subr.mxu0 %v16996_v31  ;;  %9579 = vmatpush3.msra.mxu1 %v16997_v32  ;;  %v11867_v31 = vld [vmem:[%s16926_s2 + $0x340] sm:$0xff]  ;;  %v11874_v32 = vld [vmem:[%s16926_s2 + $0x330] sm:$0xff] }
 0x12f   :  { %864 = vmatpush1.msra.mxu0 %v16998_v33  ;;  %9580 = vmatprep.subr.mxu1 %v16955_v59  ;;  %v11881_v33 = vld [vmem:[%s16926_s2 + $0x320] sm:$0xff] }
 0x130   :  { %750 = vmatprep.mubr.f32.mxu0 %v16955_v59  ;;  %9552 = vmatprep.mubr.msk.f32.mxu1 %vm10564_vm0, %v16955_v59 }
 0x131   :  { %865 = vmatprep.subr.mxu0 %v16999_v37  ;;  %9581 = vmatpush3.msra.mxu1 %v17000_v38  ;;  %v11886_v37 = vld [vmem:[%s16926_s2 + $0x328] sm:$0xff]  ;;  %v11893_v38 = vld [vmem:[%s16926_s2 + $0x318] sm:$0xff] }
 0x132   :  { %751 = vmatmul.mubr.f32.gmra.mxu0 %v11539_v34  ;;  %9553 = vmatmul.mubr.f32.gmra.mxu1 %v11539_v34 }
 0x133   :  { %866 = vmatpush1.msra.mxu0 %v17001_v39  ;;  %9582 = vmatprep.subr.mxu1 %v16955_v59  ;;  %v11900_v39 = vld [vmem:[%s16926_s2 + $0x308] sm:$0xff] }
 0x134   :  { %867 = vmatprep.subr.mxu0 %v17002_v40  ;;  %9583 = vmatpush3.msra.mxu1 %v17003_v41  ;;  %v11905_v40 = vld [vmem:[%s16926_s2 + $0x310] sm:$0xff]  ;;  %v11912_v41 = vld [vmem:[%s16926_s2 + $0x300] sm:$0xff] }
 0x135   :  { %868 = vmatpush1.msra.mxu0 %v17004_v42  ;;  %9584 = vmatprep.subr.mxu1 %v16955_v59  ;;  %v1062_v42 = vrot.slane %v11425_v1, 1 }
 0x136   :  { %756 = vmatprep.mubr.f32.mxu0 %v16955_v59  ;;  %9555 = vmatprep.mubr.msk.f32.mxu1 %vm10564_vm0, %v16955_v59 }
 0x137   :  { %869 = vmatprep.subr.mxu0 %v17005_v45  ;;  %9585 = vmatpush3.msra.mxu1 %v17006_v46  ;;  %v17008_v45 = vld [vmem:[#allocation66_spill] sm:$0xff]  ;;  %v17009_v46 = vrot.slane %v11251_v58, 1 }
 0x138   :  { %757 = vmatmul.mubr.f32.gmra.mxu0 %v11563_v43  ;;  %9556 = vmatmul.mubr.f32.gmra.mxu1 %v11563_v43 }
 0x139   :  { %870 = vmatpush1.msra.mxu0 %v17007_v47  ;;  %9586 = vmatprep.subr.mxu1 %v16955_v59  ;;  %v1063_v1 = vsel %vm1058_vm1, %v17009_v46, %v1062_v42  ;;  %v1887_v47 = vrot.slane %v11246_v0, 2  ;;  %v12286_v46 = vld [vmem:[%s16926_s2 + $0x4b0] sm:$0xff] }
 0x13a   :  { %871 = vmatprep.subr.mxu0 %v11361_v57  ;;  %9587 = vmatpush3.msra.mxu1 %v11366_v49  ;;  %v11595_v49 = vld [vmem:[%s16926_s2 + $0x470] sm:$0xff]  ;;  %v11676_v57 = vld [vmem:[%s16927_s7 + $0x40] sm:$0xf] }
 0x13b   :  { %872 = vmatpush1.msra.mxu0 %v11373_v61  ;;  %9588 = vmatprep.subr.mxu1 %v16955_v59  ;;  %v11648_v61 = vld [vmem:[%s16926_s2 + $0x448] sm:$0xff] }
 0x13c   :  { %873 = vmatprep.subr.mxu0 %v11380_v63  ;;  %9589 = vmatpush3.msra.mxu1 %v11385_v55  ;;  %v11633_v55 = vld [vmem:[%s16926_s2 + $0x450] sm:$0xff]  ;;  %v11662_v63 = vld [vmem:[%s16926_s2 + $0x428] sm:$0xff] }
 0x13d   :  { %9590 = vmatprep.mubr.msk.f32.mxu1 %vm10564_vm0, %v16955_v59  ;;  %874 = vmatpush1.msra.mxu0 %v11392_v56  ;;  %v11669_v56 = vld [vmem:[%s16926_s2 + $0x430] sm:$0xff] }
 0x13e   :  { %907 = vmatprep.mubr.f32.mxu0 %v16955_v59  ;;  %9591 = vmatmul.mubr.f32.vlgmr.msra.gmra.mxu1 %v11585_v48 }
 0x13f   :  { %9599 = vmatprep.subr.mxu1 %v16955_v59  ;;  %908 = vmatmul.mubr.f32.vlgmr.msra.gmra.mxu0 %v11585_v48 }
 0x140   :  { %1067 = vmatprep.subr.mxu0 %v11595_v49  ;;  %9600 = vmatpush3.msra.mxu1 %v11600_v50 }
 0x141   :  { %1068 = vmatpush1.msra.mxu0 %v11607_v51  ;;  %9601 = vmatprep.subr.mxu1 %v16955_v59 }
 0x142   :  { %9593 = vmatprep.mubr.msk.f32.mxu1 %vm10564_vm0, %v16955_v59  ;;  %1069 = vmatprep.subr.mxu0 %v11614_v52 }
 0x143   :  { %9602 = vmatpush3.msra.mxu1 %v11621_v53  ;;  %913 = vmatprep.mubr.f32.mxu0 %v16955_v59 }
 0x144   :  { %9594 = vmatmul.mubr.f32.gmra.mxu1 %v11628_v54  ;;  %1070 = vmatpush1.msra.mxu0 %v11633_v55 }
 0x145   :  { %9603 = vmatprep.subr.mxu1 %v16955_v59  ;;  %914 = vmatmul.mubr.f32.gmra.mxu0 %v11628_v54 }
 0x146   :  { %1071 = vmatprep.subr.mxu0 %v11643_v60  ;;  %9604 = vmatpush3.msra.mxu1 %v11648_v61 }
 0x147   :  { %1072 = vmatpush1.msra.mxu0 %v11655_v62  ;;  %9605 = vmatprep.subr.mxu1 %v16955_v59 }
 0x148   :  { %9596 = vmatprep.mubr.msk.f32.mxu1 %vm10564_vm0, %v16955_v59  ;;  %1073 = vmatprep.subr.mxu0 %v11662_v63 }
 0x149   :  { %9606 = vmatpush3.msra.mxu1 %v11669_v56  ;;  %919 = vmatprep.mubr.f32.mxu0 %v16955_v59 }
 0x14a   :  { %9597 = vmatmul.mubr.f32.gmra.mxu1 %v11676_v57  ;;  %1074 = vmatpush1.msra.mxu0 %v11681_v2 }
 0x14b   :  { %9607 = vmatprep.subr.mxu1 %v16955_v59  ;;  %920 = vmatmul.mubr.f32.gmra.mxu0 %v11676_v57 }
 0x14c   :  { %1075 = vmatprep.subr.mxu0 %v11691_v3  ;;  %9608 = vmatpush3.msra.mxu1 %v11696_v4 }
 0x14d   :  { %1076 = vmatpush1.msra.mxu0 %v11703_v5  ;;  %9609 = vmatprep.subr.mxu1 %v16955_v59 }
 0x14e   :  { %1077 = vmatprep.subr.mxu0 %v11710_v6  ;;  %9610 = vmatpush3.msra.mxu1 %v11715_v7 }
 0x14f   :  { %1078 = vmatpush1.msra.mxu0 %v11722_v8  ;;  %9611 = vmatprep.subr.mxu1 %v16955_v59 }
 0x150   :  { %1079 = vmatprep.subr.mxu0 %v11729_v9  ;;  %9612 = vmatpush3.msra.mxu1 %v11734_v10 }
 0x151   :  { %1080 = vmatpush1.msra.mxu0 %v11741_v11  ;;  %9613 = vmatprep.subr.mxu1 %v16955_v59 }
 0x152   :  { %1081 = vmatprep.subr.mxu0 %v11748_v12  ;;  %9614 = vmatpush3.msra.mxu1 %v11753_v13 }
 0x153   :  { %1082 = vmatpush1.msra.mxu0 %v11760_v14  ;;  %9615 = vmatprep.subr.mxu1 %v16955_v59 }
 0x154   :  { %1083 = vmatprep.subr.mxu0 %v11767_v15  ;;  %9616 = vmatpush3.msra.mxu1 %v11772_v16 }
 0x155   :  { %1084 = vmatpush1.msra.mxu0 %v11779_v17  ;;  %9617 = vmatprep.subr.mxu1 %v16955_v59 }
 0x156   :  { %1085 = vmatprep.subr.mxu0 %v11786_v18  ;;  %9618 = vmatpush3.msra.mxu1 %v11791_v19 }
 0x157   :  { %1086 = vmatpush1.msra.mxu0 %v11798_v20  ;;  %9619 = vmatprep.subr.mxu1 %v16955_v59 }
 0x158   :  { %1087 = vmatprep.subr.mxu0 %v11805_v21  ;;  %9620 = vmatpush3.msra.mxu1 %v11810_v22 }
 0x159   :  { %1088 = vmatpush1.msra.mxu0 %v11817_v23  ;;  %9621 = vmatprep.subr.mxu1 %v16955_v59 }
 0x15a   :  { %1089 = vmatprep.subr.mxu0 %v11824_v24  ;;  %9622 = vmatpush3.msra.mxu1 %v11829_v25 }
 0x15b   :  { %1090 = vmatpush1.msra.mxu0 %v11836_v26  ;;  %9623 = vmatprep.subr.mxu1 %v16955_v59 }
 0x15c   :  { %1091 = vmatprep.subr.mxu0 %v11843_v27  ;;  %9624 = vmatpush3.msra.mxu1 %v11848_v28 }
 0x15d   :  { %1092 = vmatpush1.msra.mxu0 %v11855_v29  ;;  %9625 = vmatprep.subr.mxu1 %v16955_v59 }
 0x15e   :  { %1093 = vmatprep.subr.mxu0 %v11862_v30  ;;  %9626 = vmatpush3.msra.mxu1 %v11867_v31 }
 0x15f   :  { %1094 = vmatpush1.msra.mxu0 %v11874_v32  ;;  %9627 = vmatprep.subr.mxu1 %v16955_v59 }
 0x160   :  { %1095 = vmatprep.subr.mxu0 %v11881_v33  ;;  %9628 = vmatpush3.msra.mxu1 %v11886_v37 }
 0x161   :  { %1096 = vmatpush1.msra.mxu0 %v11893_v38  ;;  %9629 = vmatprep.subr.mxu1 %v16955_v59 }
 0x162   :  { %1097 = vmatprep.subr.mxu0 %v11900_v39  ;;  %9630 = vmatpush3.msra.mxu1 %v11905_v40 }
 0x163   :  { %9631 = vmatprep.mubr.msk.f32.mxu1 %vm10564_vm0, %v16955_v59  ;;  %1098 = vmatpush1.msra.mxu0 %v11912_v41 }
 0x164   :  { %1131 = vmatprep.mubr.f32.mxu0 %v16955_v59  ;;  %9632 = vmatmul.mubr.f32.vlgmr.msra.gmra.mxu1 %v17008_v45 }
 0x165   :  { %9640 = vmatprep.subr.mxu1 %v16955_v59  ;;  %1132 = vmatmul.mubr.f32.vlgmr.msra.gmra.mxu0 %v17008_v45  ;;  %v12279_v45 = vld [vmem:[%s16926_s2 + $0x4c0] sm:$0xff] }
 0x166   :  { %1250 = vmatprep.subr.mxu0 %v11595_v49  ;;  %9641 = vmatpush3.msra.mxu1 %v11600_v50  ;;  %v16629_v49 = vrot.slane %v11251_v58, 2  ;;  %v1242_v50 = vrot.slane %v11585_v48, 1 }
 0x167   :  { %1251 = vmatpush1.msra.mxu0 %v11607_v51  ;;  %9642 = vmatprep.subr.mxu1 %v16955_v59  ;;  %v1243_v51 = vrot.slane %v11628_v54, 1  ;;  %v1245_v54 = vrot.slane %v11676_v57, 1  ;;  %v12058_v57 = vld [vmem:[%s16926_s2 + $0x5c0] sm:$0xff] }
 0x168   :  { %9634 = vmatprep.mubr.msk.f32.mxu1 %vm10564_vm0, %v16955_v59  ;;  %1252 = vmatprep.subr.mxu0 %v11614_v52  ;;  %v11976_v0 = vsel %vm1886_vm2, %v1887_v47, %v16629_v49  ;;  %v12013_v52 = vld [vmem:[%s16926_s2 + $0x5f0] sm:$0xff] }
 0x169   :  { %9643 = vmatpush3.msra.mxu1 %v11621_v53  ;;  %1137 = vmatprep.mubr.f32.mxu0 %v16955_v59  ;;  %v1244_v48 = vsel %vm1058_vm1, %v1242_v50, %v1243_v51  ;;  %v12018_v53 = vld [vmem:[%s16926_s2 + $0x5f8] sm:$0xff]  ;;  %v12295_v50 = vld [vmem:[%s16926_s2 + $0x4a0] sm:$0xff] }
 0x16a   :  { %9635 = vmatmul.mubr.f32.gmra.mxu1 %v1063_v1  ;;  %1253 = vmatpush1.msra.mxu0 %v11633_v55  ;;  %v12025_v55 = vld [vmem:[%s16926_s2 + $0x5e8] sm:$0xff] }
 0x16b   :  { %9644 = vmatprep.subr.mxu1 %v16955_v59  ;;  %1138 = vmatmul.mubr.f32.gmra.mxu0 %v1063_v1 }
 0x16c   :  { %1254 = vmatprep.subr.mxu0 %v11643_v60  ;;  %9645 = vmatpush3.msra.mxu1 %v11648_v61  ;;  %v12031_v60 = vld [vmem:[%s16926_s2 + $0x5d8] sm:$0xff]  ;;  %v12038_v61 = vld [vmem:[%s16926_s2 + $0x5e0] sm:$0xff] }
 0x16d   :  { %1255 = vmatpush1.msra.mxu0 %v11655_v62  ;;  %9646 = vmatprep.subr.mxu1 %v16955_v59  ;;  %v1246_v62 = vsel %vm1058_vm1, %v1243_v51, %v1245_v54  ;;  %v12300_v51 = vld [vmem:[%s16926_s2 + $0x4a8] sm:$0xff] }
 0x16e   :  { %9637 = vmatprep.mubr.msk.f32.mxu1 %vm10564_vm0, %v16955_v59  ;;  %1256 = vmatprep.subr.mxu0 %v11662_v63  ;;  %v12046_v63 = vld [vmem:[%s16926_s2 + $0x5d0] sm:$0xff] }
 0x16f   :  { %9647 = vmatpush3.msra.mxu1 %v11669_v56  ;;  %1143 = vmatprep.mubr.f32.mxu0 %v16955_v59 }
 0x170   :  { %9638 = vmatmul.mubr.f32.gmra.mxu1 %v1062_v42  ;;  %1257 = vmatpush1.msra.mxu0 %v11681_v2  ;;  %v12063_v2 = vld [vmem:[%s16926_s2 + $0x5c8] sm:$0xff] }
 0x171   :  { %9648 = vmatprep.subr.mxu1 %v16955_v59  ;;  %1144 = vmatmul.mubr.f32.gmra.mxu0 %v1062_v42  ;;  %v12274_v42 = vld [vmem:[%s16926_s2 + $0x4b8] sm:$0xff] }
 0x172   :  { %1258 = vmatprep.subr.mxu0 %v11691_v3  ;;  %9649 = vmatpush3.msra.mxu1 %v11696_v4  ;;  %v12069_v4 = vld [vmem:[%s16926_s2 + $0x5b8] sm:$0xff] }
 0x173   :  { %1259 = vmatpush1.msra.mxu0 %v11703_v5  ;;  %9650 = vmatprep.subr.mxu1 %v16955_v59  ;;  %v12075_v5 = vld [vmem:[%s16926_s2 + $0x5a8] sm:$0xff] }
 0x174   :  { %1260 = vmatprep.subr.mxu0 %v11710_v6  ;;  %9651 = vmatpush3.msra.mxu1 %v11715_v7  ;;  %v12082_v6 = vld [vmem:[%s16926_s2 + $0x5b0] sm:$0xff]  ;;  %v12089_v7 = vld [vmem:[%s16926_s2 + $0x5a0] sm:$0xff] }
 0x175   :  { %1261 = vmatpush1.msra.mxu0 %v11722_v8  ;;  %9652 = vmatprep.subr.mxu1 %v16955_v59  ;;  %v12099_v8 = vld [vmem:[%s16926_s2 + $0x590] sm:$0xff] }
 0x176   :  { %1262 = vmatprep.subr.mxu0 %v11729_v9  ;;  %9653 = vmatpush3.msra.mxu1 %v11734_v10  ;;  %v12104_v9 = vld [vmem:[%s16926_s2 + $0x598] sm:$0xff]  ;;  %v12110_v10 = vld [vmem:[%s16926_s2 + $0x588] sm:$0xff] }
 0x177   :  { %1263 = vmatpush1.msra.mxu0 %v11741_v11  ;;  %9654 = vmatprep.subr.mxu1 %v16955_v59  ;;  %v12116_v11 = vld [vmem:[%s16926_s2 + $0x578] sm:$0xff] }
 0x178   :  { %1264 = vmatprep.subr.mxu0 %v11748_v12  ;;  %9655 = vmatpush3.msra.mxu1 %v11753_v13  ;;  %v12121_v12 = vld [vmem:[%s16926_s2 + $0x580] sm:$0xff]  ;;  %v12128_v13 = vld [vmem:[%s16926_s2 + $0x570] sm:$0xff] }
 0x179   :  { %1265 = vmatpush1.msra.mxu0 %v11760_v14  ;;  %9656 = vmatprep.subr.mxu1 %v16955_v59  ;;  %v12135_v14 = vld [vmem:[%s16926_s2 + $0x560] sm:$0xff] }
 0x17a   :  { %1266 = vmatprep.subr.mxu0 %v11767_v15  ;;  %9657 = vmatpush3.msra.mxu1 %v11772_v16  ;;  %v12140_v15 = vld [vmem:[%s16926_s2 + $0x568] sm:$0xff]  ;;  %v12147_v16 = vld [vmem:[%s16926_s2 + $0x558] sm:$0xff] }
 0x17b   :  { %1267 = vmatpush1.msra.mxu0 %v11779_v17  ;;  %9658 = vmatprep.subr.mxu1 %v16955_v59  ;;  %v12154_v17 = vld [vmem:[%s16926_s2 + $0x548] sm:$0xff] }
 0x17c   :  { %1268 = vmatprep.subr.mxu0 %v11786_v18  ;;  %9659 = vmatpush3.msra.mxu1 %v11791_v19  ;;  %v12159_v18 = vld [vmem:[%s16926_s2 + $0x550] sm:$0xff]  ;;  %v12166_v19 = vld [vmem:[%s16926_s2 + $0x540] sm:$0xff] }
 0x17d   :  { %1269 = vmatpush1.msra.mxu0 %v11798_v20  ;;  %9660 = vmatprep.subr.mxu1 %v16955_v59  ;;  %v12173_v20 = vld [vmem:[%s16926_s2 + $0x530] sm:$0xff] }
 0x17e   :  { %1270 = vmatprep.subr.mxu0 %v11805_v21  ;;  %9661 = vmatpush3.msra.mxu1 %v11810_v22  ;;  %v12178_v21 = vld [vmem:[%s16926_s2 + $0x538] sm:$0xff]  ;;  %v12185_v22 = vld [vmem:[%s16926_s2 + $0x528] sm:$0xff] }
 0x17f   :  { %1271 = vmatpush1.msra.mxu0 %v11817_v23  ;;  %9662 = vmatprep.subr.mxu1 %v16955_v59  ;;  %v12192_v23 = vld [vmem:[%s16926_s2 + $0x518] sm:$0xff] }
 0x180   :  { %1272 = vmatprep.subr.mxu0 %v11824_v24  ;;  %9663 = vmatpush3.msra.mxu1 %v11829_v25  ;;  %v12197_v24 = vld [vmem:[%s16926_s2 + $0x520] sm:$0xff]  ;;  %v12204_v25 = vld [vmem:[%s16926_s2 + $0x510] sm:$0xff] }
 0x181   :  { %1273 = vmatpush1.msra.mxu0 %v11836_v26  ;;  %9664 = vmatprep.subr.mxu1 %v16955_v59 }
 0x182   :  { %1274 = vmatprep.subr.mxu0 %v11843_v27  ;;  %9665 = vmatpush3.msra.mxu1 %v11848_v28  ;;  %v12213_v27 = vld [vmem:[%s16926_s2 + $0x500] sm:$0xff]  ;;  %v12218_v28 = vld [vmem:[%s16926_s2 + $0x508] sm:$0xff] }
 0x183   :  { %1275 = vmatpush1.msra.mxu0 %v11855_v29  ;;  %9666 = vmatprep.subr.mxu1 %v16955_v59  ;;  %v12225_v29 = vld [vmem:[%s16926_s2 + $0x4f8] sm:$0xff] }
 0x184   :  { %1276 = vmatprep.subr.mxu0 %v11862_v30  ;;  %9667 = vmatpush3.msra.mxu1 %v11867_v31  ;;  %v12232_v30 = vld [vmem:[%s16926_s2 + $0x4e8] sm:$0xff]  ;;  %v12237_v31 = vld [vmem:[%s16926_s2 + $0x4f0] sm:$0xff] }
 0x185   :  { %1277 = vmatpush1.msra.mxu0 %v11874_v32  ;;  %9668 = vmatprep.subr.mxu1 %v16955_v59  ;;  %v12244_v32 = vld [vmem:[%s16926_s2 + $0x4e0] sm:$0xff] }
 0x186   :  { %1278 = vmatprep.subr.mxu0 %v11881_v33  ;;  %9669 = vmatpush3.msra.mxu1 %v11886_v37  ;;  %v12253_v37 = vld [vmem:[%s16926_s2 + $0x4d0] sm:$0xff] }
 0x187   :  { %1279 = vmatpush1.msra.mxu0 %v11893_v38  ;;  %9670 = vmatprep.subr.mxu1 %v16955_v59  ;;  %v12258_v38 = vld [vmem:[%s16926_s2 + $0x4d8] sm:$0xff] }
 0x188   :  { %1280 = vmatprep.subr.mxu0 %v11900_v39  ;;  %9671 = vmatpush3.msra.mxu1 %v11905_v40  ;;  %v12265_v39 = vld [vmem:[%s16926_s2 + $0x4c8] sm:$0xff] }
 0x189   :  { %9672 = vmatprep.mubr.msk.f32.mxu1 %vm10564_vm0, %v16955_v59  ;;  %1281 = vmatpush1.msra.mxu0 %v11912_v41 }
 0x18a   :  { %1314 = vmatprep.mubr.f32.mxu0 %v16955_v59  ;;  %9673 = vmatmul.mubr.f32.vlgmr.msra.gmra.mxu1 %v1244_v48 }
 0x18b   :  { %9681 = vmatprep.subr.mxu1 %v16955_v59  ;;  %1315 = vmatmul.mubr.f32.vlgmr.msra.gmra.mxu0 %v1244_v48  ;;  %v12307_v48 = vld [vmem:[%s16926_s2 + $0x498] sm:$0xff] }
 0x18c   :  { %1482 = vmatprep.subr.mxu0 %v12013_v52  ;;  %9682 = vmatpush3.msra.mxu1 %v12018_v53 }
 0x18d   :  { %1483 = vmatpush1.msra.mxu0 %v12025_v55  ;;  %9683 = vmatprep.subr.mxu1 %v16955_v59  ;;  %v12048_v56 = vpop.f32.mrf.mxu1  ;;  %v12206_v26 = vpop.f32.mrf.mxu0 }
 0x18e   :  { %9675 = vmatprep.mubr.msk.f32.mxu1 %vm10564_vm0, %v16955_v59  ;;  %1484 = vmatprep.subr.mxu0 %v12031_v60 }
 0x18f   :  { %9684 = vmatpush3.msra.mxu1 %v12038_v61  ;;  %1320 = vmatprep.mubr.f32.mxu0 %v16955_v59  ;;  %v9469_v3 = vpop.f32.mrf.mxu1  ;;  %v12246_v33 = vpop.f32.mrf.mxu0 }
 0x190   :  { %9676 = vmatmul.mubr.f32.gmra.mxu1 %v1246_v62  ;;  %1485 = vmatpush1.msra.mxu0 %v12046_v63  ;;  %17010 = vst [vmem:[#allocation35_spill] sm:$0xff] %v12246_v33  ;;  %v12326_v3 = vld [vmem:[%s16926_s2 + $0x480] sm:$0xff] }
 0x191   :  { %9685 = vmatprep.subr.mxu1 %v16955_v59  ;;  %1321 = vmatmul.mubr.f32.gmra.mxu0 %v1246_v62  ;;  %v12319_v62 = vld [vmem:[%s16926_s2 + $0x490] sm:$0xff] }
 0x192   :  { %1486 = vmatprep.subr.mxu0 %v12058_v57  ;;  %9686 = vmatpush3.msra.mxu1 %v12063_v2 }
 0x193   :  { %1487 = vmatpush1.msra.mxu0 %v12069_v4  ;;  %9687 = vmatprep.subr.mxu1 %v16955_v59 }
 0x194   :  { %9678 = vmatprep.mubr.msk.f32.mxu1 %vm10564_vm0, %v16955_v59  ;;  %1488 = vmatprep.subr.mxu0 %v12075_v5 }
 0x195   :  { %9688 = vmatpush3.msra.mxu1 %v12082_v6  ;;  %1326 = vmatprep.mubr.f32.mxu0 %v16955_v59 }
 0x196   :  { %9679 = vmatmul.mubr.f32.gmra.mxu1 %v1245_v54  ;;  %1489 = vmatpush1.msra.mxu0 %v12089_v7 }
 0x197   :  { %9689 = vmatprep.subr.mxu1 %v16955_v59  ;;  %1327 = vmatmul.mubr.f32.gmra.mxu0 %v1245_v54  ;;  %v12314_v54 = vld [vmem:[%s16926_s2 + $0x488] sm:$0xff] }
 0x198   :  { %1490 = vmatprep.subr.mxu0 %v12099_v8  ;;  %9690 = vmatpush3.msra.mxu1 %v12104_v9 }
 0x199   :  { %1491 = vmatpush1.msra.mxu0 %v12110_v10  ;;  %9691 = vmatprep.subr.mxu1 %v16955_v59 }
 0x19a   :  { %1492 = vmatprep.subr.mxu0 %v12116_v11  ;;  %9692 = vmatpush3.msra.mxu1 %v12121_v12 }
 0x19b   :  { %1493 = vmatpush1.msra.mxu0 %v12128_v13  ;;  %9693 = vmatprep.subr.mxu1 %v16955_v59 }
 0x19c   :  { %1494 = vmatprep.subr.mxu0 %v12135_v14  ;;  %9694 = vmatpush3.msra.mxu1 %v12140_v15 }
 0x19d   :  { %1495 = vmatpush1.msra.mxu0 %v12147_v16  ;;  %9695 = vmatprep.subr.mxu1 %v16955_v59 }
 0x19e   :  { %1496 = vmatprep.subr.mxu0 %v12154_v17  ;;  %9696 = vmatpush3.msra.mxu1 %v12159_v18 }
 0x19f   :  { %1497 = vmatpush1.msra.mxu0 %v12166_v19  ;;  %9697 = vmatprep.subr.mxu1 %v16955_v59 }
 0x1a0   :  { %1498 = vmatprep.subr.mxu0 %v12173_v20  ;;  %9698 = vmatpush3.msra.mxu1 %v12178_v21 }
 0x1a1   :  { %1499 = vmatpush1.msra.mxu0 %v12185_v22  ;;  %9699 = vmatprep.subr.mxu1 %v16955_v59 }
 0x1a2   :  { %1500 = vmatprep.subr.mxu0 %v12192_v23  ;;  %9700 = vmatpush3.msra.mxu1 %v12197_v24 }
 0x1a3   :  { %1501 = vmatpush1.msra.mxu0 %v12204_v25  ;;  %9701 = vmatprep.subr.mxu1 %v16955_v59 }
 0x1a4   :  { %1502 = vmatprep.subr.mxu0 %v12213_v27  ;;  %9702 = vmatpush3.msra.mxu1 %v12218_v28 }
 0x1a5   :  { %1503 = vmatpush1.msra.mxu0 %v12225_v29  ;;  %9703 = vmatprep.subr.mxu1 %v16955_v59 }
 0x1a6   :  { %1504 = vmatprep.subr.mxu0 %v12232_v30  ;;  %9704 = vmatpush3.msra.mxu1 %v12237_v31  ;;  %v12267_v40 = vpop.f32.mrf.mxu0  ;;  %v504_v41 = vpop.f32.mrf.mxu1 }
 0x1a7   :  { %1505 = vmatpush1.msra.mxu0 %v12244_v32  ;;  %9705 = vmatprep.subr.mxu1 %v16955_v59 }
 0x1a8   :  { %1506 = vmatprep.subr.mxu0 %v12253_v37  ;;  %9706 = vmatpush3.msra.mxu1 %v12258_v38  ;;  %v12288_v1 = vpop.f32.mrf.mxu0  ;;  %v9472_v47 = vpop.f32.mrf.mxu1 }
 0x1a9   :  { %17011 = vst [vmem:[#allocation36_spill] sm:$0xff] %v12288_v1  ;;  %1507 = vmatpush1.msra.mxu0 %v12265_v39  ;;  %9707 = vmatprep.subr.mxu1 %v16955_v59 }
 0x1aa   :  { %1508 = vmatprep.subr.mxu0 %v12274_v42  ;;  %9708 = vmatpush3.msra.mxu1 %v12279_v45 }
 0x1ab   :  { %1509 = vmatpush1.msra.mxu0 %v12286_v46  ;;  %9709 = vmatprep.subr.mxu1 %v16955_v59 }
 0x1ac   :  { %1510 = vmatprep.subr.mxu0 %v12295_v50  ;;  %9710 = vmatpush3.msra.mxu1 %v12300_v51  ;;  %v428_v47 = vpop.f32.mrf.mxu0  ;;  %v509_v49 = vpop.f32.mrf.mxu1 }
 0x1ad   :  { %1511 = vmatpush1.msra.mxu0 %v12307_v48  ;;  %9711 = vmatprep.subr.mxu1 %v16955_v59 }
 0x1ae   :  { %1512 = vmatprep.subr.mxu0 %v12314_v54  ;;  %9712 = vmatpush3.msra.mxu1 %v12319_v62  ;;  %v9475_v33 = vpop.f32.mrf.mxu1  ;;  %v12335_v1 = vpop.f32.mrf.mxu0 }
 0x1af   :  { %9713 = vmatprep.mubr.msk.f32.mxu1 %vm10564_vm0, %v16955_v59  ;;  %1513 = vmatpush1.msra.mxu0 %v12326_v3  ;;  %17012 = vst [vmem:[#allocation37_spill] sm:$0xff] %v12335_v1 }
 0x1b0   :  { %1546 = vmatprep.mubr.f32.mxu0 %v16955_v59  ;;  %9714 = vmatmul.mubr.f32.vlgmr.msra.gmra.mxu1 %v11542_v35 }
 0x1b1   :  { %9722 = vmatprep.subr.mxu1 %v16955_v59  ;;  %1547 = vmatmul.mubr.f32.vlgmr.msra.gmra.mxu0 %v11542_v35 }
 0x1b2   :  { %1665 = vmatprep.subr.mxu0 %v12013_v52  ;;  %9723 = vmatpush3.msra.mxu1 %v12018_v53  ;;  %v662_v33 = vpop.f32.mrf.mxu1 }
 0x1b3   :  { %1666 = vmatpush1.msra.mxu0 %v12025_v55  ;;  %9724 = vmatprep.subr.mxu1 %v16955_v59  ;;  %v12346_v58 = vadd.f32 %v662_v33, %v12048_v56  ;;  %v579_v1 = vpop.f32.mrf.mxu0 }
 0x1b4   :  { %9716 = vmatprep.mubr.msk.f32.mxu1 %vm10564_vm0, %v16955_v59  ;;  %1667 = vmatprep.subr.mxu0 %v12031_v60  ;;  %v12352_v35 = vadd.f32 %v579_v1, %v12206_v26  ;;  %v9510_v52 = vpop.f32.mrf.mxu1  ;;  %v12546_v26 = vld [vmem:[%s16926_s2 + $0x6f8] sm:$0xff]  ;;  %v12636_v1 = vld [vmem:[%s16926_s2 + $0x690] sm:$0xff] }
 0x1b5   :  { %17013 = vst [vmem:[#allocation38_spill] sm:$0xff] %v12346_v58  ;;  %9725 = vmatpush3.msra.mxu1 %v12038_v61  ;;  %1552 = vmatprep.mubr.f32.mxu0 %v16955_v59  ;;  %v12356_v53 = vpop.f32.mrf.mxu0  ;;  %v12685_v52 = vld [vmem:[%s16926_s2 + $0x650] sm:$0xff] }
 0x1b6   :  { %17014 = vst [vmem:[#allocation39_spill] sm:$0xff] %v12352_v35  ;;  %17015 = vst [vmem:[#allocation40_spill] sm:$0xff] %v12356_v53  ;;  %9717 = vmatmul.mubr.f32.gmra.mxu1 %v11567_v44  ;;  %1668 = vmatpush1.msra.mxu0 %v12046_v63 }
 0x1b7   :  { %9726 = vmatprep.subr.mxu1 %v16955_v59  ;;  %1553 = vmatmul.mubr.f32.gmra.mxu0 %v11567_v44 }
 0x1b8   :  { %1669 = vmatprep.subr.mxu0 %v12058_v57  ;;  %9727 = vmatpush3.msra.mxu1 %v12063_v2  ;;  %v667_v55 = vpop.f32.mrf.mxu1 }
 0x1b9   :  { %1670 = vmatpush1.msra.mxu0 %v12069_v4  ;;  %9728 = vmatprep.subr.mxu1 %v16955_v59  ;;  %v12366_v60 = vadd.f32 %v667_v55, %v504_v41  ;;  %v585_v61 = vpop.f32.mrf.mxu0  ;;  %v12690_v55 = vld [vmem:[%s16926_s2 + $0x658] sm:$0xff] }
 0x1ba   :  { %9719 = vmatprep.mubr.msk.f32.mxu1 %vm10564_vm0, %v16955_v59  ;;  %1671 = vmatprep.subr.mxu0 %v12075_v5  ;;  %v12372_v63 = vadd.f32 %v585_v61, %v12267_v40  ;;  %v9513_v44 = vpop.f32.mrf.mxu1  ;;  %v12608_v40 = vld [vmem:[%s16926_s2 + $0x6b8] sm:$0xff]  ;;  %v12697_v61 = vld [vmem:[%s16926_s2 + $0x648] sm:$0xff] }
 0x1bb   :  { %17016 = vst [vmem:[#allocation41_spill] sm:$0xff] %v12366_v60  ;;  %9729 = vmatpush3.msra.mxu1 %v12082_v6  ;;  %1558 = vmatprep.mubr.f32.mxu0 %v16955_v59  ;;  %v12376_v56 = vpop.f32.mrf.mxu0  ;;  %v17024_v60 = vld [vmem:[#allocation60_spill] sm:$0xff] }
 0x1bc   :  { %17017 = vst [vmem:[#allocation42_spill] sm:$0xff] %v12372_v63  ;;  %17018 = vst [vmem:[#allocation43_spill] sm:$0xff] %v12376_v56  ;;  %9720 = vmatmul.mubr.f32.gmra.mxu1 %v11548_v36  ;;  %1672 = vmatpush1.msra.mxu0 %v12089_v7  ;;  %v1658_v7 = vrot.slane %v11539_v34, 1  ;;  %v10227_v56 = vld [vmem:[%s16927_s7 + $0x10] sm:$0xf] }
 0x1bd   :  { %9730 = vmatprep.subr.mxu1 %v16955_v59  ;;  %1559 = vmatmul.mubr.f32.gmra.mxu0 %v11548_v36  ;;  %v10226_v36 = vld [vmem:[%s16927_s7 + $0x48] sm:$0xff] }
 0x1be   :  { %1673 = vmatprep.subr.mxu0 %v12099_v8  ;;  %9731 = vmatpush3.msra.mxu1 %v12104_v9  ;;  %v672_v57 = vpop.f32.mrf.mxu1  ;;  %v1660_v8 = vrot.slane %v11563_v43, 1  ;;  %v12444_v9 = vld [vmem:[%s16926_s2 + $0x770] sm:$0xff]  ;;  %v12455_v43 = vld [vmem:[%s16926_s2 + $0x768] sm:$0xff] }
 0x1bf   :  { %1674 = vmatpush1.msra.mxu0 %v12110_v10  ;;  %9732 = vmatprep.subr.mxu1 %v16955_v59  ;;  %v12386_v2 = vadd.f32 %v672_v57, %v509_v49  ;;  %v591_v4 = vpop.f32.mrf.mxu0  ;;  %v1657_v49 = vrot.slane %v10226_v36, 1  ;;  %v12449_v10 = vld [vmem:[%s16926_s2 + $0x778] sm:$0xff]  ;;  %v12720_v36 = vld [vmem:[%s16926_s2 + $0x630] sm:$0xff] }
 0x1c0   :  { %1675 = vmatprep.subr.mxu0 %v12116_v11  ;;  %9733 = vmatpush3.msra.mxu1 %v12121_v12  ;;  %v12390_v5 = vadd.f32 %v591_v4, %v428_v47  ;;  %v9516_v6 = vpop.f32.mrf.mxu1  ;;  %v12461_v11 = vld [vmem:[%s16926_s2 + $0x758] sm:$0xff]  ;;  %v12468_v12 = vld [vmem:[%s16926_s2 + $0x760] sm:$0xff] }
 0x1c1   :  { %17019 = vst [vmem:[#allocation44_spill] sm:$0xff] %v12386_v2  ;;  %1676 = vmatpush1.msra.mxu0 %v12128_v13  ;;  %9734 = vmatprep.subr.mxu1 %v16955_v59  ;;  %v1659_v34 = vsel %vm1058_vm1, %v1657_v49, %v1658_v7  ;;  %v1661_v13 = vsel %vm1058_vm1, %v1658_v7, %v1660_v8  ;;  %v12610_v41 = vpop.f32.mrf.mxu0  ;;  %v12676_v47 = vld [vmem:[%s16926_s2 + $0x660] sm:$0xff]  ;;  %v12708_v4 = vld [vmem:[%s16926_s2 + $0x638] sm:$0xff] }
 0x1c2   :  { %17020 = vst [vmem:[#allocation45_spill] sm:$0xff] %v12390_v5  ;;  %1677 = vmatprep.subr.mxu0 %v12135_v14  ;;  %9735 = vmatpush3.msra.mxu1 %v12140_v15  ;;  %v12476_v14 = vld [vmem:[%s16926_s2 + $0x750] sm:$0xff]  ;;  %17021 = vst [vmem:[#allocation46_spill] sm:$0xff] %v12610_v41  ;;  %v12713_v6 = vld [vmem:[%s16926_s2 + $0x640] sm:$0xff]  ;;  %v1890_v41 = vrot.slane %v10227_v56, 2  ;;  %v17025_v56 = vrot.slane %v17024_v60, 2 }
 0x1c3   :  { %1678 = vmatpush1.msra.mxu0 %v12147_v16  ;;  %9736 = vmatprep.subr.mxu1 %v16955_v59  ;;  %v12488_v16 = vld [vmem:[%s16926_s2 + $0x740] sm:$0xff] }
 0x1c4   :  { %1679 = vmatprep.subr.mxu0 %v12154_v17  ;;  %9737 = vmatpush3.msra.mxu1 %v12159_v18  ;;  %v12493_v17 = vld [vmem:[%s16926_s2 + $0x748] sm:$0xff]  ;;  %v1891_v35 = vsel %vm1886_vm2, %v17025_v56, %v1890_v41  ;;  %v12959_v56 = vld [vmem:[#allocation4 + $0x60] sm:$0xff] }
 0x1c5   :  { %1680 = vmatpush1.msra.mxu0 %v12166_v19  ;;  %9738 = vmatprep.subr.mxu1 %v16955_v59  ;;  %v12499_v19 = vld [vmem:[%s16926_s2 + $0x738] sm:$0xff]  ;;  %17039 = vst [vmem:[#allocation56_spill] sm:$0xff] %v12959_v56 }
 0x1c6   :  { %1681 = vmatprep.subr.mxu0 %v12173_v20  ;;  %9739 = vmatpush3.msra.mxu1 %v12178_v21  ;;  %v12505_v20 = vld [vmem:[%s16926_s2 + $0x728] sm:$0xff]  ;;  %v12512_v21 = vld [vmem:[%s16926_s2 + $0x730] sm:$0xff] }
 0x1c7   :  { %1682 = vmatpush1.msra.mxu0 %v12185_v22  ;;  %9740 = vmatprep.subr.mxu1 %v16955_v59  ;;  %v12519_v22 = vld [vmem:[%s16926_s2 + $0x720] sm:$0xff] }
 0x1c8   :  { %1683 = vmatprep.subr.mxu0 %v12192_v23  ;;  %9741 = vmatpush3.msra.mxu1 %v12197_v24  ;;  %v12529_v23 = vld [vmem:[%s16926_s2 + $0x710] sm:$0xff]  ;;  %v12534_v24 = vld [vmem:[%s16926_s2 + $0x718] sm:$0xff] }
 0x1c9   :  { %1684 = vmatpush1.msra.mxu0 %v12204_v25  ;;  %9742 = vmatprep.subr.mxu1 %v16955_v59  ;;  %v12540_v25 = vld [vmem:[%s16926_s2 + $0x708] sm:$0xff] }
 0x1ca   :  { %1685 = vmatprep.subr.mxu0 %v12213_v27  ;;  %9743 = vmatpush3.msra.mxu1 %v12218_v28  ;;  %v12551_v27 = vld [vmem:[%s16926_s2 + $0x700] sm:$0xff]  ;;  %v12558_v28 = vld [vmem:[%s16926_s2 + $0x6f0] sm:$0xff] }
 0x1cb   :  { %1686 = vmatpush1.msra.mxu0 %v12225_v29  ;;  %9744 = vmatprep.subr.mxu1 %v16955_v59  ;;  %v12565_v29 = vld [vmem:[%s16926_s2 + $0x6e0] sm:$0xff] }
 0x1cc   :  { %1687 = vmatprep.subr.mxu0 %v12232_v30  ;;  %9745 = vmatpush3.msra.mxu1 %v12237_v31  ;;  %v12570_v30 = vld [vmem:[%s16926_s2 + $0x6e8] sm:$0xff]  ;;  %v12577_v31 = vld [vmem:[%s16926_s2 + $0x6d8] sm:$0xff] }
 0x1cd   :  { %1688 = vmatpush1.msra.mxu0 %v12244_v32  ;;  %9746 = vmatprep.subr.mxu1 %v16955_v59  ;;  %v12584_v32 = vld [vmem:[%s16926_s2 + $0x6c8] sm:$0xff] }
 0x1ce   :  { %1689 = vmatprep.subr.mxu0 %v12253_v37  ;;  %9747 = vmatpush3.msra.mxu1 %v12258_v38  ;;  %v12589_v37 = vld [vmem:[%s16926_s2 + $0x6d0] sm:$0xff]  ;;  %v12596_v38 = vld [vmem:[%s16926_s2 + $0x6c0] sm:$0xff] }
 0x1cf   :  { %1690 = vmatpush1.msra.mxu0 %v12265_v39  ;;  %9748 = vmatprep.subr.mxu1 %v16955_v59  ;;  %v12603_v39 = vld [vmem:[%s16926_s2 + $0x6b0] sm:$0xff] }
 0x1d0   :  { %1691 = vmatprep.subr.mxu0 %v12274_v42  ;;  %9749 = vmatpush3.msra.mxu1 %v12279_v45  ;;  %v12617_v42 = vld [vmem:[%s16926_s2 + $0x6a8] sm:$0xff]  ;;  %v12624_v45 = vld [vmem:[%s16926_s2 + $0x698] sm:$0xff] }
 0x1d1   :  { %1692 = vmatpush1.msra.mxu0 %v12286_v46  ;;  %9750 = vmatprep.subr.mxu1 %v16955_v59  ;;  %v12629_v46 = vld [vmem:[%s16926_s2 + $0x6a0] sm:$0xff] }
 0x1d2   :  { %1693 = vmatprep.subr.mxu0 %v12295_v50  ;;  %9751 = vmatpush3.msra.mxu1 %v12300_v51  ;;  %v12645_v51 = vld [vmem:[%s16926_s2 + $0x680] sm:$0xff] }
 0x1d3   :  { %1694 = vmatpush1.msra.mxu0 %v12307_v48  ;;  %9752 = vmatprep.subr.mxu1 %v16955_v59  ;;  %v12650_v48 = vld [vmem:[%s16926_s2 + $0x688] sm:$0xff] }
 0x1d4   :  { %1695 = vmatprep.subr.mxu0 %v12314_v54  ;;  %9753 = vmatpush3.msra.mxu1 %v12319_v62  ;;  %v12657_v54 = vld [vmem:[%s16926_s2 + $0x678] sm:$0xff]  ;;  %v12664_v62 = vld [vmem:[%s16926_s2 + $0x668] sm:$0xff] }
 0x1d5   :  { %9754 = vmatprep.mubr.msk.f32.mxu1 %vm10564_vm0, %v16955_v59  ;;  %1696 = vmatpush1.msra.mxu0 %v12326_v3  ;;  %v12669_v3 = vld [vmem:[%s16926_s2 + $0x670] sm:$0xff] }
 0x1d6   :  { %1729 = vmatprep.mubr.f32.mxu0 %v16955_v59  ;;  %9755 = vmatmul.mubr.f32.vlgmr.msra.gmra.mxu1 %v1659_v34 }
 0x1d7   :  { %9763 = vmatprep.subr.mxu1 %v16955_v59  ;;  %1730 = vmatmul.mubr.f32.vlgmr.msra.gmra.mxu0 %v1659_v34  ;;  %v12729_v34 = vld [vmem:[%s16926_s2 + $0x620] sm:$0xff] }
 0x1d8   :  { %1895 = vmatprep.subr.mxu0 %v12444_v9  ;;  %9764 = vmatpush3.msra.mxu1 %v12449_v10 }
 0x1d9   :  { %1896 = vmatpush1.msra.mxu0 %v12455_v43  ;;  %9765 = vmatprep.subr.mxu1 %v16955_v59  ;;  %v12478_v15 = vpop.f32.mrf.mxu1  ;;  %v12638_v50 = vpop.f32.mrf.mxu0 }
 0x1da   :  { %9757 = vmatprep.mubr.msk.f32.mxu1 %vm10564_vm0, %v16955_v59  ;;  %1897 = vmatprep.subr.mxu0 %v12461_v11 }
 0x1db   :  { %9766 = vmatpush3.msra.mxu1 %v12468_v12  ;;  %1735 = vmatprep.mubr.f32.mxu0 %v16955_v59  ;;  %v9551_v18 = vpop.f32.mrf.mxu1  ;;  %v12678_v33 = vpop.f32.mrf.mxu0 }
 0x1dc   :  { %9758 = vmatmul.mubr.f32.gmra.mxu1 %v1661_v13  ;;  %1898 = vmatpush1.msra.mxu0 %v12476_v14  ;;  %17022 = vst [vmem:[#allocation47_spill] sm:$0xff] %v12678_v33  ;;  %v12748_v18 = vld [vmem:[%s16926_s2 + $0x608] sm:$0xff]  ;;  %v12760_v33 = vld [vmem:[%s16926_s2 + $0x600] sm:$0xff] }
 0x1dd   :  { %9767 = vmatprep.subr.mxu1 %v16955_v59  ;;  %1736 = vmatmul.mubr.f32.gmra.mxu0 %v1661_v13  ;;  %v12741_v13 = vld [vmem:[%s16926_s2 + $0x618] sm:$0xff]  ;;  %17023 = vst [vmem:[#allocation48_spill] sm:$0xff] %v12760_v33 }
 0x1de   :  { %1899 = vmatprep.subr.mxu0 %v12488_v16  ;;  %9768 = vmatpush3.msra.mxu1 %v12493_v17 }
 0x1df   :  { %1900 = vmatpush1.msra.mxu0 %v12499_v19  ;;  %9769 = vmatprep.subr.mxu1 %v16955_v59 }
 0x1e0   :  { %9760 = vmatprep.mubr.msk.f32.mxu1 %vm10564_vm0, %v16955_v59  ;;  %1901 = vmatprep.subr.mxu0 %v12505_v20 }
 0x1e1   :  { %9770 = vmatpush3.msra.mxu1 %v12512_v21  ;;  %1741 = vmatprep.mubr.f32.mxu0 %v16955_v59 }
 0x1e2   :  { %9761 = vmatmul.mubr.f32.gmra.mxu1 %v1660_v8  ;;  %1902 = vmatpush1.msra.mxu0 %v12519_v22 }
 0x1e3   :  { %9771 = vmatprep.subr.mxu1 %v16955_v59  ;;  %1742 = vmatmul.mubr.f32.gmra.mxu0 %v1660_v8  ;;  %v12734_v8 = vld [vmem:[%s16926_s2 + $0x628] sm:$0xff] }
 0x1e4   :  { %1903 = vmatprep.subr.mxu0 %v12529_v23  ;;  %9772 = vmatpush3.msra.mxu1 %v12534_v24 }
 0x1e5   :  { %1904 = vmatpush1.msra.mxu0 %v12540_v25  ;;  %9773 = vmatprep.subr.mxu1 %v16955_v59 }
 0x1e6   :  { %1905 = vmatprep.subr.mxu0 %v12546_v26  ;;  %9774 = vmatpush3.msra.mxu1 %v12551_v27 }
 0x1e7   :  { %1906 = vmatpush1.msra.mxu0 %v12558_v28  ;;  %9775 = vmatprep.subr.mxu1 %v16955_v59 }
 0x1e8   :  { %1907 = vmatprep.subr.mxu0 %v12565_v29  ;;  %9776 = vmatpush3.msra.mxu1 %v12570_v30 }
 0x1e9   :  { %1908 = vmatpush1.msra.mxu0 %v12577_v31  ;;  %9777 = vmatprep.subr.mxu1 %v16955_v59 }
 0x1ea   :  { %1909 = vmatprep.subr.mxu0 %v12584_v32  ;;  %9778 = vmatpush3.msra.mxu1 %v12589_v37 }
 0x1eb   :  { %1910 = vmatpush1.msra.mxu0 %v12596_v38  ;;  %9779 = vmatprep.subr.mxu1 %v16955_v59 }
 0x1ec   :  { %1911 = vmatprep.subr.mxu0 %v12603_v39  ;;  %9780 = vmatpush3.msra.mxu1 %v12608_v40 }
 0x1ed   :  { %1912 = vmatpush1.msra.mxu0 %v12617_v42  ;;  %9781 = vmatprep.subr.mxu1 %v16955_v59 }
 0x1ee   :  { %1913 = vmatprep.subr.mxu0 %v12624_v45  ;;  %9782 = vmatpush3.msra.mxu1 %v12629_v46 }
 0x1ef   :  { %1914 = vmatpush1.msra.mxu0 %v12636_v1  ;;  %9783 = vmatprep.subr.mxu1 %v16955_v59 }
 0x1f0   :  { %1915 = vmatprep.subr.mxu0 %v12645_v51  ;;  %9784 = vmatpush3.msra.mxu1 %v12650_v48 }
 0x1f1   :  { %1916 = vmatpush1.msra.mxu0 %v12657_v54  ;;  %9785 = vmatprep.subr.mxu1 %v16955_v59 }
 0x1f2   :  { %1917 = vmatprep.subr.mxu0 %v12664_v62  ;;  %9786 = vmatpush3.msra.mxu1 %v12669_v3  ;;  %v12699_v44 = vpop.f32.mrf.mxu0  ;;  %v12701_v57 = vpop.f32.mrf.mxu1 }
 0x1f3   :  { %1918 = vmatpush1.msra.mxu0 %v12676_v47  ;;  %9787 = vmatprep.subr.mxu1 %v16955_v59 }
 0x1f4   :  { %1919 = vmatprep.subr.mxu0 %v12685_v52  ;;  %9788 = vmatpush3.msra.mxu1 %v12690_v55  ;;  %v12722_v49 = vpop.f32.mrf.mxu0  ;;  %v9554_v7 = vpop.f32.mrf.mxu1 }
 0x1f5   :  { %1920 = vmatpush1.msra.mxu0 %v12697_v61  ;;  %9789 = vmatprep.subr.mxu1 %v16955_v59  ;;  %v12753_v7 = vld [vmem:[%s16926_s2 + $0x610] sm:$0xff] }
 0x1f6   :  { %1921 = vmatprep.subr.mxu0 %v12708_v4  ;;  %9790 = vmatpush3.msra.mxu1 %v12713_v6 }
 0x1f7   :  { %1922 = vmatpush1.msra.mxu0 %v12720_v36  ;;  %9791 = vmatprep.subr.mxu1 %v16955_v59 }
 0x1f8   :  { %1923 = vmatprep.subr.mxu0 %v12729_v34  ;;  %9792 = vmatpush3.msra.mxu1 %v12734_v8  ;;  %v12762_v63 = vpop.f32.mrf.mxu0  ;;  %v839_v5 = vpop.f32.mrf.mxu1 }
 0x1f9   :  { %1924 = vmatpush1.msra.mxu0 %v12741_v13  ;;  %9793 = vmatprep.subr.mxu1 %v16955_v59 }
 0x1fa   :  { %1925 = vmatprep.subr.mxu0 %v12748_v18  ;;  %9794 = vmatpush3.msra.mxu1 %v12753_v7  ;;  %v9557_v53 = vpop.f32.mrf.mxu1  ;;  %v760_v2 = vpop.f32.mrf.mxu0 }
 0x1fb   :  { %9795 = vmatprep.mubr.msk.f32.mxu1 %vm10564_vm0, %v16955_v59  ;;  %1926 = vmatpush1.msra.mxu0 %v12760_v33 }
 0x1fc   :  { %1959 = vmatprep.mubr.f32.mxu0 %v16955_v59  ;;  %9796 = vmatmul.mubr.f32.vlgmr.msra.gmra.mxu1 %v11976_v0 }
 0x1fd   :  { %9804 = vmatprep.subr.mxu1 %v16955_v59  ;;  %1960 = vmatmul.mubr.f32.vlgmr.msra.gmra.mxu0 %v11976_v0 }
 0x1fe   :  { %2075 = vmatprep.subr.mxu0 %v12444_v9  ;;  %9805 = vmatpush3.msra.mxu1 %v12449_v10  ;;  %v992_v53 = vpop.f32.mrf.mxu1 }
 0x1ff   :  { %2076 = vmatpush1.msra.mxu0 %v12455_v43  ;;  %9806 = vmatprep.subr.mxu1 %v16955_v59  ;;  %v12786_v58 = vadd.f32 %v992_v53, %v12478_v15  ;;  %v909_v33 = vpop.f32.mrf.mxu0  ;;  %v12955_v53 = vld [vmem:[#allocation4 + $0xe0] sm:$0xff] }
 0x200   :  { %9798 = vmatprep.mubr.msk.f32.mxu1 %vm10564_vm0, %v16955_v59  ;;  %2077 = vmatprep.subr.mxu0 %v12461_v11  ;;  %v12792_v0 = vadd.f32 %v909_v33, %v12638_v50  ;;  %v9592_v9 = vpop.f32.mrf.mxu1  ;;  %v17030_v50 = vld [vmem:[#allocation44_spill] sm:$0xff]  ;;  %17038 = vst [vmem:[#allocation34_spill] sm:$0xff] %v12955_v53 }
 0x201   :  { %9807 = vmatpush3.msra.mxu1 %v12468_v12  ;;  %1965 = vmatprep.mubr.f32.mxu0 %v16955_v59  ;;  %v12796_v60 = vpop.f32.mrf.mxu0  ;;  %v12961_v9 = vld [vmem:[#allocation4 + $0x150] sm:$0xff] }
 0x202   :  { %9799 = vmatmul.mubr.f32.gmra.mxu1 %v1891_v35  ;;  %2078 = vmatpush1.msra.mxu0 %v12476_v14  ;;  %17040 = vst [vmem:[#allocation57_spill] sm:$0xff] %v12961_v9 }
 0x203   :  { %9808 = vmatprep.subr.mxu1 %v16955_v59  ;;  %1966 = vmatmul.mubr.f32.gmra.mxu0 %v1891_v35 }
 0x204   :  { %2079 = vmatprep.subr.mxu0 %v12488_v16  ;;  %9809 = vmatpush3.msra.mxu1 %v12493_v17  ;;  %v997_v10 = vpop.f32.mrf.mxu1 }
 0x205   :  { %2080 = vmatpush1.msra.mxu0 %v12499_v19  ;;  %9810 = vmatprep.subr.mxu1 %v16955_v59  ;;  %v12805_v43 = vadd.f32 %v997_v10, %v12701_v57  ;;  %v915_v11 = vpop.f32.mrf.mxu0  ;;  %v12918_v57 = vld [vmem:[#allocation4 + $0x178] sm:$0xff] }
 0x206   :  { %9801 = vmatprep.mubr.msk.f32.mxu1 %vm10564_vm0, %v16955_v59  ;;  %2081 = vmatprep.subr.mxu0 %v12505_v20  ;;  %v12811_v35 = vadd.f32 %v915_v11, %v12699_v44  ;;  %v9595_v12 = vpop.f32.mrf.mxu1  ;;  %v12965_v10 = vld [vmem:[#allocation4 + $0xd8] sm:$0xff]  ;;  %v12971_v11 = vld [vmem:[#allocation4 + $0x148] sm:$0xff] }
 0x207   :  { %9811 = vmatpush3.msra.mxu1 %v12512_v21  ;;  %1971 = vmatprep.mubr.f32.mxu0 %v16955_v59  ;;  %v917_v14 = vpop.f32.mrf.mxu0  ;;  %17041 = vst [vmem:[#allocation58_spill] sm:$0xff] %v12965_v10  ;;  %17043 = vst [vmem:[#allocation61_spill] sm:$0xff] %v12971_v11  ;;  %v12975_v12 = vld [vmem:[#allocation4 + $0xd0] sm:$0xff] }
 0x208   :  { %9802 = vmatmul.mubr.f32.gmra.mxu1 %v1890_v41  ;;  %2082 = vmatpush1.msra.mxu0 %v12519_v22  ;;  %v12817_v15 = vadd.f32 %v917_v14, %v12722_v49  ;;  %v12935_v49 = vld [vmem:[#allocation4 + $0xf0] sm:$0xff]  ;;  %17044 = vst [vmem:[#allocation62_spill] sm:$0xff] %v12975_v12 }
 0x209   :  { %9812 = vmatprep.subr.mxu1 %v16955_v59  ;;  %1972 = vmatmul.mubr.f32.gmra.mxu0 %v1890_v41  ;;  %17032 = vst [vmem:[#allocation50_spill] sm:$0xff] %v12935_v49  ;;  %v12979_v14 = vld [vmem:[#allocation4 + $0x50] sm:$0xff] }
 0x20a   :  { %2083 = vmatprep.subr.mxu0 %v12529_v23  ;;  %9813 = vmatpush3.msra.mxu1 %v12534_v24  ;;  %v1002_v16 = vpop.f32.mrf.mxu1  ;;  %v10229_v23 = vld [vmem:[%s16927_s7 + $0x38] sm:$0xff]  ;;  %17045 = vst [vmem:[#allocation63_spill] sm:$0xff] %v12979_v14 }
 0x20b   :  { %2084 = vmatpush1.msra.mxu0 %v12540_v25  ;;  %9814 = vmatprep.subr.mxu1 %v16955_v59  ;;  %v12824_v17 = vadd.f32 %v1002_v16, %v839_v5  ;;  %v921_v19 = vpop.f32.mrf.mxu0  ;;  %v2068_v24 = vrot.slane %v10229_v23, 2  ;;  %v12981_v16 = vld [vmem:[#allocation4 + $0x140] sm:$0xff]  ;;  %v13001_v23 = vld [vmem:[#allocation4 + $0x130] sm:$0xff] }
 0x20c   :  { %2085 = vmatprep.subr.mxu0 %v12546_v26  ;;  %9815 = vmatpush3.msra.mxu1 %v12551_v27  ;;  %v12829_v20 = vadd.f32 %v921_v19, %v12762_v63  ;;  %v9598_v21 = vpop.f32.mrf.mxu1  ;;  %v10228_v63 = vld [vmem:[%s16927_s7 + $0x30] sm:$0xff]  ;;  %v10230_v26 = vld [vmem:[%s16927_s7 + $0x40] sm:$0xf]  ;;  %17046 = vst [vmem:[#allocation64_spill] sm:$0xff] %v12981_v16  ;;  %v12989_v19 = vld [vmem:[#allocation4 + $0x48] sm:$0xff] }
 0x20d   :  { %2086 = vmatpush1.msra.mxu0 %v12558_v28  ;;  %9816 = vmatprep.subr.mxu1 %v16955_v59  ;;  %v923_v22 = vpop.f32.mrf.mxu0  ;;  %v2070_v27 = vrot.slane %v10230_v26, 2  ;;  %v17026_v28 = vld [vmem:[#allocation48_spill] sm:$0xff]  ;;  %17048 = vst [vmem:[#allocation67_spill] sm:$0xff] %v12989_v19  ;;  %v12991_v21 = vld [vmem:[#allocation4 + $0x138] sm:$0xff]  ;;  %17052 = vst [vmem:[#allocation71_spill] sm:$0xff] %v13001_v23 }
 0x20e   :  { %2087 = vmatprep.subr.mxu0 %v12565_v29  ;;  %9817 = vmatpush3.msra.mxu1 %v12570_v30  ;;  %v12835_v5 = vadd.f32 %v923_v22, %v760_v2  ;;  %v2067_v2 = vrot.slane %v10228_v63, 2  ;;  %17049 = vst [vmem:[#allocation68_spill] sm:$0xff] %v12991_v21  ;;  %v12995_v22 = vld [vmem:[#allocation4 + $0xc0] sm:$0xff] }
 0x20f   :  { %2088 = vmatpush1.msra.mxu0 %v12577_v31  ;;  %9818 = vmatprep.subr.mxu1 %v16955_v59  ;;  %v2071_v29 = vsel %vm1886_vm2, %v2068_v24, %v2070_v27  ;;  %v17027_v31 = vld [vmem:[#allocation38_spill] sm:$0xff]  ;;  %17050 = vst [vmem:[#allocation69_spill] sm:$0xff] %v12995_v22 }
 0x210   :  { %2089 = vmatprep.subr.mxu0 %v12584_v32  ;;  %9819 = vmatpush3.msra.mxu1 %v12589_v37  ;;  %v2069_v25 = vsel %vm1886_vm2, %v2067_v2, %v2068_v24  ;;  %v12999_v2 = vld [vmem:[#allocation4 + $0x40] sm:$0xff] }
 0x211   :  { %2090 = vmatpush1.msra.mxu0 %v12596_v38  ;;  %9820 = vmatprep.subr.mxu1 %v16955_v59  ;;  %v17028_v38 = vld [vmem:[#allocation39_spill] sm:$0xff]  ;;  %17051 = vst [vmem:[#allocation70_spill] sm:$0xff] %v12999_v2 }
 0x212   :  { %2091 = vmatprep.subr.mxu0 %v12603_v39  ;;  %9821 = vmatpush3.msra.mxu1 %v12608_v40 }
 0x213   :  { %2092 = vmatpush1.msra.mxu0 %v12617_v42  ;;  %9822 = vmatprep.subr.mxu1 %v16955_v59  ;;  %v17029_v42 = vld [vmem:[#allocation41_spill] sm:$0xff] }
 0x214   :  { %2093 = vmatprep.subr.mxu0 %v12624_v45  ;;  %9823 = vmatpush3.msra.mxu1 %v12629_v46 }
 0x215   :  { %2094 = vmatpush1.msra.mxu0 %v12636_v1  ;;  %9824 = vmatprep.subr.mxu1 %v16955_v59 }
 0x216   :  { %2095 = vmatprep.subr.mxu0 %v12645_v51  ;;  %9825 = vmatpush3.msra.mxu1 %v12650_v48 }
 0x217   :  { %2096 = vmatpush1.msra.mxu0 %v12657_v54  ;;  %9826 = vmatprep.subr.mxu1 %v16955_v59 }
 0x218   :  { %2097 = vmatprep.subr.mxu0 %v12664_v62  ;;  %9827 = vmatpush3.msra.mxu1 %v12669_v3 }
 0x219   :  { %2098 = vmatpush1.msra.mxu0 %v12676_v47  ;;  %9828 = vmatprep.subr.mxu1 %v16955_v59 }
 0x21a   :  { %2099 = vmatprep.subr.mxu0 %v12685_v52  ;;  %9829 = vmatpush3.msra.mxu1 %v12690_v55 }
 0x21b   :  { %2100 = vmatpush1.msra.mxu0 %v12697_v61  ;;  %9830 = vmatprep.subr.mxu1 %v16955_v59 }
 0x21c   :  { %2101 = vmatprep.subr.mxu0 %v12708_v4  ;;  %9831 = vmatpush3.msra.mxu1 %v12713_v6  ;;  %v12920_v4 = vld [vmem:[#allocation4 + $0x170] sm:$0xff]  ;;  %v12922_v6 = vld [vmem:[#allocation4 + $0xf8] sm:$0xff] }
 0x21d   :  { %2102 = vmatpush1.msra.mxu0 %v12720_v36  ;;  %9832 = vmatprep.subr.mxu1 %v16955_v59  ;;  %v12931_v36 = vld [vmem:[#allocation4 + $0x168] sm:$0xff] }
 0x21e   :  { %2103 = vmatprep.subr.mxu0 %v12729_v34  ;;  %9833 = vmatpush3.msra.mxu1 %v12734_v8  ;;  %v12939_v34 = vld [vmem:[#allocation4 + $0x70] sm:$0xff]  ;;  %v12941_v8 = vld [vmem:[#allocation4 + $0x160] sm:$0xff] }
 0x21f   :  { %2104 = vmatpush1.msra.mxu0 %v12741_v13  ;;  %9834 = vmatprep.subr.mxu1 %v16955_v59  ;;  %17033 = vst [vmem:[#allocation51_spill] sm:$0xff] %v12939_v34  ;;  %17034 = vst [vmem:[#allocation52_spill] sm:$0xff] %v12941_v8  ;;  %v12945_v13 = vld [vmem:[#allocation4 + $0xe8] sm:$0xff] }
 0x220   :  { %2105 = vmatprep.subr.mxu0 %v12748_v18  ;;  %9835 = vmatpush3.msra.mxu1 %v12753_v7  ;;  %17035 = vst [vmem:[#allocation53_spill] sm:$0xff] %v12945_v13  ;;  %v12949_v18 = vld [vmem:[#allocation4 + $0x68] sm:$0xff]  ;;  %v12951_v7 = vld [vmem:[#allocation4 + $0x158] sm:$0xff] }
 0x221   :  { %9836 = vmatprep.mubr.msk.f32.mxu1 %vm10564_vm0, %v16955_v59  ;;  %2106 = vmatpush1.msra.mxu0 %v17026_v28  ;;  %17036 = vst [vmem:[#allocation54_spill] sm:$0xff] %v12949_v18  ;;  %17037 = vst [vmem:[#allocation55_spill] sm:$0xff] %v12951_v7  ;;  %v13014_v28 = vld [vmem:[#allocation4 + $0x38] sm:$0xff] }
 0x222   :  { %2139 = vmatprep.mubr.f32.mxu0 %v16955_v59  ;;  %9837 = vmatmul.mubr.f32.vlgmr.msra.gmra.mxu1 %v2069_v25  ;;  %17054 = vst [vmem:[#allocation73_spill] sm:$0xff] %v13014_v28 }
 0x223   :  { %2140 = vmatmul.mubr.f32.vlgmr.msra.gmra.mxu0 %v2069_v25  ;;  %9839 = vmatprep.mubr.msk.f32.mxu1 %vm10564_vm0, %v16955_v59  ;;  %v13008_v25 = vld [vmem:[#allocation4 + $0xb8] sm:$0xff] }
 0x224   :  { %2145 = vmatprep.mubr.f32.mxu0 %v16955_v59  ;;  %v1216_v30 = vpop.f32.mrf.mxu1  ;;  %9845 = vmatprep.subr.mxu1 %v16955_v59  ;;  %17053 = vst [vmem:[#allocation72_spill] sm:$0xff] %v13008_v25 }
 0x225   :  { %v12893_v32 = vadd.f32 %v1216_v30, %v17027_v31  ;;  %v1133_v37 = vpop.f32.mrf.mxu0  ;;  %9846 = vmatpush3.msra.mxu1 %v12918_v57  ;;  %8773 = vmatprep.subr.mxu0 %v12922_v6  ;;  %v13020_v30 = vld [vmem:[#allocation4 + $0xb0] sm:$0xff] }
 0x226   :  { %9840 = vmatmul.mubr.f32.gmra.mxu1 %v2071_v29  ;;  %v12896_v39 = vadd.f32 %v1133_v37, %v17028_v38  ;;  %v9633_v40 = vpop.f32.mrf.mxu1  ;;  %9847 = vmatprep.subr.mxu1 %v16955_v59  ;;  %17056 = vst [vmem:[#allocation60_spill] sm:$0xff] %v13020_v30  ;;  %v13024_v31 = vld [vmem:[#allocation4 + $0x30] sm:$0xff]  ;;  %v13030_v37 = vld [vmem:[#allocation4 + $0xa8] sm:$0xff] }
 0x227   :  { %2146 = vmatmul.mubr.f32.gmra.mxu0 %v2071_v29  ;;  %9842 = vmatprep.mubr.msk.f32.mxu1 %vm10564_vm0, %v16955_v59  ;;  %v13010_v26 = vpop.f32.mrf.mxu0  ;;  %v13016_v29 = vld [vmem:[#allocation4 + $0x128] sm:$0xff]  ;;  %17057 = vst [vmem:[#allocation48_spill] sm:$0xff] %v13024_v31  ;;  %17059 = vst [vmem:[#allocation39_spill] sm:$0xff] %v13030_v37 }
 0x228   :  { %2151 = vmatprep.mubr.f32.mxu0 %v16955_v59  ;;  %9848 = vmatpush3.msra.mxu1 %v12920_v4  ;;  %17055 = vst [vmem:[#allocation66_spill] sm:$0xff] %v13016_v29 }
 0x229   :  { %9849 = vmatprep.subr.mxu1 %v16955_v59 }
 0x22a   :  { %9843 = vmatmul.mubr.f32.gmra.mxu1 %v2070_v27  ;;  %v1221_v41 = vpop.f32.mrf.mxu1 }
 0x22b   :  { %2152 = vmatmul.mubr.f32.gmra.mxu0 %v2070_v27  ;;  %v12902_v45 = vadd.f32 %v1221_v41, %v17029_v42  ;;  %9877 = vmatprep.mubr.msk.f32.mxu1 %vm10564_vm0, %v16955_v59  ;;  %v13032_v38 = vpop.f32.mrf.mxu0  ;;  %v13036_v41 = vld [vmem:[#allocation4 + $0x28] sm:$0xff]  ;;  %v13038_v42 = vld [vmem:[#allocation4 + $0x118] sm:$0xff] }
 0x22c   :  { %v9636_v46 = vpop.f32.mrf.mxu1  ;;  %9850 = vmatpush3.msra.mxu1 %v12931_v36  ;;  %17060 = vst [vmem:[#allocation41_spill] sm:$0xff] %v13036_v41  ;;  %17061 = vst [vmem:[#allocation44_spill] sm:$0xff] %v13038_v42 }
 0x22d   :  { %9851 = vmatprep.subr.mxu1 %v16955_v59 }
 0x22e   :  { %9852 = vmatpush3.msra.mxu1 %v12941_v8 }
 0x22f   :  { %9853 = vmatprep.subr.mxu1 %v16955_v59 }
 0x230   :  { %v1226_v1 = vpop.f32.mrf.mxu1  ;;  %9854 = vmatpush3.msra.mxu1 %v12951_v7 }
 0x231   :  { %v12907_v51 = vadd.f32 %v1226_v1, %v17030_v50  ;;  %9855 = vmatprep.subr.mxu1 %v16955_v59  ;;  %v13045_v1 = vld [vmem:[#allocation4 + $0xa0] sm:$0xff] }
 0x232   :  { %v9639_v48 = vpop.f32.mrf.mxu1  ;;  %9856 = vmatpush3.msra.mxu1 %v12961_v9  ;;  %17062 = vst [vmem:[#allocation74_spill] sm:$0xff] %v13045_v1  ;;  %v17077_v9 = vld [vmem:[#allocation36_spill] sm:$0xff] }
 0x233   :  { %9857 = vmatprep.subr.mxu1 %v16955_v59  ;;  %v13049_v48 = vld [vmem:[#allocation4 + $0x20] sm:$0xff] }
 0x234   :  { %9858 = vmatpush3.msra.mxu1 %v12971_v11  ;;  %17063 = vst [vmem:[#allocation75_spill] sm:$0xff] %v13049_v48  ;;  %v17075_v11 = vld [vmem:[#allocation37_spill] sm:$0xff] }
 0x235   :  { %9859 = vmatprep.subr.mxu1 %v16955_v59 }
 0x236   :  { %9860 = vmatpush3.msra.mxu1 %v12981_v16 }
 0x237   :  { %9861 = vmatprep.subr.mxu1 %v16955_v59 }
 0x238   :  { %9862 = vmatpush3.msra.mxu1 %v12991_v21 }
 0x239   :  { %9863 = vmatprep.subr.mxu1 %v16955_v59 }
 0x23a   :  { %9864 = vmatpush3.msra.mxu1 %v13001_v23 }
 0x23b   :  { %9865 = vmatprep.subr.mxu1 %v16955_v59 }
 0x23c   :  { %9866 = vmatpush3.msra.mxu1 %v13016_v29 }
 0x23d   :  { %9867 = vmatprep.subr.mxu1 %v16955_v59 }
 0x24a   :  { %v1399_v54 = vpop.f32.mrf.mxu1 }
 0x24b   :  { %v12910_v62 = vadd.f32 %v1399_v54, %v12786_v58  ;;  %v12929_v58 = vld [vmem:[#allocation4 + $0x78] sm:$0xff]  ;;  %v13051_v54 = vld [vmem:[#allocation4 + $0x110] sm:$0xff] }
 0x24c   :  { %v9674_v3 = vpop.f32.mrf.mxu1  ;;  %17031 = vst [vmem:[#allocation49_spill] sm:$0xff] %v12929_v58  ;;  %8774 = vmatpush3.msra.mxu0 %v12929_v58  ;;  %17064 = vst [vmem:[#allocation76_spill] sm:$0xff] %v13051_v54 }
 0x24d   :  { %8775 = vmatprep.subr.mxu0 %v12935_v49  ;;  %v13057_v3 = vpop.f32.mrf.mxu0 }
 0x24e   :  { %8776 = vmatpush3.msra.mxu0 %v12939_v34 }
 0x24f   :  { %8777 = vmatprep.subr.mxu0 %v12945_v13  ;;  %v17080_v13 = vld [vmem:[#allocation40_spill] sm:$0xff] }
 0x250   :  { %v1404_v47 = vpop.f32.mrf.mxu1  ;;  %8778 = vmatpush3.msra.mxu0 %v12949_v18 }
 0x251   :  { %v12913_v33 = vadd.f32 %v1404_v47, %v12805_v43  ;;  %8779 = vmatprep.subr.mxu0 %v12955_v53  ;;  %v12969_v43 = vld [vmem:[#allocation4 + $0x58] sm:$0xff] }
 0x252   :  { %v9677_v52 = vpop.f32.mrf.mxu1  ;;  %8780 = vmatpush3.msra.mxu0 %v12959_v56  ;;  %17042 = vst [vmem:[#allocation59_spill] sm:$0xff] %v12969_v43  ;;  %v13061_v47 = vld [vmem:[#allocation4 + $0x18] sm:$0xff]  ;;  %v17078_v56 = vld [vmem:[#allocation43_spill] sm:$0xff] }
 0x253   :  { %8781 = vmatprep.subr.mxu0 %v12965_v10  ;;  %17066 = vst [vmem:[#allocation78_spill] sm:$0xff] %v13061_v47  ;;  %v13063_v52 = vld [vmem:[#allocation4 + $0x108] sm:$0xff]  ;;  %v588_v53 = vadd.f32 %v17078_v56, %v17077_v9  ;;  %v17081_v56 = vld [vmem:[#allocation45_spill] sm:$0xff] }
 0x254   :  { %8782 = vmatpush3.msra.mxu0 %v12969_v43  ;;  %17067 = vst [vmem:[#allocation79_spill] sm:$0xff] %v13063_v52  ;;  %v17076_v43 = vld [vmem:[#allocation46_spill] sm:$0xff] }
 0x255   :  { %8783 = vmatprep.subr.mxu0 %v12975_v12  ;;  %v594_v10 = vadd.f32 %v17076_v43, %v17075_v11 }
 0x256   :  { %v1409_v55 = vpop.f32.mrf.mxu1  ;;  %8784 = vmatpush3.msra.mxu0 %v12979_v14 }
 0x257   :  { %v12916_v61 = vadd.f32 %v1409_v55, %v12824_v17  ;;  %v12985_v17 = vld [vmem:[#allocation4 + $0xc8] sm:$0xff]  ;;  %v13067_v55 = vld [vmem:[#allocation4 + $0x90] sm:$0xff] }
 0x258   :  { %v9680_v44 = vpop.f32.mrf.mxu1  ;;  %17047 = vst [vmem:[#allocation65_spill] sm:$0xff] %v12985_v17  ;;  %8785 = vmatprep.subr.mxu0 %v12985_v17  ;;  %17068 = vst [vmem:[#allocation80_spill] sm:$0xff] %v13067_v55 }
 0x259   :  { %8786 = vmatpush3.msra.mxu0 %v12989_v19  ;;  %v13069_v44 = vld [vmem:[#allocation4 + $0x10] sm:$0xff] }
 0x25a   :  { %8787 = vmatprep.subr.mxu0 %v12995_v22  ;;  %17069 = vst [vmem:[#allocation81_spill] sm:$0xff] %v13069_v44 }
 0x25b   :  { %8788 = vmatpush3.msra.mxu0 %v12999_v2 }
 0x25c   :  { %8789 = vmatprep.subr.mxu0 %v13008_v25 }
 0x25d   :  { %8790 = vmatpush3.msra.mxu0 %v13014_v28 }
 0x25e   :  { %8791 = vmatprep.subr.mxu0 %v13020_v30 }
 0x25f   :  { %8792 = vmatpush3.msra.mxu0 %v13024_v31 }
 0x260   :  { %8793 = vmatprep.subr.mxu0 %v13030_v37 }
 0x261   :  { %8794 = vmatpush3.msra.mxu0 %v13036_v41 }
 0x262   :  { %8795 = vmatprep.subr.mxu0 %v13045_v1 }
 0x263   :  { %8796 = vmatpush3.msra.mxu0 %v13049_v48 }
 0x270   :  { %v1631_v63 = vpop.f32.mrf.mxu1 }
 0x271   :  { %v13004_v24 = vadd.f32 %v1631_v63, %v12893_v32  ;;  %v13026_v32 = vld [vmem:[#allocation4 + $0x120] sm:$0xff] }
 0x272   :  { %v9715_v27 = vpop.f32.mrf.mxu1  ;;  %17058 = vst [vmem:[#allocation38_spill] sm:$0xff] %v13026_v32  ;;  %9868 = vmatpush3.msra.mxu1 %v13026_v32  ;;  %v13071_v63 = vld [vmem:[#allocation4 + $0x100] sm:$0xff] }
 0x273   :  { %9869 = vmatprep.subr.mxu1 %v16955_v59  ;;  %17070 = vst [vmem:[#allocation82_spill] sm:$0xff] %v13071_v63 }
 0x274   :  { %9870 = vmatpush3.msra.mxu1 %v13038_v42 }
 0x275   :  { %9871 = vmatprep.subr.mxu1 %v16955_v59 }
 0x276   :  { %v1636_v40 = vpop.f32.mrf.mxu1  ;;  %9872 = vmatpush3.msra.mxu1 %v13051_v54  ;;  %v13088_v54 = vld [vmem:[#allocation4] sm:$0xff] }
 0x277   :  { %v13041_v46 = vadd.f32 %v1636_v40, %v12902_v45  ;;  %v13055_v45 = vld [vmem:[#allocation4 + $0x98] sm:$0xff]  ;;  %9873 = vmatprep.subr.mxu1 %v16955_v59  ;;  %v13075_v40 = vld [vmem:[#allocation4 + $0x88] sm:$0xff]  ;;  %17074 = vst [vmem:[#allocation86_spill] sm:$0xff] %v13088_v54 }
 0x278   :  { %v9718_v50 = vpop.f32.mrf.mxu1  ;;  %17065 = vst [vmem:[#allocation77_spill] sm:$0xff] %v13055_v45  ;;  %8797 = vmatprep.subr.mxu0 %v13055_v45  ;;  %9874 = vmatpush3.msra.mxu1 %v13063_v52  ;;  %17071 = vst [vmem:[#allocation83_spill] sm:$0xff] %v13075_v40  ;;  %v1145_v52 = vpop.f32.mrf.mxu0 }
 0x279   :  { %8798 = vmatpush3.msra.mxu0 %v13061_v47  ;;  %9875 = vmatprep.subr.mxu1 %v16955_v59  ;;  %v13077_v50 = vld [vmem:[#allocation4 + $0x8] sm:$0xff]  ;;  %v1236_v9 = vadd.f32 %v1145_v52, %v17081_v56 }
 0x27a   :  { %8799 = vmatprep.subr.mxu0 %v13067_v55  ;;  %17072 = vst [vmem:[#allocation84_spill] sm:$0xff] %v13077_v50  ;;  %9876 = vmatpush3.msra.mxu1 %v13071_v63  ;;  %v13085_v55 = vld [vmem:[#allocation4 + $0x80] sm:$0xff] }
 0x27b   :  { %8800 = vmatpush3.msra.mxu0 %v13069_v44  ;;  %9880 = vmatprep.subr.mxu1 %v16955_v59  ;;  %17073 = vst [vmem:[#allocation85_spill] sm:$0xff] %v13085_v55 }
 0x27c   :  { %v1641_v27 = vpop.f32.mrf.mxu1  ;;  %8801 = vmatprep.subr.mxu0 %v13075_v40 }
 0x27d   :  { %v1653_v45 = vadd.f32 %v1641_v27, %v12907_v51  ;;  %8802 = vmatpush3.msra.mxu0 %v13077_v50  ;;  %v1147_v51 = vpop.f32.mrf.mxu0 }
 0x27e   :  { %v9721_v47 = vpop.f32.mrf.mxu1  ;;  %8803 = vmatprep.subr.mxu0 %v13085_v55  ;;  %v1237_v7 = vadd.f32 %v1147_v51, %v594_v10 }
 0x27f   :  { %8804 = vmatpush3.msra.mxu0 %v13088_v54  ;;  %v13092_v27 = vpop.f32.mrf.mxu0 }
 0x280   :  { %8825 = vmatprep.subr.mxu0 %v12922_v6 }
 0x281   :  { %v13094_v47 = vpop.f32.mrf.mxu0 }
 0x283   :  { %v13096_v40 = vpop.f32.mrf.mxu0 }
 0x285   :  { %v13098_v63 = vpop.f32.mrf.mxu0 }
 0x287   :  { %v13100_v50 = vpop.f32.mrf.mxu0 }
 0x289   :  { %v13105_v48 = vpop.f32.mrf.mxu0 }
 0x28b   :  { %v1548_v1 = vpop.f32.mrf.mxu0 }
 0x28c   :  { %v1645_v52 = vadd.f32 %v1548_v1, %v12896_v39  ;;  %v17083_v39 = vld [vmem:[#allocation47_spill] sm:$0xff] }
 0x28d   :  { %v1550_v41 = vpop.f32.mrf.mxu0 }
 0x28f   :  { %v1554_v32 = vpop.f32.mrf.mxu0 }
 0x291   :  { %v1556_v28 = vpop.f32.mrf.mxu0 }
 0x293   :  { %v1560_v25 = vpop.f32.mrf.mxu0 }
 0x296   :  { %v1814_v44 = vpop.f32.mrf.mxu1 }
 0x297   :  { %v13103_v55 = vadd.f32 %v1814_v44, %v12910_v62  ;;  %v1562_v62 = vpop.f32.mrf.mxu0 }
 0x298   :  { %v9756_v54 = vpop.f32.mrf.mxu1  ;;  %v1652_v49 = vadd.f32 %v1562_v62, %v1237_v7 }
 0x299   :  { %v13113_v44 = vpop.f32.mrf.mxu0 }
 0x29b   :  { %v13115_v23 = vpop.f32.mrf.mxu0 }
 0x29c   :  { %v1819_v42 = vpop.f32.mrf.mxu1 }
 0x29d   :  { %v13108_v6 = vadd.f32 %v1819_v42, %v12913_v33  ;;  %v13117_v54 = vpop.f32.mrf.mxu0 }
 0x29e   :  { %v9759_v37 = vpop.f32.mrf.mxu1 }
 0x29f   :  { %v13119_v2 = vpop.f32.mrf.mxu0 }
 0x2a2   :  { %v1824_v31 = vpop.f32.mrf.mxu1 }
 0x2a3   :  { %v13111_v30 = vadd.f32 %v1824_v31, %v12916_v61  ;;  %v13121_v37 = vpop.f32.mrf.mxu0 }
 0x2a4   :  { %v9762_v29 = vpop.f32.mrf.mxu1 }
 0x2a5   :  { %v13123_v21 = vpop.f32.mrf.mxu0 }
 0x2bc   :  { %v2044_v33 = vpop.f32.mrf.mxu1 }
 0x2bd   :  { %v1961_v29 = vpop.f32.mrf.mxu0  ;;  %v13138_v58 = vadd.f32 %v2044_v33, %v13004_v24  ;;  %v1416_v33 = vadd.f32 %v13096_v40, %v12811_v35 }
 0x2be   :  { %v9797_v42 = vpop.f32.mrf.mxu1 }
 0x2bf   :  { %v1963_v19 = vpop.f32.mrf.mxu0 }
 0x2c2   :  { %v2049_v22 = vpop.f32.mrf.mxu1 }
 0x2c3   :  { %v1967_v16 = vpop.f32.mrf.mxu0  ;;  %v13132_v18 = vadd.f32 %v2049_v22, %v13041_v46  ;;  %v17082_v22 = vld [vmem:[#allocation42_spill] sm:$0xff] }
 0x2c4   :  { %v9800_v61 = vpop.f32.mrf.mxu1  ;;  %v1233_v46 = vadd.f32 %v13032_v38, %v17082_v22 }
 0x2c5   :  { %v1969_v14 = vpop.f32.mrf.mxu0  ;;  %v17079_v61 = vld [vmem:[#allocation35_spill] sm:$0xff] }
 0x2c6   :  { %v582_v8 = vadd.f32 %v17080_v13, %v17079_v61  ;;  %v2266_v13 = vadd.f32 %v13132_v18, %v13138_v58 }
 0x2c8   :  { %v2054_v31 = vpop.f32.mrf.mxu1  ;;  %v1231_v43 = vadd.f32 %v13010_v26, %v582_v8 }
 0x2c9   :  { %v1973_v12 = vpop.f32.mrf.mxu0  ;;  %v13129_v42 = vadd.f32 %v2054_v31, %v1653_v45  ;;  %v1651_v45 = vadd.f32 %v1560_v25, %v1236_v9  ;;  %v13165_v25 = vadd.f32 %v1961_v29, %v1645_v52 }
 0x2ca   :  { %v9803_v17 = vpop.f32.mrf.mxu1  ;;  %v1646_v7 = vadd.f32 %v1550_v41, %v1231_v43  ;;  %v1417_v43 = vadd.f32 %v13098_v63, %v12817_v15  ;;  %v1420_v15 = vadd.f32 %v13105_v48, %v12835_v5 }
 0x2cb   :  { %v1234_v17 = vadd.f32 %v13057_v3, %v588_v53  ;;  %v1975_v34 = vpop.f32.mrf.mxu0  ;;  %v2267_v10 = vsel %vm2248_vm3, %v13129_v42, 0.0  ;;  %v1648_v3 = vadd.f32 %v1554_v32, %v1233_v46  ;;  %v1419_v46 = vadd.f32 %v13100_v50, %v12829_v20 }
 0x2cc   :  { %v13148_v53 = vadd.f32 %v1975_v34, %v1652_v49  ;;  %v2268_v8 = vadd.f32 %v2267_v10, %v2266_v13  ;;  %v13152_v26 = vadd.f32 %v1963_v19, %v1646_v7  ;;  %v1831_v10 = vadd.f32 %v13117_v54, %v1416_v33 }
 0x2cd   :  { %v1649_v11 = vadd.f32 %v1556_v28, %v1234_v17  ;;  %v13154_v28 = vadd.f32 %v1973_v12, %v1651_v45  ;;  %v13157_v51 = vadd.f32 %v1967_v16, %v1648_v3  ;;  %v912_v16 = vadd.f32 %v12796_v60, %v17083_v39 }
 0x2ce   :  { %v2282_v38 = vmul.f32 %v13148_v53, %v13148_v53  ;;  %v2258_v34 = vsel %vm2248_vm3, %v13148_v53, 0.0  ;;  %v2269_v19 = vrot.slane %v2268_v8, 4  ;;  %v2276_v41 = vmul.f32 %v13152_v26, %v13152_v26 }
 0x2cf   :  { %v13150_v24 = vadd.f32 %v1969_v14, %v1649_v11  ;;  %v2249_v1 = vsel %vm2248_vm3, %v13154_v28, 0.0  ;;  %v2247_v29 = vadd.f32 %v13157_v51, %v13165_v25  ;;  %v1413_v60 = vadd.f32 %v13092_v27, %v12792_v0 }
 0x2d0   :  { %v2294_v61 = vsel %vm2248_vm3, %v2282_v38, 0.0  ;;  %v1414_v11 = vadd.f32 %v13094_v47, %v912_v16  ;;  %v2270_v35 = vadd.f32 %v2269_v19, %v2268_v8  ;;  %v1832_v13 = vadd.f32 %v13119_v2, %v1417_v43 }
 0x2d1   :  { %v2279_v49 = vmul.f32 %v13150_v24, %v13150_v24  ;;  %v2257_v12 = vadd.f32 %v13150_v24, %v13152_v26  ;;  %v2250_v40 = vadd.f32 %v2249_v1, %v2247_v29  ;;  %v1828_v63 = vadd.f32 %v13113_v44, %v1413_v60 }
 0x2d2   :  { %v1829_v3 = vadd.f32 %v13115_v23, %v1414_v11  ;;  %v1834_v20 = vadd.f32 %v13121_v37, %v1419_v46  ;;  %v2271_v8 = vrot.slane %v2270_v35, 2 }
 0x2d3   :  { %v2259_v31 = vadd.f32 %v2258_v34, %v2257_v12  ;;  %v2293_v56 = vadd.f32 %v2279_v49, %v2276_v41  ;;  %v2251_v52 = vrot.slane %v2250_v40, 4  ;;  %v1835_v34 = vadd.f32 %v13123_v21, %v1420_v15 }
 0x2d4   :  { %v2272_v41 = vadd.f32 %v2271_v8, %v2270_v35 }
 0x2d5   :  { %v2295_v7 = vadd.f32 %v2294_v61, %v2293_v56  ;;  %v2260_v47 = vrot.slane %v2259_v31, 4  ;;  %v2252_v1 = vadd.f32 %v2251_v52, %v2250_v40 }
 0x2d7   :  { %v2296_v44 = vrot.slane %v2295_v7, 4  ;;  %v2253_v35 = vrot.slane %v2252_v1, 2 }
 0x2d9   :  { %v2297_v61 = vadd.f32 %v2296_v44, %v2295_v7  ;;  %v2273_v7 = vrot.slane %v2272_v41, 1  ;;  %v2254_v8 = vadd.f32 %v2253_v35, %v2252_v1  ;;  %v2278_v1 = vmul.f32 %v13157_v51, %v13157_v51 }
 0x2db   :  { %v2298_v15 = vrot.slane %v2297_v61, 2 }
 0x2e2   :  { %v2224_v14 = vpop.f32.mrf.mxu1 }
 0x2e3   :  { %v2141_v32 = vpop.f32.mrf.mxu0  ;;  %v13200_v2 = vadd.f32 %v2224_v14, %v13103_v55  ;;  %v2261_v14 = vadd.f32 %v2260_v47, %v2259_v31 }
 0x2e4   :  { %v9838_v62 = vpop.f32.mrf.mxu1  ;;  %v13204_v38 = vadd.f32 %v2141_v32, %v1828_v63 }
 0x2e5   :  { %v2143_v17 = vpop.f32.mrf.mxu0  ;;  %v2262_v56 = vrot.slane %v2261_v14, 2 }
 0x2e6   :  { %v2229_v9 = vpop.f32.mrf.mxu1  ;;  %v13209_v49 = vadd.f32 %v2143_v17, %v1829_v3 }
 0x2e7   :  { %v2147_v22 = vpop.f32.mrf.mxu0  ;;  %v13190_v0 = vadd.f32 %v2229_v9, %v13108_v6  ;;  %v2263_v47 = vadd.f32 %v2262_v56, %v2261_v14 }
 0x2e8   :  { %v9841_v27 = vpop.f32.mrf.mxu1  ;;  %v13195_v54 = vadd.f32 %v2147_v22, %v1831_v10  ;;  %v2339_v21 = vmul.f32 %v13209_v49, %v13209_v49 }
 0x2e9   :  { %v2149_v45 = vpop.f32.mrf.mxu0  ;;  %v2329_v23 = vadd.f32 %v13190_v0, %v13200_v2 }
 0x2ea   :  { %v13202_v50 = vadd.f32 %v2149_v45, %v1832_v13  ;;  %v2234_v6 = vpop.f32.mrf.mxu1  ;;  %v2311_v12 = vadd.f32 %v13195_v54, %v13204_v38 }
 0x2eb   :  { %v13207_v5 = vadd.f32 %v2234_v6, %v13111_v30  ;;  %v2153_v48 = vpop.f32.mrf.mxu0  ;;  %v2277_v6 = vmul.f32 %v13138_v58, %v13138_v58 }
 0x2ec   :  { %v13213_v37 = vadd.f32 %v2153_v48, %v1834_v20  ;;  %v9844_v55 = vpop.f32.mrf.mxu1  ;;  %v2342_v32 = vmul.f32 %v13202_v50, %v13202_v50  ;;  %v2320_v29 = vadd.f32 %v13202_v50, %v13209_v49 }
 0x2ed   :  { %v2330_v30 = vsel %vm2248_vm3, %v13207_v5, 0.0  ;;  %v2155_v19 = vpop.f32.mrf.mxu0  ;;  %v2346_v14 = vmul.f32 %v13207_v5, %v13207_v5 }
 0x2ee   :  { %v2331_v39 = vadd.f32 %v2330_v30, %v2329_v23  ;;  %v2312_v16 = vsel %vm2248_vm3, %v13213_v37, 0.0  ;;  %v13224_v33 = vadd.f32 %v2155_v19, %v1835_v34  ;;  %v2356_v9 = vadd.f32 %v2342_v32, %v2339_v21 }
 0x2ef   :  { %v2313_v62 = vadd.f32 %v2312_v16, %v2311_v12  ;;  %v2299_v23 = vadd.f32 %v2298_v15, %v2297_v61  ;;  %v2280_v34 = vmul.f32 %v13132_v18, %v13132_v18  ;;  %v2274_v12 = vadd.f32 %v2273_v7, %v2272_v41 }
 0x2f0   :  { %v2332_v31 = vrot.slane %v2331_v39, 4  ;;  %v2321_v60 = vsel %vm2248_vm3, %v13224_v33, 0.0  ;;  %v2345_v43 = vmul.f32 %v13224_v33, %v13224_v33  ;;  %v2264_v19 = vrot.slane %v2263_v47, 1 }
 0x2f1   :  { %v2314_v17 = vrot.slane %v2313_v62, 4  ;;  %v2322_v10 = vadd.f32 %v2321_v60, %v2320_v29  ;;  %v2255_v21 = vrot.slane %v2254_v8, 1  ;;  %v2343_v29 = vmul.f32 %v13190_v0, %v13190_v0 }
 0x2f2   :  { %v2333_v11 = vadd.f32 %v2332_v31, %v2331_v39  ;;  %v2357_v22 = vsel %vm2248_vm3, %v2345_v43, 0.0  ;;  %v2300_v61 = vrot.slane %v2299_v23, 1  ;;  %v2281_v60 = vmul.f32 %v13154_v28, %v13154_v28 }
 0x2f3   :  { %v2315_v40 = vadd.f32 %v2314_v17, %v2313_v62  ;;  %v2323_v13 = vrot.slane %v2322_v10, 4  ;;  %v2358_v27 = vadd.f32 %v2357_v22, %v2356_v9  ;;  %v2283_v62 = vmul.f32 %v13129_v42, %v13129_v42 }
 0x2f4   :  { %v2334_v46 = vrot.slane %v2333_v11, 2  ;;  %v2340_v43 = vmul.f32 %v13200_v2, %v13200_v2  ;;  %v2265_v9 = vadd.f32 %v2264_v19, %v2263_v47  ;;  %v2256_v22 = vadd.f32 %v2255_v21, %v2254_v8  ;;  %v17087_v19 = vld [vmem:[#allocation52_spill] sm:$0xff]  ;;  %v17091_v21 = vld [vmem:[#allocation34_spill] sm:$0xff] }
 0x2f5   :  { %v2316_v63 = vrot.slane %v2315_v40, 2  ;;  %v2324_v3 = vadd.f32 %v2323_v13, %v2322_v10  ;;  %v2359_v20 = vrot.slane %v2358_v27, 4  ;;  %v2344_v10 = vmul.f32 %v13213_v37, %v13213_v37 }
 0x2f6   :  { %v2335_v45 = vadd.f32 %v2334_v46, %v2333_v11  ;;  %v2366_v11 = vsel %vm2248_vm3, %v2346_v14, 0.0  ;;  %v2365_v46 = vadd.f32 %v2343_v29, %v2340_v43  ;;  %v2341_v13 = vmul.f32 %v13195_v54, %v13195_v54  ;;  %v17092_v29 = vld [vmem:[#allocation56_spill] sm:$0xff]  ;;  %v17096_v43 = vld [vmem:[#allocation61_spill] sm:$0xff] }
 0x2f7   :  { %v2317_v52 = vadd.f32 %v2316_v63, %v2315_v40  ;;  %v2325_v44 = vrot.slane %v2324_v3, 2  ;;  %v2360_v55 = vadd.f32 %v2359_v20, %v2358_v27  ;;  %v2303_v27 = vsel %vm2248_vm3, %v2283_v62, 0.0 }
 0x2f8   :  { %v2336_v48 = vrot.slane %v2335_v45, 1  ;;  %v2301_v7 = vadd.f32 %v2300_v61, %v2299_v23  ;;  %v2302_v47 = vadd.f32 %v2280_v34, %v2277_v6  ;;  %v2285_v6 = vsel %vm2248_vm3, %v2281_v60, 0.0  ;;  %v17084_v23 = vld [vmem:[#allocation49_spill] sm:$0xff]  ;;  %v17095_v60 = vld [vmem:[#allocation59_spill] sm:$0xff] }
 0x2f9   :  { %v2318_v30 = vrot.slane %v2317_v52, 1  ;;  %v2326_v39 = vadd.f32 %v2325_v44, %v2324_v3  ;;  %v2361_v16 = vrot.slane %v2360_v55, 2  ;;  %v2367_v3 = vadd.f32 %v2366_v11, %v2365_v46  ;;  %v17097_v11 = vld [vmem:[#allocation62_spill] sm:$0xff]  ;;  %v17100_v46 = vld [vmem:[#allocation65_spill] sm:$0xff] }
 0x2fa   :  { %v2337_v32 = vadd.f32 %v2336_v48, %v2335_v45  ;;  %v2338_v45 = vmul.f32 %v13204_v38, %v13204_v38  ;;  %v2304_v48 = vadd.f32 %v2303_v27, %v2302_v47  ;;  %v17102_v27 = vld [vmem:[#allocation68_spill] sm:$0xff]  ;;  %v17104_v47 = vld [vmem:[#allocation70_spill] sm:$0xff] }
 0x2fb   :  { %v2327_v41 = vrot.slane %v2326_v39, 1  ;;  %v2362_v17 = vadd.f32 %v2361_v16, %v2360_v55  ;;  %v2319_v56 = vadd.f32 %v2318_v30, %v2317_v52  ;;  %v2275_v52 = vmul.f32 %v13165_v25, %v13165_v25  ;;  %v17086_v30 = vld [vmem:[#allocation51_spill] sm:$0xff] }
 0x2fc   :  { %v2376_v31 = vadd.f32 %v2337_v32, %v2274_v12  ;;  %v2347_v44 = vadd.f32 %v2341_v13, %v2338_v45  ;;  %v2368_v55 = vrot.slane %v2367_v3, 4  ;;  %v17085_v12 = vld [vmem:[#allocation50_spill] sm:$0xff]  ;;  %v2305_v32 = vrot.slane %v2304_v48, 4  ;;  %v17090_v16 = vld [vmem:[#allocation55_spill] sm:$0xff] }
 0x2fd   :  { %v2328_v35 = vadd.f32 %v2327_v41, %v2326_v39  ;;  %v2363_v40 = vrot.slane %v2362_v17, 1  ;;  %v2374_v20 = vadd.f32 %v2319_v56, %v2256_v22  ;;  %v17088_v39 = vld [vmem:[#allocation53_spill] sm:$0xff]  ;;  %v17101_v13 = vld [vmem:[#allocation67_spill] sm:$0xff] }
 0x2fe   :  { %9878 = vmatmul.mubr.f32.vlgmr.msra.gmra.mxu1 %v2376_v31  ;;  %v17093_v31 = vld [vmem:[#allocation57_spill] sm:$0xff]  ;;  %v2306_v41 = vadd.f32 %v2305_v32, %v2304_v48  ;;  %v17105_v45 = vld [vmem:[#allocation71_spill] sm:$0xff]  ;;  %v17109_v48 = vld [vmem:[#allocation60_spill] sm:$0xff] }
 0x2ff   :  { %9881 = vmatpush3.msra.mxu1 %v12918_v57  ;;  %9912 = vmatprep.mubr.msk.f32.mxu1 %vm10564_vm0, %v16955_v59  ;;  %v2375_v15 = vadd.f32 %v2328_v35, %v2265_v9  ;;  %v2364_v63 = vadd.f32 %v2363_v40, %v2362_v17  ;;  %v2348_v57 = vsel %vm2248_vm3, %v2344_v10, 0.0  ;;  %v17094_v17 = vld [vmem:[#allocation58_spill] sm:$0xff]  ;;  %v17098_v10 = vld [vmem:[#allocation63_spill] sm:$0xff]  ;;  %v17099_v35 = vld [vmem:[#allocation64_spill] sm:$0xff] }
 0x300   :  { %9882 = vmatprep.subr.mxu1 %v16955_v59  ;;  %v2349_v34 = vadd.f32 %v2348_v57, %v2347_v44  ;;  %v2307_v40 = vrot.slane %v2306_v41, 2  ;;  %v17115_v32 = vld [vmem:[#allocation74_spill] sm:$0xff] }
 0x301   :  { %9883 = vmatpush3.msra.mxu1 %v12920_v4  ;;  %2492 = vmatprep.mubr.f32.mxu0 %v2375_v15  ;;  %v2378_v8 = vadd.f32 %v2364_v63, %v2301_v7  ;;  %v2284_v4 = vadd.f32 %v2278_v1, %v2275_v52  ;;  %v2369_v1 = vadd.f32 %v2368_v55, %v2367_v3  ;;  %v17103_v7 = vld [vmem:[#allocation69_spill] sm:$0xff]  ;;  %v17108_v52 = vld [vmem:[#allocation66_spill] sm:$0xff]  ;;  %v17112_v55 = vld [vmem:[#allocation39_spill] sm:$0xff] }
 0x302   :  { %9884 = vmatprep.subr.mxu1 %v16955_v59  ;;  %2493 = vmatmul.mubr.f32.vlgmr.msra.gmra.mxu0 %v2374_v20  ;;  %v2350_v62 = vrot.slane %v2349_v34, 4  ;;  %v17106_v20 = vld [vmem:[#allocation72_spill] sm:$0xff]  ;;  %v2308_v57 = vadd.f32 %v2307_v40, %v2306_v41  ;;  %v17127_v40 = vld [vmem:[#allocation86_spill] sm:$0xff] }
 0x303   :  { %9885 = vmatpush3.msra.mxu1 %v12931_v36  ;;  %8826 = vmatpush3.msra.mxu0 %v17084_v23  ;;  %v2286_v14 = vadd.f32 %v2285_v6, %v2284_v4  ;;  %v17089_v36 = vld [vmem:[#allocation54_spill] sm:$0xff]  ;;  %v2370_v56 = vrot.slane %v2369_v1, 2  ;;  %v17110_v23 = vld [vmem:[#allocation48_spill] sm:$0xff] }
 0x304   :  { %2632 = vmatprep.mubr.f32.mxu0 %v2378_v8  ;;  %8827 = vmatprep.subr.mxu0 %v17085_v12  ;;  %v2351_v9 = vadd.f32 %v2350_v62, %v2349_v34  ;;  %v17107_v8 = vld [vmem:[#allocation73_spill] sm:$0xff]  ;;  %v17111_v4 = vld [vmem:[#allocation38_spill] sm:$0xff]  ;;  %v2309_v34 = vrot.slane %v2308_v57, 1  ;;  %v17121_v41 = vld [vmem:[#allocation80_spill] sm:$0xff] }
 0x305   :  { %9886 = vmatprep.subr.mxu1 %v16955_v59  ;;  %8828 = vmatpush3.msra.mxu0 %v17086_v30  ;;  %v2287_v61 = vrot.slane %v2286_v14, 4  ;;  %v2371_v63 = vadd.f32 %v2370_v56, %v2369_v1  ;;  %v17113_v30 = vld [vmem:[#allocation41_spill] sm:$0xff]  ;;  %v17124_v56 = vld [vmem:[#allocation83_spill] sm:$0xff] }
 0x306   :  { %9887 = vmatpush3.msra.mxu1 %v17087_v19  ;;  %8829 = vmatprep.subr.mxu0 %v17088_v39  ;;  %v2352_v15 = vrot.slane %v2351_v9, 2  ;;  %v17114_v19 = vld [vmem:[#allocation44_spill] sm:$0xff]  ;;  %v17118_v1 = vld [vmem:[#allocation77_spill] sm:$0xff]  ;;  %v2310_v62 = vadd.f32 %v2309_v34, %v2308_v57 }
 0x307   :  { %9888 = vmatprep.subr.mxu1 %v16955_v59  ;;  %8830 = vmatpush3.msra.mxu0 %v17089_v36  ;;  %v2288_v22 = vadd.f32 %v2287_v61, %v2286_v14  ;;  %v2372_v44 = vrot.slane %v2371_v63, 1  ;;  %v17116_v36 = vld [vmem:[#allocation75_spill] sm:$0xff] }
 0x308   :  { %9889 = vmatpush3.msra.mxu1 %v17090_v16  ;;  %8831 = vmatprep.subr.mxu0 %v17091_v21  ;;  %v2353_v6 = vadd.f32 %v2352_v15, %v2351_v9  ;;  %v17117_v16 = vld [vmem:[#allocation76_spill] sm:$0xff]  ;;  %v2719_v15 = vld [vmem:[#allocation7] sm:$0xff] }
 0x309   :  { %9890 = vmatprep.subr.mxu1 %v16955_v59  ;;  %8832 = vmatpush3.msra.mxu0 %v17092_v29  ;;  %v2289_v3 = vrot.slane %v2288_v22, 2  ;;  %v2373_v14 = vadd.f32 %v2372_v44, %v2371_v63  ;;  %v17119_v29 = vld [vmem:[#allocation78_spill] sm:$0xff] }
 0x30a   :  { %9891 = vmatpush3.msra.mxu1 %v17093_v31  ;;  %8833 = vmatprep.subr.mxu0 %v17094_v17  ;;  %v2354_v39 = vrot.slane %v2353_v6, 1  ;;  %v17120_v31 = vld [vmem:[#allocation79_spill] sm:$0xff] }
 0x30b   :  { %9892 = vmatprep.subr.mxu1 %v16955_v59  ;;  %8834 = vmatpush3.msra.mxu0 %v17095_v60  ;;  %v2290_v12 = vadd.f32 %v2289_v3, %v2288_v22  ;;  %v2379_v61 = vadd.f32 %v2373_v14, %v2310_v62  ;;  %v17122_v60 = vld [vmem:[#allocation81_spill] sm:$0xff]  ;;  %v2723_v22 = vld [vmem:[#allocation7 + $0x20] sm:$0xff]  ;;  %v3014_v62 = vlaneseq }
 0x30c   :  { %9893 = vmatpush3.msra.mxu1 %v17096_v43  ;;  %8835 = vmatprep.subr.mxu0 %v17097_v11  ;;  %v2355_v17 = vadd.f32 %v2354_v39, %v2353_v6  ;;  %v17123_v43 = vld [vmem:[#allocation82_spill] sm:$0xff]  ;;  %v17125_v11 = vld [vmem:[#allocation84_spill] sm:$0xff] }
 0x30d   :  { %9894 = vmatprep.subr.mxu1 %v16955_v59  ;;  %8836 = vmatpush3.msra.mxu0 %v17098_v10  ;;  %v2291_v21 = vrot.slane %v2290_v12, 1  ;;  %v17126_v10 = vld [vmem:[#allocation85_spill] sm:$0xff]  ;;  %v2716_v39 = vld [vmem:[%s17129_s24] sm:$0x1] }
 0x30e   :  { %9895 = vmatpush3.msra.mxu1 %v17099_v35  ;;  %8837 = vmatprep.subr.mxu0 %v17100_v46  ;;  %v2722_v46 = vld [vmem:[#allocation7 + $0x18] sm:$0xff] }
 0x30f   :  { %9896 = vmatprep.subr.mxu1 %v16955_v59  ;;  %8838 = vmatpush3.msra.mxu0 %v17101_v13  ;;  %v2292_v9 = vadd.f32 %v2291_v21, %v2290_v12  ;;  %v2724_v13 = vld [vmem:[#allocation7 + $0x28] sm:$0xff]  ;;  %v3015_v21 = vshrl.u32 %v3014_v62, 7 }
 0x310   :  { %9897 = vmatpush3.msra.mxu1 %v17102_v27  ;;  %8839 = vmatprep.subr.mxu0 %v17103_v7  ;;  %v2720_v27 = vld [vmem:[#allocation7 + $0x8] sm:$0xff]  ;;  %v2721_v7 = vld [vmem:[#allocation7 + $0x10] sm:$0xff] }
 0x311   :  { %9898 = vmatprep.subr.mxu1 %v16955_v59  ;;  %8840 = vmatpush3.msra.mxu0 %v17104_v47  ;;  %v2377_v35 = vadd.f32 %v2355_v17, %v2292_v9 }
 0x312   :  { %9899 = vmatpush3.msra.mxu1 %v17105_v45  ;;  %8841 = vmatprep.subr.mxu0 %v17106_v20 }
 0x313   :  { %9900 = vmatprep.subr.mxu1 %v16955_v59  ;;  %8842 = vmatpush3.msra.mxu0 %v17107_v8 }
 0x314   :  { %9901 = vmatpush3.msra.mxu1 %v17108_v52  ;;  %8843 = vmatprep.subr.mxu0 %v17109_v48 }
 0x315   :  { %9902 = vmatprep.subr.mxu1 %v16955_v59  ;;  %8844 = vmatpush3.msra.mxu0 %v17110_v23 }
 0x316   :  { %9903 = vmatpush3.msra.mxu1 %v17111_v4  ;;  %8845 = vmatprep.subr.mxu0 %v17112_v55 }
 0x317   :  { %9904 = vmatprep.subr.mxu1 %v16955_v59  ;;  %8846 = vmatpush3.msra.mxu0 %v17113_v30 }
 0x318   :  { %9905 = vmatpush3.msra.mxu1 %v17114_v19  ;;  %8847 = vmatprep.subr.mxu0 %v17115_v32  ;;  %v2712_v19 = vld [vmem:[%s17128_s23] sm:$0x1] }
 0x319   :  { %9906 = vmatprep.subr.mxu1 %v16955_v59  ;;  %8848 = vmatpush3.msra.mxu0 %v17116_v36 }
 0x31a   :  { %9907 = vmatpush3.msra.mxu1 %v17117_v16  ;;  %8849 = vmatprep.subr.mxu0 %v17118_v1  ;;  %v13348_v1 = vld [vmem:[#allocation9] sm:$0xff] }
 0x31b   :  { %9908 = vmatprep.subr.mxu1 %v16955_v59  ;;  %8850 = vmatpush3.msra.mxu0 %v17119_v29  ;;  %v13352_v29 = vsub.s32 0, %v3015_v21 }
 0x31c   :  { %9909 = vmatpush3.msra.mxu1 %v17120_v31  ;;  %8851 = vmatprep.subr.mxu0 %v17121_v41 }
 0x31d   :  { %9910 = vmatprep.subr.mxu1 %v16955_v59  ;;  %8852 = vmatpush3.msra.mxu0 %v17122_v60  ;;  %17130 = vst [vmem:[#allocation37_spill] sm:$0xff] %v13352_v29 }
 0x31e   :  { %9911 = vmatpush3.msra.mxu1 %v17123_v43  ;;  %8853 = vmatprep.subr.mxu0 %v17124_v56 }
 0x31f   :  { %9913 = vmatmul.mubr.f32.vlgmr.msra.gmra.mxu1 %v2379_v61  ;;  %8854 = vmatpush3.msra.mxu0 %v17125_v11 }
 0x320   :  { %9915 = vmatprep.subr.mxu1 %v16955_v59  ;;  %8855 = vmatprep.subr.mxu0 %v17126_v10 }
 0x321   :  { %9919 = vmatprep.mubr.msk.f32.mxu1 %vm10564_vm0, %v16955_v59  ;;  %8856 = vmatpush3.msra.mxu0 %v17127_v40 }
 0x322   :  { %2633 = vmatmul.mubr.f32.vlgmr.msra.gmra.mxu0 %v2377_v35  ;;  %2757 = vmatprep.subr.mxu0 %v2723_v22 }
 0x323   :  { %2793 = vmatprep.mubr.f32.mxu0 %v16955_v59  ;;  %9916 = vmatpush3.msra.mxu1 %v2724_v13 }
 0x324   :  { %2758 = vmatpush1.msra.mxu0 %v2722_v46  ;;  %9917 = vmatprep.subr.mxu1 %v16955_v59 }
 0x325   :  { %2759 = vmatprep.subr.mxu0 %v2720_v27  ;;  %9918 = vmatpush3.msra.mxu1 %v2721_v7 }
 0x326   :  { %2760 = vmatpush1.msra.mxu0 %v2719_v15  ;;  %9922 = vmatprep.subr.mxu1 %v16955_v59 }
 0x327   :  { %2901 = vmatprep.subr.mxu0 %v2723_v22 }
 0x3be   :  { %v2564_v63 = vpop.f32.mrf.mxu1 }
 0x3c0   :  { %v9879_v47 = vpop.f32.mrf.mxu1 }
 0x3c2   :  { %v8805_v45 = vpop.f32.mrf.mxu0 }
 0x3c4   :  { %v8806_v3 = vpop.f32.mrf.mxu0 }
 0x3c5   :  { %v8807_v20 = vadd.f32 %v8806_v3, %v8805_v45 }
 0x3c7   :  { %v2565_v52 = vadd.f32 %v8807_v20, %v2564_v63 }
 0x3c9   :  { %v2708_v6 = vmul.f32 0.0015432099, %v2565_v52 }
 0x3cb   :  { %v2710_v55 = vmul.f32 %v2708_v6, %v2708_v6 }
 0x3df   :  { %v2704_v57 = vpop.f32.mrf.mxu1 }
 0x3e1   :  { %v9914_v8 = vpop.f32.mrf.mxu1 }
 0x3e2   :  { %v8857_v48 = vpop.f32.mrf.mxu0 }
 0x3e4   :  { %v8858_v44 = vpop.f32.mrf.mxu0 }
 0x3e5   :  { %v8859_v23 = vadd.f32 %v8858_v44, %v8857_v48 }
 0x3e7   :  { %v2705_v4 = vadd.f32 %v8859_v23, %v2704_v57 }
 0x3e9   :  { %v2709_v34 = vmul.f32 0.0015432099, %v2705_v4 }
 0x3eb   :  { %v2711_v12 = vsub.f32 %v2709_v34, %v2710_v55  ;;  %v3093_v55 = vld [vmem:[#allocation9 + $0x8] sm:$0x1] }
 0x3ed   :  { %v2713_v30 = vadd.f32 1e-05, %v2711_v12 }
 0x3ef   :  { %10220 = vrsqrt.f32 %v2713_v30 }
 0x3fc   :  { %v10221_v32 = vpop.eup %10220 }
 0x3fd   :  { %v2715_v14 = vmul.f32 %v10221_v32, %v2712_v19 }
 0x3ff   :  { %8403 = vmatmul.mubr.msk.f32.vlgmr.msra.gmra.mxu0 %vm2725_vm4, %v2715_v14  ;;  %9920 = vmatmul.mubr.msk.f32.vlgmr.msra.gmra.mxu1 %vm2725_vm4, %v2715_v14  ;;  %v2717_v36 = vmul.f32 %v2715_v14, %v2708_v6 }
 0x400   :  { %2902 = vmatpush1.msra.mxu0 %v2722_v46  ;;  %9923 = vmatpush3.msra.mxu1 %v2724_v13 }
 0x401   :  { %2903 = vmatprep.subr.mxu0 %v2720_v27  ;;  %9924 = vmatprep.subr.mxu1 %v16955_v59  ;;  %v2718_v16 = vsub.f32 %v2716_v39, %v2717_v36 }
 0x402   :  { %2904 = vmatpush1.msra.mxu0 %v2719_v15  ;;  %2937 = vmatprep.mubr.f32.mxu0 %v16955_v59 }
 0x403   :  { %9925 = vmatpush3.msra.mxu1 %v2721_v7  ;;  %9926 = vmatprep.mubr.msk.f32.mxu1 %vm10564_vm0, %v16955_v59 }
 0x404   :  { %8405 = vmatmul.mubr.msk.f32.vlgmr.msra.gmra.mxu0 %vm2725_vm4, %v2718_v16  ;;  %9927 = vmatmul.mubr.msk.f32.vlgmr.msra.gmra.mxu1 %vm2725_vm4, %v2718_v16 }
 0x405   :  { %3174 = vmatprep.mubr.f32.mxu0 %v16955_v59  ;;  %9935 = vmatprep.mubr.msk.f32.mxu1 %vm3094_vm5, %v13348_v1 }
 0x4bf   :  { %v2795_v31 = vpop.f32.mrf.mxu0  ;;  %v2866_v41 = vpop.f32.mrf.mxu1 }
 0x4c0   :  { %v13355_v61 = vrot.slane %v2866_v41, %v13352_v29  ;;  %v13358_v43 = vrot.slane %v2795_v31, %v13352_v29 }
 0x4c1   :  { %v2797_v17 = vpop.f32.mrf.mxu0  ;;  %v9921_v60 = vpop.f32.mrf.mxu1 }
 0x4c2   :  { %v13361_v56 = vrot.slane %v2797_v17, %v13352_v29  ;;  %v3034_v40 = vmul.f32 %v13355_v61, %v13129_v42  ;;  %v3031_v22 = vmul.f32 %v13355_v61, %v13132_v18  ;;  %v3032_v27 = vmul.f32 %v13358_v43, %v13154_v28 }
 0x4c3   :  { %v3028_v15 = vmul.f32 %v13355_v61, %v13138_v58  ;;  %v3029_v28 = vmul.f32 %v13358_v43, %v13157_v51  ;;  %v3026_v52 = vmul.f32 %v13358_v43, %v13165_v25  ;;  %v3073_v12 = vmul.f32 %v13355_v61, %v13207_v5  ;;  %v13417_v5 = vld [vmem:[#allocation10] sm:$0xff] }
 0x4c4   :  { %v2939_v9 = vpop.f32.mrf.mxu0  ;;  %v3010_v11 = vpop.f32.mrf.mxu1  ;;  %v3033_v47 = vmul.f32 %v13361_v56, %v13148_v53  ;;  %v3030_v45 = vmul.f32 %v13361_v56, %v13150_v24  ;;  %v3027_v57 = vmul.f32 %v13361_v56, %v13152_v26  ;;  %v3072_v19 = vmul.f32 %v13361_v56, %v13224_v33 }
 0x4c5   :  { %v13364_v10 = vrot.slane %v2939_v9, %v13352_v29  ;;  %v13367_v35 = vrot.slane %v3010_v11, %v13352_v29  ;;  %v3070_v32 = vmul.f32 %v13355_v61, %v13190_v0  ;;  %v3071_v33 = vmul.f32 %v13358_v43, %v13213_v37 }
 0x4c6   :  { %v2941_v46 = vpop.f32.mrf.mxu0  ;;  %v9928_v13 = vpop.f32.mrf.mxu1  ;;  %v3067_v36 = vmul.f32 %v13355_v61, %v13200_v2  ;;  %v3069_v16 = vmul.f32 %v13361_v56, %v13202_v50  ;;  %v3068_v37 = vmul.f32 %v13358_v43, %v13195_v54  ;;  %v3066_v21 = vmul.f32 %v13361_v56, %v13209_v49  ;;  %v3269_v61 = vld [vmem:[#allocation10 + $0x8] sm:$0x1] }
 0x4c7   :  { %v13378_v7 = vrot.slane %v2941_v46, %v13352_v29  ;;  %v3055_v63 = vadd.f32 %v13367_v35, %v3034_v40  ;;  %v3052_v42 = vadd.f32 %v13367_v35, %v3031_v22  ;;  %v3053_v18 = vadd.f32 %v13364_v10, %v3032_v27  ;;  %v3436_v40 = vld [vmem:[#allocation9 + $0x8] sm:$0x1]  ;;  %v13467_v22 = vld [vmem:[#allocation12 + $0x3f0] sm:$0xff]  ;;  %v13469_v46 = vld [vmem:[#allocation12 + $0x5f8] sm:$0xff] }
 0x4c8   :  { %v3049_v20 = vadd.f32 %v13367_v35, %v3028_v15  ;;  %v3050_v8 = vadd.f32 %v13364_v10, %v3029_v28  ;;  %v3047_v6 = vadd.f32 %v13364_v10, %v3026_v52  ;;  %v3082_v30 = vadd.f32 %v3073_v12, %v13367_v35  ;;  %v13478_v13 = vld [vmem:[#allocation10 + $0x8] sm:$0x1]  ;;  %v13481_v27 = vld [vmem:[#allocation12 + $0x3e0] sm:$0xff]  ;;  %v13563_v12 = vld [vmem:[#allocation12 + $0x370] sm:$0xff] }
 0x4c9   :  { %v3064_v3 = vmax.f32 %v3055_v63, 0.0  ;;  %v3054_v58 = vadd.f32 %v13378_v7, %v3033_v47  ;;  %v3051_v53 = vadd.f32 %v13378_v7, %v3030_v45  ;;  %v3061_v48 = vmax.f32 %v3052_v42, 0.0  ;;  %v13484_v15 = vld [vmem:[#allocation12 + $0x3d8] sm:$0xff]  ;;  %v13490_v63 = vld [vmem:[#allocation12 + $0x3d0] sm:$0xff]  ;;  %v13492_v47 = vld [vmem:[#allocation12 + $0x5e8] sm:$0xff] }
 0x4ca   :  { %v3048_v51 = vadd.f32 %v13378_v7, %v3027_v57  ;;  %v3062_v44 = vmax.f32 %v3053_v18, 0.0  ;;  %v3058_v23 = vmax.f32 %v3049_v20, 0.0  ;;  %v3059_v25 = vmax.f32 %v3050_v8, 0.0  ;;  %v13498_v42 = vld [vmem:[#allocation12 + $0x3c8] sm:$0xff]  ;;  %v13500_v18 = vld [vmem:[#allocation12 + $0x5e0] sm:$0xff]  ;;  %v13506_v28 = vld [vmem:[#allocation12 + $0x5d8] sm:$0xff] }
 0x4cb   :  { %9929 = vmatprep.subr.msk.mxu1 %vm2248_vm3, %v3064_v3  ;;  %v3063_v24 = vmax.f32 %v3054_v58, 0.0  ;;  %v3060_v26 = vmax.f32 %v3051_v53, 0.0  ;;  %v3056_v34 = vmax.f32 %v3047_v6, 0.0  ;;  %v3081_v14 = vadd.f32 %v3072_v19, %v13378_v7  ;;  %v13503_v45 = vld [vmem:[#allocation12 + $0x3c0] sm:$0xff]  ;;  %v13512_v58 = vld [vmem:[#allocation12 + $0x5d0] sm:$0xff]  ;;  %v13518_v57 = vld [vmem:[#allocation12 + $0x5c8] sm:$0xff] }
 0x4cc   :  { %9930 = vmatpush3.msk.msra.mxu1 %vm2248_vm3, %v3064_v3  ;;  %v3057_v4 = vmax.f32 %v3048_v51, 0.0  ;;  %v3079_v39 = vadd.f32 %v3070_v32, %v13367_v35  ;;  %v3091_v0 = vmax.f32 %v3082_v30, 0.0  ;;  %v3080_v62 = vadd.f32 %v3071_v33, %v13364_v10  ;;  %v13515_v20 = vld [vmem:[#allocation12 + $0x3b0] sm:$0xff]  ;;  %17131 = vst [vmem:[#allocation46_spill] sm:$0xff] %v13518_v57  ;;  %v13521_v53 = vld [vmem:[#allocation12 + $0x3a8] sm:$0xff]  ;;  %v13524_v8 = vld [vmem:[#allocation12 + $0x5c0] sm:$0xff] }
 0x4cd   :  { %8407 = vmatprep.subr.msk.mxu0 %vm2248_vm3, %v3063_v24  ;;  %9931 = vmatprep.subr.mxu1 %v3061_v48  ;;  %v3090_v2 = vmax.f32 %v3081_v14, 0.0  ;;  %v3076_v50 = vadd.f32 %v3067_v36, %v13367_v35  ;;  %v3078_v41 = vadd.f32 %v3069_v16, %v13378_v7  ;;  %v3077_v17 = vadd.f32 %v3068_v37, %v13364_v10  ;;  %v13527_v52 = vld [vmem:[#allocation12 + $0x3a0] sm:$0xff]  ;;  %v13536_v51 = vld [vmem:[#allocation12 + $0x5b0] sm:$0xff]  ;;  %v13542_v6 = vld [vmem:[#allocation12 + $0x5a8] sm:$0xff] }
 0x4ce   :  { %8408 = vmatpush1.msk.msra.mxu0 %vm2248_vm3, %v3062_v44  ;;  %9932 = vmatpush3.msra.mxu1 %v3061_v48  ;;  %v3088_v31 = vmax.f32 %v3079_v39, 0.0  ;;  %v3065_v54 = vmul.f32 %v13358_v43, %v13204_v38  ;;  %v3075_v49 = vadd.f32 %v3066_v21, %v13378_v7  ;;  %v3089_v60 = vmax.f32 %v3080_v62, 0.0  ;;  %v13487_v7 = vld [vmem:[#allocation12 + $0x5f0] sm:$0xff]  ;;  %17132 = vst [vmem:[#allocation36_spill] sm:$0xff] %v13524_v8  ;;  %v13567_v30 = vld [vmem:[#allocation12 + $0x368] sm:$0xff]  ;;  %v13571_v19 = vld [vmem:[#allocation12 + $0x360] sm:$0xff] }
 0x4cf   :  { %3138 = vmatprep.subr.mxu0 %v3060_v26  ;;  %9933 = vmatprep.subr.mxu1 %v3058_v23  ;;  %v3085_v9 = vmax.f32 %v3076_v50, 0.0  ;;  %v3087_v11 = vmax.f32 %v3078_v41, 0.0  ;;  %v3086_v38 = vmax.f32 %v3077_v17, 0.0  ;;  %17134 = vst [vmem:[#allocation35_spill] sm:$0xff] %v13536_v51  ;;  %17135 = vst [vmem:[#allocation40_spill] sm:$0xff] %v13542_v6  ;;  %v13575_v32 = vld [vmem:[#allocation12 + $0x358] sm:$0xff] }
 0x4d0   :  { %3139 = vmatpush1.msra.mxu0 %v3059_v25  ;;  %9934 = vmatpush3.msra.mxu1 %v3058_v23  ;;  %v3074_v56 = vadd.f32 %v3065_v54, %v13364_v10  ;;  %v3084_v43 = vmax.f32 %v3075_v49, 0.0  ;;  %v13464_v10 = vld [vmem:[#allocation12 + $0x3f8] sm:$0xff]  ;;  %v13584_v14 = vld [vmem:[#allocation12 + $0x348] sm:$0xff]  ;;  %v13587_v39 = vld [vmem:[#allocation12 + $0x340] sm:$0xff] }
 0x4d1   :  { %3140 = vmatprep.subr.mxu0 %v3057_v4  ;;  %8414 = vmatprep.subr.msk.mxu1 %vm2248_vm3, %v3063_v24  ;;  %v13530_v24 = vld [vmem:[#allocation12 + $0x5b8] sm:$0xff]  ;;  %v13596_v36 = vld [vmem:[#allocation12 + $0x328] sm:$0xff]  ;;  %v13599_v16 = vld [vmem:[#allocation12 + $0x320] sm:$0xff] }
 0x4d2   :  { %3141 = vmatpush1.msra.mxu0 %v3056_v34  ;;  %9936 = vmatmul.mubr.msk.f32.vlgmr.msra.gmra.mxu1 %vm3094_vm5, %v3093_v55  ;;  %v3083_v35 = vmax.f32 %v3074_v56, 0.0  ;;  %17133 = vst [vmem:[#allocation43_spill] sm:$0xff] %v13530_v24  ;;  %v13590_v33 = vld [vmem:[#allocation12 + $0x338] sm:$0xff]  ;;  %v13605_v37 = vld [vmem:[#allocation12 + $0x310] sm:$0xff]  ;;  %v13608_v21 = vld [vmem:[#allocation12 + $0x308] sm:$0xff] }
 0x4d3   :  { %8415 = vmatpush1.msk.msra.mxu1 %vm2248_vm3, %v3062_v44  ;;  %8409 = vmatmul.mubr.msk.f32.vlgmr.msra.gmra.mxu0 %vm3094_vm5, %v13348_v1  ;;  %v13539_v44 = vld [vmem:[#allocation12 + $0x390] sm:$0xff]  ;;  %v13602_v62 = vld [vmem:[#allocation12 + $0x318] sm:$0xff]  ;;  %v13620_v41 = vld [vmem:[#allocation12 + $0x4e8] sm:$0xff] }
 0x4d4   :  { %3304 = vmatprep.subr.mxu1 %v3060_v26  ;;  %9938 = vmatprep.subr.msk.mxu0 %vm2248_vm3, %v3064_v3  ;;  %v13545_v26 = vld [vmem:[#allocation12 + $0x388] sm:$0xff]  ;;  %v13617_v50 = vld [vmem:[#allocation12 + $0x4f0] sm:$0xff]  ;;  %v13626_v17 = vld [vmem:[#allocation12 + $0x4d8] sm:$0xff] }
 0x4d5   :  { %3305 = vmatpush1.msra.mxu1 %v3059_v25  ;;  %9939 = vmatpush3.msk.msra.mxu0 %vm2248_vm3, %v3064_v3  ;;  %v13509_v3 = vld [vmem:[#allocation12 + $0x3b8] sm:$0xff]  ;;  %v13551_v25 = vld [vmem:[#allocation12 + $0x380] sm:$0xff]  ;;  %v13629_v54 = vld [vmem:[#allocation12 + $0x4d0] sm:$0xff] }
 0x4d6   :  { %3306 = vmatprep.subr.mxu1 %v3057_v4  ;;  %9940 = vmatprep.subr.mxu0 %v3061_v48  ;;  %v13554_v4 = vld [vmem:[#allocation12 + $0x598] sm:$0xff]  ;;  %v13632_v49 = vld [vmem:[#allocation12 + $0x4c8] sm:$0xff]  ;;  %v13661_v29 = vld [vmem:[#allocation12 + $0x490] sm:$0xff] }
 0x4d7   :  { %3180 = vmatprep.mubr.f32.mxu0 %v16955_v59  ;;  %3307 = vmatpush1.msra.mxu1 %v3056_v34  ;;  %17137 = vst [vmem:[#allocation42_spill] sm:$0xff] %v13554_v4  ;;  %v13560_v34 = vld [vmem:[#allocation12 + $0x590] sm:$0xff]  ;;  %v13638_v56 = vld [vmem:[#allocation12 + $0x4b8] sm:$0xff]  ;;  %17145 = vst [vmem:[#allocation55_spill] sm:$0xff] %v13661_v29 }
 0x4d8   :  { %3340 = vmatprep.mubr.f32.mxu1 %v16955_v59  ;;  %9941 = vmatpush3.msra.mxu0 %v3061_v48  ;;  %v13533_v48 = vld [vmem:[#allocation12 + $0x398] sm:$0xff]  ;;  %17138 = vst [vmem:[#allocation47_spill] sm:$0xff] %v13560_v34 }
 0x4d9   :  { %8410 = vmatmul.mubr.msk.f32.gmra.mxu0 %vm3094_vm5, %v3093_v55  ;;  %8416 = vmatmul.mubr.msk.f32.vlgmr.msra.gmra.mxu1 %vm3094_vm5, %v13417_v5  ;;  %v13557_v55 = vld [vmem:[#allocation12 + $0x378] sm:$0xff] }
 0x4da   :  { %9942 = vmatprep.subr.mxu0 %v3058_v23  ;;  %9947 = vmatprep.subr.msk.mxu1 %vm2248_vm3, %v3091_v0 }
 0x4db   :  { %9943 = vmatpush3.msra.mxu0 %v3058_v23  ;;  %9948 = vmatpush3.msk.msra.mxu1 %vm2248_vm3, %v3091_v0  ;;  %v13548_v23 = vld [vmem:[#allocation12 + $0x5a0] sm:$0xff] }
 0x4dc   :  { %8421 = vmatprep.subr.msk.mxu0 %vm2248_vm3, %v3090_v2  ;;  %9949 = vmatprep.subr.mxu1 %v3088_v31  ;;  %17136 = vst [vmem:[#allocation45_spill] sm:$0xff] %v13548_v23 }
 0x4dd   :  { %3346 = vmatprep.mubr.f32.mxu1 %v16955_v59  ;;  %9944 = vmatprep.mubr.msk.f32.mxu0 %vm3094_vm5, %v13417_v5 }
 0x4de   :  { %9950 = vmatpush3.msra.mxu1 %v3088_v31  ;;  %9945 = vmatmul.mubr.msk.f32.vlgmr.msra.gmra.mxu0 %vm3094_vm5, %v3269_v61 }
 0x4df   :  { %8417 = vmatmul.mubr.msk.f32.gmra.mxu1 %vm3094_vm5, %v3269_v61  ;;  %8422 = vmatpush1.msk.msra.mxu0 %vm2248_vm3, %v3089_v60  ;;  %v13623_v61 = vld [vmem:[#allocation12 + $0x4e0] sm:$0xff] }
 0x4e0   :  { %9951 = vmatprep.subr.mxu1 %v3085_v9  ;;  %3480 = vmatprep.subr.mxu0 %v3087_v11 }
 0x4e1   :  { %9952 = vmatpush3.msra.mxu1 %v3085_v9  ;;  %3481 = vmatpush1.msra.mxu0 %v3086_v38 }
 0x4e2   :  { %8428 = vmatprep.subr.msk.mxu1 %vm2248_vm3, %v3090_v2  ;;  %3482 = vmatprep.subr.mxu0 %v3084_v43  ;;  %v13611_v2 = vld [vmem:[#allocation12 + $0x300] sm:$0xff] }
 0x4e3   :  { %9953 = vmatprep.mubr.msk.f32.mxu1 %vm3094_vm5, %v13348_v1  ;;  %3483 = vmatpush1.msra.mxu0 %v3083_v35 }
 0x4e4   :  { %9954 = vmatmul.mubr.msk.f32.vlgmr.msra.gmra.mxu1 %vm3094_vm5, %v3436_v40  ;;  %3516 = vmatprep.mubr.f32.mxu0 %v16955_v59 }
 0x4e5   :  { %8429 = vmatpush1.msk.msra.mxu1 %vm2248_vm3, %v3089_v60  ;;  %9956 = vmatprep.subr.msk.mxu0 %vm2248_vm3, %v3091_v0  ;;  %v13635_v60 = vld [vmem:[#allocation12 + $0x4c0] sm:$0xff] }
 0x4e6   :  { %3647 = vmatprep.subr.mxu1 %v3087_v11  ;;  %8423 = vmatmul.mubr.msk.f32.vlgmr.msra.gmra.mxu0 %vm3094_vm5, %v13348_v1  ;;  %v13474_v1 = vld [vmem:[#allocation12 + $0x3e8] sm:$0xff] }
 0x4e7   :  { %3648 = vmatpush1.msra.mxu1 %v3086_v38  ;;  %9957 = vmatpush3.msk.msra.mxu0 %vm2248_vm3, %v3091_v0  ;;  %v13593_v0 = vld [vmem:[#allocation12 + $0x330] sm:$0xff]  ;;  %v13644_v11 = vld [vmem:[#allocation12 + $0x4a8] sm:$0xff] }
 0x4e8   :  { %3649 = vmatprep.subr.mxu1 %v3084_v43  ;;  %9958 = vmatprep.subr.mxu0 %v3088_v31  ;;  %17139 = vst [vmem:[#allocation49_spill] sm:$0xff] %v13644_v11  ;;  %v13646_v38 = vld [vmem:[#allocation12 + $0x588] sm:$0xff]  ;;  %v13649_v43 = vld [vmem:[#allocation12 + $0x4a0] sm:$0xff] }
 0x4e9   :  { %3650 = vmatpush1.msra.mxu1 %v3083_v35  ;;  %9959 = vmatpush3.msra.mxu0 %v3088_v31  ;;  %v13614_v31 = vld [vmem:[#allocation12 + $0x4f8] sm:$0xff]  ;;  %17140 = vst [vmem:[#allocation50_spill] sm:$0xff] %v13646_v38  ;;  %17141 = vst [vmem:[#allocation51_spill] sm:$0xff] %v13649_v43  ;;  %v13652_v35 = vld [vmem:[#allocation12 + $0x580] sm:$0xff] }
 0x4ea   :  { %9960 = vmatprep.subr.mxu0 %v3085_v9  ;;  %3522 = vmatprep.mubr.f32.mxu0 %v16955_v59  ;;  %17142 = vst [vmem:[#allocation52_spill] sm:$0xff] %v13652_v35 }
 0x4eb   :  { %9961 = vmatpush3.msra.mxu0 %v3085_v9  ;;  %3683 = vmatprep.mubr.f32.mxu1 %v16955_v59  ;;  %v13641_v9 = vld [vmem:[#allocation12 + $0x4b0] sm:$0xff] }
 0x4ec   :  { %8424 = vmatmul.mubr.msk.f32.gmra.mxu0 %vm3094_vm5, %v3436_v40  ;;  %8430 = vmatmul.mubr.msk.f32.vlgmr.msra.gmra.mxu1 %vm3094_vm5, %v13417_v5  ;;  %v13655_v40 = vld [vmem:[#allocation12 + $0x498] sm:$0xff] }
 0x4ed   :  { %9962 = vmatprep.mubr.msk.f32.mxu0 %vm3094_vm5, %v13417_v5  ;;  %3986 = vmatprep.subr.mxu1 %v13464_v10  ;;  %v13579_v5 = vld [vmem:[#allocation12 + $0x350] sm:$0xff]  ;;  %17143 = vst [vmem:[#allocation53_spill] sm:$0xff] %v13655_v40 }
 0x4ee   :  { %3987 = vmatpush1.msra.mxu1 %v13467_v22  ;;  %4057 = vmatprep.subr.mxu0 %v13469_v46 }
 0x4ef   :  { %3988 = vmatprep.subr.mxu1 %v13474_v1  ;;  %3689 = vmatprep.mubr.f32.mxu1 %v16955_v59 }
 0x4f0   :  { %9963 = vmatmul.mubr.msk.f32.vlgmr.msra.gmra.mxu0 %vm3094_vm5, %v13478_v13  ;;  %3989 = vmatpush1.msra.mxu1 %v13481_v27 }
 0x4f1   :  { %3990 = vmatprep.subr.mxu1 %v13484_v15  ;;  %4058 = vmatpush1.msra.mxu0 %v13487_v7 }
 0x4f2   :  { %3991 = vmatpush1.msra.mxu1 %v13490_v63  ;;  %4059 = vmatprep.subr.mxu0 %v13492_v47 }
 0x4f3   :  { %3992 = vmatprep.subr.mxu1 %v13498_v42  ;;  %4060 = vmatpush1.msra.mxu0 %v13500_v18 }
 0x4f4   :  { %3993 = vmatpush1.msra.mxu1 %v13503_v45  ;;  %4061 = vmatprep.subr.mxu0 %v13506_v28 }
 0x4f5   :  { %3994 = vmatprep.subr.mxu1 %v13509_v3  ;;  %4062 = vmatpush1.msra.mxu0 %v13512_v58 }
 0x4f6   :  { %3995 = vmatpush1.msra.mxu1 %v13515_v20  ;;  %4063 = vmatprep.subr.mxu0 %v13518_v57 }
 0x4f7   :  { %3996 = vmatprep.subr.mxu1 %v13521_v53  ;;  %4064 = vmatpush1.msra.mxu0 %v13524_v8 }
 0x4f8   :  { %3997 = vmatpush1.msra.mxu1 %v13527_v52  ;;  %4065 = vmatprep.subr.mxu0 %v13530_v24  ;;  %v13746_v24 = vld [vmem:[#allocation12 + $0x420] sm:$0xff] }
 0x4f9   :  { %3998 = vmatprep.subr.mxu1 %v13533_v48  ;;  %4066 = vmatpush1.msra.mxu0 %v13536_v51  ;;  %v13688_v51 = vld [vmem:[#allocation12 + $0x468] sm:$0xff]  ;;  %17174 = vst [vmem:[#allocation78_spill] sm:$0xff] %v13746_v24 }
 0x4fa   :  { %3999 = vmatpush1.msra.mxu1 %v13539_v44  ;;  %4067 = vmatprep.subr.mxu0 %v13542_v6  ;;  %v13682_v6 = vld [vmem:[#allocation12 + $0x470] sm:$0xff]  ;;  %17154 = vst [vmem:[#allocation64_spill] sm:$0xff] %v13688_v51 }
 0x4fb   :  { %4000 = vmatprep.subr.mxu1 %v13545_v26  ;;  %4068 = vmatpush1.msra.mxu0 %v13548_v23  ;;  %v13676_v23 = vld [vmem:[#allocation12 + $0x478] sm:$0xff]  ;;  %17152 = vst [vmem:[#allocation62_spill] sm:$0xff] %v13682_v6 }
 0x4fc   :  { %4001 = vmatpush1.msra.mxu1 %v13551_v25  ;;  %4069 = vmatprep.subr.mxu0 %v13554_v4  ;;  %v13671_v4 = vld [vmem:[#allocation12 + $0x480] sm:$0xff]  ;;  %17150 = vst [vmem:[#allocation59_spill] sm:$0xff] %v13676_v23 }
 0x4fd   :  { %4002 = vmatprep.subr.mxu1 %v13557_v55  ;;  %4070 = vmatpush1.msra.mxu0 %v13560_v34  ;;  %v13664_v34 = vld [vmem:[#allocation12 + $0x570] sm:$0xff]  ;;  %17148 = vst [vmem:[#allocation57_spill] sm:$0xff] %v13671_v4 }
 0x4fe   :  { %4003 = vmatpush1.msra.mxu1 %v13563_v12  ;;  %4121 = vmatprep.mubr.f32.mxu0 %v16955_v59  ;;  %17146 = vst [vmem:[#allocation34_spill] sm:$0xff] %v13664_v34 }
 0x4ff   :  { %4004 = vmatprep.subr.mxu1 %v13567_v30  ;;  %8431 = vmatmul.mubr.msk.f32.gmra.mxu1 %vm3094_vm5, %v13478_v13  ;;  %v13658_v13 = vld [vmem:[#allocation12 + $0x578] sm:$0xff] }
 0x500   :  { %4005 = vmatpush1.msra.mxu1 %v13571_v19  ;;  %4071 = vmatprep.subr.mxu0 %v13646_v38  ;;  %17144 = vst [vmem:[#allocation54_spill] sm:$0xff] %v13658_v13  ;;  %v13667_v38 = vld [vmem:[#allocation12 + $0x488] sm:$0xff] }
 0x501   :  { %4006 = vmatprep.subr.mxu1 %v13575_v32  ;;  %4072 = vmatpush1.msra.mxu0 %v13652_v35  ;;  %17147 = vst [vmem:[#allocation56_spill] sm:$0xff] %v13667_v38  ;;  %v13673_v35 = vld [vmem:[#allocation12 + $0x568] sm:$0xff] }
 0x502   :  { %4007 = vmatpush1.msra.mxu1 %v13579_v5  ;;  %4073 = vmatprep.subr.mxu0 %v13658_v13  ;;  %17149 = vst [vmem:[#allocation58_spill] sm:$0xff] %v13673_v35  ;;  %v13679_v13 = vld [vmem:[#allocation12 + $0x560] sm:$0xff] }
 0x503   :  { %4008 = vmatprep.subr.mxu1 %v13584_v14  ;;  %4074 = vmatpush1.msra.mxu0 %v13664_v34  ;;  %17151 = vst [vmem:[#allocation61_spill] sm:$0xff] %v13679_v13  ;;  %v13685_v34 = vld [vmem:[#allocation12 + $0x558] sm:$0xff] }
 0x504   :  { %4009 = vmatpush1.msra.mxu1 %v13587_v39  ;;  %4075 = vmatprep.subr.mxu0 %v13673_v35  ;;  %17153 = vst [vmem:[#allocation63_spill] sm:$0xff] %v13685_v34  ;;  %v13694_v35 = vld [vmem:[#allocation12 + $0x460] sm:$0xff] }
 0x505   :  { %4010 = vmatprep.subr.mxu1 %v13590_v33  ;;  %4076 = vmatpush1.msra.mxu0 %v13679_v13  ;;  %17156 = vst [vmem:[#allocation67_spill] sm:$0xff] %v13694_v35  ;;  %v13700_v13 = vld [vmem:[#allocation12 + $0x458] sm:$0xff] }
 0x506   :  { %4011 = vmatpush1.msra.mxu1 %v13593_v0  ;;  %4077 = vmatprep.subr.mxu0 %v13685_v34  ;;  %17158 = vst [vmem:[#allocation69_spill] sm:$0xff] %v13700_v13  ;;  %v13706_v34 = vld [vmem:[#allocation12 + $0x450] sm:$0xff] }
 0x507   :  { %4012 = vmatprep.subr.mxu1 %v13596_v36  ;;  %17160 = vst [vmem:[#allocation71_spill] sm:$0xff] %v13706_v34 }
 0x508   :  { %4013 = vmatpush1.msra.mxu1 %v13599_v16 }
 0x509   :  { %4014 = vmatprep.subr.mxu1 %v13602_v62 }
 0x50a   :  { %4015 = vmatpush1.msra.mxu1 %v13605_v37 }
 0x50b   :  { %4016 = vmatprep.subr.mxu1 %v13608_v21 }
 0x50c   :  { %4017 = vmatpush1.msra.mxu1 %v13611_v2 }
 0x50d   :  { %4018 = vmatprep.subr.mxu1 %v13614_v31 }
 0x50e   :  { %4019 = vmatpush2.msra.mxu1 %v13617_v50 }
 0x50f   :  { %4020 = vmatprep.subr.mxu1 %v13620_v41 }
 0x510   :  { %4021 = vmatpush2.msra.mxu1 %v13623_v61 }
 0x511   :  { %4022 = vmatprep.subr.mxu1 %v13626_v17 }
 0x512   :  { %4023 = vmatpush2.msra.mxu1 %v13629_v54 }
 0x513   :  { %4024 = vmatprep.subr.mxu1 %v13632_v49 }
 0x514   :  { %4025 = vmatpush2.msra.mxu1 %v13635_v60 }
 0x515   :  { %4026 = vmatprep.subr.mxu1 %v13638_v56 }
 0x516   :  { %4027 = vmatpush2.msra.mxu1 %v13641_v9 }
 0x517   :  { %4028 = vmatprep.subr.mxu1 %v13644_v11 }
 0x518   :  { %4029 = vmatpush2.msra.mxu1 %v13649_v43  ;;  %v13788_v43 = vld [vmem:[#allocation12 + $0x2d8] sm:$0xff] }
 0x519   :  { %4030 = vmatprep.subr.mxu1 %v13655_v40  ;;  %v13729_v40 = vld [vmem:[#allocation12 + $0x518] sm:$0xff]  ;;  %17185 = vst [vmem:[#allocation89_spill] sm:$0xff] %v13788_v43 }
 0x51a   :  { %4031 = vmatpush2.msra.mxu1 %v13661_v29  ;;  %v13691_v29 = vld [vmem:[#allocation12 + $0x550] sm:$0xff]  ;;  %17168 = vst [vmem:[#allocation41_spill] sm:$0xff] %v13729_v40 }
 0x51b   :  { %4032 = vmatprep.subr.mxu1 %v13667_v38  ;;  %17155 = vst [vmem:[#allocation65_spill] sm:$0xff] %v13691_v29  ;;  %4078 = vmatpush1.msra.mxu0 %v13691_v29  ;;  %v13697_v38 = vld [vmem:[#allocation12 + $0x548] sm:$0xff] }
 0x51c   :  { %4033 = vmatpush2.msra.mxu1 %v13671_v4  ;;  %17157 = vst [vmem:[#allocation68_spill] sm:$0xff] %v13697_v38  ;;  %4079 = vmatprep.subr.mxu0 %v13697_v38  ;;  %v13703_v4 = vld [vmem:[#allocation12 + $0x540] sm:$0xff]  ;;  %v13712_v29 = vld [vmem:[#allocation12 + $0x448] sm:$0xff] }
 0x51d   :  { %4034 = vmatprep.subr.mxu1 %v13676_v23  ;;  %17159 = vst [vmem:[#allocation70_spill] sm:$0xff] %v13703_v4  ;;  %4080 = vmatpush1.msra.mxu0 %v13703_v4  ;;  %v13709_v23 = vld [vmem:[#allocation12 + $0x538] sm:$0xff]  ;;  %17162 = vst [vmem:[#allocation73_spill] sm:$0xff] %v13712_v29  ;;  %v13718_v38 = vld [vmem:[#allocation12 + $0x440] sm:$0xff] }
 0x51e   :  { %4035 = vmatpush2.msra.mxu1 %v13682_v6  ;;  %17161 = vst [vmem:[#allocation72_spill] sm:$0xff] %v13709_v23  ;;  %4081 = vmatprep.subr.mxu0 %v13709_v23  ;;  %v13715_v6 = vld [vmem:[#allocation12 + $0x530] sm:$0xff]  ;;  %17164 = vst [vmem:[#allocation60_spill] sm:$0xff] %v13718_v38  ;;  %v13724_v4 = vld [vmem:[#allocation12 + $0x438] sm:$0xff] }
 0x51f   :  { %4036 = vmatprep.subr.mxu1 %v13688_v51  ;;  %17163 = vst [vmem:[#allocation66_spill] sm:$0xff] %v13715_v6  ;;  %4082 = vmatpush1.msra.mxu0 %v13715_v6  ;;  %v13721_v51 = vld [vmem:[#allocation12 + $0x528] sm:$0xff]  ;;  %17166 = vst [vmem:[#allocation38_spill] sm:$0xff] %v13724_v4  ;;  %v13732_v23 = vld [vmem:[#allocation12 + $0x430] sm:$0xff] }
 0x520   :  { %4037 = vmatpush2.msra.mxu1 %v13694_v35  ;;  %17165 = vst [vmem:[#allocation48_spill] sm:$0xff] %v13721_v51  ;;  %4083 = vmatprep.subr.mxu0 %v13721_v51  ;;  %v13727_v35 = vld [vmem:[#allocation12 + $0x520] sm:$0xff]  ;;  %17169 = vst [vmem:[#allocation44_spill] sm:$0xff] %v13732_v23  ;;  %v13737_v6 = vld [vmem:[#allocation12 + $0x508] sm:$0xff] }
 0x521   :  { %4038 = vmatprep.subr.mxu1 %v13700_v13  ;;  %17167 = vst [vmem:[#allocation39_spill] sm:$0xff] %v13727_v35  ;;  %4084 = vmatpush1.msra.mxu0 %v13727_v35  ;;  %v13735_v13 = vld [vmem:[#allocation12 + $0x510] sm:$0xff]  ;;  %17171 = vst [vmem:[#allocation75_spill] sm:$0xff] %v13737_v6  ;;  %v13743_v51 = vld [vmem:[#allocation12 + $0x500] sm:$0xff] }
 0x522   :  { %4039 = vmatpush2.msra.mxu1 %v13706_v34  ;;  %17170 = vst [vmem:[#allocation74_spill] sm:$0xff] %v13735_v13  ;;  %v13740_v34 = vld [vmem:[#allocation12 + $0x428] sm:$0xff]  ;;  %4085 = vmatprep.subr.mxu0 %v13729_v40  ;;  %17173 = vst [vmem:[#allocation77_spill] sm:$0xff] %v13743_v51  ;;  %v13752_v35 = vld [vmem:[#allocation12 + $0x418] sm:$0xff] }
 0x523   :  { %4040 = vmatprep.subr.mxu1 %v13712_v29  ;;  %17172 = vst [vmem:[#allocation76_spill] sm:$0xff] %v13740_v34  ;;  %4086 = vmatpush1.msra.mxu0 %v13735_v13  ;;  %v13749_v29 = vld [vmem:[#allocation12 + $0xf8] sm:$0xff]  ;;  %17176 = vst [vmem:[#allocation80_spill] sm:$0xff] %v13752_v35  ;;  %v13760_v40 = vld [vmem:[#allocation12 + $0x408] sm:$0xff] }
 0x524   :  { %4041 = vmatpush2.msra.mxu1 %v13718_v38  ;;  %17175 = vst [vmem:[#allocation79_spill] sm:$0xff] %v13749_v29  ;;  %4087 = vmatprep.subr.mxu0 %v13737_v6  ;;  %v13756_v38 = vld [vmem:[#allocation12 + $0x410] sm:$0xff]  ;;  %17178 = vst [vmem:[#allocation82_spill] sm:$0xff] %v13760_v40  ;;  %v13764_v13 = vld [vmem:[#allocation12 + $0x400] sm:$0xff] }
 0x525   :  { %4042 = vmatprep.subr.mxu1 %v13724_v4  ;;  %17177 = vst [vmem:[#allocation81_spill] sm:$0xff] %v13756_v38  ;;  %4088 = vmatpush1.msra.mxu0 %v13743_v51  ;;  %17179 = vst [vmem:[#allocation83_spill] sm:$0xff] %v13764_v13 }
 0x526   :  { %4043 = vmatpush2.msra.mxu1 %v13732_v23  ;;  %4128 = vmatprep.subr.mxu0 %v13749_v29  ;;  %v13767_v23 = vld [vmem:[#allocation12 + $0x2f8] sm:$0xff] }
 0x527   :  { %4044 = vmatprep.subr.mxu1 %v13740_v34  ;;  %17180 = vst [vmem:[#allocation84_spill] sm:$0xff] %v13767_v23  ;;  %v13785_v34 = vld [vmem:[#allocation12 + $0x2e0] sm:$0xff] }
 0x528   :  { %4045 = vmatpush2.msra.mxu1 %v13746_v24  ;;  %v13781_v24 = vld [vmem:[#allocation12 + $0x2f0] sm:$0xff]  ;;  %17184 = vst [vmem:[#allocation88_spill] sm:$0xff] %v13785_v34 }
 0x529   :  { %4046 = vmatprep.subr.mxu1 %v13752_v35  ;;  %17182 = vst [vmem:[#allocation86_spill] sm:$0xff] %v13781_v24 }
 0x52a   :  { %4047 = vmatpush2.msra.mxu1 %v13756_v38 }
 0x52b   :  { %4048 = vmatprep.subr.mxu1 %v13760_v40 }
 0x52c   :  { %4049 = vmatpush2.msra.mxu1 %v13764_v13 }
 0x52d   :  { %4199 = vmatprep.subr.mxu1 %v13767_v23 }
 0x592   :  { %v9937_v51 = vpop.f32.mrf.mxu1 }
 0x593   :  { %v13772_v6 = vpop.f32.mrf.mxu0  ;;  %3267 = vst [vmem:[#allocation2 + $0x28] sm:$0x1] %v9937_v51  ;;  %v13783_v51 = vld [vmem:[#allocation12 + $0x2e8] sm:$0xff] }
 0x594   :  { %3262 = vst [vmem:[#allocation2 + $0xb0] sm:$0xff] %v13772_v6  ;;  %v13775_v29 = vpop.f32.mrf.mxu1  ;;  %17183 = vst [vmem:[#allocation87_spill] sm:$0xff] %v13783_v51 }
 0x595   :  { %v13777_v35 = vpop.f32.mrf.mxu0  ;;  %3264 = vst [vmem:[#allocation2 + $0x10] sm:$0xff] %v13775_v29 }
 0x596   :  { %17181 = vst [vmem:[#allocation85_spill] sm:$0xff] %v13777_v35  ;;  %3263 = vst [vmem:[#allocation2] sm:$0xff] %v13777_v35 }
 0x599   :  { %v3182_v38 = vpop.f32.mrf.mxu0  ;;  %v3342_v40 = vpop.f32.mrf.mxu1 }
 0x59a   :  { %3265 = vst [vmem:[#allocation2 + $0x48] sm:$0x1] %v3182_v38  ;;  %3429 = vst [vmem:[#allocation2 + $0x40] sm:$0xff] %v3342_v40  ;;  %v13792_v38 = vld [vmem:[#allocation12 + $0xf0] sm:$0xff] }
 0x59b   :  { %v3184_v13 = vpop.f32.mrf.mxu0  ;;  %v3344_v23 = vpop.f32.mrf.mxu1  ;;  %17186 = vst [vmem:[#allocation90_spill] sm:$0xff] %v13792_v38 }
 0x59c   :  { %3266 = vst [vmem:[#allocation2 + $0x60] sm:$0x1] %v3184_v13  ;;  %3430 = vst [vmem:[#allocation2 + $0x78] sm:$0xff] %v3344_v23  ;;  %4050 = vmatprep.mubr.f32.mxu1 %v3344_v23  ;;  %v13795_v23 = vld [vmem:[#allocation12 + $0xe8] sm:$0xff] }
 0x59d   :  { %4051 = vmatmul.mubr.f32.vlgmr.msra.gmra.mxu1 %v3342_v40  ;;  %17187 = vst [vmem:[#allocation91_spill] sm:$0xff] %v13795_v23  ;;  %v13797_v40 = vld [vmem:[#allocation12 + $0x2d0] sm:$0xff] }
 0x59e   :  { %v9946_v4 = vpop.f32.mrf.mxu0  ;;  %4200 = vmatpush1.msra.mxu1 %v13781_v24  ;;  %4263 = vmatprep.mubr.f32.mxu1 %v16955_v59  ;;  %17188 = vst [vmem:[#allocation92_spill] sm:$0xff] %v13797_v40  ;;  %v13802_v24 = vld [vmem:[#allocation12 + $0x2c8] sm:$0xff] }
 0x59f   :  { %4201 = vmatprep.subr.mxu1 %v13783_v51  ;;  %v3348_v8 = vpop.f32.mrf.mxu1  ;;  %v13800_v4 = vld [vmem:[#allocation12 + $0xe0] sm:$0xff]  ;;  %17190 = vst [vmem:[#allocation94_spill] sm:$0xff] %v13802_v24 }
 0x5a0   :  { %v3419_v13 = vpop.f32.mrf.mxu0  ;;  %4202 = vmatpush1.msra.mxu1 %v13785_v34  ;;  %17189 = vst [vmem:[#allocation93_spill] sm:$0xff] %v13800_v4  ;;  %v13806_v8 = vld [vmem:[#allocation12 + $0xd8] sm:$0xff]  ;;  %v13808_v34 = vld [vmem:[#allocation12 + $0x2c0] sm:$0xff] }
 0x5a1   :  { %3431 = vst [vmem:[#allocation2 + $0x88] sm:$0xff] %v3419_v13  ;;  %4122 = vmatmul.mubr.f32.vlgmr.msra.gmra.mxu0 %v3419_v13  ;;  %4203 = vmatprep.subr.mxu1 %v13788_v43  ;;  %v3350_v59 = vpop.f32.mrf.mxu1  ;;  %17191 = vst [vmem:[#allocation95_spill] sm:$0xff] %v13806_v8  ;;  %v13812_v13 = vld [vmem:[#allocation12 + $0xd0] sm:$0xff]  ;;  %v13814_v43 = vld [vmem:[#allocation12 + $0x2b8] sm:$0xff] }
 0x5a2   :  { %4129 = vmatpush1.msra.mxu0 %v13792_v38  ;;  %4192 = vmatprep.mubr.f32.mxu0 %v13777_v35  ;;  %17192 = vst [vmem:[#allocation96_spill] sm:$0xff] %v13808_v34  ;;  %17193 = vst [vmem:[#allocation97_spill] sm:$0xff] %v13812_v13  ;;  %v13818_v59 = vld [vmem:[#allocation12 + $0xc8] sm:$0xff]  ;;  %v13820_v38 = vld [vmem:[#allocation12 + $0x2b0] sm:$0xff] }
 0x5a3   :  { %4130 = vmatprep.subr.mxu0 %v13795_v23  ;;  %4204 = vmatpush1.msra.mxu1 %v13797_v40  ;;  %17194 = vst [vmem:[#allocation98_spill] sm:$0xff] %v13814_v43  ;;  %17195 = vst [vmem:[#allocation99_spill] sm:$0xff] %v13818_v59  ;;  %v13824_v23 = vld [vmem:[#allocation12 + $0xc0] sm:$0xff]  ;;  %v13826_v40 = vld [vmem:[#allocation12 + $0x2a8] sm:$0xff] }
 0x5a4   :  { %4131 = vmatpush1.msra.mxu0 %v13800_v4  ;;  %4205 = vmatprep.subr.mxu1 %v13802_v24  ;;  %17196 = vst [vmem:[#allocation100_spill] sm:$0xff] %v13820_v38  ;;  %v9955_v35 = vpop.f32.mrf.mxu1  ;;  %17197 = vst [vmem:[#allocation101_spill] sm:$0xff] %v13824_v23  ;;  %v13830_v4 = vld [vmem:[#allocation12 + $0xb8] sm:$0xff]  ;;  %v13832_v24 = vld [vmem:[#allocation12 + $0x2a0] sm:$0xff] }
 0x5a5   :  { %4132 = vmatprep.subr.mxu0 %v13806_v8  ;;  %4206 = vmatpush1.msra.mxu1 %v13808_v34  ;;  %17198 = vst [vmem:[#allocation102_spill] sm:$0xff] %v13826_v40  ;;  %3610 = vst [vmem:[#allocation2 + $0x68] sm:$0x1] %v9955_v35  ;;  %v13840_v34 = vld [vmem:[#allocation12 + $0xb0] sm:$0xff]  ;;  %v13842_v8 = vld [vmem:[#allocation12 + $0x298] sm:$0xff] }
 0x5a6   :  { %4133 = vmatpush1.msra.mxu0 %v13812_v13  ;;  %4207 = vmatprep.subr.mxu1 %v13814_v43  ;;  %17199 = vst [vmem:[#allocation103_spill] sm:$0xff] %v13830_v4  ;;  %17200 = vst [vmem:[#allocation104_spill] sm:$0xff] %v13832_v24  ;;  %v13834_v51 = vpop.f32.mrf.mxu0  ;;  %v13836_v11 = vpop.f32.mrf.mxu1  ;;  %v13848_v35 = vld [vmem:[#allocation12 + $0xa8] sm:$0xff]  ;;  %v13850_v43 = vld [vmem:[#allocation12 + $0x290] sm:$0xff] }
 0x5a7   :  { %17201 = vst [vmem:[#allocation105_spill] sm:$0xff] %v13834_v51  ;;  %17202 = vst [vmem:[#allocation106_spill] sm:$0xff] %v13836_v11  ;;  %4134 = vmatprep.subr.mxu0 %v13818_v59  ;;  %4208 = vmatpush1.msra.mxu1 %v13820_v38  ;;  %v13856_v38 = vld [vmem:[#allocation12 + $0xa0] sm:$0xff]  ;;  %v13858_v59 = vld [vmem:[#allocation12 + $0x288] sm:$0xff] }
 0x5a8   :  { %17203 = vst [vmem:[#allocation107_spill] sm:$0xff] %v13840_v34  ;;  %17204 = vst [vmem:[#allocation108_spill] sm:$0xff] %v13842_v8  ;;  %4135 = vmatpush1.msra.mxu0 %v13824_v23  ;;  %4209 = vmatprep.subr.mxu1 %v13826_v40  ;;  %v13852_v13 = vpop.f32.mrf.mxu0  ;;  %v13875_v40 = vld [vmem:[#allocation12 + $0x88] sm:$0xff] }
 0x5a9   :  { %3605 = vst [vmem:[#allocation2 + $0x38] sm:$0xff] %v13834_v51  ;;  %3607 = vst [vmem:[#allocation2 + $0x70] sm:$0xff] %v13836_v11  ;;  %4136 = vmatprep.subr.mxu0 %v13830_v4  ;;  %4210 = vmatpush1.msra.mxu1 %v13832_v24  ;;  %v13863_v51 = vld [vmem:[#allocation12 + $0x98] sm:$0xff]  ;;  %v13865_v11 = vld [vmem:[#allocation12 + $0x280] sm:$0xff] }
 0x5aa   :  { %17205 = vst [vmem:[#allocation109_spill] sm:$0xff] %v13848_v35  ;;  %17206 = vst [vmem:[#allocation110_spill] sm:$0xff] %v13850_v43  ;;  %4137 = vmatpush1.msra.mxu0 %v13840_v34  ;;  %4211 = vmatprep.subr.mxu1 %v13842_v8  ;;  %v13869_v4 = vld [vmem:[#allocation12 + $0x90] sm:$0xff]  ;;  %v13871_v24 = vld [vmem:[#allocation12 + $0x278] sm:$0xff] }
 0x5ab   :  { %17207 = vst [vmem:[#allocation111_spill] sm:$0xff] %v13852_v13  ;;  %17208 = vst [vmem:[#allocation112_spill] sm:$0xff] %v13856_v38  ;;  %4138 = vmatprep.subr.mxu0 %v13848_v35  ;;  %4212 = vmatpush1.msra.mxu1 %v13850_v43  ;;  %v13877_v34 = vld [vmem:[#allocation12 + $0x270] sm:$0xff]  ;;  %v13883_v43 = vld [vmem:[#allocation12 + $0x80] sm:$0xff] }
 0x5ac   :  { %17209 = vst [vmem:[#allocation113_spill] sm:$0xff] %v13858_v59  ;;  %3606 = vst [vmem:[#allocation2 + $0x50] sm:$0xff] %v13852_v13  ;;  %4139 = vmatpush1.msra.mxu0 %v13856_v38  ;;  %4213 = vmatprep.subr.mxu1 %v13858_v59  ;;  %v3524_v8 = vpop.f32.mrf.mxu0  ;;  %v13879_v23 = vpop.f32.mrf.mxu1  ;;  %v13885_v35 = vld [vmem:[#allocation12 + $0x268] sm:$0xff]  ;;  %v13890_v59 = vld [vmem:[#allocation12 + $0x78] sm:$0xff] }
 0x5ad   :  { %17210 = vst [vmem:[#allocation114_spill] sm:$0xff] %v13863_v51  ;;  %17211 = vst [vmem:[#allocation115_spill] sm:$0xff] %v13865_v11  ;;  %4140 = vmatprep.subr.mxu0 %v13863_v51  ;;  %4214 = vmatpush1.msra.mxu1 %v13865_v11  ;;  %v13892_v38 = vld [vmem:[#allocation12 + $0x260] sm:$0xff]  ;;  %v13898_v11 = vld [vmem:[#allocation12 + $0x70] sm:$0xff] }
 0x5ae   :  { %17212 = vst [vmem:[#allocation116_spill] sm:$0xff] %v13869_v4  ;;  %17213 = vst [vmem:[#allocation117_spill] sm:$0xff] %v13871_v24  ;;  %4141 = vmatpush1.msra.mxu0 %v13869_v4  ;;  %4215 = vmatprep.subr.mxu1 %v13871_v24  ;;  %v3526_v13 = vpop.f32.mrf.mxu0  ;;  %v13894_v57 = vpop.f32.mrf.mxu1  ;;  %v13905_v24 = vld [vmem:[#allocation12 + $0x68] sm:$0xff]  ;;  %v13907_v4 = vld [vmem:[#allocation12 + $0x250] sm:$0xff] }
 0x5af   :  { %17214 = vst [vmem:[#allocation118_spill] sm:$0xff] %v13875_v40  ;;  %17215 = vst [vmem:[#allocation119_spill] sm:$0xff] %v13877_v34  ;;  %4142 = vmatprep.subr.mxu0 %v13875_v40  ;;  %4216 = vmatpush1.msra.mxu1 %v13877_v34  ;;  %v13911_v34 = vld [vmem:[#allocation12 + $0x60] sm:$0xff]  ;;  %v13913_v40 = vld [vmem:[#allocation12 + $0x248] sm:$0xff] }
 0x5b0   :  { %17216 = vst [vmem:[#allocation120_spill] sm:$0xff] %v13883_v43  ;;  %17217 = vst [vmem:[#allocation121_spill] sm:$0xff] %v13885_v35  ;;  %4143 = vmatpush1.msra.mxu0 %v13883_v43  ;;  %4217 = vmatprep.subr.mxu1 %v13885_v35  ;;  %v9964_v51 = vpop.f32.mrf.mxu0  ;;  %v13919_v35 = vld [vmem:[#allocation12 + $0x240] sm:$0xff] }
 0x5b1   :  { %3608 = vst [vmem:[#allocation2 + $0xa0] sm:$0x1] %v3524_v8  ;;  %3772 = vst [vmem:[#allocation2 + $0x30] sm:$0xff] %v13879_v23  ;;  %v13900_v8 = vld [vmem:[#allocation12 + $0x258] sm:$0xff]  ;;  %4144 = vmatprep.subr.mxu0 %v13890_v59  ;;  %4218 = vmatpush1.msra.mxu1 %v13892_v38  ;;  %v13925_v51 = vld [vmem:[#allocation12 + $0x50] sm:$0xff] }
 0x5b2   :  { %17218 = vst [vmem:[#allocation122_spill] sm:$0xff] %v13890_v59  ;;  %17219 = vst [vmem:[#allocation123_spill] sm:$0xff] %v13892_v38  ;;  %4145 = vmatpush1.msra.mxu0 %v13898_v11  ;;  %4219 = vmatprep.subr.mxu1 %v13900_v8  ;;  %v13921_v43 = vpop.f32.mrf.mxu0  ;;  %v13927_v38 = vld [vmem:[#allocation12 + $0x238] sm:$0xff] }
 0x5b3   :  { %17220 = vst [vmem:[#allocation124_spill] sm:$0xff] %v13898_v11  ;;  %17221 = vst [vmem:[#allocation125_spill] sm:$0xff] %v13900_v8  ;;  %4146 = vmatprep.subr.mxu0 %v13905_v24  ;;  %4220 = vmatpush1.msra.mxu1 %v13907_v4  ;;  %v13932_v8 = vld [vmem:[#allocation12 + $0x48] sm:$0xff]  ;;  %v13934_v11 = vld [vmem:[#allocation12 + $0x230] sm:$0xff] }
 0x5b4   :  { %3609 = vst [vmem:[#allocation2 + $0xa8] sm:$0x1] %v3526_v13  ;;  %3773 = vst [vmem:[#allocation2 + $0x58] sm:$0xff] %v13894_v57  ;;  %v13917_v13 = vld [vmem:[#allocation12 + $0x58] sm:$0xff]  ;;  %4147 = vmatpush1.msra.mxu0 %v13911_v34  ;;  %4221 = vmatprep.subr.mxu1 %v13913_v40 }
 0x5b5   :  { %17222 = vst [vmem:[#allocation126_spill] sm:$0xff] %v13905_v24  ;;  %17223 = vst [vmem:[#allocation127_spill] sm:$0xff] %v13907_v4  ;;  %4148 = vmatprep.subr.mxu0 %v13917_v13  ;;  %4222 = vmatpush1.msra.mxu1 %v13919_v35  ;;  %v13938_v24 = vld [vmem:[#allocation12 + $0x40] sm:$0xff]  ;;  %v13940_v4 = vld [vmem:[#allocation12 + $0x228] sm:$0xff] }
 0x5b6   :  { %17224 = vst [vmem:[#allocation128_spill] sm:$0xff] %v13911_v34  ;;  %17225 = vst [vmem:[#allocation129_spill] sm:$0xff] %v13913_v40  ;;  %4149 = vmatpush1.msra.mxu0 %v13925_v51  ;;  %4223 = vmatprep.subr.mxu1 %v13927_v38  ;;  %v13944_v59 = vld [vmem:[#allocation12 + $0x38] sm:$0xff]  ;;  %v13946_v34 = vld [vmem:[#allocation12 + $0x220] sm:$0xff] }
 0x5b7   :  { %17226 = vst [vmem:[#allocation130_spill] sm:$0xff] %v13917_v13  ;;  %17227 = vst [vmem:[#allocation131_spill] sm:$0xff] %v13919_v35  ;;  %4150 = vmatprep.subr.mxu0 %v13932_v8  ;;  %4224 = vmatpush1.msra.mxu1 %v13934_v11  ;;  %v13950_v40 = vld [vmem:[#allocation12 + $0x30] sm:$0xff]  ;;  %v13952_v13 = vld [vmem:[#allocation12 + $0x218] sm:$0xff] }
 0x5b8   :  { %17228 = vst [vmem:[#allocation132_spill] sm:$0xff] %v13925_v51  ;;  %17229 = vst [vmem:[#allocation133_spill] sm:$0xff] %v13927_v38  ;;  %4151 = vmatpush1.msra.mxu0 %v13938_v24  ;;  %4225 = vmatprep.subr.mxu1 %v13940_v4  ;;  %v13956_v35 = vld [vmem:[#allocation12 + $0x28] sm:$0xff]  ;;  %v13958_v51 = vld [vmem:[#allocation12 + $0x210] sm:$0xff] }
 0x5b9   :  { %3774 = vst [vmem:[#allocation2 + $0x80] sm:$0xff] %v13921_v43  ;;  %17230 = vst [vmem:[#allocation134_spill] sm:$0xff] %v13932_v8  ;;  %4152 = vmatprep.subr.mxu0 %v13944_v59  ;;  %4226 = vmatpush1.msra.mxu1 %v13946_v34  ;;  %v13962_v38 = vld [vmem:[#allocation12 + $0x20] sm:$0xff]  ;;  %v13964_v8 = vld [vmem:[#allocation12 + $0x208] sm:$0xff] }
 0x5ba   :  { %17231 = vst [vmem:[#allocation135_spill] sm:$0xff] %v13934_v11  ;;  %17232 = vst [vmem:[#allocation136_spill] sm:$0xff] %v13938_v24  ;;  %4153 = vmatpush1.msra.mxu0 %v13950_v40  ;;  %4227 = vmatprep.subr.mxu1 %v13952_v13  ;;  %v13968_v11 = vld [vmem:[#allocation12 + $0x18] sm:$0xff]  ;;  %v13970_v24 = vld [vmem:[#allocation12 + $0x200] sm:$0xff] }
 0x5bb   :  { %17233 = vst [vmem:[#allocation137_spill] sm:$0xff] %v13940_v4  ;;  %17234 = vst [vmem:[#allocation138_spill] sm:$0xff] %v13946_v34  ;;  %4154 = vmatprep.subr.mxu0 %v13956_v35  ;;  %4228 = vmatpush1.msra.mxu1 %v13958_v51  ;;  %v13974_v4 = vld [vmem:[#allocation12 + $0x10] sm:$0xff]  ;;  %v13978_v34 = vld [vmem:[#allocation12 + $0x8] sm:$0xff] }
 0x5bc   :  { %17235 = vst [vmem:[#allocation139_spill] sm:$0xff] %v13952_v13  ;;  %17236 = vst [vmem:[#allocation140_spill] sm:$0xff] %v13956_v35  ;;  %4155 = vmatpush1.msra.mxu0 %v13962_v38  ;;  %4229 = vmatprep.subr.mxu1 %v13964_v8  ;;  %v13982_v13 = vld [vmem:[#allocation12] sm:$0xff]  ;;  %v13986_v35 = vld [vmem:[#allocation12 + $0x1f8] sm:$0xff] }
 0x5bd   :  { %17237 = vst [vmem:[#allocation141_spill] sm:$0xff] %v13962_v38  ;;  %17238 = vst [vmem:[#allocation142_spill] sm:$0xff] %v13968_v11  ;;  %4156 = vmatprep.subr.mxu0 %v13968_v11  ;;  %4230 = vmatpush1.msra.mxu1 %v13970_v24  ;;  %v13990_v38 = vld [vmem:[#allocation12 + $0x1f0] sm:$0xff]  ;;  %v13994_v11 = vld [vmem:[#allocation12 + $0x1e8] sm:$0xff] }
 0x5be   :  { %17239 = vst [vmem:[#allocation143_spill] sm:$0xff] %v13974_v4  ;;  %4157 = vmatpush1.msra.mxu0 %v13974_v4  ;;  %4264 = vmatmul.mubr.f32.vlgmr.msra.gmra.mxu1 %v13775_v29  ;;  %v13998_v4 = vld [vmem:[#allocation12 + $0x1e0] sm:$0xff]  ;;  %v14002_v29 = vld [vmem:[#allocation12 + $0x1d8] sm:$0xff] }
 0x5bf   :  { %4273 = vmatprep.subr.mxu1 %v13464_v10  ;;  %4158 = vmatprep.subr.mxu0 %v13978_v34  ;;  %v14006_v10 = vld [vmem:[#allocation12 + $0x1d0] sm:$0xff] }
 0x5c0   :  { %4274 = vmatpush1.msra.mxu1 %v13467_v22  ;;  %4159 = vmatpush1.msra.mxu0 %v13982_v13  ;;  %v14010_v22 = vld [vmem:[#allocation12 + $0x1c8] sm:$0xff] }
 0x5c1   :  { %4275 = vmatprep.subr.mxu1 %v13474_v1  ;;  %4160 = vmatprep.subr.mxu0 %v13986_v35  ;;  %v14014_v1 = vld [vmem:[#allocation12 + $0x1c0] sm:$0xff] }
 0x5c2   :  { %4276 = vmatpush1.msra.mxu1 %v13481_v27  ;;  %4161 = vmatpush2.msra.mxu0 %v13990_v38  ;;  %v14018_v27 = vld [vmem:[#allocation12 + $0x1b8] sm:$0xff] }
 0x5c3   :  { %4277 = vmatprep.subr.mxu1 %v13484_v15  ;;  %4162 = vmatprep.subr.mxu0 %v13994_v11  ;;  %v14022_v15 = vld [vmem:[#allocation12 + $0x1b0] sm:$0xff] }
 0x5c4   :  { %4278 = vmatpush1.msra.mxu1 %v13490_v63  ;;  %4163 = vmatpush2.msra.mxu0 %v13998_v4  ;;  %v14026_v63 = vld [vmem:[#allocation12 + $0x1a8] sm:$0xff] }
 0x5c5   :  { %4279 = vmatprep.subr.mxu1 %v13498_v42  ;;  %4164 = vmatprep.subr.mxu0 %v14002_v29  ;;  %v14030_v42 = vld [vmem:[#allocation12 + $0x1a0] sm:$0xff] }
 0x5c6   :  { %4280 = vmatpush1.msra.mxu1 %v13503_v45  ;;  %4165 = vmatpush2.msra.mxu0 %v14006_v10  ;;  %v14034_v45 = vld [vmem:[#allocation12 + $0x198] sm:$0xff] }
 0x5c7   :  { %4281 = vmatprep.subr.mxu1 %v13509_v3  ;;  %4166 = vmatprep.subr.mxu0 %v14010_v22  ;;  %v14038_v3 = vld [vmem:[#allocation12 + $0x190] sm:$0xff] }
 0x5c8   :  { %4282 = vmatpush1.msra.mxu1 %v13515_v20  ;;  %4167 = vmatpush2.msra.mxu0 %v14014_v1  ;;  %v14042_v20 = vld [vmem:[#allocation12 + $0x188] sm:$0xff] }
 0x5c9   :  { %4283 = vmatprep.subr.mxu1 %v13521_v53  ;;  %4168 = vmatprep.subr.mxu0 %v14018_v27  ;;  %v14046_v53 = vld [vmem:[#allocation12 + $0x180] sm:$0xff] }
 0x5ca   :  { %4284 = vmatpush1.msra.mxu1 %v13527_v52  ;;  %4169 = vmatpush2.msra.mxu0 %v14022_v15  ;;  %v14050_v52 = vld [vmem:[#allocation12 + $0x178] sm:$0xff] }
 0x5cb   :  { %4285 = vmatprep.subr.mxu1 %v13533_v48  ;;  %4170 = vmatprep.subr.mxu0 %v14026_v63  ;;  %v14054_v48 = vld [vmem:[#allocation12 + $0x170] sm:$0xff] }
 0x5cc   :  { %4286 = vmatpush1.msra.mxu1 %v13539_v44  ;;  %4171 = vmatpush2.msra.mxu0 %v14030_v42  ;;  %v14058_v44 = vld [vmem:[#allocation12 + $0x168] sm:$0xff] }
 0x5cd   :  { %4287 = vmatprep.subr.mxu1 %v13545_v26  ;;  %4172 = vmatprep.subr.mxu0 %v14034_v45  ;;  %v14062_v26 = vld [vmem:[#allocation12 + $0x160] sm:$0xff] }
 0x5ce   :  { %4288 = vmatpush1.msra.mxu1 %v13551_v25  ;;  %4173 = vmatpush2.msra.mxu0 %v14038_v3  ;;  %v14066_v25 = vld [vmem:[#allocation12 + $0x158] sm:$0xff] }
 0x5cf   :  { %4289 = vmatprep.subr.mxu1 %v13557_v55  ;;  %4174 = vmatprep.subr.mxu0 %v14042_v20  ;;  %v14070_v55 = vld [vmem:[#allocation12 + $0x150] sm:$0xff] }
 0x5d0   :  { %4290 = vmatpush1.msra.mxu1 %v13563_v12  ;;  %4175 = vmatpush2.msra.mxu0 %v14046_v53  ;;  %v14074_v12 = vld [vmem:[#allocation12 + $0x148] sm:$0xff] }
 0x5d1   :  { %4291 = vmatprep.subr.mxu1 %v13567_v30  ;;  %4176 = vmatprep.subr.mxu0 %v14050_v52  ;;  %v14078_v30 = vld [vmem:[#allocation12 + $0x140] sm:$0xff] }
 0x5d2   :  { %4292 = vmatpush1.msra.mxu1 %v13571_v19  ;;  %4177 = vmatpush2.msra.mxu0 %v14054_v48  ;;  %v14082_v19 = vld [vmem:[#allocation12 + $0x138] sm:$0xff] }
 0x5d3   :  { %4293 = vmatprep.subr.mxu1 %v13575_v32  ;;  %4178 = vmatprep.subr.mxu0 %v14058_v44  ;;  %v14086_v32 = vld [vmem:[#allocation12 + $0x130] sm:$0xff] }
 0x5d4   :  { %4294 = vmatpush1.msra.mxu1 %v13579_v5  ;;  %4179 = vmatpush2.msra.mxu0 %v14062_v26  ;;  %v14090_v5 = vld [vmem:[#allocation12 + $0x128] sm:$0xff] }
 0x5d5   :  { %4295 = vmatprep.subr.mxu1 %v13584_v14  ;;  %4180 = vmatprep.subr.mxu0 %v14066_v25  ;;  %v14094_v14 = vld [vmem:[#allocation12 + $0x120] sm:$0xff] }
 0x5d6   :  { %4296 = vmatpush1.msra.mxu1 %v13587_v39  ;;  %4181 = vmatpush2.msra.mxu0 %v14070_v55  ;;  %v14098_v39 = vld [vmem:[#allocation12 + $0x118] sm:$0xff] }
 0x5d7   :  { %4297 = vmatprep.subr.mxu1 %v13590_v33  ;;  %4182 = vmatprep.subr.mxu0 %v14074_v12  ;;  %v14102_v33 = vld [vmem:[#allocation12 + $0x110] sm:$0xff] }
 0x5d8   :  { %4298 = vmatpush1.msra.mxu1 %v13593_v0  ;;  %4183 = vmatpush2.msra.mxu0 %v14078_v30  ;;  %v14106_v0 = vld [vmem:[#allocation12 + $0x108] sm:$0xff] }
 0x5d9   :  { %4299 = vmatprep.subr.mxu1 %v13596_v36  ;;  %4184 = vmatprep.subr.mxu0 %v14082_v19  ;;  %v14110_v36 = vld [vmem:[#allocation12 + $0x100] sm:$0xff] }
 0x5da   :  { %4300 = vmatpush1.msra.mxu1 %v13599_v16  ;;  %4185 = vmatpush2.msra.mxu0 %v14086_v32  ;;  %v3691_v16 = vpop.f32.mrf.mxu1 }
 0x5db   :  { %4301 = vmatprep.subr.mxu1 %v13602_v62  ;;  %4186 = vmatprep.subr.mxu0 %v14090_v5  ;;  %v17260_v16 = vld [vmem:[#allocation54_spill] sm:$0xff] }
 0x5dc   :  { %4302 = vmatpush1.msra.mxu1 %v13605_v37  ;;  %4187 = vmatpush2.msra.mxu0 %v14094_v14  ;;  %v3693_v62 = vpop.f32.mrf.mxu1  ;;  %v17245_v37 = vld [vmem:[#allocation53_spill] sm:$0xff] }
 0x5dd   :  { %4303 = vmatprep.subr.mxu1 %v13608_v21  ;;  %4188 = vmatprep.subr.mxu0 %v14098_v39  ;;  %v17246_v21 = vld [vmem:[#allocation35_spill] sm:$0xff]  ;;  %v17261_v62 = vld [vmem:[#allocation69_spill] sm:$0xff] }
 0x5de   :  { %4304 = vmatpush1.msra.mxu1 %v13611_v2  ;;  %4189 = vmatpush2.msra.mxu0 %v14102_v33  ;;  %v17248_v2 = vld [vmem:[#allocation40_spill] sm:$0xff] }
 0x5df   :  { %4305 = vmatprep.subr.mxu1 %v13614_v31  ;;  %4190 = vmatprep.subr.mxu0 %v14106_v0  ;;  %v17250_v31 = vld [vmem:[#allocation45_spill] sm:$0xff] }
 0x5e0   :  { %4306 = vmatpush2.msra.mxu1 %v13617_v50  ;;  %4191 = vmatpush2.msra.mxu0 %v14110_v36  ;;  %v17251_v50 = vld [vmem:[#allocation57_spill] sm:$0xff] }
 0x5e1   :  { %4307 = vmatprep.subr.mxu1 %v13620_v41  ;;  %4193 = vmatmul.mubr.f32.vlgmr.msra.gmra.mxu0 %v13772_v6  ;;  %v17243_v6 = vld [vmem:[#allocation51_spill] sm:$0xff]  ;;  %v17252_v41 = vld [vmem:[#allocation42_spill] sm:$0xff] }
 0x5e2   :  { %4308 = vmatpush2.msra.mxu1 %v13623_v61  ;;  %4344 = vmatprep.subr.mxu0 %v13469_v46  ;;  %v17240_v46 = vld [vmem:[#allocation46_spill] sm:$0xff]  ;;  %v17253_v61 = vld [vmem:[#allocation59_spill] sm:$0xff] }
 0x5e3   :  { %4309 = vmatprep.subr.mxu1 %v13626_v17  ;;  %4345 = vmatpush1.msra.mxu0 %v13487_v7  ;;  %v17241_v7 = vld [vmem:[#allocation49_spill] sm:$0xff]  ;;  %v17254_v17 = vld [vmem:[#allocation47_spill] sm:$0xff] }
 0x5e4   :  { %4310 = vmatpush2.msra.mxu1 %v13629_v54  ;;  %4346 = vmatprep.subr.mxu0 %v13492_v47  ;;  %v17242_v47 = vld [vmem:[#allocation36_spill] sm:$0xff]  ;;  %v17255_v54 = vld [vmem:[#allocation62_spill] sm:$0xff] }
 0x5e5   :  { %4311 = vmatprep.subr.mxu1 %v13632_v49  ;;  %4347 = vmatpush1.msra.mxu0 %v13500_v18  ;;  %v17244_v18 = vld [vmem:[#allocation43_spill] sm:$0xff]  ;;  %v17256_v49 = vld [vmem:[#allocation50_spill] sm:$0xff] }
 0x5e6   :  { %4312 = vmatpush2.msra.mxu1 %v13635_v60  ;;  %4348 = vmatprep.subr.mxu0 %v13506_v28  ;;  %v17247_v28 = vld [vmem:[#allocation55_spill] sm:$0xff]  ;;  %v17257_v60 = vld [vmem:[#allocation64_spill] sm:$0xff] }
 0x5e7   :  { %4313 = vmatprep.subr.mxu1 %v13638_v56  ;;  %4349 = vmatpush1.msra.mxu0 %v13512_v58  ;;  %v17249_v58 = vld [vmem:[#allocation56_spill] sm:$0xff] }
 0x5e8   :  { %4314 = vmatpush2.msra.mxu1 %v13641_v9  ;;  %4350 = vmatprep.subr.mxu0 %v17240_v46  ;;  %v17258_v56 = vld [vmem:[#allocation52_spill] sm:$0xff]  ;;  %v17259_v9 = vld [vmem:[#allocation67_spill] sm:$0xff]  ;;  %v17262_v46 = vld [vmem:[#allocation34_spill] sm:$0xff] }
 0x5e9   :  { %4315 = vmatprep.subr.mxu1 %v17241_v7  ;;  %4351 = vmatpush1.msra.mxu0 %v17242_v47  ;;  %v17263_v7 = vld [vmem:[#allocation71_spill] sm:$0xff]  ;;  %v17264_v47 = vld [vmem:[#allocation58_spill] sm:$0xff] }
 0x5ea   :  { %4316 = vmatpush2.msra.mxu1 %v17243_v6  ;;  %4352 = vmatprep.subr.mxu0 %v17244_v18  ;;  %v17265_v6 = vld [vmem:[#allocation73_spill] sm:$0xff] }
 0x5eb   :  { %4317 = vmatprep.subr.mxu1 %v17245_v37  ;;  %4353 = vmatpush1.msra.mxu0 %v17246_v21  ;;  %v17266_v18 = vld [vmem:[#allocation61_spill] sm:$0xff]  ;;  %v17267_v37 = vld [vmem:[#allocation60_spill] sm:$0xff]  ;;  %v17268_v21 = vld [vmem:[#allocation63_spill] sm:$0xff] }
 0x5ec   :  { %4318 = vmatpush2.msra.mxu1 %v17247_v28  ;;  %4354 = vmatprep.subr.mxu0 %v17248_v2  ;;  %v17269_v28 = vld [vmem:[#allocation38_spill] sm:$0xff]  ;;  %v17270_v2 = vld [vmem:[#allocation65_spill] sm:$0xff] }
 0x5ed   :  { %4319 = vmatprep.subr.mxu1 %v17249_v58  ;;  %4355 = vmatpush1.msra.mxu0 %v17250_v31  ;;  %v17271_v58 = vld [vmem:[#allocation44_spill] sm:$0xff] }
 0x5ee   :  { %4320 = vmatpush2.msra.mxu1 %v17251_v50  ;;  %4356 = vmatprep.subr.mxu0 %v17252_v41  ;;  %v17272_v31 = vld [vmem:[#allocation68_spill] sm:$0xff]  ;;  %v17274_v41 = vld [vmem:[#allocation70_spill] sm:$0xff] }
 0x5ef   :  { %4321 = vmatprep.subr.mxu1 %v17253_v61  ;;  %4357 = vmatpush1.msra.mxu0 %v17254_v17  ;;  %v17273_v50 = vld [vmem:[#allocation76_spill] sm:$0xff]  ;;  %v17275_v61 = vld [vmem:[#allocation78_spill] sm:$0xff] }
 0x5f0   :  { %4322 = vmatpush2.msra.mxu1 %v17255_v54  ;;  %4358 = vmatprep.subr.mxu0 %v17256_v49  ;;  %v17276_v17 = vld [vmem:[#allocation72_spill] sm:$0xff]  ;;  %v17278_v49 = vld [vmem:[#allocation66_spill] sm:$0xff] }
 0x5f1   :  { %4323 = vmatprep.subr.mxu1 %v17257_v60  ;;  %4359 = vmatpush1.msra.mxu0 %v17258_v56  ;;  %v17277_v54 = vld [vmem:[#allocation80_spill] sm:$0xff]  ;;  %v17279_v60 = vld [vmem:[#allocation81_spill] sm:$0xff] }
 0x5f2   :  { %4324 = vmatpush2.msra.mxu1 %v17259_v9  ;;  %4360 = vmatprep.subr.mxu0 %v17260_v16  ;;  %v17280_v56 = vld [vmem:[#allocation48_spill] sm:$0xff]  ;;  %v17281_v9 = vld [vmem:[#allocation82_spill] sm:$0xff]  ;;  %v17282_v16 = vld [vmem:[#allocation39_spill] sm:$0xff] }
 0x5f3   :  { %4325 = vmatprep.subr.mxu1 %v17261_v62  ;;  %4361 = vmatpush1.msra.mxu0 %v17262_v46  ;;  %v17283_v62 = vld [vmem:[#allocation83_spill] sm:$0xff]  ;;  %v17284_v46 = vld [vmem:[#allocation41_spill] sm:$0xff] }
 0x5f4   :  { %4326 = vmatpush2.msra.mxu1 %v17263_v7  ;;  %4362 = vmatprep.subr.mxu0 %v17264_v47  ;;  %v17285_v7 = vld [vmem:[#allocation74_spill] sm:$0xff]  ;;  %v17286_v47 = vld [vmem:[#allocation84_spill] sm:$0xff] }
 0x5f5   :  { %4327 = vmatprep.subr.mxu1 %v17265_v6  ;;  %4363 = vmatpush1.msra.mxu0 %v17266_v18  ;;  %v17287_v6 = vld [vmem:[#allocation75_spill] sm:$0xff]  ;;  %v17288_v18 = vld [vmem:[#allocation86_spill] sm:$0xff] }
 0x5f6   :  { %4328 = vmatpush2.msra.mxu1 %v17267_v37  ;;  %4364 = vmatprep.subr.mxu0 %v17268_v21  ;;  %v17289_v37 = vld [vmem:[#allocation77_spill] sm:$0xff]  ;;  %v17290_v21 = vmov 0.0  }
 0x5f7   :  { %4329 = vmatprep.subr.mxu1 %v17269_v28  ;;  %4365 = vmatpush1.msra.mxu0 %v17270_v2  ;;  %v17291_v28 = vld [vmem:[#allocation87_spill] sm:$0xff] }
 0x5f8   :  { %4330 = vmatpush2.msra.mxu1 %v17271_v58  ;;  %4366 = vmatprep.subr.mxu0 %v17272_v31  ;;  %v17292_v2 = vld [vmem:[#allocation79_spill] sm:$0xff]  ;;  %v17294_v58 = vld [vmem:[#allocation90_spill] sm:$0xff] }
 0x5f9   :  { %4331 = vmatprep.subr.mxu1 %v17273_v50  ;;  %4367 = vmatpush1.msra.mxu0 %v17274_v41  ;;  %v17295_v31 = vld [vmem:[#allocation111_spill] sm:$0xff]  ;;  %v17298_v41 = vld [vmem:[#allocation92_spill] sm:$0xff] }
 0x5fa   :  { %4332 = vmatpush2.msra.mxu1 %v17275_v61  ;;  %4368 = vmatprep.subr.mxu0 %v17276_v17  ;;  %v17297_v50 = vld [vmem:[#allocation91_spill] sm:$0xff]  ;;  %v17299_v61 = vld [vmem:[#allocation93_spill] sm:$0xff]  ;;  %v17300_v17 = vld [vmem:[#allocation94_spill] sm:$0xff] }
 0x5fb   :  { %4333 = vmatprep.subr.mxu1 %v17277_v54  ;;  %4369 = vmatpush1.msra.mxu0 %v17278_v49  ;;  %v17301_v54 = vld [vmem:[#allocation95_spill] sm:$0xff]  ;;  %v17303_v49 = vld [vmem:[#allocation97_spill] sm:$0xff] }
 0x5fc   :  { %4334 = vmatpush2.msra.mxu1 %v17279_v60  ;;  %4370 = vmatprep.subr.mxu0 %v17280_v56  ;;  %v17304_v60 = vld [vmem:[#allocation98_spill] sm:$0xff]  ;;  %v17305_v56 = vld [vmem:[#allocation99_spill] sm:$0xff] }
 0x5fd   :  { %4335 = vmatprep.subr.mxu1 %v17281_v9  ;;  %4371 = vmatpush1.msra.mxu0 %v17282_v16  ;;  %v17306_v9 = vld [vmem:[#allocation100_spill] sm:$0xff]  ;;  %v17307_v16 = vld [vmem:[#allocation101_spill] sm:$0xff] }
 0x5fe   :  { %4336 = vmatpush2.msra.mxu1 %v17283_v62  ;;  %4372 = vmatprep.subr.mxu0 %v17284_v46  ;;  %v17308_v62 = vld [vmem:[#allocation102_spill] sm:$0xff]  ;;  %v17309_v46 = vld [vmem:[#allocation103_spill] sm:$0xff] }
 0x5ff   :  { %4337 = vmatprep.mubr.f32.mxu1 %v13894_v57  ;;  %4373 = vmatpush1.msra.mxu0 %v17285_v7  ;;  %v17293_v57 = vld [vmem:[#allocation88_spill] sm:$0xff] }
 0x600   :  { %4486 = vmatprep.subr.mxu1 %v17286_v47  ;;  %4338 = vmatmul.mubr.f32.vlgmr.msra.gmra.mxu1 %v13879_v23  ;;  %v17296_v23 = vld [vmem:[#allocation89_spill] sm:$0xff]  ;;  %v17310_v7 = vld [vmem:[#allocation104_spill] sm:$0xff]  ;;  %v17311_v47 = vld [vmem:[#allocation107_spill] sm:$0xff] }
 0x601   :  { %4374 = vmatprep.subr.mxu0 %v17287_v6  ;;  %4487 = vmatpush1.msra.mxu1 %v17288_v18  ;;  %v17312_v6 = vld [vmem:[#allocation108_spill] sm:$0xff]  ;;  %v17313_v18 = vld [vmem:[#allocation109_spill] sm:$0xff] }
 0x602   :  { %4375 = vmatpush1.msra.mxu0 %v17289_v37  ;;  %4408 = vmatprep.mubr.f32.mxu0 %v17290_v21  ;;  %v17314_v37 = vld [vmem:[#allocation110_spill] sm:$0xff] }
 0x603   :  { %4488 = vmatprep.subr.mxu1 %v17291_v28  ;;  %4409 = vmatmul.mubr.f32.vlgmr.msra.gmra.mxu0 %v13921_v43  ;;  %v17302_v43 = vld [vmem:[#allocation96_spill] sm:$0xff] }
 0x604   :  { %4415 = vmatprep.subr.mxu0 %v17292_v2  ;;  %4489 = vmatpush1.msra.mxu1 %v17293_v57  ;;  %v17315_v28 = vld [vmem:[#allocation112_spill] sm:$0xff]  ;;  %v17316_v2 = vld [vmem:[#allocation113_spill] sm:$0xff]  ;;  %v17317_v57 = vld [vmem:[#allocation114_spill] sm:$0xff] }
 0x605   :  { %4416 = vmatpush1.msra.mxu0 %v17294_v58  ;;  %4479 = vmatprep.mubr.f32.mxu0 %v17295_v31  ;;  %v17318_v58 = vld [vmem:[#allocation115_spill] sm:$0xff]  ;;  %v17319_v31 = vld [vmem:[#allocation116_spill] sm:$0xff] }
 0x606   :  { %4490 = vmatprep.subr.mxu1 %v17296_v23  ;;  %4417 = vmatprep.subr.mxu0 %v17297_v50  ;;  %v17320_v23 = vld [vmem:[#allocation117_spill] sm:$0xff]  ;;  %v17321_v50 = vld [vmem:[#allocation118_spill] sm:$0xff] }
 0x607   :  { %4491 = vmatpush1.msra.mxu1 %v17298_v41  ;;  %4418 = vmatpush1.msra.mxu0 %v17299_v61  ;;  %v17322_v41 = vld [vmem:[#allocation119_spill] sm:$0xff]  ;;  %v17323_v61 = vld [vmem:[#allocation120_spill] sm:$0xff] }
 0x608   :  { %4492 = vmatprep.subr.mxu1 %v17300_v17  ;;  %4419 = vmatprep.subr.mxu0 %v17301_v54  ;;  %v17324_v17 = vld [vmem:[#allocation121_spill] sm:$0xff]  ;;  %v17325_v54 = vld [vmem:[#allocation122_spill] sm:$0xff] }
 0x609   :  { %4493 = vmatpush1.msra.mxu1 %v17302_v43  ;;  %4420 = vmatpush1.msra.mxu0 %v17303_v49  ;;  %v17326_v43 = vld [vmem:[#allocation123_spill] sm:$0xff]  ;;  %v17327_v49 = vld [vmem:[#allocation124_spill] sm:$0xff] }
 0x60a   :  { %4494 = vmatprep.subr.mxu1 %v17304_v60  ;;  %4421 = vmatprep.subr.mxu0 %v17305_v56  ;;  %v17328_v60 = vld [vmem:[#allocation125_spill] sm:$0xff]  ;;  %v17329_v56 = vld [vmem:[#allocation126_spill] sm:$0xff] }
 0x60b   :  { %4495 = vmatpush1.msra.mxu1 %v17306_v9  ;;  %4422 = vmatpush1.msra.mxu0 %v17307_v16  ;;  %v17330_v9 = vld [vmem:[#allocation127_spill] sm:$0xff]  ;;  %v17331_v16 = vld [vmem:[#allocation128_spill] sm:$0xff] }
 0x60c   :  { %4496 = vmatprep.subr.mxu1 %v17308_v62  ;;  %4423 = vmatprep.subr.mxu0 %v17309_v46  ;;  %v17332_v62 = vld [vmem:[#allocation129_spill] sm:$0xff]  ;;  %v17333_v46 = vld [vmem:[#allocation130_spill] sm:$0xff] }
 0x60d   :  { %4497 = vmatpush1.msra.mxu1 %v17310_v7  ;;  %4424 = vmatpush1.msra.mxu0 %v17311_v47  ;;  %v17334_v7 = vld [vmem:[#allocation131_spill] sm:$0xff]  ;;  %v17335_v47 = vld [vmem:[#allocation132_spill] sm:$0xff] }
 0x60e   :  { %4498 = vmatprep.subr.mxu1 %v17312_v6  ;;  %4425 = vmatprep.subr.mxu0 %v17313_v18  ;;  %v17336_v6 = vld [vmem:[#allocation133_spill] sm:$0xff]  ;;  %v17337_v18 = vld [vmem:[#allocation134_spill] sm:$0xff] }
 0x60f   :  { %4499 = vmatpush1.msra.mxu1 %v17314_v37  ;;  %4426 = vmatpush1.msra.mxu0 %v17315_v28  ;;  %v17338_v37 = vld [vmem:[#allocation135_spill] sm:$0xff]  ;;  %v17339_v28 = vld [vmem:[#allocation136_spill] sm:$0xff] }
 0x610   :  { %4500 = vmatprep.subr.mxu1 %v17316_v2  ;;  %4427 = vmatprep.subr.mxu0 %v17317_v57  ;;  %v17340_v2 = vld [vmem:[#allocation137_spill] sm:$0xff]  ;;  %v17341_v57 = vld [vmem:[#allocation138_spill] sm:$0xff] }
 0x611   :  { %4501 = vmatpush1.msra.mxu1 %v17318_v58  ;;  %4428 = vmatpush1.msra.mxu0 %v17319_v31  ;;  %v17342_v58 = vld [vmem:[#allocation139_spill] sm:$0xff]  ;;  %v17343_v31 = vld [vmem:[#allocation140_spill] sm:$0xff] }
 0x612   :  { %4502 = vmatprep.subr.mxu1 %v17320_v23  ;;  %4429 = vmatprep.subr.mxu0 %v17321_v50  ;;  %v17344_v23 = vld [vmem:[#allocation141_spill] sm:$0xff]  ;;  %v17345_v50 = vld [vmem:[#allocation142_spill] sm:$0xff] }
 0x613   :  { %4503 = vmatpush1.msra.mxu1 %v17322_v41  ;;  %4430 = vmatpush1.msra.mxu0 %v17323_v61  ;;  %v14246_v41 = vld [vmem:[#allocation12 + $0x6f8] sm:$0xff]  ;;  %v17347_v61 = vld [vmem:[#allocation106_spill] sm:$0xff] }
 0x614   :  { %4504 = vmatprep.subr.mxu1 %v17324_v17  ;;  %4431 = vmatprep.subr.mxu0 %v17325_v54  ;;  %v17348_v17 = vld [vmem:[#allocation85_spill] sm:$0xff] }
 0x615   :  { %4505 = vmatpush1.msra.mxu1 %v17326_v43  ;;  %4432 = vmatpush1.msra.mxu0 %v17327_v49  ;;  %v14255_v54 = vld [vmem:[#allocation12 + $0x6e8] sm:$0xff]  ;;  %v14266_v43 = vld [vmem:[#allocation12 + $0x6d0] sm:$0xff] }
 0x616   :  { %4506 = vmatprep.subr.mxu1 %v17328_v60  ;;  %4433 = vmatprep.subr.mxu0 %v17329_v56  ;;  %v14270_v49 = vld [vmem:[#allocation12 + $0x6c8] sm:$0xff]  ;;  %v14392_v60 = vld [vmem:[#allocation12 + $0x7d8] sm:$0xff]  ;;  %v14398_v56 = vld [vmem:[#allocation12 + $0x7d0] sm:$0xff] }
 0x617   :  { %4507 = vmatpush1.msra.mxu1 %v17330_v9  ;;  %4434 = vmatpush1.msra.mxu0 %v17331_v16  ;;  %17359 = vst [vmem:[#allocation45_spill] sm:$0xff] %v14392_v60  ;;  %17360 = vst [vmem:[#allocation57_spill] sm:$0xff] %v14398_v56  ;;  %v14402_v9 = vld [vmem:[#allocation12 + $0x8e8] sm:$0xff]  ;;  %v14408_v16 = vld [vmem:[#allocation12 + $0x8e0] sm:$0xff] }
 0x618   :  { %4508 = vmatprep.subr.mxu1 %v17332_v62  ;;  %4435 = vmatprep.subr.mxu0 %v17333_v46  ;;  %v14414_v62 = vld [vmem:[#allocation12 + $0x8d8] sm:$0xff] }
 0x619   :  { %4509 = vmatpush1.msra.mxu1 %v17334_v7  ;;  %4436 = vmatpush1.msra.mxu0 %v17335_v47  ;;  %v14416_v46 = vld [vmem:[#allocation12 + $0x7b8] sm:$0xff]  ;;  %v14420_v7 = vld [vmem:[#allocation12 + $0x8d0] sm:$0xff] }
 0x61a   :  { %4510 = vmatprep.subr.mxu1 %v17336_v6  ;;  %4437 = vmatprep.subr.mxu0 %v17337_v18  ;;  %17364 = vst [vmem:[#allocation47_spill] sm:$0xff] %v14416_v46  ;;  %v14422_v47 = vld [vmem:[#allocation12 + $0x7b0] sm:$0xff]  ;;  %v14426_v6 = vld [vmem:[#allocation12 + $0x8c8] sm:$0xff] }
 0x61b   :  { %4511 = vmatpush1.msra.mxu1 %v17338_v37  ;;  %4438 = vmatpush1.msra.mxu0 %v17339_v28  ;;  %17365 = vst [vmem:[#allocation62_spill] sm:$0xff] %v14422_v47  ;;  %v14428_v18 = vld [vmem:[#allocation12 + $0x7a8] sm:$0xff]  ;;  %v14432_v37 = vld [vmem:[#allocation12 + $0x8c0] sm:$0xff] }
 0x61c   :  { %4512 = vmatprep.subr.mxu1 %v17340_v2  ;;  %4439 = vmatprep.subr.mxu0 %v13944_v59  ;;  %v14250_v59 = vld [vmem:[#allocation12 + $0x6f0] sm:$0xff]  ;;  %17366 = vst [vmem:[#allocation50_spill] sm:$0xff] %v14428_v18  ;;  %v14434_v28 = vld [vmem:[#allocation12 + $0x7a0] sm:$0xff]  ;;  %v14438_v2 = vld [vmem:[#allocation12 + $0x8b8] sm:$0xff] }
 0x61d   :  { %4513 = vmatpush1.msra.mxu1 %v17341_v57  ;;  %4440 = vmatpush1.msra.mxu0 %v13950_v40  ;;  %v17346_v40 = vld [vmem:[#allocation143_spill] sm:$0xff]  ;;  %17367 = vst [vmem:[#allocation64_spill] sm:$0xff] %v14434_v28 }
 0x61e   :  { %4514 = vmatprep.subr.mxu1 %v17342_v58  ;;  %4441 = vmatprep.subr.mxu0 %v17343_v31  ;;  %v14440_v57 = vld [vmem:[#allocation12 + $0x798] sm:$0xff]  ;;  %v14444_v58 = vld [vmem:[#allocation12 + $0x8b0] sm:$0xff] }
 0x61f   :  { %4515 = vmatpush1.msra.mxu1 %v13958_v51  ;;  %4442 = vmatpush1.msra.mxu0 %v17344_v23  ;;  %v4658_v51 = vrot.slane %v17348_v17, 1  ;;  %17368 = vst [vmem:[#allocation52_spill] sm:$0xff] %v14440_v57  ;;  %v14446_v31 = vld [vmem:[#allocation12 + $0x790] sm:$0xff]  ;;  %v14450_v23 = vld [vmem:[#allocation12 + $0x8a8] sm:$0xff]  ;;  %v14462_v17 = vld [vmem:[#allocation12 + $0x898] sm:$0xff] }
 0x620   :  { %4516 = vmatprep.subr.mxu1 %v13964_v8  ;;  %4443 = vmatprep.subr.mxu0 %v17345_v50  ;;  %v14259_v8 = vld [vmem:[#allocation12 + $0x6e0] sm:$0xff]  ;;  %17369 = vst [vmem:[#allocation67_spill] sm:$0xff] %v14446_v31  ;;  %v14452_v50 = vld [vmem:[#allocation12 + $0x788] sm:$0xff] }
 0x621   :  { %4517 = vmatpush1.msra.mxu1 %v13970_v24  ;;  %4550 = vmatprep.mubr.f32.mxu1 %v17290_v21  ;;  %v14262_v24 = vld [vmem:[#allocation12 + $0x6d8] sm:$0xff]  ;;  %17370 = vst [vmem:[#allocation54_spill] sm:$0xff] %v14452_v50 }
 0x622   :  { %4444 = vmatpush1.msra.mxu0 %v17346_v40  ;;  %4551 = vmatmul.mubr.f32.vlgmr.msra.gmra.mxu1 %v17347_v61  ;;  %v14456_v40 = vld [vmem:[#allocation12 + $0x8a0] sm:$0xff] }
 0x623   :  { %4663 = vmatprep.subr.mxu1 %v14246_v41  ;;  %4445 = vmatprep.subr.mxu0 %v13978_v34  ;;  %v14274_v34 = vld [vmem:[#allocation12 + $0x6c0] sm:$0xff] }
 0x624   :  { %4664 = vmatpush1.msra.mxu1 %v14250_v59  ;;  %4727 = vmatprep.mubr.f32.mxu1 %v4658_v51  ;;  %v14458_v61 = vld [vmem:[#allocation12 + $0x780] sm:$0xff]  ;;  %v14464_v51 = vld [vmem:[#allocation12 + $0x778] sm:$0xff] }
 0x625   :  { %4446 = vmatpush1.msra.mxu0 %v13982_v13  ;;  %4665 = vmatprep.subr.mxu1 %v14255_v54  ;;  %v14278_v13 = vld [vmem:[#allocation12 + $0x6b8] sm:$0xff]  ;;  %17371 = vst [vmem:[#allocation69_spill] sm:$0xff] %v14458_v61  ;;  %17372 = vst [vmem:[#allocation34_spill] sm:$0xff] %v14464_v51 }
 0x626   :  { %4447 = vmatprep.subr.mxu0 %v13986_v35  ;;  %4666 = vmatpush1.msra.mxu1 %v14259_v8  ;;  %v14282_v35 = vld [vmem:[#allocation12 + $0x6b0] sm:$0xff] }
 0x627   :  { %4448 = vmatpush2.msra.mxu0 %v13990_v38  ;;  %4667 = vmatprep.subr.mxu1 %v14262_v24  ;;  %v14286_v38 = vld [vmem:[#allocation12 + $0x6a8] sm:$0xff] }
 0x628   :  { %4449 = vmatprep.subr.mxu0 %v13994_v11  ;;  %4668 = vmatpush1.msra.mxu1 %v14266_v43  ;;  %v14290_v11 = vld [vmem:[#allocation12 + $0x6a0] sm:$0xff] }
 0x629   :  { %4450 = vmatpush2.msra.mxu0 %v13998_v4  ;;  %4669 = vmatprep.subr.mxu1 %v14270_v49  ;;  %v14294_v4 = vld [vmem:[#allocation12 + $0x698] sm:$0xff] }
 0x62a   :  { %4451 = vmatprep.subr.mxu0 %v14002_v29  ;;  %4670 = vmatpush1.msra.mxu1 %v14274_v34  ;;  %v14298_v29 = vld [vmem:[#allocation12 + $0x690] sm:$0xff] }
 0x62b   :  { %4452 = vmatpush2.msra.mxu0 %v14006_v10  ;;  %4671 = vmatprep.subr.mxu1 %v14278_v13  ;;  %v14302_v10 = vld [vmem:[#allocation12 + $0x688] sm:$0xff] }
 0x62c   :  { %4453 = vmatprep.subr.mxu0 %v14010_v22  ;;  %4672 = vmatpush1.msra.mxu1 %v14282_v35  ;;  %v14306_v22 = vld [vmem:[#allocation12 + $0x680] sm:$0xff] }
 0x62d   :  { %4454 = vmatpush2.msra.mxu0 %v14014_v1  ;;  %4673 = vmatprep.subr.mxu1 %v14286_v38  ;;  %v14310_v1 = vld [vmem:[#allocation12 + $0x678] sm:$0xff] }
 0x62e   :  { %4455 = vmatprep.subr.mxu0 %v14018_v27  ;;  %4674 = vmatpush1.msra.mxu1 %v14290_v11  ;;  %v14314_v27 = vld [vmem:[#allocation12 + $0x670] sm:$0xff] }
 0x62f   :  { %4456 = vmatpush2.msra.mxu0 %v14022_v15  ;;  %4675 = vmatprep.subr.mxu1 %v14294_v4  ;;  %v14318_v15 = vld [vmem:[#allocation12 + $0x668] sm:$0xff] }
 0x630   :  { %4457 = vmatprep.subr.mxu0 %v14026_v63  ;;  %4676 = vmatpush1.msra.mxu1 %v14298_v29  ;;  %v14322_v63 = vld [vmem:[#allocation12 + $0x660] sm:$0xff] }
 0x631   :  { %4458 = vmatpush2.msra.mxu0 %v14030_v42  ;;  %4677 = vmatprep.subr.mxu1 %v14302_v10  ;;  %v14326_v42 = vld [vmem:[#allocation12 + $0x658] sm:$0xff] }
 0x632   :  { %4459 = vmatprep.subr.mxu0 %v14034_v45  ;;  %4678 = vmatpush1.msra.mxu1 %v14306_v22  ;;  %v14330_v45 = vld [vmem:[#allocation12 + $0x650] sm:$0xff] }
 0x633   :  { %4460 = vmatpush2.msra.mxu0 %v14038_v3  ;;  %4679 = vmatprep.subr.mxu1 %v14310_v1  ;;  %v14334_v3 = vld [vmem:[#allocation12 + $0x648] sm:$0xff] }
 0x634   :  { %4461 = vmatprep.subr.mxu0 %v14042_v20  ;;  %4680 = vmatpush1.msra.mxu1 %v14314_v27  ;;  %v14338_v20 = vld [vmem:[#allocation12 + $0x640] sm:$0xff] }
 0x635   :  { %4462 = vmatpush2.msra.mxu0 %v14046_v53  ;;  %4681 = vmatprep.subr.mxu1 %v14318_v15  ;;  %v14342_v53 = vld [vmem:[#allocation12 + $0x638] sm:$0xff] }
 0x636   :  { %4463 = vmatprep.subr.mxu0 %v14050_v52  ;;  %4682 = vmatpush1.msra.mxu1 %v14322_v63  ;;  %v14346_v52 = vld [vmem:[#allocation12 + $0x630] sm:$0xff] }
 0x637   :  { %4464 = vmatpush2.msra.mxu0 %v14054_v48  ;;  %4683 = vmatprep.subr.mxu1 %v14326_v42  ;;  %v14350_v48 = vld [vmem:[#allocation12 + $0x628] sm:$0xff] }
 0x638   :  { %4465 = vmatprep.subr.mxu0 %v14058_v44  ;;  %4684 = vmatpush1.msra.mxu1 %v14330_v45  ;;  %17349 = vst [vmem:[#allocation46_spill] sm:$0xff] %v14350_v48  ;;  %v14354_v44 = vld [vmem:[#allocation12 + $0x620] sm:$0xff] }
 0x639   :  { %4466 = vmatpush2.msra.mxu0 %v14062_v26  ;;  %4685 = vmatprep.subr.mxu1 %v14334_v3  ;;  %17350 = vst [vmem:[#allocation49_spill] sm:$0xff] %v14354_v44  ;;  %v14358_v26 = vld [vmem:[#allocation12 + $0x618] sm:$0xff] }
 0x63a   :  { %4467 = vmatprep.subr.mxu0 %v14066_v25  ;;  %4686 = vmatpush1.msra.mxu1 %v14338_v20  ;;  %17351 = vst [vmem:[#allocation36_spill] sm:$0xff] %v14358_v26  ;;  %v14362_v25 = vld [vmem:[#allocation12 + $0x610] sm:$0xff] }
 0x63b   :  { %4468 = vmatpush2.msra.mxu0 %v14070_v55  ;;  %4687 = vmatprep.subr.mxu1 %v14342_v53  ;;  %17352 = vst [vmem:[#allocation51_spill] sm:$0xff] %v14362_v25  ;;  %v14366_v55 = vld [vmem:[#allocation12 + $0x608] sm:$0xff] }
 0x63c   :  { %4469 = vmatprep.subr.mxu0 %v14074_v12  ;;  %4688 = vmatpush1.msra.mxu1 %v14346_v52  ;;  %17353 = vst [vmem:[#allocation43_spill] sm:$0xff] %v14366_v55  ;;  %v14370_v12 = vld [vmem:[#allocation12 + $0x600] sm:$0xff] }
 0x63d   :  { %4470 = vmatpush2.msra.mxu0 %v14078_v30  ;;  %4689 = vmatprep.subr.mxu1 %v14350_v48  ;;  %17354 = vst [vmem:[#allocation53_spill] sm:$0xff] %v14370_v12  ;;  %v14374_v30 = vld [vmem:[#allocation12 + $0x7f8] sm:$0xff] }
 0x63e   :  { %4471 = vmatprep.subr.mxu0 %v14082_v19  ;;  %4690 = vmatpush1.msra.mxu1 %v14354_v44  ;;  %17355 = vst [vmem:[#allocation35_spill] sm:$0xff] %v14374_v30  ;;  %v14378_v19 = vld [vmem:[#allocation12 + $0x7f0] sm:$0xff] }
 0x63f   :  { %4472 = vmatpush2.msra.mxu0 %v14086_v32  ;;  %4691 = vmatprep.subr.mxu1 %v14358_v26  ;;  %17356 = vst [vmem:[#allocation55_spill] sm:$0xff] %v14378_v19  ;;  %v14382_v32 = vld [vmem:[#allocation12 + $0x7e8] sm:$0xff]  ;;  %v10231_v26 = vld [vmem:[#allocation2 + $0xb0] sm:$0xff]  ;;  %v14562_v44 = vld [vmem:[#allocation12 + $0x810] sm:$0xff] }
 0x640   :  { %4473 = vmatprep.subr.mxu0 %v14090_v5  ;;  %4692 = vmatpush1.msra.mxu1 %v14362_v25  ;;  %17357 = vst [vmem:[#allocation40_spill] sm:$0xff] %v14382_v32  ;;  %v14386_v5 = vld [vmem:[#allocation12 + $0x7e0] sm:$0xff] }
 0x641   :  { %4474 = vmatpush2.msra.mxu0 %v14094_v14  ;;  %4693 = vmatprep.subr.mxu1 %v14366_v55  ;;  %17358 = vst [vmem:[#allocation56_spill] sm:$0xff] %v14386_v5  ;;  %v14390_v14 = vld [vmem:[#allocation12 + $0x8f8] sm:$0xff]  ;;  %v14548_v55 = vld [vmem:[#allocation12 + $0x708] sm:$0xff]  ;;  %v14554_v25 = vld [vmem:[#allocation12 + $0x700] sm:$0xff] }
 0x642   :  { %4475 = vmatprep.subr.mxu0 %v14098_v39  ;;  %4694 = vmatpush1.msra.mxu1 %v14370_v12  ;;  %v14396_v39 = vld [vmem:[#allocation12 + $0x8f0] sm:$0xff]  ;;  %17386 = vst [vmem:[#allocation72_spill] sm:$0xff] %v14554_v25 }
 0x643   :  { %4476 = vmatpush2.msra.mxu0 %v14102_v33  ;;  %4695 = vmatprep.subr.mxu1 %v14374_v30  ;;  %v17361_v33 = vld [vmem:[#allocation105_spill] sm:$0xff]  ;;  %v14536_v30 = vld [vmem:[#allocation12 + $0x718] sm:$0xff]  ;;  %v14542_v12 = vld [vmem:[#allocation12 + $0x710] sm:$0xff] }
 0x644   :  { %4477 = vmatprep.subr.mxu0 %v14106_v0  ;;  %4696 = vmatpush2.msra.mxu1 %v14378_v19  ;;  %v14404_v0 = vld [vmem:[#allocation12 + $0x7c8] sm:$0xff]  ;;  %v14530_v19 = vld [vmem:[#allocation12 + $0x720] sm:$0xff]  ;;  %17384 = vst [vmem:[#allocation70_spill] sm:$0xff] %v14536_v30  ;;  %17385 = vst [vmem:[#allocation78_spill] sm:$0xff] %v14542_v12 }
 0x645   :  { %4478 = vmatpush2.msra.mxu0 %v14110_v36  ;;  %4697 = vmatprep.subr.mxu1 %v14382_v32  ;;  %17362 = vst [vmem:[#allocation42_spill] sm:$0xff] %v14404_v0  ;;  %v14410_v36 = vld [vmem:[#allocation12 + $0x7c0] sm:$0xff]  ;;  %v14524_v32 = vld [vmem:[#allocation12 + $0x728] sm:$0xff]  ;;  %17383 = vst [vmem:[#allocation76_spill] sm:$0xff] %v14530_v19 }
 0x646   :  { %4480 = vmatmul.mubr.f32.vlgmr.msra.gmra.mxu0 %v17361_v33  ;;  %4698 = vmatpush2.msra.mxu1 %v14386_v5  ;;  %17363 = vst [vmem:[#allocation59_spill] sm:$0xff] %v14410_v36  ;;  %v14468_v33 = vld [vmem:[#allocation12 + $0x890] sm:$0xff]  ;;  %17382 = vst [vmem:[#allocation68_spill] sm:$0xff] %v14524_v32 }
 0x647   :  { %4734 = vmatprep.subr.mxu0 %v14390_v14  ;;  %4699 = vmatprep.subr.mxu1 %v14392_v60  ;;  %v14512_v60 = vld [vmem:[#allocation12 + $0x738] sm:$0xff]  ;;  %v14518_v5 = vld [vmem:[#allocation12 + $0x730] sm:$0xff] }
 0x648   :  { %4735 = vmatpush1.msra.mxu0 %v14396_v39  ;;  %4700 = vmatpush2.msra.mxu1 %v14398_v56  ;;  %v14506_v56 = vld [vmem:[#allocation12 + $0x740] sm:$0xff]  ;;  %17380 = vst [vmem:[#allocation65_spill] sm:$0xff] %v14512_v60  ;;  %17381 = vst [vmem:[#allocation44_spill] sm:$0xff] %v14518_v5 }
 0x649   :  { %4736 = vmatprep.subr.mxu0 %v14402_v9  ;;  %4701 = vmatprep.subr.mxu1 %v14404_v0  ;;  %v14500_v0 = vld [vmem:[#allocation12 + $0x748] sm:$0xff]  ;;  %17379 = vst [vmem:[#allocation38_spill] sm:$0xff] %v14506_v56 }
 0x64a   :  { %4737 = vmatpush1.msra.mxu0 %v14408_v16  ;;  %4702 = vmatpush2.msra.mxu1 %v14410_v36  ;;  %v14494_v36 = vld [vmem:[#allocation12 + $0x750] sm:$0xff]  ;;  %17378 = vst [vmem:[#allocation63_spill] sm:$0xff] %v14500_v0 }
 0x64b   :  { %4738 = vmatprep.subr.mxu0 %v14414_v62  ;;  %4703 = vmatprep.subr.mxu1 %v14416_v46  ;;  %v14488_v46 = vld [vmem:[#allocation12 + $0x758] sm:$0xff]  ;;  %17377 = vst [vmem:[#allocation60_spill] sm:$0xff] %v14494_v36 }
 0x64c   :  { %4739 = vmatpush1.msra.mxu0 %v14420_v7  ;;  %4704 = vmatpush2.msra.mxu1 %v14422_v47  ;;  %v14482_v47 = vld [vmem:[#allocation12 + $0x760] sm:$0xff]  ;;  %17376 = vst [vmem:[#allocation61_spill] sm:$0xff] %v14488_v46 }
 0x64d   :  { %4740 = vmatprep.subr.mxu0 %v14426_v6  ;;  %4705 = vmatprep.subr.mxu1 %v14428_v18  ;;  %v14476_v18 = vld [vmem:[#allocation12 + $0x768] sm:$0xff]  ;;  %17375 = vst [vmem:[#allocation73_spill] sm:$0xff] %v14482_v47 }
 0x64e   :  { %4741 = vmatpush1.msra.mxu0 %v14432_v37  ;;  %4706 = vmatpush2.msra.mxu1 %v14434_v28  ;;  %v14470_v28 = vld [vmem:[#allocation12 + $0x770] sm:$0xff]  ;;  %17374 = vst [vmem:[#allocation58_spill] sm:$0xff] %v14476_v18 }
 0x64f   :  { %4742 = vmatprep.subr.mxu0 %v14438_v2  ;;  %4707 = vmatprep.subr.mxu1 %v14440_v57  ;;  %17373 = vst [vmem:[#allocation71_spill] sm:$0xff] %v14470_v28  ;;  %v14474_v57 = vld [vmem:[#allocation12 + $0x888] sm:$0xff] }
 0x650   :  { %4743 = vmatpush1.msra.mxu0 %v14444_v58  ;;  %4708 = vmatpush2.msra.mxu1 %v14446_v31  ;;  %v14480_v31 = vld [vmem:[#allocation12 + $0x880] sm:$0xff] }
 0x651   :  { %4744 = vmatprep.subr.mxu0 %v14450_v23  ;;  %4709 = vmatprep.subr.mxu1 %v14452_v50  ;;  %v14486_v50 = vld [vmem:[#allocation12 + $0x878] sm:$0xff] }
 0x652   :  { %4745 = vmatpush1.msra.mxu0 %v14456_v40  ;;  %4710 = vmatpush2.msra.mxu1 %v14458_v61  ;;  %v14492_v61 = vld [vmem:[#allocation12 + $0x870] sm:$0xff] }
 0x653   :  { %4746 = vmatprep.subr.mxu0 %v14462_v17  ;;  %4711 = vmatprep.subr.mxu1 %v14464_v51  ;;  %v14498_v51 = vld [vmem:[#allocation12 + $0x868] sm:$0xff] }
 0x654   :  { %4747 = vmatpush1.msra.mxu0 %v14468_v33  ;;  %4712 = vmatpush2.msra.mxu1 %v14470_v28  ;;  %v14504_v28 = vld [vmem:[#allocation12 + $0x860] sm:$0xff] }
 0x655   :  { %4748 = vmatprep.subr.mxu0 %v14474_v57  ;;  %4713 = vmatprep.subr.mxu1 %v14476_v18  ;;  %v14510_v18 = vld [vmem:[#allocation12 + $0x858] sm:$0xff] }
 0x656   :  { %4749 = vmatpush1.msra.mxu0 %v14480_v31  ;;  %4714 = vmatpush2.msra.mxu1 %v14482_v47  ;;  %v14516_v47 = vld [vmem:[#allocation12 + $0x850] sm:$0xff] }
 0x657   :  { %4750 = vmatprep.subr.mxu0 %v14486_v50  ;;  %4715 = vmatprep.subr.mxu1 %v14488_v46  ;;  %v14522_v46 = vld [vmem:[#allocation12 + $0x848] sm:$0xff] }
 0x658   :  { %4751 = vmatpush1.msra.mxu0 %v14492_v61  ;;  %4716 = vmatpush2.msra.mxu1 %v14494_v36  ;;  %v14528_v36 = vld [vmem:[#allocation12 + $0x840] sm:$0xff] }
 0x659   :  { %4752 = vmatprep.subr.mxu0 %v14498_v51  ;;  %4717 = vmatprep.subr.mxu1 %v14500_v0  ;;  %v14534_v0 = vld [vmem:[#allocation12 + $0x838] sm:$0xff] }
 0x65a   :  { %4753 = vmatpush1.msra.mxu0 %v14504_v28  ;;  %4718 = vmatpush2.msra.mxu1 %v14506_v56  ;;  %v14540_v56 = vld [vmem:[#allocation12 + $0x830] sm:$0xff] }
 0x65b   :  { %4754 = vmatprep.subr.mxu0 %v14510_v18  ;;  %4719 = vmatprep.subr.mxu1 %v14512_v60  ;;  %v14546_v60 = vld [vmem:[#allocation12 + $0x828] sm:$0xff] }
 0x65c   :  { %4755 = vmatpush1.msra.mxu0 %v14516_v47  ;;  %4720 = vmatpush2.msra.mxu1 %v14518_v5  ;;  %v14552_v5 = vld [vmem:[#allocation12 + $0x820] sm:$0xff] }
 0x65d   :  { %4756 = vmatprep.subr.mxu0 %v14522_v46  ;;  %4721 = vmatprep.subr.mxu1 %v14524_v32  ;;  %v14558_v32 = vld [vmem:[#allocation12 + $0x818] sm:$0xff] }
 0x65e   :  { %4757 = vmatpush1.msra.mxu0 %v14528_v36  ;;  %4722 = vmatpush2.msra.mxu1 %v14530_v19  ;;  %v4657_v19 = vrot.slane %v10231_v26, 1  ;;  %v10232_v26 = vld [vmem:[#allocation2 + $0x10] sm:$0xff] }
 0x65f   :  { %4758 = vmatprep.subr.mxu0 %v14534_v0  ;;  %4723 = vmatprep.subr.mxu1 %v14536_v30  ;;  %v14566_v30 = vld [vmem:[#allocation12 + $0x808] sm:$0xff]  ;;  %v4659_v48 = vrot.slane %v10232_v26, 1  ;;  %v17417_v26 = vld [vmem:[#allocation63_spill] sm:$0xff] }
 0x660   :  { %4759 = vmatpush1.msra.mxu0 %v14540_v56  ;;  %4724 = vmatpush2.msra.mxu1 %v14542_v12  ;;  %v14569_v12 = vld [vmem:[#allocation12 + $0x800] sm:$0xff] }
 0x661   :  { %4760 = vmatprep.subr.mxu0 %v14546_v60  ;;  %4725 = vmatprep.subr.mxu1 %v14548_v55 }
 0x662   :  { %4761 = vmatpush1.msra.mxu0 %v14552_v5  ;;  %4726 = vmatpush2.msra.mxu1 %v14554_v25 }
 0x663   :  { %4762 = vmatprep.subr.mxu0 %v14558_v32  ;;  %4728 = vmatmul.mubr.f32.vlgmr.msra.gmra.mxu1 %v4657_v19  ;;  %v10233_v19 = vld [vmem:[#allocation2 + $0x50] sm:$0xff] }
 0x664   :  { %4763 = vmatpush1.msra.mxu0 %v14562_v44  ;;  %4887 = vmatprep.subr.mxu1 %v14390_v14  ;;  %v4811_v25 = vrot.slane %v10233_v19, 1  ;;  %v14689_v14 = vld [vmem:[#allocation12 + $0x988] sm:$0xff]  ;;  %v14745_v19 = vld [vmem:[#allocation12 + $0x918] sm:$0xff] }
 0x665   :  { %4764 = vmatprep.subr.mxu0 %v14566_v30  ;;  %4888 = vmatpush1.msra.mxu1 %v14396_v39  ;;  %v14693_v39 = vld [vmem:[#allocation12 + $0x980] sm:$0xff]  ;;  %17418 = vst [vmem:[#allocation81_spill] sm:$0xff] %v14745_v19 }
 0x666   :  { %4765 = vmatpush1.msra.mxu0 %v14569_v12  ;;  %4798 = vmatprep.mubr.f32.mxu0 %v17290_v21 }
 0x667   :  { %4889 = vmatprep.subr.mxu1 %v14402_v9  ;;  %4799 = vmatmul.mubr.f32.vlgmr.msra.gmra.mxu0 %v4659_v48  ;;  %v17398_v48 = vld [vmem:[#allocation57_spill] sm:$0xff]  ;;  %v14697_v9 = vld [vmem:[#allocation12 + $0x978] sm:$0xff] }
 0x668   :  { %4816 = vmatprep.subr.mxu0 %v14246_v41  ;;  %4890 = vmatpush1.msra.mxu1 %v14408_v16  ;;  %v17387_v41 = vld [vmem:[#allocation46_spill] sm:$0xff] }
 0x669   :  { %4817 = vmatpush1.msra.mxu0 %v14250_v59  ;;  %4880 = vmatprep.mubr.f32.mxu0 %v4811_v25  ;;  %v17388_v59 = vld [vmem:[#allocation49_spill] sm:$0xff]  ;;  %v17399_v25 = vld [vmem:[#allocation42_spill] sm:$0xff] }
 0x66a   :  { %4891 = vmatprep.subr.mxu1 %v14414_v62  ;;  %4818 = vmatprep.subr.mxu0 %v14255_v54  ;;  %v10234_v54 = vld [vmem:[#allocation2 + $0x70] sm:$0xff]  ;;  %v14701_v16 = vld [vmem:[#allocation12 + $0x970] sm:$0xff]  ;;  %v14705_v62 = vld [vmem:[#allocation12 + $0x968] sm:$0xff] }
 0x66b   :  { %4892 = vmatpush1.msra.mxu1 %v14420_v7  ;;  %4819 = vmatpush1.msra.mxu0 %v14259_v8  ;;  %v4812_v8 = vrot.slane %v10234_v54, 1  ;;  %v14709_v7 = vld [vmem:[#allocation12 + $0x960] sm:$0xff] }
 0x66c   :  { %4893 = vmatprep.subr.mxu1 %v14426_v6  ;;  %4820 = vmatprep.subr.mxu0 %v14262_v24  ;;  %v17389_v24 = vld [vmem:[#allocation36_spill] sm:$0xff]  ;;  %v17421_v54 = vld [vmem:[#allocation65_spill] sm:$0xff] }
 0x66d   :  { %4894 = vmatpush1.msra.mxu1 %v14432_v37  ;;  %4821 = vmatpush1.msra.mxu0 %v14266_v43  ;;  %v14635_v43 = vld [vmem:[#allocation12 + $0x9f8] sm:$0xff]  ;;  %v14717_v37 = vld [vmem:[#allocation12 + $0x950] sm:$0xff] }
 0x66e   :  { %4895 = vmatprep.subr.mxu1 %v14438_v2  ;;  %4822 = vmatprep.subr.mxu0 %v14270_v49  ;;  %v14639_v49 = vld [vmem:[#allocation12 + $0x9f0] sm:$0xff]  ;;  %v14713_v6 = vld [vmem:[#allocation12 + $0x958] sm:$0xff]  ;;  %v14721_v2 = vld [vmem:[#allocation12 + $0x948] sm:$0xff] }
 0x66f   :  { %4896 = vmatpush1.msra.mxu1 %v14444_v58  ;;  %4823 = vmatpush1.msra.mxu0 %v14274_v34  ;;  %v10235_v34 = vld [vmem:[#allocation2 + $0x78] sm:$0xff]  ;;  %v14725_v58 = vld [vmem:[#allocation12 + $0x940] sm:$0xff] }
 0x670   :  { %4897 = vmatprep.subr.mxu1 %v14450_v23  ;;  %4824 = vmatprep.subr.mxu0 %v14278_v13  ;;  %v5061_v13 = vrot.slane %v10235_v34, 1  ;;  %v14729_v23 = vld [vmem:[#allocation12 + $0x938] sm:$0xff]  ;;  %v14757_v34 = vld [vmem:[#allocation12 + $0x900] sm:$0xff] }
 0x671   :  { %4898 = vmatpush1.msra.mxu1 %v14456_v40  ;;  %4825 = vmatpush1.msra.mxu0 %v14282_v35  ;;  %v17390_v35 = vld [vmem:[#allocation51_spill] sm:$0xff]  ;;  %17424 = vst [vmem:[#allocation39_spill] sm:$0xff] %v14757_v34 }
 0x672   :  { %4899 = vmatprep.subr.mxu1 %v14462_v17  ;;  %4826 = vmatprep.subr.mxu0 %v14286_v38  ;;  %v14642_v38 = vld [vmem:[#allocation12 + $0x9e8] sm:$0xff]  ;;  %v14733_v40 = vld [vmem:[#allocation12 + $0x930] sm:$0xff] }
 0x673   :  { %4900 = vmatpush1.msra.mxu1 %v14468_v33  ;;  %4827 = vmatpush1.msra.mxu0 %v14290_v11  ;;  %v17391_v11 = vld [vmem:[#allocation43_spill] sm:$0xff]  ;;  %v14737_v17 = vld [vmem:[#allocation12 + $0x928] sm:$0xff]  ;;  %v14741_v33 = vld [vmem:[#allocation12 + $0x920] sm:$0xff] }
 0x674   :  { %4901 = vmatprep.subr.mxu1 %v14474_v57  ;;  %4828 = vmatprep.subr.mxu0 %v14294_v4  ;;  %v14646_v4 = vld [vmem:[#allocation12 + $0x9e0] sm:$0xff]  ;;  %v17410_v57 = vld [vmem:[#allocation71_spill] sm:$0xff]  ;;  %17414 = vst [vmem:[#allocation80_spill] sm:$0xff] %v14737_v17  ;;  %17416 = vst [vmem:[#allocation66_spill] sm:$0xff] %v14741_v33 }
 0x675   :  { %4902 = vmatpush1.msra.mxu1 %v14480_v31  ;;  %4829 = vmatpush1.msra.mxu0 %v14298_v29  ;;  %v14649_v29 = vld [vmem:[#allocation12 + $0x9d8] sm:$0xff]  ;;  %v17411_v31 = vld [vmem:[#allocation58_spill] sm:$0xff] }
 0x676   :  { %4903 = vmatprep.subr.mxu1 %v14486_v50  ;;  %4830 = vmatprep.subr.mxu0 %v14302_v10  ;;  %v17392_v10 = vld [vmem:[#allocation53_spill] sm:$0xff] }
 0x677   :  { %4904 = vmatpush1.msra.mxu1 %v14492_v61  ;;  %4831 = vmatpush1.msra.mxu0 %v14306_v22  ;;  %v14653_v22 = vld [vmem:[#allocation12 + $0x9d0] sm:$0xff]  ;;  %v17412_v50 = vld [vmem:[#allocation73_spill] sm:$0xff] }
 0x678   :  { %4905 = vmatprep.subr.mxu1 %v14498_v51  ;;  %4832 = vmatprep.subr.mxu0 %v14310_v1  ;;  %v17393_v1 = vld [vmem:[#allocation35_spill] sm:$0xff]  ;;  %v17413_v61 = vld [vmem:[#allocation61_spill] sm:$0xff]  ;;  %v17415_v51 = vld [vmem:[#allocation60_spill] sm:$0xff] }
 0x679   :  { %4906 = vmatpush1.msra.mxu1 %v14504_v28  ;;  %4833 = vmatpush1.msra.mxu0 %v14314_v27  ;;  %v14657_v27 = vld [vmem:[#allocation12 + $0x9c8] sm:$0xff] }
 0x67a   :  { %4907 = vmatprep.subr.mxu1 %v14510_v18  ;;  %4834 = vmatprep.subr.mxu0 %v14318_v15  ;;  %v17394_v15 = vld [vmem:[#allocation55_spill] sm:$0xff]  ;;  %v17408_v18 = vld [vmem:[#allocation69_spill] sm:$0xff]  ;;  %v17409_v28 = vld [vmem:[#allocation34_spill] sm:$0xff] }
 0x67b   :  { %4908 = vmatpush1.msra.mxu1 %v14516_v47  ;;  %4835 = vmatpush1.msra.mxu0 %v14322_v63  ;;  %v14661_v63 = vld [vmem:[#allocation12 + $0x9c0] sm:$0xff]  ;;  %v17407_v47 = vld [vmem:[#allocation54_spill] sm:$0xff] }
 0x67c   :  { %4909 = vmatprep.subr.mxu1 %v14522_v46  ;;  %4836 = vmatprep.subr.mxu0 %v14326_v42  ;;  %v17395_v42 = vld [vmem:[#allocation40_spill] sm:$0xff]  ;;  %v17406_v46 = vld [vmem:[#allocation67_spill] sm:$0xff] }
 0x67d   :  { %4910 = vmatpush1.msra.mxu1 %v14528_v36  ;;  %4837 = vmatpush1.msra.mxu0 %v14330_v45  ;;  %v14665_v45 = vld [vmem:[#allocation12 + $0x9b8] sm:$0xff] }
 0x67e   :  { %4911 = vmatprep.subr.mxu1 %v14534_v0  ;;  %4838 = vmatprep.subr.mxu0 %v14334_v3  ;;  %v17396_v3 = vld [vmem:[#allocation56_spill] sm:$0xff] }
 0x67f   :  { %4912 = vmatpush1.msra.mxu1 %v14540_v56  ;;  %4839 = vmatpush1.msra.mxu0 %v14338_v20  ;;  %v14669_v20 = vld [vmem:[#allocation12 + $0x9b0] sm:$0xff]  ;;  %v17404_v0 = vld [vmem:[#allocation64_spill] sm:$0xff] }
 0x680   :  { %4913 = vmatprep.subr.mxu1 %v14546_v60  ;;  %4840 = vmatprep.subr.mxu0 %v14342_v53  ;;  %v17397_v53 = vld [vmem:[#allocation45_spill] sm:$0xff]  ;;  %v17402_v60 = vld [vmem:[#allocation62_spill] sm:$0xff]  ;;  %v17405_v36 = vld [vmem:[#allocation52_spill] sm:$0xff] }
 0x681   :  { %4914 = vmatpush1.msra.mxu1 %v14552_v5  ;;  %4841 = vmatpush1.msra.mxu0 %v14346_v52  ;;  %v14673_v52 = vld [vmem:[#allocation12 + $0x9a8] sm:$0xff]  ;;  %v17401_v5 = vld [vmem:[#allocation47_spill] sm:$0xff] }
 0x682   :  { %4915 = vmatprep.subr.mxu1 %v14558_v32  ;;  %4842 = vmatprep.subr.mxu0 %v17387_v41  ;;  %v14685_v32 = vld [vmem:[#allocation12 + $0x990] sm:$0xff] }
 0x683   :  { %4916 = vmatpush1.msra.mxu1 %v14562_v44  ;;  %4843 = vmatpush1.msra.mxu0 %v17388_v59  ;;  %v14677_v44 = vld [vmem:[#allocation12 + $0x9a0] sm:$0xff]  ;;  %v17403_v56 = vld [vmem:[#allocation50_spill] sm:$0xff] }
 0x684   :  { %4917 = vmatprep.subr.mxu1 %v14566_v30  ;;  %4844 = vmatprep.subr.mxu0 %v17389_v24  ;;  %v17400_v30 = vld [vmem:[#allocation59_spill] sm:$0xff]  ;;  %v17419_v41 = vld [vmem:[#allocation38_spill] sm:$0xff]  ;;  %v17423_v24 = vld [vmem:[#allocation44_spill] sm:$0xff] }
 0x685   :  { %4918 = vmatpush1.msra.mxu1 %v14569_v12  ;;  %4951 = vmatprep.mubr.f32.mxu1 %v17290_v21  ;;  %v14681_v12 = vld [vmem:[#allocation12 + $0x998] sm:$0xff]  ;;  %v14749_v59 = vld [vmem:[#allocation12 + $0x910] sm:$0xff] }
 0x686   :  { %4845 = vmatpush1.msra.mxu0 %v17390_v35  ;;  %4952 = vmatmul.mubr.f32.vlgmr.msra.gmra.mxu1 %v4812_v8  ;;  %17420 = vst [vmem:[#allocation48_spill] sm:$0xff] %v14749_v59  ;;  %v14753_v8 = vld [vmem:[#allocation12 + $0x908] sm:$0xff]  ;;  %v14761_v35 = vld [vmem:[#allocation12 + $0xaf8] sm:$0xff] }
 0x687   :  { %5066 = vmatprep.subr.mxu1 %v14635_v43  ;;  %4846 = vmatprep.subr.mxu0 %v17391_v11  ;;  %17422 = vst [vmem:[#allocation82_spill] sm:$0xff] %v14753_v8  ;;  %17426 = vst [vmem:[#allocation83_spill] sm:$0xff] %v14761_v35  ;;  %v17427_v11 = vld [vmem:[#allocation76_spill] sm:$0xff] }
 0x688   :  { %5067 = vmatpush1.msra.mxu1 %v14639_v49  ;;  %5130 = vmatprep.mubr.f32.mxu1 %v5061_v13  ;;  %v17425_v13 = vld [vmem:[#allocation68_spill] sm:$0xff] }
 0x689   :  { %4847 = vmatpush1.msra.mxu0 %v17392_v10  ;;  %5068 = vmatprep.subr.mxu1 %v14642_v38  ;;  %v14765_v10 = vld [vmem:[#allocation12 + $0xaf0] sm:$0xff] }
 0x68a   :  { %4848 = vmatprep.subr.mxu0 %v17393_v1  ;;  %5069 = vmatpush1.msra.mxu1 %v14646_v4  ;;  %17428 = vst [vmem:[#allocation41_spill] sm:$0xff] %v14765_v10  ;;  %v17429_v1 = vld [vmem:[#allocation70_spill] sm:$0xff] }
 0x68b   :  { %4849 = vmatpush2.msra.mxu0 %v17394_v15  ;;  %5070 = vmatprep.subr.mxu1 %v14649_v29  ;;  %v14769_v15 = vld [vmem:[#allocation12 + $0xae8] sm:$0xff] }
 0x68c   :  { %4850 = vmatprep.subr.mxu0 %v17395_v42  ;;  %5071 = vmatpush1.msra.mxu1 %v14653_v22  ;;  %17430 = vst [vmem:[#allocation74_spill] sm:$0xff] %v14769_v15  ;;  %v17431_v42 = vld [vmem:[#allocation78_spill] sm:$0xff] }
 0x68d   :  { %4851 = vmatpush2.msra.mxu0 %v17396_v3  ;;  %5072 = vmatprep.subr.mxu1 %v14657_v27  ;;  %v14773_v3 = vld [vmem:[#allocation12 + $0xae0] sm:$0xff] }
 0x68e   :  { %4852 = vmatprep.subr.mxu0 %v17397_v53  ;;  %5073 = vmatpush1.msra.mxu1 %v14661_v63  ;;  %17432 = vst [vmem:[#allocation84_spill] sm:$0xff] %v14773_v3  ;;  %v10236_v53 = vld [vmem:[#allocation2 + $0x38] sm:$0xff] }
 0x68f   :  { %4853 = vmatpush2.msra.mxu0 %v17398_v48  ;;  %5074 = vmatprep.subr.mxu1 %v14665_v45  ;;  %v4810_v48 = vrot.slane %v10236_v53, 1  ;;  %v14848_v53 = vld [vmem:[#allocation12 + $0xb98] sm:$0xff] }
 0x690   :  { %4854 = vmatprep.subr.mxu0 %v17399_v25  ;;  %5075 = vmatpush1.msra.mxu1 %v14669_v20  ;;  %v14777_v25 = vld [vmem:[#allocation12 + $0xbf8] sm:$0xff] }
 0x691   :  { %4855 = vmatpush2.msra.mxu0 %v17400_v30  ;;  %5076 = vmatprep.subr.mxu1 %v14673_v52  ;;  %v14779_v30 = vld [vmem:[#allocation12 + $0xad8] sm:$0xff] }
 0x692   :  { %4856 = vmatprep.subr.mxu0 %v17401_v5  ;;  %5077 = vmatpush1.msra.mxu1 %v14677_v44  ;;  %17433 = vst [vmem:[#allocation75_spill] sm:$0xff] %v14779_v30  ;;  %v17434_v5 = vld [vmem:[#allocation72_spill] sm:$0xff] }
 0x693   :  { %4857 = vmatpush2.msra.mxu0 %v17402_v60  ;;  %5078 = vmatprep.subr.mxu1 %v14681_v12  ;;  %v14783_v60 = vld [vmem:[#allocation12 + $0xbf0] sm:$0xff] }
 0x694   :  { %4858 = vmatprep.subr.mxu0 %v17403_v56  ;;  %5079 = vmatpush1.msra.mxu1 %v14685_v32  ;;  %v14785_v56 = vld [vmem:[#allocation12 + $0xad0] sm:$0xff] }
 0x695   :  { %4859 = vmatpush2.msra.mxu0 %v17404_v0  ;;  %5080 = vmatprep.subr.mxu1 %v14689_v14  ;;  %17435 = vst [vmem:[#allocation86_spill] sm:$0xff] %v14785_v56  ;;  %v14788_v0 = vld [vmem:[#allocation12 + $0xbe8] sm:$0xff] }
 0x696   :  { %4860 = vmatprep.subr.mxu0 %v17405_v36  ;;  %5081 = vmatpush1.msra.mxu1 %v14693_v39  ;;  %v14794_v36 = vld [vmem:[#allocation12 + $0xbe0] sm:$0xff] }
 0x697   :  { %4861 = vmatpush2.msra.mxu0 %v17406_v46  ;;  %5082 = vmatprep.subr.mxu1 %v14697_v9  ;;  %v14796_v46 = vld [vmem:[#allocation12 + $0xac0] sm:$0xff] }
 0x698   :  { %4862 = vmatprep.subr.mxu0 %v17407_v47  ;;  %5083 = vmatpush1.msra.mxu1 %v14701_v16  ;;  %17437 = vst [vmem:[#allocation87_spill] sm:$0xff] %v14796_v46  ;;  %v14800_v47 = vld [vmem:[#allocation12 + $0xbd8] sm:$0xff] }
 0x699   :  { %4863 = vmatpush2.msra.mxu0 %v17408_v18  ;;  %5084 = vmatprep.subr.mxu1 %v14705_v62  ;;  %v14802_v18 = vld [vmem:[#allocation12 + $0xab8] sm:$0xff] }
 0x69a   :  { %4864 = vmatprep.subr.mxu0 %v17409_v28  ;;  %5085 = vmatpush1.msra.mxu1 %v14709_v7  ;;  %17438 = vst [vmem:[#allocation79_spill] sm:$0xff] %v14802_v18  ;;  %v14806_v28 = vld [vmem:[#allocation12 + $0xbd0] sm:$0xff] }
 0x69b   :  { %4865 = vmatpush2.msra.mxu0 %v17410_v57  ;;  %5086 = vmatprep.subr.mxu1 %v14713_v6  ;;  %v14808_v57 = vld [vmem:[#allocation12 + $0xab0] sm:$0xff] }
 0x69c   :  { %4866 = vmatprep.subr.mxu0 %v17411_v31  ;;  %5087 = vmatpush1.msra.mxu1 %v14717_v37  ;;  %17439 = vst [vmem:[#allocation88_spill] sm:$0xff] %v14808_v57  ;;  %v14812_v31 = vld [vmem:[#allocation12 + $0xbc8] sm:$0xff] }
 0x69d   :  { %4867 = vmatpush2.msra.mxu0 %v17412_v50  ;;  %5088 = vmatprep.subr.mxu1 %v14721_v2  ;;  %v14814_v50 = vld [vmem:[#allocation12 + $0xaa8] sm:$0xff] }
 0x69e   :  { %4868 = vmatprep.subr.mxu0 %v17413_v61  ;;  %5089 = vmatpush1.msra.mxu1 %v14725_v58  ;;  %17440 = vst [vmem:[#allocation90_spill] sm:$0xff] %v14814_v50  ;;  %v14818_v61 = vld [vmem:[#allocation12 + $0xbc0] sm:$0xff] }
 0x69f   :  { %4869 = vmatpush2.msra.mxu0 %v17415_v51  ;;  %5090 = vmatprep.subr.mxu1 %v14729_v23  ;;  %v14820_v51 = vld [vmem:[#allocation12 + $0xaa0] sm:$0xff] }
 0x6a0   :  { %4870 = vmatprep.subr.mxu0 %v17417_v26  ;;  %5091 = vmatpush1.msra.mxu1 %v14733_v40  ;;  %17441 = vst [vmem:[#allocation111_spill] sm:$0xff] %v14820_v51  ;;  %v14824_v26 = vld [vmem:[#allocation12 + $0xbb8] sm:$0xff] }
 0x6a1   :  { %4871 = vmatpush2.msra.mxu0 %v17419_v41  ;;  %5092 = vmatprep.subr.mxu1 %v14737_v17  ;;  %v14826_v41 = vld [vmem:[#allocation12 + $0xa98] sm:$0xff] }
 0x6a2   :  { %4872 = vmatprep.subr.mxu0 %v17421_v54  ;;  %5093 = vmatpush1.msra.mxu1 %v14741_v33  ;;  %17442 = vst [vmem:[#allocation89_spill] sm:$0xff] %v14826_v41  ;;  %v14830_v54 = vld [vmem:[#allocation12 + $0xbb0] sm:$0xff] }
 0x6a3   :  { %4873 = vmatpush2.msra.mxu0 %v17423_v24  ;;  %5094 = vmatprep.subr.mxu1 %v14745_v19  ;;  %v14832_v24 = vld [vmem:[#allocation12 + $0xa90] sm:$0xff] }
 0x6a4   :  { %4874 = vmatprep.subr.mxu0 %v17425_v13  ;;  %5095 = vmatpush1.msra.mxu1 %v14749_v59  ;;  %17443 = vst [vmem:[#allocation91_spill] sm:$0xff] %v14832_v24  ;;  %v14836_v13 = vld [vmem:[#allocation12 + $0xba8] sm:$0xff]  ;;  %v14940_v59 = vld [vmem:[#allocation12 + $0xa00] sm:$0xff]  ;;  %v10237_v19 = vld [vmem:[#allocation2 + $0x40] sm:$0xff] }
 0x6a5   :  { %4875 = vmatpush2.msra.mxu0 %v17427_v11  ;;  %5096 = vmatprep.subr.mxu1 %v14753_v8  ;;  %v14838_v11 = vld [vmem:[#allocation12 + $0xa88] sm:$0xff]  ;;  %17461 = vst [vmem:[#allocation112_spill] sm:$0xff] %v14940_v59  ;;  %v14948_v33 = vld [vmem:[#allocation12 + $0xb10] sm:$0xff] }
 0x6a6   :  { %4876 = vmatprep.subr.mxu0 %v17429_v1  ;;  %5097 = vmatpush1.msra.mxu1 %v14757_v34  ;;  %17444 = vst [vmem:[#allocation92_spill] sm:$0xff] %v14838_v11  ;;  %v14842_v1 = vld [vmem:[#allocation12 + $0xba0] sm:$0xff]  ;;  %v14928_v34 = vld [vmem:[#allocation12 + $0xa10] sm:$0xff]  ;;  %v14934_v8 = vld [vmem:[#allocation12 + $0xa08] sm:$0xff] }
 0x6a7   :  { %4877 = vmatpush2.msra.mxu0 %v17431_v42  ;;  %5098 = vmatprep.subr.mxu1 %v14761_v35  ;;  %v14844_v42 = vld [vmem:[#allocation12 + $0xa80] sm:$0xff]  ;;  %v14922_v35 = vld [vmem:[#allocation12 + $0xa18] sm:$0xff]  ;;  %17459 = vst [vmem:[#allocation109_spill] sm:$0xff] %v14928_v34  ;;  %17460 = vst [vmem:[#allocation110_spill] sm:$0xff] %v14934_v8 }
 0x6a8   :  { %4878 = vmatprep.subr.mxu0 %v14548_v55  ;;  %5099 = vmatpush2.msra.mxu1 %v14765_v10  ;;  %v14790_v55 = vld [vmem:[#allocation12 + $0xac8] sm:$0xff]  ;;  %17445 = vst [vmem:[#allocation93_spill] sm:$0xff] %v14844_v42  ;;  %v14916_v10 = vld [vmem:[#allocation12 + $0xa20] sm:$0xff]  ;;  %17458 = vst [vmem:[#allocation108_spill] sm:$0xff] %v14922_v35 }
 0x6a9   :  { %4879 = vmatpush2.msra.mxu0 %v17434_v5  ;;  %5100 = vmatprep.subr.mxu1 %v14769_v15  ;;  %17436 = vst [vmem:[#allocation77_spill] sm:$0xff] %v14790_v55  ;;  %v14854_v5 = vld [vmem:[#allocation12 + $0xb90] sm:$0xff]  ;;  %v14910_v15 = vld [vmem:[#allocation12 + $0xa28] sm:$0xff]  ;;  %17457 = vst [vmem:[#allocation107_spill] sm:$0xff] %v14916_v10 }
 0x6aa   :  { %4881 = vmatmul.mubr.f32.vlgmr.msra.gmra.mxu0 %v4810_v48  ;;  %5101 = vmatpush2.msra.mxu1 %v14773_v3  ;;  %v14850_v48 = vld [vmem:[#allocation12 + $0xa78] sm:$0xff]  ;;  %v14904_v3 = vld [vmem:[#allocation12 + $0xa30] sm:$0xff]  ;;  %17456 = vst [vmem:[#allocation104_spill] sm:$0xff] %v14910_v15 }
 0x6ab   :  { %5137 = vmatprep.subr.mxu0 %v14777_v25  ;;  %5102 = vmatprep.subr.mxu1 %v14779_v30  ;;  %17446 = vst [vmem:[#allocation94_spill] sm:$0xff] %v14850_v48  ;;  %v14898_v30 = vld [vmem:[#allocation12 + $0xa38] sm:$0xff]  ;;  %17455 = vst [vmem:[#allocation103_spill] sm:$0xff] %v14904_v3 }
 0x6ac   :  { %5138 = vmatpush1.msra.mxu0 %v14783_v60  ;;  %5103 = vmatpush2.msra.mxu1 %v14785_v56  ;;  %v14892_v56 = vld [vmem:[#allocation12 + $0xa40] sm:$0xff]  ;;  %17454 = vst [vmem:[#allocation102_spill] sm:$0xff] %v14898_v30 }
 0x6ad   :  { %5139 = vmatprep.subr.mxu0 %v14788_v0  ;;  %5104 = vmatprep.subr.mxu1 %v14790_v55  ;;  %v14886_v55 = vld [vmem:[#allocation12 + $0xa48] sm:$0xff]  ;;  %17453 = vst [vmem:[#allocation101_spill] sm:$0xff] %v14892_v56 }
 0x6ae   :  { %5140 = vmatpush1.msra.mxu0 %v14794_v36  ;;  %5105 = vmatpush2.msra.mxu1 %v14796_v46  ;;  %v14880_v46 = vld [vmem:[#allocation12 + $0xa50] sm:$0xff]  ;;  %17452 = vst [vmem:[#allocation100_spill] sm:$0xff] %v14886_v55 }
 0x6af   :  { %5141 = vmatprep.subr.mxu0 %v14800_v47  ;;  %5106 = vmatprep.subr.mxu1 %v14802_v18  ;;  %v14874_v18 = vld [vmem:[#allocation12 + $0xa58] sm:$0xff]  ;;  %17451 = vst [vmem:[#allocation99_spill] sm:$0xff] %v14880_v46 }
 0x6b0   :  { %5142 = vmatpush1.msra.mxu0 %v14806_v28  ;;  %5107 = vmatpush2.msra.mxu1 %v14808_v57  ;;  %v14868_v57 = vld [vmem:[#allocation12 + $0xa60] sm:$0xff]  ;;  %17450 = vst [vmem:[#allocation98_spill] sm:$0xff] %v14874_v18 }
 0x6b1   :  { %5143 = vmatprep.subr.mxu0 %v14812_v31  ;;  %5108 = vmatprep.subr.mxu1 %v14814_v50  ;;  %v14862_v50 = vld [vmem:[#allocation12 + $0xa68] sm:$0xff]  ;;  %17449 = vst [vmem:[#allocation97_spill] sm:$0xff] %v14868_v57 }
 0x6b2   :  { %5144 = vmatpush1.msra.mxu0 %v14818_v61  ;;  %5109 = vmatpush2.msra.mxu1 %v14820_v51  ;;  %v14856_v51 = vld [vmem:[#allocation12 + $0xa70] sm:$0xff]  ;;  %17448 = vst [vmem:[#allocation96_spill] sm:$0xff] %v14862_v50 }
 0x6b3   :  { %5145 = vmatprep.subr.mxu0 %v14824_v26  ;;  %5110 = vmatprep.subr.mxu1 %v14826_v41  ;;  %17447 = vst [vmem:[#allocation95_spill] sm:$0xff] %v14856_v51  ;;  %v14860_v41 = vld [vmem:[#allocation12 + $0xb88] sm:$0xff] }
 0x6b4   :  { %5146 = vmatpush1.msra.mxu0 %v14830_v54  ;;  %5111 = vmatpush2.msra.mxu1 %v14832_v24  ;;  %v14866_v24 = vld [vmem:[#allocation12 + $0xb80] sm:$0xff] }
 0x6b5   :  { %5147 = vmatprep.subr.mxu0 %v14836_v13  ;;  %5112 = vmatprep.subr.mxu1 %v14838_v11  ;;  %v14872_v11 = vld [vmem:[#allocation12 + $0xb78] sm:$0xff] }
 0x6b6   :  { %5148 = vmatpush1.msra.mxu0 %v14842_v1  ;;  %5113 = vmatpush2.msra.mxu1 %v14844_v42  ;;  %v14878_v42 = vld [vmem:[#allocation12 + $0xb70] sm:$0xff] }
 0x6b7   :  { %5149 = vmatprep.subr.mxu0 %v14848_v53  ;;  %5114 = vmatprep.subr.mxu1 %v14850_v48  ;;  %v14884_v48 = vld [vmem:[#allocation12 + $0xb68] sm:$0xff] }
 0x6b8   :  { %5150 = vmatpush1.msra.mxu0 %v14854_v5  ;;  %5115 = vmatpush2.msra.mxu1 %v14856_v51  ;;  %v14890_v51 = vld [vmem:[#allocation12 + $0xb60] sm:$0xff] }
 0x6b9   :  { %5151 = vmatprep.subr.mxu0 %v14860_v41  ;;  %5116 = vmatprep.subr.mxu1 %v14862_v50  ;;  %v14896_v50 = vld [vmem:[#allocation12 + $0xb58] sm:$0xff] }
 0x6ba   :  { %5152 = vmatpush1.msra.mxu0 %v14866_v24  ;;  %5117 = vmatpush2.msra.mxu1 %v14868_v57  ;;  %v14902_v57 = vld [vmem:[#allocation12 + $0xb50] sm:$0xff] }
 0x6bb   :  { %5153 = vmatprep.subr.mxu0 %v14872_v11  ;;  %5118 = vmatprep.subr.mxu1 %v14874_v18  ;;  %v14908_v18 = vld [vmem:[#allocation12 + $0xb48] sm:$0xff] }
 0x6bc   :  { %5154 = vmatpush1.msra.mxu0 %v14878_v42  ;;  %5119 = vmatpush2.msra.mxu1 %v14880_v46  ;;  %v14914_v46 = vld [vmem:[#allocation12 + $0xb40] sm:$0xff] }
 0x6bd   :  { %5155 = vmatprep.subr.mxu0 %v14884_v48  ;;  %5120 = vmatprep.subr.mxu1 %v14886_v55  ;;  %v14920_v55 = vld [vmem:[#allocation12 + $0xb38] sm:$0xff] }
 0x6be   :  { %5156 = vmatpush1.msra.mxu0 %v14890_v51  ;;  %5121 = vmatpush2.msra.mxu1 %v14892_v56  ;;  %v14926_v56 = vld [vmem:[#allocation12 + $0xb30] sm:$0xff] }
 0x6bf   :  { %5157 = vmatprep.subr.mxu0 %v14896_v50  ;;  %5122 = vmatprep.subr.mxu1 %v14898_v30  ;;  %v14932_v30 = vld [vmem:[#allocation12 + $0xb28] sm:$0xff] }
 0x6c0   :  { %5158 = vmatpush1.msra.mxu0 %v14902_v57  ;;  %5123 = vmatpush2.msra.mxu1 %v14904_v3  ;;  %v14938_v3 = vld [vmem:[#allocation12 + $0xb20] sm:$0xff] }
 0x6c1   :  { %5159 = vmatprep.subr.mxu0 %v14908_v18  ;;  %5124 = vmatprep.subr.mxu1 %v14910_v15  ;;  %v14944_v15 = vld [vmem:[#allocation12 + $0xb18] sm:$0xff] }
 0x6c2   :  { %5160 = vmatpush1.msra.mxu0 %v14914_v46  ;;  %5125 = vmatpush2.msra.mxu1 %v14916_v10  ;;  %v5060_v10 = vrot.slane %v10237_v19, 1  ;;  %v10238_v19 = vld [vmem:[#allocation2 + $0x88] sm:$0xff] }
 0x6c3   :  { %5161 = vmatprep.subr.mxu0 %v14920_v55  ;;  %5126 = vmatprep.subr.mxu1 %v14922_v35  ;;  %v14952_v35 = vld [vmem:[#allocation12 + $0xb08] sm:$0xff]  ;;  %v5062_v17 = vrot.slane %v10238_v19, 1  ;;  %v15128_v19 = vld [vmem:[#allocation12 + $0xc20] sm:$0xff] }
 0x6c4   :  { %5162 = vmatpush1.msra.mxu0 %v14926_v56  ;;  %5127 = vmatpush2.msra.mxu1 %v14928_v34  ;;  %v14955_v34 = vld [vmem:[#allocation12 + $0xb00] sm:$0xff]  ;;  %17495 = vst [vmem:[#allocation118_spill] sm:$0xff] %v15128_v19 }
 0x6c5   :  { %5163 = vmatprep.subr.mxu0 %v14932_v30  ;;  %5128 = vmatprep.subr.mxu1 %v14934_v8 }
 0x6c6   :  { %5164 = vmatpush1.msra.mxu0 %v14938_v3  ;;  %5129 = vmatpush2.msra.mxu1 %v14940_v59  ;;  %v10239_v59 = vld [vmem:[#allocation2 + $0x58] sm:$0xff] }
 0x6c7   :  { %5165 = vmatprep.subr.mxu0 %v14944_v15  ;;  %5131 = vmatmul.mubr.f32.vlgmr.msra.gmra.mxu1 %v5060_v10  ;;  %v5214_v8 = vrot.slane %v10239_v59, 1  ;;  %v15060_v59 = vld [vmem:[#allocation12 + $0xca8] sm:$0xff]  ;;  %v15068_v10 = vld [vmem:[#allocation12 + $0xc98] sm:$0xff] }
 0x6c8   :  { %5166 = vmatpush1.msra.mxu0 %v14948_v33  ;;  %5290 = vmatprep.subr.mxu1 %v14777_v25  ;;  %v17476_v25 = vld [vmem:[#allocation79_spill] sm:$0xff] }
 0x6c9   :  { %5167 = vmatprep.subr.mxu0 %v14952_v35  ;;  %5291 = vmatpush1.msra.mxu1 %v14783_v60  ;;  %v17477_v60 = vld [vmem:[#allocation88_spill] sm:$0xff] }
 0x6ca   :  { %5168 = vmatpush1.msra.mxu0 %v14955_v34  ;;  %5201 = vmatprep.mubr.f32.mxu0 %v17290_v21 }
 0x6cb   :  { %5292 = vmatprep.subr.mxu1 %v14788_v0  ;;  %5202 = vmatmul.mubr.f32.vlgmr.msra.gmra.mxu0 %v5062_v17  ;;  %v15056_v17 = vld [vmem:[#allocation12 + $0xcb0] sm:$0xff] }
 0x6cc   :  { %5219 = vmatprep.subr.mxu0 %v14635_v43  ;;  %5293 = vmatpush1.msra.mxu1 %v14794_v36  ;;  %v3878_v43 = vld [vmem:[#allocation2 + $0x60] sm:$0x1]  ;;  %v17479_v36 = vld [vmem:[#allocation111_spill] sm:$0xff] }
 0x6cd   :  { %5220 = vmatpush1.msra.mxu0 %v14639_v49  ;;  %5283 = vmatprep.mubr.f32.mxu0 %v5214_v8  ;;  %v17462_v49 = vld [vmem:[#allocation80_spill] sm:$0xff]  ;;  %v17473_v8 = vld [vmem:[#allocation86_spill] sm:$0xff] }
 0x6ce   :  { %5294 = vmatprep.subr.mxu1 %v14800_v47  ;;  %5221 = vmatprep.subr.mxu0 %v14642_v38  ;;  %v17463_v38 = vld [vmem:[#allocation66_spill] sm:$0xff]  ;;  %v17480_v47 = vld [vmem:[#allocation89_spill] sm:$0xff] }
 0x6cf   :  { %5295 = vmatpush1.msra.mxu1 %v14806_v28  ;;  %5222 = vmatpush1.msra.mxu0 %v14646_v4  ;;  %v5467_v4 = vrot.slane %v3878_v43, 2  ;;  %v17478_v0 = vld [vmem:[#allocation90_spill] sm:$0xff]  ;;  %v17481_v28 = vld [vmem:[#allocation91_spill] sm:$0xff]  ;;  %v17496_v43 = vld [vmem:[#allocation100_spill] sm:$0xff] }
 0x6d0   :  { %5296 = vmatprep.subr.mxu1 %v14812_v31  ;;  %5223 = vmatprep.subr.mxu0 %v14649_v29  ;;  %v10240_v29 = vld [vmem:[#allocation2 + $0x80] sm:$0xff]  ;;  %v17482_v31 = vld [vmem:[#allocation92_spill] sm:$0xff] }
 0x6d1   :  { %5297 = vmatpush1.msra.mxu1 %v14818_v61  ;;  %5224 = vmatpush1.msra.mxu0 %v14653_v22  ;;  %v5215_v22 = vrot.slane %v10240_v29, 1  ;;  %v17483_v61 = vld [vmem:[#allocation93_spill] sm:$0xff]  ;;  %v17500_v29 = vld [vmem:[#allocation102_spill] sm:$0xff] }
 0x6d2   :  { %5298 = vmatprep.subr.mxu1 %v14824_v26  ;;  %5225 = vmatprep.subr.mxu0 %v14657_v27  ;;  %v17464_v27 = vld [vmem:[#allocation81_spill] sm:$0xff]  ;;  %v17484_v26 = vld [vmem:[#allocation94_spill] sm:$0xff] }
 0x6d3   :  { %5299 = vmatpush1.msra.mxu1 %v14830_v54  ;;  %5226 = vmatpush1.msra.mxu0 %v14661_v63  ;;  %v15021_v63 = vld [vmem:[#allocation12 + $0xcf8] sm:$0xff] }
 0x6d4   :  { %5300 = vmatprep.subr.mxu1 %v14836_v13  ;;  %5227 = vmatprep.subr.mxu0 %v14665_v45  ;;  %v10241_v45 = vld [vmem:[#allocation2] sm:$0xff]  ;;  %v17488_v13 = vld [vmem:[#allocation96_spill] sm:$0xff] }
 0x6d5   :  { %5301 = vmatpush1.msra.mxu1 %v14842_v1  ;;  %5228 = vmatpush1.msra.mxu0 %v14669_v20  ;;  %v5466_v20 = vrot.slane %v10241_v45, 2  ;;  %v17486_v54 = vld [vmem:[#allocation95_spill] sm:$0xff]  ;;  %v17490_v1 = vld [vmem:[#allocation97_spill] sm:$0xff] }
 0x6d6   :  { %5302 = vmatprep.subr.mxu1 %v14848_v53  ;;  %5229 = vmatprep.subr.mxu0 %v14673_v52  ;;  %v15025_v52 = vld [vmem:[#allocation12 + $0xcf0] sm:$0xff]  ;;  %v15144_v45 = vld [vmem:[#allocation12 + $0xc00] sm:$0xff] }
 0x6d7   :  { %5303 = vmatpush1.msra.mxu1 %v14854_v5  ;;  %5230 = vmatpush1.msra.mxu0 %v14677_v44  ;;  %v17465_v44 = vld [vmem:[#allocation48_spill] sm:$0xff]  ;;  %v17492_v53 = vld [vmem:[#allocation98_spill] sm:$0xff]  ;;  %v17494_v5 = vld [vmem:[#allocation99_spill] sm:$0xff]  ;;  %17503 = vst [vmem:[#allocation122_spill] sm:$0xff] %v15144_v45 }
 0x6d8   :  { %5304 = vmatprep.subr.mxu1 %v14860_v41  ;;  %5231 = vmatprep.subr.mxu0 %v14681_v12  ;;  %v15028_v12 = vld [vmem:[#allocation12 + $0xce8] sm:$0xff] }
 0x6d9   :  { %5305 = vmatpush1.msra.mxu1 %v14866_v24  ;;  %5232 = vmatpush1.msra.mxu0 %v14685_v32  ;;  %v17466_v32 = vld [vmem:[#allocation82_spill] sm:$0xff]  ;;  %v15112_v24 = vld [vmem:[#allocation12 + $0xc40] sm:$0xff] }
 0x6da   :  { %5306 = vmatprep.subr.mxu1 %v14872_v11  ;;  %5233 = vmatprep.subr.mxu0 %v14689_v14  ;;  %v5468_v14 = vsel %vm1886_vm2, %v5466_v20, %v5467_v4  ;;  %v15108_v41 = vld [vmem:[#allocation12 + $0xc48] sm:$0xff]  ;;  %17487 = vst [vmem:[#allocation114_spill] sm:$0xff] %v15112_v24  ;;  %v15116_v11 = vld [vmem:[#allocation12 + $0xc38] sm:$0xff]  ;;  %v15136_v4 = vld [vmem:[#allocation12 + $0xc10] sm:$0xff] }
 0x6db   :  { %5307 = vmatpush1.msra.mxu1 %v14878_v42  ;;  %5234 = vmatpush1.msra.mxu0 %v14693_v39  ;;  %v15033_v39 = vld [vmem:[#allocation12 + $0xce0] sm:$0xff]  ;;  %17485 = vst [vmem:[#allocation113_spill] sm:$0xff] %v15108_v41  ;;  %17489 = vst [vmem:[#allocation115_spill] sm:$0xff] %v15116_v11  ;;  %v15120_v42 = vld [vmem:[#allocation12 + $0xc30] sm:$0xff] }
 0x6dc   :  { %5308 = vmatprep.subr.mxu1 %v14884_v48  ;;  %5235 = vmatprep.subr.mxu0 %v14697_v9  ;;  %v15036_v9 = vld [vmem:[#allocation12 + $0xcd8] sm:$0xff]  ;;  %17491 = vst [vmem:[#allocation116_spill] sm:$0xff] %v15120_v42  ;;  %v15124_v48 = vld [vmem:[#allocation12 + $0xc28] sm:$0xff]  ;;  %17499 = vst [vmem:[#allocation120_spill] sm:$0xff] %v15136_v4 }
 0x6dd   :  { %5309 = vmatpush1.msra.mxu1 %v14890_v51  ;;  %5236 = vmatpush1.msra.mxu0 %v14701_v16  ;;  %v17467_v16 = vld [vmem:[#allocation39_spill] sm:$0xff]  ;;  %17493 = vst [vmem:[#allocation117_spill] sm:$0xff] %v15124_v48  ;;  %v17504_v20 = vld [vmem:[#allocation104_spill] sm:$0xff] }
 0x6de   :  { %5310 = vmatprep.subr.mxu1 %v14896_v50  ;;  %5237 = vmatprep.subr.mxu0 %v14705_v62  ;;  %v15040_v62 = vld [vmem:[#allocation12 + $0xcd0] sm:$0xff]  ;;  %v15100_v50 = vld [vmem:[#allocation12 + $0xc58] sm:$0xff] }
 0x6df   :  { %5311 = vmatpush1.msra.mxu1 %v14902_v57  ;;  %5238 = vmatpush1.msra.mxu0 %v14709_v7  ;;  %v17468_v7 = vld [vmem:[#allocation83_spill] sm:$0xff]  ;;  %v15096_v57 = vld [vmem:[#allocation12 + $0xc60] sm:$0xff] }
 0x6e0   :  { %5312 = vmatprep.subr.mxu1 %v14908_v18  ;;  %5239 = vmatprep.subr.mxu0 %v14713_v6  ;;  %v15044_v6 = vld [vmem:[#allocation12 + $0xcc8] sm:$0xff]  ;;  %v15104_v51 = vld [vmem:[#allocation12 + $0xc50] sm:$0xff] }
 0x6e1   :  { %5313 = vmatpush1.msra.mxu1 %v14914_v46  ;;  %5240 = vmatpush1.msra.mxu0 %v14717_v37  ;;  %v17469_v37 = vld [vmem:[#allocation41_spill] sm:$0xff]  ;;  %v15088_v46 = vld [vmem:[#allocation12 + $0xc70] sm:$0xff] }
 0x6e2   :  { %5314 = vmatprep.subr.mxu1 %v14920_v55  ;;  %5241 = vmatprep.subr.mxu0 %v14721_v2  ;;  %v15048_v2 = vld [vmem:[#allocation12 + $0xcc0] sm:$0xff]  ;;  %v15084_v55 = vld [vmem:[#allocation12 + $0xc78] sm:$0xff]  ;;  %v15092_v18 = vld [vmem:[#allocation12 + $0xc68] sm:$0xff] }
 0x6e3   :  { %5315 = vmatpush1.msra.mxu1 %v14926_v56  ;;  %5242 = vmatpush1.msra.mxu0 %v14725_v58  ;;  %v17470_v58 = vld [vmem:[#allocation74_spill] sm:$0xff]  ;;  %v15080_v56 = vld [vmem:[#allocation12 + $0xc80] sm:$0xff] }
 0x6e4   :  { %5316 = vmatprep.subr.mxu1 %v14932_v30  ;;  %5243 = vmatprep.subr.mxu0 %v14729_v23  ;;  %v15052_v23 = vld [vmem:[#allocation12 + $0xcb8] sm:$0xff]  ;;  %v15076_v30 = vld [vmem:[#allocation12 + $0xc88] sm:$0xff] }
 0x6e5   :  { %5317 = vmatpush1.msra.mxu1 %v14938_v3  ;;  %5244 = vmatpush1.msra.mxu0 %v14733_v40  ;;  %v17471_v40 = vld [vmem:[#allocation84_spill] sm:$0xff]  ;;  %v15072_v3 = vld [vmem:[#allocation12 + $0xc90] sm:$0xff] }
 0x6e6   :  { %5318 = vmatprep.subr.mxu1 %v14944_v15  ;;  %5245 = vmatprep.subr.mxu0 %v17462_v49  ;;  %v17475_v15 = vld [vmem:[#allocation87_spill] sm:$0xff] }
 0x6e7   :  { %5319 = vmatpush1.msra.mxu1 %v14948_v33  ;;  %5246 = vmatpush1.msra.mxu0 %v17463_v38  ;;  %v17472_v33 = vld [vmem:[#allocation75_spill] sm:$0xff]  ;;  %v17498_v38 = vld [vmem:[#allocation101_spill] sm:$0xff] }
 0x6e8   :  { %5320 = vmatprep.subr.mxu1 %v14952_v35  ;;  %5247 = vmatprep.subr.mxu0 %v17464_v27  ;;  %v17474_v35 = vld [vmem:[#allocation77_spill] sm:$0xff]  ;;  %v15132_v49 = vld [vmem:[#allocation12 + $0xc18] sm:$0xff] }
 0x6e9   :  { %5321 = vmatpush1.msra.mxu1 %v14955_v34  ;;  %5354 = vmatprep.mubr.f32.mxu1 %v17290_v21  ;;  %v15064_v34 = vld [vmem:[#allocation12 + $0xca0] sm:$0xff]  ;;  %17497 = vst [vmem:[#allocation119_spill] sm:$0xff] %v15132_v49  ;;  %v17502_v27 = vld [vmem:[#allocation103_spill] sm:$0xff] }
 0x6ea   :  { %5248 = vmatpush1.msra.mxu0 %v17465_v44  ;;  %5355 = vmatmul.mubr.f32.vlgmr.msra.gmra.mxu1 %v5215_v22  ;;  %v15140_v22 = vld [vmem:[#allocation12 + $0xc08] sm:$0xff]  ;;  %v15148_v44 = vld [vmem:[#allocation12 + $0xdf8] sm:$0xff] }
 0x6eb   :  { %5475 = vmatprep.subr.mxu1 %v15021_v63  ;;  %5249 = vmatprep.subr.mxu0 %v17466_v32  ;;  %17501 = vst [vmem:[#allocation121_spill] sm:$0xff] %v15140_v22  ;;  %17505 = vst [vmem:[#allocation123_spill] sm:$0xff] %v15148_v44  ;;  %v17506_v32 = vld [vmem:[#allocation107_spill] sm:$0xff] }
 0x6ec   :  { %5476 = vmatpush1.msra.mxu1 %v15025_v52  ;;  %5539 = vmatprep.mubr.f32.mxu1 %v5468_v14  ;;  %v15152_v14 = vld [vmem:[#allocation12 + $0xdf0] sm:$0xff] }
 0x6ed   :  { %5250 = vmatpush1.msra.mxu0 %v17467_v16  ;;  %5477 = vmatprep.subr.mxu1 %v15028_v12  ;;  %17507 = vst [vmem:[#allocation124_spill] sm:$0xff] %v15152_v14  ;;  %v17508_v16 = vld [vmem:[#allocation108_spill] sm:$0xff] }
 0x6ee   :  { %5251 = vmatprep.subr.mxu0 %v17468_v7  ;;  %5478 = vmatpush1.msra.mxu1 %v15033_v39  ;;  %v15156_v7 = vld [vmem:[#allocation12 + $0xde8] sm:$0xff] }
 0x6ef   :  { %5252 = vmatpush2.msra.mxu0 %v17469_v37  ;;  %5479 = vmatprep.subr.mxu1 %v15036_v9  ;;  %17509 = vst [vmem:[#allocation125_spill] sm:$0xff] %v15156_v7  ;;  %v17510_v37 = vld [vmem:[#allocation109_spill] sm:$0xff] }
 0x6f0   :  { %5253 = vmatprep.subr.mxu0 %v17470_v58  ;;  %5480 = vmatpush1.msra.mxu1 %v15040_v62  ;;  %v15160_v58 = vld [vmem:[#allocation12 + $0xde0] sm:$0xff] }
 0x6f1   :  { %5254 = vmatpush2.msra.mxu0 %v17471_v40  ;;  %5481 = vmatprep.subr.mxu1 %v15044_v6  ;;  %17511 = vst [vmem:[#allocation126_spill] sm:$0xff] %v15160_v58  ;;  %v10242_v40 = vld [vmem:[#allocation2 + $0x30] sm:$0xff] }
 0x6f2   :  { %5255 = vmatprep.subr.mxu0 %v17472_v33  ;;  %5482 = vmatpush1.msra.mxu1 %v15048_v2  ;;  %v5213_v33 = vrot.slane %v10242_v40, 1  ;;  %v15231_v40 = vld [vmem:[#allocation12 + $0xd80] sm:$0xff] }
 0x6f3   :  { %5256 = vmatpush2.msra.mxu0 %v17473_v8  ;;  %5483 = vmatprep.subr.mxu1 %v15052_v23  ;;  %v17512_v8 = vld [vmem:[#allocation110_spill] sm:$0xff]  ;;  %17525 = vst [vmem:[#allocation138_spill] sm:$0xff] %v15231_v40 }
 0x6f4   :  { %5257 = vmatprep.subr.mxu0 %v17474_v35  ;;  %5484 = vmatpush1.msra.mxu1 %v15056_v17  ;;  %v15164_v35 = vld [vmem:[#allocation12 + $0xef8] sm:$0xff] }
 0x6f5   :  { %5258 = vmatpush2.msra.mxu0 %v17475_v15  ;;  %5485 = vmatprep.subr.mxu1 %v15060_v59  ;;  %v15166_v15 = vld [vmem:[#allocation12 + $0xdd8] sm:$0xff] }
 0x6f6   :  { %5259 = vmatprep.subr.mxu0 %v17476_v25  ;;  %5486 = vmatpush1.msra.mxu1 %v15064_v34  ;;  %17513 = vst [vmem:[#allocation127_spill] sm:$0xff] %v15166_v15  ;;  %v17514_v25 = vld [vmem:[#allocation112_spill] sm:$0xff] }
 0x6f7   :  { %5260 = vmatpush2.msra.mxu0 %v17477_v60  ;;  %5487 = vmatprep.subr.mxu1 %v15068_v10  ;;  %v15170_v60 = vld [vmem:[#allocation12 + $0xef0] sm:$0xff] }
 0x6f8   :  { %5261 = vmatprep.subr.mxu0 %v17478_v0  ;;  %5488 = vmatpush1.msra.mxu1 %v15072_v3  ;;  %v15172_v0 = vld [vmem:[#allocation12 + $0xdd0] sm:$0xff] }
 0x6f9   :  { %5262 = vmatpush2.msra.mxu0 %v17479_v36  ;;  %5489 = vmatprep.subr.mxu1 %v15076_v30  ;;  %17515 = vst [vmem:[#allocation128_spill] sm:$0xff] %v15172_v0  ;;  %v15175_v36 = vld [vmem:[#allocation12 + $0xee8] sm:$0xff] }
 0x6fa   :  { %5263 = vmatprep.subr.mxu0 %v17480_v47  ;;  %5490 = vmatpush1.msra.mxu1 %v15080_v56  ;;  %v15177_v47 = vld [vmem:[#allocation12 + $0xdc8] sm:$0xff] }
 0x6fb   :  { %5264 = vmatpush2.msra.mxu0 %v17481_v28  ;;  %5491 = vmatprep.subr.mxu1 %v15084_v55  ;;  %17516 = vst [vmem:[#allocation129_spill] sm:$0xff] %v15177_v47  ;;  %v15181_v28 = vld [vmem:[#allocation12 + $0xee0] sm:$0xff] }
 0x6fc   :  { %5265 = vmatprep.subr.mxu0 %v17482_v31  ;;  %5492 = vmatpush1.msra.mxu1 %v15088_v46  ;;  %v15183_v31 = vld [vmem:[#allocation12 + $0xdc0] sm:$0xff] }
 0x6fd   :  { %5266 = vmatpush2.msra.mxu0 %v17483_v61  ;;  %5493 = vmatprep.subr.mxu1 %v15092_v18  ;;  %17517 = vst [vmem:[#allocation130_spill] sm:$0xff] %v15183_v31  ;;  %v15187_v61 = vld [vmem:[#allocation12 + $0xed8] sm:$0xff] }
 0x6fe   :  { %5267 = vmatprep.subr.mxu0 %v17484_v26  ;;  %5494 = vmatpush1.msra.mxu1 %v15096_v57  ;;  %v15189_v26 = vld [vmem:[#allocation12 + $0xdb8] sm:$0xff] }
 0x6ff   :  { %5268 = vmatpush2.msra.mxu0 %v17486_v54  ;;  %5495 = vmatprep.subr.mxu1 %v15100_v50  ;;  %17518 = vst [vmem:[#allocation131_spill] sm:$0xff] %v15189_v26  ;;  %v15193_v54 = vld [vmem:[#allocation12 + $0xed0] sm:$0xff] }
 0x700   :  { %5269 = vmatprep.subr.mxu0 %v17488_v13  ;;  %5496 = vmatpush1.msra.mxu1 %v15104_v51  ;;  %v15195_v13 = vld [vmem:[#allocation12 + $0xdb0] sm:$0xff] }
 0x701   :  { %5270 = vmatpush2.msra.mxu0 %v17490_v1  ;;  %5497 = vmatprep.subr.mxu1 %v15108_v41  ;;  %17519 = vst [vmem:[#allocation132_spill] sm:$0xff] %v15195_v13  ;;  %v15199_v1 = vld [vmem:[#allocation12 + $0xec8] sm:$0xff] }
 0x702   :  { %5271 = vmatprep.subr.mxu0 %v17492_v53  ;;  %5498 = vmatpush1.msra.mxu1 %v15112_v24  ;;  %v15201_v53 = vld [vmem:[#allocation12 + $0xda8] sm:$0xff] }
 0x703   :  { %5272 = vmatpush2.msra.mxu0 %v17494_v5  ;;  %5499 = vmatprep.subr.mxu1 %v15116_v11  ;;  %17520 = vst [vmem:[#allocation133_spill] sm:$0xff] %v15201_v53  ;;  %v15205_v5 = vld [vmem:[#allocation12 + $0xec0] sm:$0xff] }
 0x704   :  { %5273 = vmatprep.subr.mxu0 %v17496_v43  ;;  %5500 = vmatpush1.msra.mxu1 %v15120_v42  ;;  %v15207_v43 = vld [vmem:[#allocation12 + $0xda0] sm:$0xff] }
 0x705   :  { %5274 = vmatpush2.msra.mxu0 %v17498_v38  ;;  %5501 = vmatprep.subr.mxu1 %v15124_v48  ;;  %17521 = vst [vmem:[#allocation134_spill] sm:$0xff] %v15207_v43  ;;  %v15211_v38 = vld [vmem:[#allocation12 + $0xeb8] sm:$0xff]  ;;  %v10243_v48 = vld [vmem:[#allocation2 + $0xb0] sm:$0xff] }
 0x706   :  { %5275 = vmatprep.subr.mxu0 %v17500_v29  ;;  %5502 = vmatpush1.msra.mxu1 %v15128_v19  ;;  %v15213_v29 = vld [vmem:[#allocation12 + $0xd98] sm:$0xff]  ;;  %v5463_v42 = vrot.slane %v10243_v48, 2  ;;  %v10244_v11 = vld [vmem:[#allocation2 + $0x10] sm:$0xff] }
 0x707   :  { %5276 = vmatpush2.msra.mxu0 %v17502_v27  ;;  %5503 = vmatprep.subr.mxu1 %v15132_v49  ;;  %17522 = vst [vmem:[#allocation135_spill] sm:$0xff] %v15213_v29  ;;  %v15217_v27 = vld [vmem:[#allocation12 + $0xeb0] sm:$0xff]  ;;  %v15325_v49 = vld [vmem:[#allocation12 + $0xe20] sm:$0xff]  ;;  %v3879_v19 = vld [vmem:[#allocation2 + $0x28] sm:$0x1]  ;;  %v5469_v24 = vrot.slane %v10244_v11, 2 }
 0x708   :  { %5277 = vmatprep.subr.mxu0 %v17504_v20  ;;  %5504 = vmatpush1.msra.mxu1 %v15136_v4  ;;  %v15219_v20 = vld [vmem:[#allocation12 + $0xd90] sm:$0xff]  ;;  %v15321_v4 = vld [vmem:[#allocation12 + $0xd08] sm:$0xff] }
 0x709   :  { %5278 = vmatpush2.msra.mxu0 %v17506_v32  ;;  %5505 = vmatprep.subr.mxu1 %v15140_v22  ;;  %17523 = vst [vmem:[#allocation136_spill] sm:$0xff] %v15219_v20  ;;  %v15223_v32 = vld [vmem:[#allocation12 + $0xea8] sm:$0xff]  ;;  %17542 = vst [vmem:[#allocation40_spill] sm:$0xff] %v15321_v4 }
 0x70a   :  { %5279 = vmatprep.subr.mxu0 %v17508_v16  ;;  %5506 = vmatpush1.msra.mxu1 %v15144_v45  ;;  %v15225_v16 = vld [vmem:[#allocation12 + $0xd88] sm:$0xff]  ;;  %v15313_v45 = vld [vmem:[#allocation12 + $0xe30] sm:$0xff] }
 0x70b   :  { %5280 = vmatpush2.msra.mxu0 %v17510_v37  ;;  %5507 = vmatprep.subr.mxu1 %v15148_v44  ;;  %17524 = vst [vmem:[#allocation137_spill] sm:$0xff] %v15225_v16  ;;  %v15229_v37 = vld [vmem:[#allocation12 + $0xea0] sm:$0xff]  ;;  %v15307_v44 = vld [vmem:[#allocation12 + $0xe38] sm:$0xff]  ;;  %17539 = vst [vmem:[#allocation53_spill] sm:$0xff] %v15313_v45 }
 0x70c   :  { %5281 = vmatprep.subr.mxu0 %v17512_v8  ;;  %5508 = vmatpush2.msra.mxu1 %v15152_v14  ;;  %v15237_v8 = vld [vmem:[#allocation12 + $0xd78] sm:$0xff]  ;;  %v15303_v14 = vld [vmem:[#allocation12 + $0xd20] sm:$0xff]  ;;  %v15319_v22 = vld [vmem:[#allocation12 + $0xe28] sm:$0xff] }
 0x70d   :  { %5282 = vmatpush2.msra.mxu0 %v17514_v25  ;;  %5509 = vmatprep.subr.mxu1 %v15156_v7  ;;  %17526 = vst [vmem:[#allocation139_spill] sm:$0xff] %v15237_v8  ;;  %v15241_v25 = vld [vmem:[#allocation12 + $0xe90] sm:$0xff]  ;;  %v15297_v7 = vld [vmem:[#allocation12 + $0xd28] sm:$0xff]  ;;  %17537 = vst [vmem:[#allocation51_spill] sm:$0xff] %v15303_v14 }
 0x70e   :  { %5284 = vmatmul.mubr.f32.vlgmr.msra.gmra.mxu0 %v5213_v33  ;;  %5510 = vmatpush2.msra.mxu1 %v15160_v58  ;;  %v15235_v33 = vld [vmem:[#allocation12 + $0xe98] sm:$0xff]  ;;  %v15291_v58 = vld [vmem:[#allocation12 + $0xd30] sm:$0xff]  ;;  %17536 = vst [vmem:[#allocation36_spill] sm:$0xff] %v15297_v7  ;;  %17541 = vst [vmem:[#allocation55_spill] sm:$0xff] %v15319_v22 }
 0x70f   :  { %5546 = vmatprep.subr.mxu0 %v15164_v35  ;;  %5511 = vmatprep.subr.mxu1 %v15166_v15  ;;  %v15285_v15 = vld [vmem:[#allocation12 + $0xd38] sm:$0xff]  ;;  %17535 = vst [vmem:[#allocation49_spill] sm:$0xff] %v15291_v58 }
 0x710   :  { %5547 = vmatpush1.msra.mxu0 %v15170_v60  ;;  %5512 = vmatpush2.msra.mxu1 %v15172_v0  ;;  %v15279_v0 = vld [vmem:[#allocation12 + $0xd40] sm:$0xff]  ;;  %17534 = vst [vmem:[#allocation46_spill] sm:$0xff] %v15285_v15 }
 0x711   :  { %5548 = vmatprep.subr.mxu0 %v15175_v36  ;;  %5513 = vmatprep.subr.mxu1 %v15177_v47  ;;  %v15273_v47 = vld [vmem:[#allocation12 + $0xd48] sm:$0xff]  ;;  %17533 = vst [vmem:[#allocation105_spill] sm:$0xff] %v15279_v0 }
 0x712   :  { %5549 = vmatpush1.msra.mxu0 %v15181_v28  ;;  %5514 = vmatpush2.msra.mxu1 %v15183_v31  ;;  %v15267_v31 = vld [vmem:[#allocation12 + $0xd50] sm:$0xff]  ;;  %17532 = vst [vmem:[#allocation85_spill] sm:$0xff] %v15273_v47 }
 0x713   :  { %5550 = vmatprep.subr.mxu0 %v15187_v61  ;;  %5515 = vmatprep.subr.mxu1 %v15189_v26  ;;  %v15261_v26 = vld [vmem:[#allocation12 + $0xd58] sm:$0xff]  ;;  %17531 = vst [vmem:[#allocation106_spill] sm:$0xff] %v15267_v31 }
 0x714   :  { %5551 = vmatpush1.msra.mxu0 %v15193_v54  ;;  %5516 = vmatpush2.msra.mxu1 %v15195_v13  ;;  %v15255_v13 = vld [vmem:[#allocation12 + $0xd60] sm:$0xff]  ;;  %17530 = vst [vmem:[#allocation143_spill] sm:$0xff] %v15261_v26 }
 0x715   :  { %5552 = vmatprep.subr.mxu0 %v15199_v1  ;;  %5517 = vmatprep.subr.mxu1 %v15201_v53  ;;  %v15249_v53 = vld [vmem:[#allocation12 + $0xd68] sm:$0xff]  ;;  %17529 = vst [vmem:[#allocation142_spill] sm:$0xff] %v15255_v13 }
 0x716   :  { %5553 = vmatpush1.msra.mxu0 %v15205_v5  ;;  %5518 = vmatpush2.msra.mxu1 %v15207_v43  ;;  %v15243_v43 = vld [vmem:[#allocation12 + $0xd70] sm:$0xff]  ;;  %17528 = vst [vmem:[#allocation141_spill] sm:$0xff] %v15249_v53 }
 0x717   :  { %5554 = vmatprep.subr.mxu0 %v15211_v38  ;;  %5519 = vmatprep.subr.mxu1 %v15213_v29  ;;  %17527 = vst [vmem:[#allocation140_spill] sm:$0xff] %v15243_v43  ;;  %v15247_v29 = vld [vmem:[#allocation12 + $0xe88] sm:$0xff] }
 0x718   :  { %5555 = vmatpush1.msra.mxu0 %v15217_v27  ;;  %5520 = vmatpush2.msra.mxu1 %v15219_v20  ;;  %v15253_v20 = vld [vmem:[#allocation12 + $0xe80] sm:$0xff] }
 0x719   :  { %5556 = vmatprep.subr.mxu0 %v15223_v32  ;;  %5521 = vmatprep.subr.mxu1 %v15225_v16  ;;  %v15259_v16 = vld [vmem:[#allocation12 + $0xe78] sm:$0xff] }
 0x71a   :  { %5557 = vmatpush1.msra.mxu0 %v15229_v37  ;;  %5522 = vmatpush2.msra.mxu1 %v15231_v40  ;;  %v15265_v40 = vld [vmem:[#allocation12 + $0xe70] sm:$0xff] }
 0x71b   :  { %5558 = vmatprep.subr.mxu0 %v15235_v33  ;;  %5523 = vmatprep.subr.mxu1 %v15237_v8  ;;  %v15271_v8 = vld [vmem:[#allocation12 + $0xe68] sm:$0xff] }
 0x71c   :  { %5559 = vmatpush1.msra.mxu0 %v15241_v25  ;;  %5524 = vmatpush2.msra.mxu1 %v15243_v43  ;;  %v15277_v43 = vld [vmem:[#allocation12 + $0xe60] sm:$0xff] }
 0x71d   :  { %5560 = vmatprep.subr.mxu0 %v15247_v29  ;;  %5525 = vmatprep.subr.mxu1 %v15249_v53  ;;  %v15283_v53 = vld [vmem:[#allocation12 + $0xe58] sm:$0xff] }
 0x71e   :  { %5561 = vmatpush1.msra.mxu0 %v15253_v20  ;;  %5526 = vmatpush2.msra.mxu1 %v15255_v13  ;;  %v15289_v13 = vld [vmem:[#allocation12 + $0xe50] sm:$0xff] }
 0x71f   :  { %5562 = vmatprep.subr.mxu0 %v15259_v16  ;;  %5527 = vmatprep.subr.mxu1 %v15261_v26  ;;  %v15295_v26 = vld [vmem:[#allocation12 + $0xe48] sm:$0xff] }
 0x720   :  { %5563 = vmatpush1.msra.mxu0 %v15265_v40  ;;  %5528 = vmatpush2.msra.mxu1 %v15267_v31  ;;  %v15301_v31 = vld [vmem:[#allocation12 + $0xe40] sm:$0xff] }
 0x721   :  { %5564 = vmatprep.subr.mxu0 %v15271_v8  ;;  %5529 = vmatprep.subr.mxu1 %v15273_v47  ;;  %v3877_v47 = vld [vmem:[#allocation2 + $0x48] sm:$0x1] }
 0x722   :  { %5565 = vmatpush1.msra.mxu0 %v15277_v43  ;;  %5530 = vmatpush2.msra.mxu1 %v15279_v0  ;;  %v15309_v0 = vld [vmem:[#allocation12 + $0xd18] sm:$0xff] }
 0x723   :  { %5566 = vmatprep.subr.mxu0 %v15283_v53  ;;  %5531 = vmatprep.subr.mxu1 %v15285_v15  ;;  %17538 = vst [vmem:[#allocation43_spill] sm:$0xff] %v15309_v0  ;;  %v15315_v15 = vld [vmem:[#allocation12 + $0xd10] sm:$0xff] }
 0x724   :  { %5567 = vmatpush1.msra.mxu0 %v15289_v13  ;;  %5532 = vmatpush2.msra.mxu1 %v15291_v58  ;;  %17540 = vst [vmem:[#allocation35_spill] sm:$0xff] %v15315_v15  ;;  %v5464_v58 = vrot.slane %v3877_v47, 2  ;;  %v15335_v47 = vld [vmem:[#allocation12 + $0xe10] sm:$0xff] }
 0x725   :  { %5568 = vmatprep.subr.mxu0 %v15295_v26  ;;  %5533 = vmatprep.subr.mxu1 %v15297_v7  ;;  %v15327_v7 = vld [vmem:[#allocation12 + $0xd00] sm:$0xff] }
 0x726   :  { %5569 = vmatpush1.msra.mxu0 %v15301_v31  ;;  %5534 = vmatpush2.msra.mxu1 %v15303_v14  ;;  %v15331_v14 = vld [vmem:[#allocation12 + $0xe18] sm:$0xff]  ;;  %v5465_v48 = vsel %vm1886_vm2, %v5463_v42, %v5464_v58 }
 0x727   :  { %5570 = vmatprep.subr.mxu0 %v15307_v44  ;;  %5535 = vmatprep.subr.mxu1 %v15309_v0  ;;  %v3884_v0 = vld [vmem:[#allocation2 + $0xa8] sm:$0x1]  ;;  %v17568_v58 = vld [vmem:[#allocation136_spill] sm:$0xff] }
 0x728   :  { %5571 = vmatpush1.msra.mxu0 %v15313_v45  ;;  %5536 = vmatpush2.msra.mxu1 %v15315_v15  ;;  %v15340_v45 = vld [vmem:[#allocation12 + $0xe08] sm:$0xff]  ;;  %v5470_v15 = vrot.slane %v3879_v19, 2  ;;  %v5626_v11 = vrot.slane %v3884_v0, 2  ;;  %v17572_v0 = vld [vmem:[#allocation140_spill] sm:$0xff] }
 0x729   :  { %5572 = vmatprep.subr.mxu0 %v15319_v22  ;;  %5537 = vmatprep.subr.mxu1 %v15321_v4  ;;  %v15343_v22 = vld [vmem:[#allocation12 + $0xe00] sm:$0xff] }
 0x72a   :  { %5573 = vmatpush1.msra.mxu0 %v15325_v49  ;;  %5538 = vmatpush2.msra.mxu1 %v15327_v7  ;;  %v10245_v4 = vld [vmem:[#allocation2 + $0x50] sm:$0xff]  ;;  %v5471_v42 = vsel %vm1886_vm2, %v5469_v24, %v5470_v15  ;;  %v17570_v15 = vld [vmem:[#allocation138_spill] sm:$0xff] }
 0x72b   :  { %5574 = vmatprep.subr.mxu0 %v15331_v14  ;;  %5540 = vmatmul.mubr.f32.vlgmr.msra.gmra.mxu1 %v5465_v48  ;;  %v5625_v41 = vrot.slane %v10245_v4, 2  ;;  %v17561_v24 = vld [vmem:[#allocation129_spill] sm:$0xff]  ;;  %v17563_v4 = vld [vmem:[#allocation131_spill] sm:$0xff] }
 0x72c   :  { %5575 = vmatpush1.msra.mxu0 %v15335_v47  ;;  %5705 = vmatprep.subr.mxu1 %v15164_v35  ;;  %v17569_v35 = vld [vmem:[#allocation137_spill] sm:$0xff] }
 0x72d   :  { %5576 = vmatprep.subr.mxu0 %v15340_v45  ;;  %5706 = vmatpush1.msra.mxu1 %v15170_v60  ;;  %v5627_v19 = vsel %vm1886_vm2, %v5625_v41, %v5626_v11  ;;  %v17560_v41 = vld [vmem:[#allocation128_spill] sm:$0xff]  ;;  %v17571_v60 = vld [vmem:[#allocation139_spill] sm:$0xff]  ;;  %v5855_v48 = vld [vmem:[#allocation13 + $0x68] sm:$0xff] }
 0x72e   :  { %5577 = vmatpush1.msra.mxu0 %v15343_v22  ;;  %5610 = vmatprep.mubr.f32.mxu0 %v17290_v21  ;;  %v5870_v11 = vld [vmem:[#allocation13 + $0xe0] sm:$0xff] }
 0x72f   :  { %5707 = vmatprep.subr.mxu1 %v15175_v36  ;;  %5611 = vmatmul.mubr.f32.vlgmr.msra.gmra.mxu0 %v5471_v42  ;;  %v17573_v36 = vld [vmem:[#allocation141_spill] sm:$0xff]  ;;  %v5869_v42 = vld [vmem:[#allocation13 + $0xd8] sm:$0xff] }
 0x730   :  { %5634 = vmatprep.subr.mxu0 %v15021_v63  ;;  %5708 = vmatpush1.msra.mxu1 %v15181_v28  ;;  %v17543_v63 = vld [vmem:[#allocation113_spill] sm:$0xff]  ;;  %v17574_v28 = vld [vmem:[#allocation142_spill] sm:$0xff] }
 0x731   :  { %5635 = vmatpush1.msra.mxu0 %v15025_v52  ;;  %5698 = vmatprep.mubr.f32.mxu0 %v5627_v19  ;;  %v3885_v52 = vld [vmem:[#allocation2 + $0x68] sm:$0x1] }
 0x732   :  { %5709 = vmatprep.subr.mxu1 %v15187_v61  ;;  %5636 = vmatprep.subr.mxu0 %v15028_v12  ;;  %v17544_v12 = vld [vmem:[#allocation53_spill] sm:$0xff]  ;;  %v17576_v61 = vld [vmem:[#allocation106_spill] sm:$0xff]  ;;  %v5853_v19 = vld [vmem:[#allocation13 + $0x58] sm:$0xff] }
 0x733   :  { %5710 = vmatpush1.msra.mxu1 %v15193_v54  ;;  %5637 = vmatpush1.msra.mxu0 %v15033_v39  ;;  %v17545_v39 = vld [vmem:[#allocation114_spill] sm:$0xff]  ;;  %v17578_v54 = vld [vmem:[#allocation105_spill] sm:$0xff] }
 0x734   :  { %5711 = vmatprep.subr.mxu1 %v15199_v1  ;;  %5638 = vmatprep.subr.mxu0 %v15036_v9  ;;  %v17546_v9 = vld [vmem:[#allocation55_spill] sm:$0xff]  ;;  %v3883_v1 = vld [vmem:[#allocation2 + $0xa0] sm:$0x1] }
 0x735   :  { %5712 = vmatpush1.msra.mxu1 %v15205_v5  ;;  %5639 = vmatpush1.msra.mxu0 %v15040_v62  ;;  %v17547_v62 = vld [vmem:[#allocation115_spill] sm:$0xff]  ;;  %v17581_v5 = vld [vmem:[#allocation36_spill] sm:$0xff] }
 0x736   :  { %5713 = vmatprep.subr.mxu1 %v15211_v38  ;;  %5640 = vmatprep.subr.mxu0 %v15044_v6  ;;  %v10246_v6 = vld [vmem:[#allocation2 + $0x70] sm:$0xff] }
 0x737   :  { %5714 = vmatpush1.msra.mxu1 %v15217_v27  ;;  %5641 = vmatpush1.msra.mxu0 %v15048_v2  ;;  %v5628_v2 = vrot.slane %v10246_v6, 2  ;;  %v5623_v27 = vrot.slane %v3883_v1, 2  ;;  %v5865_v6 = vld [vmem:[#allocation13 + $0xb8] sm:$0xff] }
 0x738   :  { %5715 = vmatprep.subr.mxu1 %v15223_v32  ;;  %5642 = vmatprep.subr.mxu0 %v15052_v23  ;;  %v17548_v23 = vld [vmem:[#allocation116_spill] sm:$0xff]  ;;  %v17584_v32 = vld [vmem:[#allocation35_spill] sm:$0xff] }
 0x739   :  { %5716 = vmatpush1.msra.mxu1 %v15229_v37  ;;  %5643 = vmatpush1.msra.mxu0 %v15056_v17  ;;  %v5629_v17 = vrot.slane %v3885_v52, 2  ;;  %v5852_v52 = vld [vmem:[#allocation13 + $0x50] sm:$0xff] }
 0x73a   :  { %5717 = vmatprep.subr.mxu1 %v15235_v33  ;;  %5644 = vmatprep.subr.mxu0 %v15060_v59  ;;  %v17549_v59 = vld [vmem:[#allocation117_spill] sm:$0xff]  ;;  %v5857_v33 = vld [vmem:[#allocation13 + $0x78] sm:$0xff] }
 0x73b   :  { %5718 = vmatpush1.msra.mxu1 %v15241_v25  ;;  %5645 = vmatpush1.msra.mxu0 %v15064_v34  ;;  %v17550_v34 = vld [vmem:[#allocation118_spill] sm:$0xff] }
 0x73c   :  { %5719 = vmatprep.subr.mxu1 %v15247_v29  ;;  %5646 = vmatprep.subr.mxu0 %v15068_v10  ;;  %v17551_v10 = vld [vmem:[#allocation119_spill] sm:$0xff] }
 0x73d   :  { %5720 = vmatpush1.msra.mxu1 %v15253_v20  ;;  %5647 = vmatpush1.msra.mxu0 %v15072_v3  ;;  %v5630_v3 = vsel %vm1886_vm2, %v5628_v2, %v5629_v17  ;;  %v17582_v29 = vld [vmem:[#allocation51_spill] sm:$0xff] }
 0x73e   :  { %5721 = vmatprep.subr.mxu1 %v15259_v16  ;;  %5648 = vmatprep.subr.mxu0 %v15076_v30  ;;  %v17552_v30 = vld [vmem:[#allocation120_spill] sm:$0xff]  ;;  %v17583_v20 = vld [vmem:[#allocation43_spill] sm:$0xff] }
 0x73f   :  { %5722 = vmatpush1.msra.mxu1 %v15265_v40  ;;  %5649 = vmatpush1.msra.mxu0 %v15080_v56  ;;  %v17553_v56 = vld [vmem:[#allocation121_spill] sm:$0xff]  ;;  %v17585_v16 = vld [vmem:[#allocation40_spill] sm:$0xff]  ;;  %v5856_v25 = vld [vmem:[#allocation13 + $0x70] sm:$0xff] }
 0x740   :  { %5723 = vmatprep.subr.mxu1 %v15271_v8  ;;  %5650 = vmatprep.subr.mxu0 %v15084_v55  ;;  %v17554_v55 = vld [vmem:[#allocation122_spill] sm:$0xff]  ;;  %v5873_v40 = vld [vmem:[#allocation13 + $0xf8] sm:$0xff] }
 0x741   :  { %5724 = vmatpush1.msra.mxu1 %v15277_v43  ;;  %5651 = vmatpush1.msra.mxu0 %v15088_v46  ;;  %v17555_v46 = vld [vmem:[#allocation123_spill] sm:$0xff]  ;;  %v10247_v43 = vld [vmem:[#allocation2 + $0x38] sm:$0xff] }
 0x742   :  { %5725 = vmatprep.subr.mxu1 %v15283_v53  ;;  %5652 = vmatprep.subr.mxu0 %v15092_v18  ;;  %v17556_v18 = vld [vmem:[#allocation124_spill] sm:$0xff]  ;;  %v17580_v53 = vld [vmem:[#allocation49_spill] sm:$0xff]  ;;  %v5622_v38 = vrot.slane %v10247_v43, 2  ;;  %v5872_v8 = vld [vmem:[#allocation13 + $0xf0] sm:$0xff] }
 0x743   :  { %5726 = vmatpush1.msra.mxu1 %v15289_v13  ;;  %5653 = vmatpush1.msra.mxu0 %v15096_v57  ;;  %v17557_v57 = vld [vmem:[#allocation125_spill] sm:$0xff]  ;;  %v17579_v13 = vld [vmem:[#allocation46_spill] sm:$0xff]  ;;  %v5849_v2 = vld [vmem:[#allocation13 + $0x38] sm:$0xff] }
 0x744   :  { %5727 = vmatprep.subr.mxu1 %v15295_v26  ;;  %5654 = vmatprep.subr.mxu0 %v15100_v50  ;;  %v17558_v50 = vld [vmem:[#allocation126_spill] sm:$0xff]  ;;  %v17577_v26 = vld [vmem:[#allocation85_spill] sm:$0xff]  ;;  %v5624_v37 = vsel %vm1886_vm2, %v5622_v38, %v5623_v27 }
 0x745   :  { %5728 = vmatpush1.msra.mxu1 %v15301_v31  ;;  %5655 = vmatpush1.msra.mxu0 %v15104_v51  ;;  %v17559_v51 = vld [vmem:[#allocation127_spill] sm:$0xff] }
 0x746   :  { %5729 = vmatprep.subr.mxu1 %v15307_v44  ;;  %5656 = vmatprep.subr.mxu0 %v17543_v63  ;;  %v17566_v44 = vld [vmem:[#allocation134_spill] sm:$0xff]  ;;  %v17575_v31 = vld [vmem:[#allocation143_spill] sm:$0xff] }
 0x747   :  { %5730 = vmatpush1.msra.mxu1 %v17544_v12  ;;  %5657 = vmatpush1.msra.mxu0 %v17545_v39  ;;  %v5868_v63 = vld [vmem:[#allocation13 + $0xd0] sm:$0xff]  ;;  %v5867_v12 = vld [vmem:[#allocation13 + $0xc8] sm:$0xff] }
 0x748   :  { %5731 = vmatprep.subr.mxu1 %v17546_v9  ;;  %5658 = vmatprep.subr.mxu0 %v17547_v62  ;;  %v5851_v39 = vld [vmem:[#allocation13 + $0x48] sm:$0xff]  ;;  %v5866_v9 = vld [vmem:[#allocation13 + $0xc0] sm:$0xff]  ;;  %v5848_v17 = vld [vmem:[#allocation13 + $0x30] sm:$0xff] }
 0x749   :  { %5732 = vmatpush1.msra.mxu1 %v15325_v49  ;;  %5659 = vmatpush1.msra.mxu0 %v17548_v23  ;;  %v17562_v49 = vld [vmem:[#allocation130_spill] sm:$0xff]  ;;  %v5850_v62 = vld [vmem:[#allocation13 + $0x40] sm:$0xff] }
 0x74a   :  { %5733 = vmatprep.subr.mxu1 %v15331_v14  ;;  %5660 = vmatprep.subr.mxu0 %v17549_v59  ;;  %v17567_v14 = vld [vmem:[#allocation135_spill] sm:$0xff]  ;;  %v5863_v59 = vld [vmem:[#allocation13 + $0xa8] sm:$0xff] }
 0x74b   :  { %5734 = vmatpush1.msra.mxu1 %v15335_v47  ;;  %5661 = vmatpush1.msra.mxu0 %v17550_v34  ;;  %v5871_v47 = vld [vmem:[#allocation13 + $0xe8] sm:$0xff]  ;;  %v5864_v23 = vld [vmem:[#allocation13 + $0xb0] sm:$0xff] }
 0x74c   :  { %5735 = vmatprep.subr.mxu1 %v15340_v45  ;;  %5662 = vmatprep.subr.mxu0 %v17551_v10  ;;  %v17565_v45 = vld [vmem:[#allocation133_spill] sm:$0xff] }
 0x74d   :  { %5736 = vmatpush1.msra.mxu1 %v15343_v22  ;;  %5769 = vmatprep.mubr.f32.mxu1 %v17290_v21  ;;  %v17564_v22 = vld [vmem:[#allocation132_spill] sm:$0xff]  ;;  %v5847_v34 = vld [vmem:[#allocation13 + $0x28] sm:$0xff] }
 0x74e   :  { %5663 = vmatpush1.msra.mxu0 %v17552_v30  ;;  %5770 = vmatmul.mubr.f32.vlgmr.msra.gmra.mxu1 %v5630_v3  ;;  %v5862_v10 = vld [vmem:[#allocation13 + $0xa0] sm:$0xff]  ;;  %v5861_v30 = vld [vmem:[#allocation13 + $0x98] sm:$0xff] }
 0x74f   :  { %5664 = vmatprep.subr.mxu0 %v17553_v56  ;;  %8903 = vmatprep.subr.mxu1 %v5873_v40  ;;  %v5846_v3 = vld [vmem:[#allocation13 + $0x20] sm:$0xff]  ;;  %v5845_v56 = vld [vmem:[#allocation13 + $0x18] sm:$0xff] }
 0x750   :  { %5665 = vmatpush1.msra.mxu0 %v17554_v55  ;;  %8904 = vmatpush3.msra.mxu1 %v5857_v33  ;;  %v5860_v55 = vld [vmem:[#allocation13 + $0x90] sm:$0xff] }
 0x751   :  { %5666 = vmatprep.subr.mxu0 %v17555_v46  ;;  %8905 = vmatprep.subr.mxu1 %v5872_v8  ;;  %v5844_v46 = vld [vmem:[#allocation13 + $0x10] sm:$0xff] }
 0x752   :  { %5667 = vmatpush2.msra.mxu0 %v17556_v18  ;;  %8906 = vmatpush3.msra.mxu1 %v5856_v25  ;;  %v5859_v18 = vld [vmem:[#allocation13 + $0x88] sm:$0xff] }
 0x753   :  { %5668 = vmatprep.subr.mxu0 %v17557_v57  ;;  %8907 = vmatprep.subr.mxu1 %v5871_v47  ;;  %v5843_v57 = vld [vmem:[#allocation13 + $0x8] sm:$0xff] }
 0x754   :  { %5669 = vmatpush2.msra.mxu0 %v17558_v50  ;;  %8908 = vmatpush3.msra.mxu1 %v5855_v48  ;;  %v5858_v50 = vld [vmem:[#allocation13 + $0x80] sm:$0xff] }
 0x755   :  { %5670 = vmatprep.subr.mxu0 %v17559_v51  ;;  %8909 = vmatprep.subr.mxu1 %v5870_v11  ;;  %v5842_v51 = vld [vmem:[#allocation13] sm:$0xff] }
 0x756   :  { %5671 = vmatpush2.msra.mxu0 %v17560_v41  ;;  %v4123_v41 = vpop.f32.mrf.mxu0 }
 0x757   :  { %5672 = vmatprep.subr.mxu0 %v17561_v24  ;;  %v4052_v24 = vpop.f32.mrf.mxu1 }
 0x758   :  { %5673 = vmatpush2.msra.mxu0 %v17562_v49  ;;  %v4125_v49 = vpop.f32.mrf.mxu0 }
 0x759   :  { %5674 = vmatprep.subr.mxu0 %v17563_v4  ;;  %v4054_v4 = vpop.f32.mrf.mxu1 }
 0x75a   :  { %5675 = vmatpush2.msra.mxu0 %v17564_v22  ;;  %v4194_v22 = vpop.f32.mrf.mxu0 }
 0x75b   :  { %5676 = vmatprep.subr.mxu0 %v17565_v45  ;;  %v4265_v45 = vpop.f32.mrf.mxu1 }
 0x75c   :  { %5677 = vmatpush2.msra.mxu0 %v17566_v44  ;;  %v4196_v44 = vpop.f32.mrf.mxu0 }
 0x75d   :  { %5678 = vmatprep.subr.mxu0 %v17567_v14  ;;  %v4267_v14 = vpop.f32.mrf.mxu1 }
 0x75e   :  { %5679 = vmatpush2.msra.mxu0 %v17568_v58  ;;  %v4410_v58 = vpop.f32.mrf.mxu0 }
 0x75f   :  { %5680 = vmatprep.subr.mxu0 %v17569_v35  ;;  %v4339_v35 = vpop.f32.mrf.mxu1 }
 0x760   :  { %5681 = vmatpush2.msra.mxu0 %v17570_v15  ;;  %v4412_v15 = vpop.f32.mrf.mxu0 }
 0x761   :  { %5682 = vmatprep.subr.mxu0 %v17571_v60  ;;  %v4341_v60 = vpop.f32.mrf.mxu1 }
 0x762   :  { %5683 = vmatpush2.msra.mxu0 %v17572_v0  ;;  %v4481_v0 = vpop.f32.mrf.mxu0 }
 0x763   :  { %5684 = vmatprep.subr.mxu0 %v17573_v36  ;;  %v4552_v36 = vpop.f32.mrf.mxu1 }
 0x764   :  { %5685 = vmatpush2.msra.mxu0 %v17574_v28  ;;  %v4483_v28 = vpop.f32.mrf.mxu0 }
 0x765   :  { %5686 = vmatprep.subr.mxu0 %v17575_v31  ;;  %v4554_v31 = vpop.f32.mrf.mxu1 }
 0x766   :  { %5687 = vmatpush2.msra.mxu0 %v17576_v61  ;;  %v4800_v61 = vpop.f32.mrf.mxu0 }
 0x767   :  { %5688 = vmatprep.subr.mxu0 %v17577_v26  ;;  %v4729_v26 = vpop.f32.mrf.mxu1 }
 0x768   :  { %5689 = vmatpush2.msra.mxu0 %v17578_v54  ;;  %v4802_v54 = vpop.f32.mrf.mxu0 }
 0x769   :  { %5690 = vmatprep.subr.mxu0 %v17579_v13  ;;  %v4731_v13 = vpop.f32.mrf.mxu1 }
 0x76a   :  { %5691 = vmatpush2.msra.mxu0 %v17580_v53  ;;  %v4882_v1 = vpop.f32.mrf.mxu0 }
 0x76b   :  { %5692 = vmatprep.subr.mxu0 %v17581_v5  ;;  %v4953_v53 = vpop.f32.mrf.mxu1 }
 0x76c   :  { %5693 = vmatpush2.msra.mxu0 %v17582_v29  ;;  %v4884_v5 = vpop.f32.mrf.mxu0 }
 0x76d   :  { %5694 = vmatprep.subr.mxu0 %v17583_v20  ;;  %v4955_v43 = vpop.f32.mrf.mxu1 }
 0x76e   :  { %5695 = vmatpush2.msra.mxu0 %v17584_v32 }
 0x76f   :  { %5696 = vmatprep.subr.mxu0 %v17585_v16 }
 0x770   :  { %5697 = vmatpush2.msra.mxu0 %v15327_v7  ;;  %v5854_v7 = vld [vmem:[#allocation13 + $0x60] sm:$0xff] }
 0x771   :  { %5699 = vmatmul.mubr.f32.vlgmr.msra.gmra.mxu0 %v5624_v37  ;;  %8938 = vmatprep.subr.mxu0 %v5873_v40  ;;  %v4126_v40 = vadd.f32 %v4125_v49, %v4054_v4  ;;  %v4956_v49 = vadd.f32 %v4955_v43, %v4884_v5 }
 0x772   :  { %8939 = vmatpush3.msra.mxu0 %v5857_v33  ;;  %8910 = vmatpush3.msra.mxu1 %v5854_v7  ;;  %v4124_v33 = vadd.f32 %v4123_v41, %v4052_v24 }
 0x773   :  { %8940 = vmatprep.subr.mxu0 %v5872_v8  ;;  %8911 = vmatprep.subr.mxu1 %v5869_v42 }
 0x774   :  { %8941 = vmatpush3.msra.mxu0 %v5856_v25  ;;  %8912 = vmatpush3.msra.mxu1 %v5853_v19 }
 0x775   :  { %8942 = vmatprep.subr.mxu0 %v5871_v47  ;;  %8913 = vmatprep.subr.mxu1 %v5868_v63  ;;  %v4197_v47 = vadd.f32 %v4196_v44, %v4126_v40 }
 0x776   :  { %8943 = vmatpush3.msra.mxu0 %v5855_v48  ;;  %8914 = vmatpush3.msra.mxu1 %v5852_v52  ;;  %v4195_v48 = vadd.f32 %v4194_v22, %v4124_v33 }
 0x777   :  { %8944 = vmatprep.subr.mxu0 %v5870_v11  ;;  %8915 = vmatprep.subr.mxu1 %v5867_v12 }
 0x778   :  { %8945 = vmatpush3.msra.mxu0 %v5854_v7  ;;  %8916 = vmatpush3.msra.mxu1 %v5851_v39  ;;  %v4803_v7 = vadd.f32 %v4802_v54, %v4731_v13 }
 0x779   :  { %8946 = vmatprep.subr.mxu0 %v5869_v42  ;;  %8917 = vmatprep.subr.mxu1 %v5866_v9  ;;  %v4801_v42 = vadd.f32 %v4800_v61, %v4729_v26 }
 0x77a   :  { %8947 = vmatpush3.msra.mxu0 %v5853_v19  ;;  %8918 = vmatpush3.msra.mxu1 %v5850_v62 }
 0x77b   :  { %8948 = vmatprep.subr.mxu0 %v5868_v63  ;;  %8919 = vmatprep.subr.mxu1 %v5865_v6  ;;  %v4268_v63 = vadd.f32 %v4267_v14, %v4197_v47 }
 0x77c   :  { %8949 = vmatpush3.msra.mxu0 %v5852_v52  ;;  %8920 = vmatpush3.msra.mxu1 %v5849_v2 }
 0x77d   :  { %8950 = vmatprep.subr.mxu0 %v5867_v12  ;;  %8921 = vmatprep.subr.mxu1 %v5864_v23  ;;  %v4266_v12 = vadd.f32 %v4265_v45, %v4195_v48 }
 0x77e   :  { %8951 = vmatpush3.msra.mxu0 %v5851_v39  ;;  %8922 = vmatpush3.msra.mxu1 %v5848_v17 }
 0x77f   :  { %8952 = vmatprep.subr.mxu0 %v5866_v9  ;;  %8923 = vmatprep.subr.mxu1 %v5863_v59 }
 0x780   :  { %8953 = vmatpush3.msra.mxu0 %v5850_v62  ;;  %8924 = vmatpush3.msra.mxu1 %v5847_v34  ;;  %v4806_v62 = vadd.f32 %v4803_v7, %v4268_v63 }
 0x781   :  { %8954 = vmatprep.subr.mxu0 %v5865_v6  ;;  %8925 = vmatprep.subr.mxu1 %v5862_v10 }
 0x782   :  { %8955 = vmatpush3.msra.mxu0 %v5849_v2  ;;  %8926 = vmatpush3.msra.mxu1 %v5846_v3  ;;  %v4805_v2 = vadd.f32 %v4801_v42, %v4266_v12 }
 0x783   :  { %8956 = vmatprep.subr.mxu0 %v5864_v23  ;;  %8927 = vmatprep.subr.mxu1 %v5861_v30 }
 0x784   :  { %8957 = vmatpush3.msra.mxu0 %v5848_v17  ;;  %8928 = vmatpush3.msra.mxu1 %v5845_v56 }
 0x785   :  { %8958 = vmatprep.subr.mxu0 %v5863_v59  ;;  %8929 = vmatprep.subr.mxu1 %v5860_v55 }
 0x786   :  { %8959 = vmatpush3.msra.mxu0 %v5847_v34  ;;  %8930 = vmatpush3.msra.mxu1 %v5844_v46 }
 0x787   :  { %8960 = vmatprep.subr.mxu0 %v5862_v10  ;;  %8931 = vmatprep.subr.mxu1 %v5859_v18  ;;  %v5132_v29 = vpop.f32.mrf.mxu1 }
 0x788   :  { %8961 = vmatpush3.msra.mxu0 %v5846_v3  ;;  %8932 = vmatpush3.msra.mxu1 %v5843_v57  ;;  %v4411_v3 = vadd.f32 %v4410_v58, %v4339_v35 }
 0x789   :  { %8962 = vmatprep.subr.mxu0 %v5861_v30  ;;  %8933 = vmatprep.subr.mxu1 %v5858_v50  ;;  %v5134_v20 = vpop.f32.mrf.mxu1 }
 0x78a   :  { %8963 = vmatpush3.msra.mxu0 %v5845_v56  ;;  %8934 = vmatpush3.msra.mxu1 %v5842_v51  ;;  %v4482_v30 = vadd.f32 %v4481_v0, %v4411_v3 }
 0x78b   :  { %8964 = vmatprep.subr.mxu0 %v5860_v55  ;;  %v5203_v38 = vpop.f32.mrf.mxu0  ;;  %v4413_v55 = vadd.f32 %v4412_v15, %v4341_v60 }
 0x78c   :  { %8965 = vmatpush3.msra.mxu0 %v5844_v46  ;;  %v5204_v39 = vadd.f32 %v5203_v38, %v5132_v29  ;;  %v4553_v41 = vadd.f32 %v4552_v36, %v4482_v30 }
 0x78d   :  { %8966 = vmatprep.subr.mxu0 %v5859_v18  ;;  %v5205_v27 = vpop.f32.mrf.mxu0 }
 0x78e   :  { %8967 = vmatpush3.msra.mxu0 %v5843_v57  ;;  %v5206_v52 = vadd.f32 %v5205_v27, %v5134_v20  ;;  %v5208_v59 = vadd.f32 %v5204_v39, %v4805_v2  ;;  %v4484_v57 = vadd.f32 %v4483_v28, %v4413_v55 }
 0x78f   :  { %8968 = vmatprep.subr.mxu0 %v5858_v50  ;;  %v4954_v50 = vadd.f32 %v4953_v53, %v4882_v1 }
 0x790   :  { %8969 = vmatpush3.msra.mxu0 %v5842_v51  ;;  %v5209_v17 = vadd.f32 %v5206_v52, %v4806_v62  ;;  %v4555_v58 = vadd.f32 %v4554_v31, %v4484_v57 }
 0x791   :  { %v4958_v35 = vadd.f32 %v4954_v50, %v4553_v41 }
 0x792   :  { %v4959_v61 = vadd.f32 %v4956_v49, %v4555_v58 }
 0x7aa   :  { %v5356_v16 = vpop.f32.mrf.mxu1 }
 0x7ac   :  { %v5358_v8 = vpop.f32.mrf.mxu1 }
 0x7ce   :  { %v5285_v32 = vpop.f32.mrf.mxu0 }
 0x7cf   :  { %v5357_v4 = vadd.f32 %v5356_v16, %v5285_v32 }
 0x7d0   :  { %v5287_v37 = vpop.f32.mrf.mxu0 }
 0x7d1   :  { %v5359_v15 = vadd.f32 %v5358_v8, %v5287_v37  ;;  %v5361_v26 = vadd.f32 %v5357_v4, %v4958_v35 }
 0x7d3   :  { %v5362_v5 = vadd.f32 %v5359_v15, %v4959_v61 }
 0x7eb   :  { %v5541_v11 = vpop.f32.mrf.mxu1 }
 0x7ed   :  { %v5543_v9 = vpop.f32.mrf.mxu1 }
 0x7ef   :  { %v5612_v25 = vpop.f32.mrf.mxu0 }
 0x7f0   :  { %v5613_v23 = vadd.f32 %v5612_v25, %v5541_v11 }
 0x7f1   :  { %v5614_v19 = vpop.f32.mrf.mxu0 }
 0x7f2   :  { %v5615_v6 = vadd.f32 %v5614_v19, %v5543_v9  ;;  %v15452_v10 = vadd.f32 %v5613_v23, %v5208_v59 }
 0x7f4   :  { %v15450_v34 = vadd.f32 %v5615_v6, %v5209_v17  ;;  %v5792_v46 = vmul.f32 %v15452_v10, %v15452_v10  ;;  %v5778_v51 = vsel %vm1058_vm1, %v15452_v10, 0.0 }
 0x7f5   :  { %v5779_v44 = vrot.slane %v5778_v51, 4 }
 0x7f6   :  { %v5793_v56 = vmul.f32 %v15450_v34, %v15450_v34  ;;  %v5785_v18 = vsel %vm1058_vm1, %v15450_v34, 0.0  ;;  %v5794_v22 = vsel %vm1058_vm1, %v5792_v46, 0.0 }
 0x7f7   :  { %v5786_v45 = vrot.slane %v5785_v18, 4  ;;  %v5795_v0 = vrot.slane %v5794_v22, 4  ;;  %v5780_v36 = vadd.f32 %v5779_v44, %v5778_v51 }
 0x7f8   :  { %v5801_v24 = vsel %vm1058_vm1, %v5793_v56, 0.0 }
 0x7f9   :  { %v5802_v60 = vrot.slane %v5801_v24, 4  ;;  %v5787_v54 = vadd.f32 %v5786_v45, %v5785_v18  ;;  %v5796_v27 = vadd.f32 %v5795_v0, %v5794_v22  ;;  %v5781_v37 = vrot.slane %v5780_v36, 2 }
 0x7fb   :  { %v5803_v29 = vadd.f32 %v5802_v60, %v5801_v24  ;;  %v5788_v16 = vrot.slane %v5787_v54, 2  ;;  %v5797_v42 = vrot.slane %v5796_v27, 2  ;;  %v5782_v62 = vadd.f32 %v5781_v37, %v5780_v36  ;;  %v6030_v36 = vld [vmem:[#allocation15 + $0x28] sm:$0xff] }
 0x7fd   :  { %v5804_v47 = vrot.slane %v5803_v29, 2  ;;  %v5789_v63 = vadd.f32 %v5788_v16, %v5787_v54  ;;  %v5798_v30 = vadd.f32 %v5797_v42, %v5796_v27  ;;  %v5783_v57 = vrot.slane %v5782_v62, 1  ;;  %v6032_v54 = vld [vmem:[#allocation15 + $0x38] sm:$0xff] }
 0x7fe   :  { %6061 = vmatprep.subr.mxu1 %v6032_v54  ;;  %6135 = vmatprep.subr.mxu0 %v6032_v54  ;;  %v15588_v54 = vld [vmem:[%s16578_s15 + $0xe0] sm:$0xff] }
 0x7ff   :  { %v5805_v6 = vadd.f32 %v5804_v47, %v5803_v29  ;;  %v5790_v3 = vrot.slane %v5789_v63, 1  ;;  %v5799_v4 = vrot.slane %v5798_v30, 1  ;;  %v6025_v29 = vld [vmem:[#allocation15] sm:$0xff] }
 0x801   :  { %v5806_v51 = vrot.slane %v5805_v6, 1  ;;  %v5791_v22 = vadd.f32 %v5790_v3, %v5789_v63 }
 0x803   :  { %v5807_v15 = vadd.f32 %v5806_v51, %v5805_v6 }
 0x80e   :  { %v5771_v14 = vpop.f32.mrf.mxu1 }
 0x810   :  { %v5773_v1 = vpop.f32.mrf.mxu1 }
 0x831   :  { %v5700_v28 = vpop.f32.mrf.mxu0 }
 0x832   :  { %v5772_v13 = vadd.f32 %v5771_v14, %v5700_v28  ;;  %v5784_v14 = vadd.f32 %v5783_v57, %v5782_v62  ;;  %v5800_v28 = vadd.f32 %v5799_v4, %v5798_v30  ;;  %v15511_v4 = vld [vmem:[%s16578_s15 + $0x1f8] sm:$0xff] }
 0x833   :  { %v5702_v53 = vpop.f32.mrf.mxu0 }
 0x834   :  { %v15464_v43 = vadd.f32 %v5772_v13, %v5361_v26  ;;  %v5774_v38 = vadd.f32 %v5773_v1, %v5702_v53  ;;  %v6031_v13 = vld [vmem:[#allocation15 + $0x30] sm:$0xff]  ;;  %v6029_v1 = vld [vmem:[#allocation15 + $0x20] sm:$0xff]  ;;  %v6028_v53 = vld [vmem:[#allocation15 + $0x18] sm:$0xff] }
 0x836   :  { %v5808_v31 = vsel %vm1058_vm1, %v15464_v43, 0.0  ;;  %v5822_v20 = vmul.f32 %v15464_v43, %v15464_v43  ;;  %v15470_v32 = vadd.f32 %v5774_v38, %v5362_v5  ;;  %v6027_v5 = vld [vmem:[#allocation15 + $0x10] sm:$0xff]  ;;  %v6026_v38 = vld [vmem:[#allocation15 + $0x8] sm:$0xff] }
 0x837   :  { %v5809_v40 = vrot.slane %v5808_v31, 4 }
 0x838   :  { %v5824_v33 = vsel %vm1058_vm1, %v5822_v20, 0.0  ;;  %v5815_v8 = vsel %vm1058_vm1, %v15470_v32, 0.0  ;;  %v5823_v25 = vmul.f32 %v15470_v32, %v15470_v32 }
 0x839   :  { %v5810_v48 = vadd.f32 %v5809_v40, %v5808_v31  ;;  %v5825_v11 = vrot.slane %v5824_v33, 4  ;;  %v5816_v7 = vrot.slane %v5815_v8, 4 }
 0x83a   :  { %v5831_v19 = vsel %vm1058_vm1, %v5823_v25, 0.0 }
 0x83b   :  { %v5811_v52 = vrot.slane %v5810_v48, 2  ;;  %v5826_v12 = vadd.f32 %v5825_v11, %v5824_v33  ;;  %v5817_v39 = vadd.f32 %v5816_v7, %v5815_v8  ;;  %v5832_v9 = vrot.slane %v5831_v19, 4  ;;  %v6018_v11 = vld [vmem:[%s16574_s11] sm:$0x1] }
 0x83d   :  { %v5812_v2 = vadd.f32 %v5811_v52, %v5810_v48  ;;  %v5827_v23 = vrot.slane %v5826_v12, 2  ;;  %v5818_v17 = vrot.slane %v5817_v39, 2  ;;  %v5833_v59 = vadd.f32 %v5832_v9, %v5831_v19  ;;  %v6022_v19 = vld [vmem:[%s16575_s12] sm:$0x1] }
 0x83f   :  { %v5819_v56 = vadd.f32 %v5818_v17, %v5817_v39  ;;  %v5813_v55 = vrot.slane %v5812_v2, 1  ;;  %v5834_v46 = vrot.slane %v5833_v59, 2  ;;  %v5828_v18 = vadd.f32 %v5827_v23, %v5826_v12  ;;  %v17586_v39 = vld [vmem:[#allocation37_spill] sm:$0xff] }
 0x841   :  { %v5820_v50 = vrot.slane %v5819_v56, 1  ;;  %v5835_v41 = vadd.f32 %v5834_v46, %v5833_v59  ;;  %v5829_v24 = vrot.slane %v5828_v18, 1  ;;  %v5814_v49 = vadd.f32 %v5813_v55, %v5812_v2 }
 0x843   :  { %v5821_v45 = vadd.f32 %v5820_v50, %v5819_v56  ;;  %v5836_v44 = vrot.slane %v5835_v41, 1  ;;  %v5830_v58 = vadd.f32 %v5829_v24, %v5828_v18  ;;  %v5838_v0 = vadd.f32 %v5814_v49, %v5784_v14  ;;  %v6210_v24 = vld [vmem:[#allocation16] sm:$0xf]  ;;  %v6297_v49 = vld [vmem:[#allocation18] sm:$0xf] }
 0x844   :  { %v15535_v14 = vld [vmem:[%s16578_s15 + $0x1f0] sm:$0xff] }
 0x845   :  { %v5839_v35 = vadd.f32 %v5821_v45, %v5791_v22  ;;  %v5837_v60 = vadd.f32 %v5836_v44, %v5835_v41  ;;  %v5840_v26 = vadd.f32 %v5830_v58, %v5800_v28  ;;  %v15516_v22 = vld [vmem:[%s16578_s15 + $0xf8] sm:$0xff]  ;;  %v15540_v58 = vld [vmem:[%s16578_s15 + $0xf0] sm:$0xff]  ;;  %v15571_v28 = vld [vmem:[%s16578_s15 + $0x168] sm:$0xff] }
 0x846   :  { %v15523_v45 = vld [vmem:[%s16578_s15 + $0x178] sm:$0xff] }
 0x847   :  { %5938 = vmatprep.mubr.f32.mxu1 %v5839_v35  ;;  %v5841_v61 = vadd.f32 %v5837_v60, %v5807_v15  ;;  %v15528_v44 = vld [vmem:[%s16578_s15 + $0x78] sm:$0xff]  ;;  %v15547_v35 = vld [vmem:[%s16578_s15 + $0x170] sm:$0xff]  ;;  %v15559_v60 = vld [vmem:[%s16578_s15 + $0x1e8] sm:$0xff] }
 0x848   :  { %5939 = vmatmul.mubr.f32.vlgmr.msra.gmra.mxu1 %v5838_v0  ;;  %v15552_v15 = vld [vmem:[%s16578_s15 + $0x70] sm:$0xff]  ;;  %v15564_v0 = vld [vmem:[%s16578_s15 + $0xe8] sm:$0xff] }
 0x849   :  { %6008 = vmatprep.mubr.f32.mxu0 %v5841_v61  ;;  %6101 = vmatprep.mubr.f32.mxu1 %v17290_v21  ;;  %v15576_v61 = vld [vmem:[%s16578_s15 + $0x68] sm:$0xff] }
 0x84a   :  { %6009 = vmatmul.mubr.f32.vlgmr.msra.gmra.mxu0 %v5840_v26  ;;  %6062 = vmatpush1.msra.mxu1 %v6031_v13  ;;  %v15583_v26 = vld [vmem:[%s16578_s15 + $0x1e0] sm:$0xff] }
 0x84b   :  { %6175 = vmatprep.mubr.f32.mxu0 %v17290_v21  ;;  %6136 = vmatpush1.msra.mxu0 %v6031_v13  ;;  %v15595_v13 = vld [vmem:[%s16578_s15 + $0x160] sm:$0xff] }
 0x84c   :  { %6063 = vmatprep.subr.mxu1 %v6030_v36  ;;  %6137 = vmatprep.subr.mxu0 %v6030_v36  ;;  %v15600_v36 = vld [vmem:[%s16578_s15 + $0x60] sm:$0xff] }
 0x84d   :  { %6064 = vmatpush1.msra.mxu1 %v6029_v1  ;;  %6138 = vmatpush1.msra.mxu0 %v6029_v1  ;;  %v15607_v1 = vld [vmem:[%s16578_s15 + $0x1d8] sm:$0xff] }
 0x84e   :  { %6065 = vmatprep.subr.mxu1 %v6028_v53  ;;  %6139 = vmatprep.subr.mxu0 %v6028_v53  ;;  %v15612_v53 = vld [vmem:[%s16578_s15 + $0xd8] sm:$0xff] }
 0x84f   :  { %6066 = vmatpush1.msra.mxu1 %v6027_v5  ;;  %6140 = vmatpush1.msra.mxu0 %v6027_v5  ;;  %v15619_v5 = vld [vmem:[%s16578_s15 + $0x158] sm:$0xff] }
 0x850   :  { %6067 = vmatprep.subr.mxu1 %v6026_v38  ;;  %6141 = vmatprep.subr.mxu0 %v6026_v38  ;;  %v15624_v38 = vld [vmem:[%s16578_s15 + $0x58] sm:$0xff] }
 0x851   :  { %6068 = vmatpush1.msra.mxu1 %v6025_v29  ;;  %6142 = vmatpush1.msra.mxu0 %v6025_v29  ;;  %v15631_v29 = vld [vmem:[%s16578_s15 + $0x1d0] sm:$0xff] }
 0x908   :  { %v8935_v27 = vpop.f32.mrf.mxu1 }
 0x90a   :  { %v8936_v31 = vpop.f32.mrf.mxu1  ;;  %v8970_v20 = vpop.f32.mrf.mxu0 }
 0x90b   :  { %v8937_v16 = vadd.f32 %v8936_v31, %v8935_v27  ;;  %v15636_v27 = vld [vmem:[%s16578_s15 + $0xd0] sm:$0xff] }
 0x90c   :  { %v8971_v37 = vpop.f32.mrf.mxu0  ;;  %v15643_v31 = vld [vmem:[%s16578_s15 + $0x150] sm:$0xff] }
 0x90d   :  { %v6014_v40 = vmul.f32 0.010204081, %v8937_v16  ;;  %v8972_v33 = vadd.f32 %v8971_v37, %v8970_v20  ;;  %v15648_v20 = vld [vmem:[%s16578_s15 + $0x50] sm:$0xff]  ;;  %v15655_v16 = vld [vmem:[%s16578_s15 + $0x1c8] sm:$0xff] }
 0x90e   :  { %v15660_v37 = vld [vmem:[%s16578_s15 + $0xc8] sm:$0xff] }
 0x90f   :  { %v6016_v8 = vmul.f32 %v6014_v40, %v6014_v40  ;;  %v6015_v25 = vmul.f32 0.010204081, %v8972_v33  ;;  %v15672_v33 = vld [vmem:[%s16578_s15 + $0x48] sm:$0xff] }
 0x911   :  { %v6017_v47 = vsub.f32 %v6015_v25, %v6016_v8  ;;  %v15679_v8 = vld [vmem:[%s16578_s15 + $0x1c0] sm:$0xff] }
 0x912   :  { %v15684_v25 = vld [vmem:[%s16578_s15 + $0xc0] sm:$0xff] }
 0x913   :  { %v6019_v48 = vadd.f32 1e-05, %v6017_v47  ;;  %v15691_v47 = vld [vmem:[%s16578_s15 + $0x140] sm:$0xff] }
 0x915   :  { %10222 = vrsqrt.f32 %v6019_v48  ;;  %v15696_v48 = vld [vmem:[%s16578_s15 + $0x40] sm:$0xff] }
 0x922   :  { %v10223_v7 = vpop.eup %10222 }
 0x923   :  { %v6021_v42 = vmul.f32 %v10223_v7, %v6018_v11  ;;  %v15703_v11 = vld [vmem:[%s16578_s15 + $0x1b8] sm:$0xff] }
 0x924   :  { %v15708_v7 = vld [vmem:[%s16578_s15 + $0xb8] sm:$0xff] }
 0x925   :  { %8435 = vmatmul.mubr.msk.f32.vlgmr.msra.gmra.mxu1 %vm6033_vm6, %v6021_v42  ;;  %v6023_v63 = vmul.f32 %v6021_v42, %v6014_v40  ;;  %v15667_v40 = vld [vmem:[%s16578_s15 + $0x148] sm:$0xff]  ;;  %v15715_v42 = vld [vmem:[%s16578_s15 + $0x138] sm:$0xff] }
 0x926   :  { %6285 = vmatprep.mubr.f32.mxu1 %v17290_v21 }
 0x927   :  { %v6024_v52 = vsub.f32 %v6022_v19, %v6023_v63  ;;  %v15720_v19 = vld [vmem:[%s16578_s15 + $0x38] sm:$0xff]  ;;  %v15727_v63 = vld [vmem:[%s16578_s15 + $0x1b0] sm:$0xff] }
 0x929   :  { %8436 = vmatmul.mubr.msk.f32.vlgmr.msra.gmra.mxu0 %vm6033_vm6, %v6024_v52  ;;  %v15732_v52 = vld [vmem:[%s16578_s15 + $0xb0] sm:$0xff] }
 0x92a   :  { %6365 = vmatprep.mubr.f32.mxu0 %v17290_v21 }
 0x9e5   :  { %v6103_v12 = vpop.f32.mrf.mxu1 }
 0x9e6   :  { %v6185_v9 = vrot.slane %v6103_v12, %v17586_v39  ;;  %v15739_v12 = vld [vmem:[%s16578_s15 + $0x130] sm:$0xff] }
 0x9e7   :  { %v6105_v62 = vpop.f32.mrf.mxu1 }
 0x9e8   :  { %v6189_v6 = vrot.slane %v6105_v62, %v17586_v39  ;;  %v6190_v17 = vmul.f32 %v6185_v9, %v15452_v10  ;;  %v6204_v46 = vmul.f32 %v6185_v9, %v15464_v43  ;;  %v6378_v43 = vld [vmem:[#allocation16] sm:$0xf]  ;;  %v15751_v62 = vld [vmem:[%s16578_s15 + $0x1a8] sm:$0xff] }
 0x9e9   :  { %v6177_v2 = vpop.f32.mrf.mxu0  ;;  %v15744_v9 = vld [vmem:[%s16578_s15 + $0x30] sm:$0xff] }
 0x9ea   :  { %v6195_v23 = vrot.slane %v6177_v2, %v17586_v39  ;;  %v6191_v3 = vmul.f32 %v6189_v6, %v15450_v34  ;;  %v6205_v56 = vmul.f32 %v6189_v6, %v15470_v32  ;;  %v6465_v32 = vld [vmem:[#allocation18] sm:$0xf]  ;;  %v15756_v6 = vld [vmem:[%s16578_s15 + $0xa8] sm:$0xff] }
 0x9eb   :  { %v6179_v59 = vpop.f32.mrf.mxu0  ;;  %v15763_v2 = vld [vmem:[%s16578_s15 + $0x128] sm:$0xff] }
 0x9ec   :  { %v6199_v30 = vrot.slane %v6179_v59, %v17586_v39  ;;  %v6200_v55 = vadd.f32 %v6195_v23, %v6190_v17  ;;  %v6206_v50 = vadd.f32 %v6204_v46, %v6195_v23  ;;  %v15768_v23 = vld [vmem:[%s16578_s15 + $0x28] sm:$0xff]  ;;  %v15775_v17 = vld [vmem:[%s16578_s15 + $0x1a0] sm:$0xff]  ;;  %v15811_v46 = vld [vmem:[%s16578_s15 + $0x118] sm:$0xff] }
 0x9ed   :  { %v15780_v59 = vld [vmem:[%s16578_s15 + $0xa0] sm:$0xff] }
 0x9ee   :  { %v6201_v18 = vadd.f32 %v6199_v30, %v6191_v3  ;;  %v6207_v57 = vadd.f32 %v6205_v56, %v6199_v30  ;;  %v6202_v41 = vmax.f32 %v6200_v55, 0.0  ;;  %v6208_v10 = vmax.f32 %v6206_v50, 0.0  ;;  %v15787_v3 = vld [vmem:[%s16578_s15 + $0x120] sm:$0xff]  ;;  %v15799_v56 = vld [vmem:[%s16578_s15 + $0x198] sm:$0xff]  ;;  %v15828_v50 = vld [vmem:[%s16578_s15 + $0x90] sm:$0xff] }
 0x9ef   :  { %v15792_v30 = vld [vmem:[%s16578_s15 + $0x20] sm:$0xff]  ;;  %v15804_v55 = vld [vmem:[%s16578_s15 + $0x98] sm:$0xff] }
 0x9f0   :  { %v6203_v51 = vmax.f32 %v6201_v18, 0.0  ;;  %v6209_v34 = vmax.f32 %v6207_v57, 0.0  ;;  %v15816_v18 = vld [vmem:[%s16578_s15 + $0x18] sm:$0xff]  ;;  %v15823_v57 = vld [vmem:[%s16578_s15 + $0x190] sm:$0xff]  ;;  %v15887_v39 = vld [vmem:[%s16578_s15 + $0x100] sm:$0xff] }
 0x9f2   :  { %8437 = vmatprep.subr.msk.mxu1 %vm1058_vm1, %v6203_v51  ;;  %8440 = vmatprep.subr.msk.mxu0 %vm1058_vm1, %v6203_v51  ;;  %v15839_v51 = vld [vmem:[%s16578_s15 + $0x110] sm:$0xff] }
 0x9f3   :  { %8438 = vmatpush1.msk.msra.mxu1 %vm1058_vm1, %v6202_v41  ;;  %8441 = vmatpush1.msk.msra.mxu0 %vm1058_vm1, %v6202_v41  ;;  %17587 = vst [vmem:[#allocation56_spill] sm:$0xff] %v15839_v51  ;;  %v15844_v41 = vld [vmem:[%s16578_s15 + $0x10] sm:$0xff] }
 0x9f4   :  { %8439 = vmatmul.mubr.msk.f32.vlgmr.msra.gmra.mxu1 %vm6211_vm7, %v6210_v24  ;;  %8442 = vmatmul.mubr.msk.f32.vlgmr.msra.gmra.mxu0 %vm6211_vm7, %v6297_v49  ;;  %17588 = vst [vmem:[#allocation45_spill] sm:$0xff] %v15844_v41  ;;  %v15849_v24 = vld [vmem:[%s16578_s15 + $0x188] sm:$0xff] }
 0x9f5   :  { %8443 = vmatprep.subr.msk.mxu1 %vm1058_vm1, %v6209_v34  ;;  %8446 = vmatprep.subr.msk.mxu0 %vm1058_vm1, %v6209_v34  ;;  %17589 = vst [vmem:[#allocation57_spill] sm:$0xff] %v15849_v24  ;;  %v15856_v49 = vld [vmem:[%s16578_s15 + $0x88] sm:$0xff] }
 0x9f6   :  { %8444 = vmatpush1.msk.msra.mxu1 %vm1058_vm1, %v6208_v10  ;;  %8447 = vmatpush1.msk.msra.mxu0 %vm1058_vm1, %v6208_v10  ;;  %17590 = vst [vmem:[#allocation42_spill] sm:$0xff] %v15856_v49  ;;  %v15863_v34 = vld [vmem:[%s16578_s15 + $0x108] sm:$0xff] }
 0x9f7   :  { %6452 = vmatprep.mubr.f32.mxu1 %v17290_v21  ;;  %6533 = vmatprep.mubr.f32.mxu0 %v17290_v21  ;;  %17591 = vst [vmem:[#allocation59_spill] sm:$0xff] %v15863_v34  ;;  %v15868_v10 = vld [vmem:[%s16578_s15 + $0x8] sm:$0xff]  ;;  %v15892_v21 = vld [vmem:[%s16578_s15] sm:$0xff] }
 0x9f8   :  { %8445 = vmatmul.mubr.msk.f32.vlgmr.msra.gmra.mxu1 %vm6211_vm7, %v6378_v43  ;;  %8448 = vmatmul.mubr.msk.f32.vlgmr.msra.gmra.mxu0 %vm6211_vm7, %v6465_v32  ;;  %17592 = vst [vmem:[#allocation47_spill] sm:$0xff] %v15868_v10  ;;  %v15875_v43 = vld [vmem:[%s16578_s15 + $0x180] sm:$0xff] }
 0x9f9   :  { %8973 = vmatprep.subr.mxu1 %v15511_v4  ;;  %9008 = vmatprep.subr.mxu0 %v15516_v22  ;;  %17593 = vst [vmem:[#allocation62_spill] sm:$0xff] %v15875_v43  ;;  %v15880_v32 = vld [vmem:[%s16578_s15 + $0x80] sm:$0xff] }
 0x9fa   :  { %8974 = vmatpush3.msra.mxu1 %v15523_v45  ;;  %9009 = vmatpush3.msra.mxu0 %v15528_v44  ;;  %17594 = vst [vmem:[#allocation50_spill] sm:$0xff] %v15880_v32 }
 0x9fb   :  { %8975 = vmatprep.subr.mxu1 %v15535_v14  ;;  %9010 = vmatprep.subr.mxu0 %v15540_v58 }
 0x9fc   :  { %8976 = vmatpush3.msra.mxu1 %v15547_v35  ;;  %9011 = vmatpush3.msra.mxu0 %v15552_v15 }
 0x9fd   :  { %8977 = vmatprep.subr.mxu1 %v15559_v60  ;;  %9012 = vmatprep.subr.mxu0 %v15564_v0 }
 0x9fe   :  { %8978 = vmatpush3.msra.mxu1 %v15571_v28  ;;  %9013 = vmatpush3.msra.mxu0 %v15576_v61 }
 0x9ff   :  { %8979 = vmatprep.subr.mxu1 %v15583_v26  ;;  %9014 = vmatprep.subr.mxu0 %v15588_v54 }
 0xa00   :  { %8980 = vmatpush3.msra.mxu1 %v15595_v13  ;;  %9015 = vmatpush3.msra.mxu0 %v15600_v36 }
 0xa01   :  { %8981 = vmatprep.subr.mxu1 %v15607_v1  ;;  %9016 = vmatprep.subr.mxu0 %v15612_v53 }
 0xa02   :  { %8982 = vmatpush3.msra.mxu1 %v15619_v5  ;;  %9017 = vmatpush3.msra.mxu0 %v15624_v38 }
 0xa03   :  { %8983 = vmatprep.subr.mxu1 %v15631_v29  ;;  %9018 = vmatprep.subr.mxu0 %v15636_v27 }
 0xa04   :  { %8984 = vmatpush3.msra.mxu1 %v15643_v31  ;;  %9019 = vmatpush3.msra.mxu0 %v15648_v20 }
 0xa05   :  { %8985 = vmatprep.subr.mxu1 %v15655_v16  ;;  %9020 = vmatprep.subr.mxu0 %v15660_v37 }
 0xa06   :  { %8986 = vmatpush3.msra.mxu1 %v15667_v40  ;;  %9021 = vmatpush3.msra.mxu0 %v15672_v33 }
 0xa07   :  { %8987 = vmatprep.subr.mxu1 %v15679_v8  ;;  %9022 = vmatprep.subr.mxu0 %v15684_v25 }
 0xa08   :  { %8988 = vmatpush3.msra.mxu1 %v15691_v47  ;;  %9023 = vmatpush3.msra.mxu0 %v15696_v48 }
 0xa09   :  { %8989 = vmatprep.subr.mxu1 %v15703_v11  ;;  %9024 = vmatprep.subr.mxu0 %v15708_v7 }
 0xa0a   :  { %8990 = vmatpush3.msra.mxu1 %v15715_v42  ;;  %9025 = vmatpush3.msra.mxu0 %v15720_v19 }
 0xa0b   :  { %8991 = vmatprep.subr.mxu1 %v15727_v63  ;;  %9026 = vmatprep.subr.mxu0 %v15732_v52 }
 0xa0c   :  { %8992 = vmatpush3.msra.mxu1 %v15739_v12  ;;  %9027 = vmatpush3.msra.mxu0 %v15744_v9 }
 0xa0d   :  { %8993 = vmatprep.subr.mxu1 %v15751_v62  ;;  %9028 = vmatprep.subr.mxu0 %v15756_v6 }
 0xa0e   :  { %8994 = vmatpush3.msra.mxu1 %v15763_v2  ;;  %9029 = vmatpush3.msra.mxu0 %v15768_v23 }
 0xa0f   :  { %8995 = vmatprep.subr.mxu1 %v15775_v17  ;;  %9030 = vmatprep.subr.mxu0 %v15780_v59 }
 0xa10   :  { %8996 = vmatpush3.msra.mxu1 %v15787_v3  ;;  %9031 = vmatpush3.msra.mxu0 %v15792_v30 }
 0xa11   :  { %8997 = vmatprep.subr.mxu1 %v15799_v56  ;;  %9032 = vmatprep.subr.mxu0 %v15804_v55 }
 0xa12   :  { %8998 = vmatpush3.msra.mxu1 %v15811_v46  ;;  %9033 = vmatpush3.msra.mxu0 %v15816_v18 }
 0xa13   :  { %8999 = vmatprep.subr.mxu1 %v15823_v57  ;;  %9034 = vmatprep.subr.mxu0 %v15828_v50 }
 0xa14   :  { %9000 = vmatpush3.msra.mxu1 %v15839_v51  ;;  %9035 = vmatpush3.msra.mxu0 %v15844_v41 }
 0xa15   :  { %9001 = vmatprep.subr.mxu1 %v15849_v24  ;;  %9036 = vmatprep.subr.mxu0 %v15856_v49 }
 0xa16   :  { %9002 = vmatpush3.msra.mxu1 %v15863_v34  ;;  %9037 = vmatpush3.msra.mxu0 %v15868_v10 }
 0xa17   :  { %9003 = vmatprep.subr.mxu1 %v15875_v43  ;;  %9038 = vmatprep.subr.mxu0 %v15880_v32 }
 0xa18   :  { %9004 = vmatpush3.msra.mxu1 %v15887_v39  ;;  %9039 = vmatpush3.msra.mxu0 %v15892_v21 }
 0xa19   :  { %9043 = vmatprep.subr.mxu1 %v15511_v4  ;;  %9078 = vmatprep.subr.mxu0 %v15516_v22 }
 0xab4   :  { %v6287_v43 = vpop.f32.mrf.mxu1  ;;  %v6367_v32 = vpop.f32.mrf.mxu0 }
 0xab6   :  { %v6289_v10 = vpop.f32.mrf.mxu1  ;;  %v6369_v34 = vpop.f32.mrf.mxu0 }
 0xab7   :  { %v15898_v49 = vcombine.low %v6287_v43, %v6289_v10  ;;  %v15900_v24 = vcombine.low %v6289_v10, %v6289_v10  ;;  %v15902_v41 = vcombine.low %v6367_v32, %v6369_v34  ;;  %v15904_v51 = vcombine.low %v6369_v34, %v6369_v34  ;;  %v8543_v34 = vld [vmem:[%s16578_s15 + $0x3f0] sm:$0xff]  ;;  %v8526_v43 = vld [vmem:[%s16578_s15 + $0x368] sm:$0xff]  ;;  %v8541_v32 = vld [vmem:[%s16578_s15 + $0x3e0] sm:$0xff] }
 0xab8   :  { %v6535_v4 = vpop.f32.mrf.mxu0  ;;  %v6454_v22 = vpop.f32.mrf.mxu1  ;;  %v8527_v10 = vld [vmem:[%s16578_s15 + $0x370] sm:$0xff] }
 0xab9   :  { %6681 = vmatprep.mubr.f32.mxu1 %v15904_v51  ;;  %6754 = vmatprep.mubr.f32.mxu0 %v15900_v24 }
 0xaba   :  { %6682 = vmatmul.mubr.f32.vlgmr.msra.gmra.mxu1 %v15902_v41  ;;  %6755 = vmatmul.mubr.f32.vlgmr.msra.gmra.mxu0 %v15898_v49 }
 0xabb   :  { %9044 = vmatpush3.msra.mxu1 %v15523_v45  ;;  %9079 = vmatpush3.msra.mxu0 %v15528_v44  ;;  %v6537_v45 = vpop.f32.mrf.mxu0  ;;  %v6456_v44 = vpop.f32.mrf.mxu1 }
 0xabc   :  { %9045 = vmatprep.subr.mxu1 %v15535_v14  ;;  %9080 = vmatprep.subr.mxu0 %v15540_v58  ;;  %v17595_v14 = vld [vmem:[#allocation56_spill] sm:$0xff]  ;;  %v17596_v58 = vld [vmem:[#allocation45_spill] sm:$0xff] }
 0xabd   :  { %9046 = vmatpush3.msra.mxu1 %v15547_v35  ;;  %9081 = vmatpush3.msra.mxu0 %v15552_v15  ;;  %v15964_v35 = vcombine.low %v6537_v45, %v6537_v45  ;;  %v15966_v15 = vcombine.low %v6456_v44, %v6456_v44 }
 0xabe   :  { %9047 = vmatprep.subr.mxu1 %v15559_v60  ;;  %9082 = vmatprep.subr.mxu0 %v15564_v0  ;;  %v17597_v60 = vld [vmem:[#allocation57_spill] sm:$0xff]  ;;  %v17598_v0 = vld [vmem:[#allocation42_spill] sm:$0xff] }
 0xabf   :  { %9048 = vmatpush3.msra.mxu1 %v15571_v28  ;;  %9083 = vmatpush3.msra.mxu0 %v15576_v61  ;;  %v17599_v28 = vld [vmem:[#allocation59_spill] sm:$0xff] }
 0xac0   :  { %9049 = vmatprep.subr.mxu1 %v15583_v26  ;;  %9084 = vmatprep.subr.mxu0 %v15588_v54  ;;  %v17600_v61 = vld [vmem:[#allocation47_spill] sm:$0xff]  ;;  %v17601_v26 = vld [vmem:[#allocation62_spill] sm:$0xff] }
 0xac1   :  { %9050 = vmatpush3.msra.mxu1 %v15595_v13  ;;  %9085 = vmatpush3.msra.mxu0 %v15600_v36  ;;  %v17602_v54 = vld [vmem:[#allocation50_spill] sm:$0xff]  ;;  %v15974_v13 = vcombine.low %v6454_v22, %v6456_v44  ;;  %v15976_v36 = vcombine.low %v6535_v4, %v6537_v45  ;;  %v8539_v44 = vld [vmem:[%s16578_s15 + $0x3d0] sm:$0xff] }
 0xac2   :  { %9051 = vmatprep.subr.mxu1 %v15607_v1  ;;  %9086 = vmatprep.subr.mxu0 %v15612_v53  ;;  %v8512_v1 = vld [vmem:[%s16578_s15 + $0x2f8] sm:$0xff]  ;;  %v8525_v4 = vld [vmem:[%s16578_s15 + $0x360] sm:$0xff] }
 0xac3   :  { %9052 = vmatpush3.msra.mxu1 %v15619_v5  ;;  %9087 = vmatpush3.msra.mxu0 %v15624_v38  ;;  %v8496_v53 = vld [vmem:[%s16578_s15 + $0x278] sm:$0xff]  ;;  %v8511_v5 = vld [vmem:[%s16578_s15 + $0x2f0] sm:$0xff]  ;;  %v7016_v38 = vrot.slane %v15966_v15, 1 }
 0xac4   :  { %9053 = vmatprep.subr.mxu1 %v15631_v29  ;;  %9088 = vmatprep.subr.mxu0 %v15636_v27  ;;  %v8510_v29 = vld [vmem:[%s16578_s15 + $0x2e8] sm:$0xff]  ;;  %v8540_v22 = vld [vmem:[%s16578_s15 + $0x3d8] sm:$0xff] }
 0xac5   :  { %9054 = vmatpush3.msra.mxu1 %v15643_v31  ;;  %9089 = vmatpush3.msra.mxu0 %v15648_v20  ;;  %v8494_v27 = vld [vmem:[%s16578_s15 + $0x268] sm:$0xff]  ;;  %v8509_v31 = vld [vmem:[%s16578_s15 + $0x2e0] sm:$0xff]  ;;  %v8524_v45 = vld [vmem:[%s16578_s15 + $0x358] sm:$0xff] }
 0xac6   :  { %9055 = vmatprep.subr.mxu1 %v15655_v16  ;;  %9090 = vmatprep.subr.mxu0 %v15660_v37  ;;  %v8493_v20 = vld [vmem:[%s16578_s15 + $0x260] sm:$0xff]  ;;  %v8508_v16 = vld [vmem:[%s16578_s15 + $0x2d8] sm:$0xff] }
 0xac7   :  { %9056 = vmatpush3.msra.mxu1 %v15667_v40  ;;  %9091 = vmatpush3.msra.mxu0 %v15672_v33  ;;  %v8492_v37 = vld [vmem:[%s16578_s15 + $0x258] sm:$0xff]  ;;  %v8507_v40 = vld [vmem:[%s16578_s15 + $0x2d0] sm:$0xff] }
 0xac8   :  { %9057 = vmatprep.subr.mxu1 %v15679_v8  ;;  %9092 = vmatprep.subr.mxu0 %v15684_v25  ;;  %v8491_v33 = vld [vmem:[%s16578_s15 + $0x250] sm:$0xff]  ;;  %v8506_v8 = vld [vmem:[%s16578_s15 + $0x2c8] sm:$0xff] }
 0xac9   :  { %9058 = vmatpush3.msra.mxu1 %v15691_v47  ;;  %9093 = vmatpush3.msra.mxu0 %v15696_v48  ;;  %v8490_v25 = vld [vmem:[%s16578_s15 + $0x248] sm:$0xff]  ;;  %v8505_v47 = vld [vmem:[%s16578_s15 + $0x2c0] sm:$0xff] }
 0xaca   :  { %9059 = vmatprep.subr.mxu1 %v15703_v11  ;;  %9094 = vmatprep.subr.mxu0 %v15708_v7  ;;  %v8489_v48 = vld [vmem:[%s16578_s15 + $0x240] sm:$0xff]  ;;  %v8504_v11 = vld [vmem:[%s16578_s15 + $0x2b8] sm:$0xff] }
 0xacb   :  { %9060 = vmatpush3.msra.mxu1 %v15715_v42  ;;  %9095 = vmatpush3.msra.mxu0 %v15720_v19  ;;  %v8488_v7 = vld [vmem:[%s16578_s15 + $0x238] sm:$0xff]  ;;  %v8503_v42 = vld [vmem:[%s16578_s15 + $0x2b0] sm:$0xff] }
 0xacc   :  { %9061 = vmatprep.subr.mxu1 %v15727_v63  ;;  %9096 = vmatprep.subr.mxu0 %v15732_v52  ;;  %v8487_v19 = vld [vmem:[%s16578_s15 + $0x230] sm:$0xff]  ;;  %v8502_v63 = vld [vmem:[%s16578_s15 + $0x2a8] sm:$0xff] }
 0xacd   :  { %9062 = vmatpush3.msra.mxu1 %v15739_v12  ;;  %9097 = vmatpush3.msra.mxu0 %v15744_v9  ;;  %v8486_v52 = vld [vmem:[%s16578_s15 + $0x228] sm:$0xff]  ;;  %v8501_v12 = vld [vmem:[%s16578_s15 + $0x2a0] sm:$0xff] }
 0xace   :  { %9063 = vmatprep.subr.mxu1 %v15751_v62  ;;  %9098 = vmatprep.subr.mxu0 %v15756_v6  ;;  %v8485_v9 = vld [vmem:[%s16578_s15 + $0x220] sm:$0xff]  ;;  %v8500_v62 = vld [vmem:[%s16578_s15 + $0x298] sm:$0xff] }
 0xacf   :  { %9064 = vmatpush3.msra.mxu1 %v15763_v2  ;;  %9099 = vmatpush3.msra.mxu0 %v15768_v23  ;;  %v8484_v6 = vld [vmem:[%s16578_s15 + $0x218] sm:$0xff]  ;;  %v8499_v2 = vld [vmem:[%s16578_s15 + $0x290] sm:$0xff] }
 0xad0   :  { %9065 = vmatprep.subr.mxu1 %v15775_v17  ;;  %9100 = vmatprep.subr.mxu0 %v15780_v59  ;;  %v8483_v23 = vld [vmem:[%s16578_s15 + $0x210] sm:$0xff]  ;;  %v8498_v17 = vld [vmem:[%s16578_s15 + $0x288] sm:$0xff] }
 0xad1   :  { %9066 = vmatpush3.msra.mxu1 %v15787_v3  ;;  %9101 = vmatpush3.msra.mxu0 %v15792_v30  ;;  %v8482_v59 = vld [vmem:[%s16578_s15 + $0x208] sm:$0xff]  ;;  %v8497_v3 = vld [vmem:[%s16578_s15 + $0x280] sm:$0xff] }
 0xad2   :  { %9067 = vmatprep.subr.mxu1 %v15799_v56  ;;  %9102 = vmatprep.subr.mxu0 %v15804_v55  ;;  %v8481_v30 = vld [vmem:[%s16578_s15 + $0x200] sm:$0xff]  ;;  %v6940_v56 = vrot.slane %v15898_v49, 1  ;;  %v7015_v55 = vrot.slane %v15974_v13, 1 }
 0xad3   :  { %9068 = vmatpush3.msra.mxu1 %v15811_v46  ;;  %9103 = vmatpush3.msra.mxu0 %v15816_v18  ;;  %v8544_v46 = vld [vmem:[%s16578_s15 + $0x3f8] sm:$0xff] }
 0xad4   :  { %9069 = vmatprep.subr.mxu1 %v15823_v57  ;;  %9104 = vmatprep.subr.mxu0 %v15828_v50  ;;  %v8528_v18 = vld [vmem:[%s16578_s15 + $0x378] sm:$0xff]  ;;  %v7124_v57 = vrot.slane %v15904_v51, 1  ;;  %v7199_v50 = vrot.slane %v15964_v35, 1  ;;  %v8542_v51 = vld [vmem:[%s16578_s15 + $0x3e8] sm:$0xff] }
 0xad5   :  { %9070 = vmatpush3.msra.mxu1 %v17595_v14  ;;  %9105 = vmatpush3.msra.mxu0 %v17596_v58  ;;  %v8523_v14 = vld [vmem:[%s16578_s15 + $0x350] sm:$0xff]  ;;  %v8538_v58 = vld [vmem:[%s16578_s15 + $0x3c8] sm:$0xff] }
 0xad6   :  { %9071 = vmatprep.subr.mxu1 %v17597_v60  ;;  %9106 = vmatprep.subr.mxu0 %v17598_v0  ;;  %v8537_v60 = vld [vmem:[%s16578_s15 + $0x3c0] sm:$0xff] }
 0xad7   :  { %9072 = vmatpush3.msra.mxu1 %v17599_v28  ;;  %9107 = vmatpush3.msra.mxu0 %v17600_v61  ;;  %v8521_v0 = vld [vmem:[%s16578_s15 + $0x340] sm:$0xff]  ;;  %v8536_v28 = vld [vmem:[%s16578_s15 + $0x3b8] sm:$0xff] }
 0xad8   :  { %9073 = vmatprep.subr.mxu1 %v17601_v26  ;;  %9108 = vmatprep.subr.mxu0 %v17602_v54  ;;  %v8520_v61 = vld [vmem:[%s16578_s15 + $0x338] sm:$0xff]  ;;  %v8535_v26 = vld [vmem:[%s16578_s15 + $0x3b0] sm:$0xff] }
 0xad9   :  { %9074 = vmatpush3.msra.mxu1 %v15887_v39  ;;  %6828 = vmatprep.mubr.f32.mxu1 %v15964_v35  ;;  %v6941_v39 = vrot.slane %v15900_v24, 1  ;;  %v8522_v35 = vld [vmem:[%s16578_s15 + $0x348] sm:$0xff]  ;;  %v8519_v54 = vld [vmem:[%s16578_s15 + $0x330] sm:$0xff] }
 0xada   :  { %9109 = vmatpush3.msra.mxu0 %v15892_v21  ;;  %6901 = vmatprep.mubr.f32.mxu0 %v15966_v15  ;;  %v8495_v21 = vld [vmem:[%s16578_s15 + $0x270] sm:$0xff] }
 0xadb   :  { %6829 = vmatmul.mubr.f32.vlgmr.msra.gmra.mxu1 %v15976_v36  ;;  %6902 = vmatmul.mubr.f32.vlgmr.msra.gmra.mxu0 %v15974_v13 }
 0xadc   :  { %9113 = vmatprep.subr.mxu1 %v8512_v1  ;;  %9148 = vmatprep.subr.mxu0 %v8512_v1  ;;  %v8534_v1 = vld [vmem:[%s16578_s15 + $0x3a8] sm:$0xff] }
 0xadd   :  { %9114 = vmatpush3.msra.mxu1 %v8496_v53  ;;  %7008 = vmatprep.mubr.f32.mxu1 %v6941_v39  ;;  %v8533_v39 = vld [vmem:[%s16578_s15 + $0x3a0] sm:$0xff] }
 0xade   :  { %9149 = vmatpush3.msra.mxu0 %v8496_v53  ;;  %9115 = vmatprep.subr.mxu1 %v8511_v5  ;;  %v8518_v53 = vld [vmem:[%s16578_s15 + $0x328] sm:$0xff] }
 0xadf   :  { %9150 = vmatprep.subr.mxu0 %v8511_v5  ;;  %9116 = vmatpush3.msra.mxu1 %v8495_v21  ;;  %v8517_v5 = vld [vmem:[%s16578_s15 + $0x320] sm:$0xff] }
 0xae0   :  { %9151 = vmatpush3.msra.mxu0 %v8495_v21  ;;  %7083 = vmatprep.mubr.f32.mxu0 %v7016_v38  ;;  %v8532_v21 = vld [vmem:[%s16578_s15 + $0x398] sm:$0xff] }
 0xae1   :  { %9117 = vmatprep.subr.mxu1 %v8510_v29  ;;  %9152 = vmatprep.subr.mxu0 %v8510_v29  ;;  %v8516_v38 = vld [vmem:[%s16578_s15 + $0x318] sm:$0xff]  ;;  %v8531_v29 = vld [vmem:[%s16578_s15 + $0x390] sm:$0xff] }
 0xae2   :  { %9118 = vmatpush3.msra.mxu1 %v8494_v27  ;;  %9153 = vmatpush3.msra.mxu0 %v8494_v27  ;;  %v8515_v27 = vld [vmem:[%s16578_s15 + $0x310] sm:$0xff] }
 0xae3   :  { %9119 = vmatprep.subr.mxu1 %v8509_v31  ;;  %9154 = vmatprep.subr.mxu0 %v8509_v31  ;;  %v8530_v31 = vld [vmem:[%s16578_s15 + $0x388] sm:$0xff] }
 0xae4   :  { %9120 = vmatpush3.msra.mxu1 %v8493_v20  ;;  %9155 = vmatpush3.msra.mxu0 %v8493_v20  ;;  %v8514_v20 = vld [vmem:[%s16578_s15 + $0x308] sm:$0xff] }
 0xae5   :  { %9121 = vmatprep.subr.mxu1 %v8508_v16  ;;  %9156 = vmatprep.subr.mxu0 %v8508_v16  ;;  %v8529_v16 = vld [vmem:[%s16578_s15 + $0x380] sm:$0xff] }
 0xae6   :  { %9122 = vmatpush3.msra.mxu1 %v8492_v37  ;;  %9157 = vmatpush3.msra.mxu0 %v8492_v37  ;;  %v8513_v37 = vld [vmem:[%s16578_s15 + $0x300] sm:$0xff] }
 0xae7   :  { %9123 = vmatprep.subr.mxu1 %v8507_v40  ;;  %9158 = vmatprep.subr.mxu0 %v8507_v40  ;;  %v7123_v40 = vrot.slane %v15902_v41, 1  ;;  %v7382_v41 = vrot.slane %v15966_v15, 2  ;;  %v8558_v15 = vld [vmem:[%s16578_s15 + $0x468] sm:$0xff] }
 0xae8   :  { %9124 = vmatpush3.msra.mxu1 %v8491_v33  ;;  %9159 = vmatpush3.msra.mxu0 %v8491_v33  ;;  %v7198_v33 = vrot.slane %v15976_v36, 1  ;;  %v8575_v36 = vld [vmem:[%s16578_s15 + $0x4f0] sm:$0xff] }
 0xae9   :  { %9125 = vmatprep.subr.mxu1 %v8506_v8  ;;  %9160 = vmatprep.subr.mxu0 %v8506_v8  ;;  %v8576_v8 = vld [vmem:[%s16578_s15 + $0x4f8] sm:$0xff] }
 0xaea   :  { %9126 = vmatpush3.msra.mxu1 %v8490_v25  ;;  %9161 = vmatpush3.msra.mxu0 %v8490_v25  ;;  %v8560_v25 = vld [vmem:[%s16578_s15 + $0x478] sm:$0xff] }
 0xaeb   :  { %9127 = vmatprep.subr.mxu1 %v8505_v47  ;;  %9162 = vmatprep.subr.mxu0 %v8505_v47  ;;  %v7307_v47 = vrot.slane %v15900_v24, 2  ;;  %v8574_v24 = vld [vmem:[%s16578_s15 + $0x4e8] sm:$0xff] }
 0xaec   :  { %9128 = vmatpush3.msra.mxu1 %v8489_v48  ;;  %9163 = vmatpush3.msra.mxu0 %v8489_v48  ;;  %v8559_v48 = vld [vmem:[%s16578_s15 + $0x470] sm:$0xff] }
 0xaed   :  { %9129 = vmatprep.subr.mxu1 %v8504_v11  ;;  %9164 = vmatprep.subr.mxu0 %v8504_v11  ;;  %v8573_v11 = vld [vmem:[%s16578_s15 + $0x4e0] sm:$0xff] }
 0xaee   :  { %9130 = vmatpush3.msra.mxu1 %v8488_v7  ;;  %9165 = vmatpush3.msra.mxu0 %v8488_v7  ;;  %v8557_v7 = vld [vmem:[%s16578_s15 + $0x460] sm:$0xff] }
 0xaef   :  { %9131 = vmatprep.subr.mxu1 %v8503_v42  ;;  %9166 = vmatprep.subr.mxu0 %v8503_v42  ;;  %v8572_v42 = vld [vmem:[%s16578_s15 + $0x4d8] sm:$0xff] }
 0xaf0   :  { %9132 = vmatpush3.msra.mxu1 %v8487_v19  ;;  %9167 = vmatpush3.msra.mxu0 %v8487_v19  ;;  %v8556_v19 = vld [vmem:[%s16578_s15 + $0x458] sm:$0xff] }
 0xaf1   :  { %9133 = vmatprep.subr.mxu1 %v8502_v63  ;;  %9168 = vmatprep.subr.mxu0 %v8502_v63  ;;  %v8571_v63 = vld [vmem:[%s16578_s15 + $0x4d0] sm:$0xff] }
 0xaf2   :  { %9134 = vmatpush3.msra.mxu1 %v8486_v52  ;;  %9169 = vmatpush3.msra.mxu0 %v8486_v52  ;;  %v8555_v52 = vld [vmem:[%s16578_s15 + $0x450] sm:$0xff] }
 0xaf3   :  { %9135 = vmatprep.subr.mxu1 %v8501_v12  ;;  %9170 = vmatprep.subr.mxu0 %v8501_v12  ;;  %v8570_v12 = vld [vmem:[%s16578_s15 + $0x4c8] sm:$0xff] }
 0xaf4   :  { %9136 = vmatpush3.msra.mxu1 %v8485_v9  ;;  %9171 = vmatpush3.msra.mxu0 %v8485_v9  ;;  %v8554_v9 = vld [vmem:[%s16578_s15 + $0x448] sm:$0xff] }
 0xaf5   :  { %9137 = vmatprep.subr.mxu1 %v8500_v62  ;;  %9172 = vmatprep.subr.mxu0 %v8500_v62  ;;  %v8569_v62 = vld [vmem:[%s16578_s15 + $0x4c0] sm:$0xff] }
 0xaf6   :  { %9138 = vmatpush3.msra.mxu1 %v8484_v6  ;;  %9173 = vmatpush3.msra.mxu0 %v8484_v6  ;;  %v8553_v6 = vld [vmem:[%s16578_s15 + $0x440] sm:$0xff] }
 0xaf7   :  { %9139 = vmatprep.subr.mxu1 %v8499_v2  ;;  %9174 = vmatprep.subr.mxu0 %v8499_v2  ;;  %v8568_v2 = vld [vmem:[%s16578_s15 + $0x4b8] sm:$0xff] }
 0xaf8   :  { %9140 = vmatpush3.msra.mxu1 %v8483_v23  ;;  %9175 = vmatpush3.msra.mxu0 %v8483_v23  ;;  %v8552_v23 = vld [vmem:[%s16578_s15 + $0x438] sm:$0xff] }
 0xaf9   :  { %9141 = vmatprep.subr.mxu1 %v8498_v17  ;;  %9176 = vmatprep.subr.mxu0 %v8498_v17  ;;  %v8567_v17 = vld [vmem:[%s16578_s15 + $0x4b0] sm:$0xff] }
 0xafa   :  { %9142 = vmatpush3.msra.mxu1 %v8482_v59  ;;  %9177 = vmatpush3.msra.mxu0 %v8482_v59  ;;  %v8551_v59 = vld [vmem:[%s16578_s15 + $0x430] sm:$0xff] }
 0xafb   :  { %9143 = vmatprep.subr.mxu1 %v8497_v3  ;;  %9178 = vmatprep.subr.mxu0 %v8497_v3  ;;  %v8566_v3 = vld [vmem:[%s16578_s15 + $0x4a8] sm:$0xff] }
 0xafc   :  { %9144 = vmatpush3.msra.mxu1 %v8481_v30  ;;  %9179 = vmatpush3.msra.mxu0 %v8481_v30  ;;  %v8550_v30 = vld [vmem:[%s16578_s15 + $0x428] sm:$0xff] }
 0xafd   :  { %7009 = vmatmul.mubr.f32.vlgmr.msra.gmra.mxu1 %v6940_v56  ;;  %7084 = vmatmul.mubr.f32.vlgmr.msra.gmra.mxu0 %v7015_v55  ;;  %v8565_v56 = vld [vmem:[%s16578_s15 + $0x4a0] sm:$0xff] }
 0xafe   :  { %9183 = vmatprep.subr.mxu1 %v8544_v46  ;;  %9218 = vmatprep.subr.mxu0 %v8544_v46  ;;  %v8549_v55 = vld [vmem:[%s16578_s15 + $0x420] sm:$0xff]  ;;  %v8564_v46 = vld [vmem:[%s16578_s15 + $0x498] sm:$0xff] }
 0xaff   :  { %9184 = vmatpush3.msra.mxu1 %v8528_v18  ;;  %7191 = vmatprep.mubr.f32.mxu1 %v7124_v57  ;;  %v8563_v57 = vld [vmem:[%s16578_s15 + $0x490] sm:$0xff] }
 0xb00   :  { %9219 = vmatpush3.msra.mxu0 %v8528_v18  ;;  %7266 = vmatprep.mubr.f32.mxu0 %v7199_v50  ;;  %v8548_v18 = vld [vmem:[%s16578_s15 + $0x418] sm:$0xff]  ;;  %v8547_v50 = vld [vmem:[%s16578_s15 + $0x410] sm:$0xff] }
 0xb01   :  { %9185 = vmatprep.subr.mxu1 %v8543_v34  ;;  %9220 = vmatprep.subr.mxu0 %v8543_v34  ;;  %v8562_v34 = vld [vmem:[%s16578_s15 + $0x488] sm:$0xff] }
 0xb02   :  { %9186 = vmatpush3.msra.mxu1 %v8527_v10  ;;  %9221 = vmatpush3.msra.mxu0 %v8527_v10  ;;  %v8546_v10 = vld [vmem:[%s16578_s15 + $0x408] sm:$0xff] }
 0xb03   :  { %9187 = vmatprep.subr.mxu1 %v8542_v51  ;;  %9222 = vmatprep.subr.mxu0 %v8542_v51  ;;  %v8561_v51 = vld [vmem:[%s16578_s15 + $0x480] sm:$0xff] }
 0xb04   :  { %9188 = vmatpush3.msra.mxu1 %v8526_v43  ;;  %9223 = vmatpush3.msra.mxu0 %v8526_v43  ;;  %v8545_v43 = vld [vmem:[%s16578_s15 + $0x400] sm:$0xff] }
 0xb05   :  { %9189 = vmatprep.subr.mxu1 %v8541_v32  ;;  %9224 = vmatprep.subr.mxu0 %v8541_v32  ;;  %v7306_v32 = vrot.slane %v15898_v49, 2  ;;  %v7502_v49 = vld [vmem:[#allocation19 + $0x70] sm:$0xff] }
 0xb06   :  { %9190 = vmatpush3.msra.mxu1 %v8525_v4  ;;  %9225 = vmatpush3.msra.mxu0 %v8525_v4  ;;  %v7381_v4 = vrot.slane %v15974_v13, 2  ;;  %v7501_v13 = vld [vmem:[#allocation19 + $0x68] sm:$0xff] }
 0xb07   :  { %9191 = vmatprep.subr.mxu1 %v8540_v22  ;;  %9226 = vmatprep.subr.mxu0 %v8540_v22  ;;  %v17603_v22 = vmov 0.0  }
 0xb08   :  { %9192 = vmatpush3.msra.mxu1 %v8524_v45  ;;  %9227 = vmatpush3.msra.mxu0 %v8524_v45  ;;  %v7503_v45 = vld [vmem:[#allocation19 + $0x78] sm:$0xff] }
 0xb09   :  { %9193 = vmatprep.subr.mxu1 %v8539_v44  ;;  %9228 = vmatprep.subr.mxu0 %v8539_v44  ;;  %v7500_v44 = vld [vmem:[#allocation19 + $0x60] sm:$0xff] }
 0xb0a   :  { %9194 = vmatpush3.msra.mxu1 %v8523_v14  ;;  %9229 = vmatpush3.msra.mxu0 %v8523_v14  ;;  %v7499_v14 = vld [vmem:[#allocation19 + $0x58] sm:$0xff] }
 0xb0b   :  { %9195 = vmatprep.subr.mxu1 %v8538_v58  ;;  %9230 = vmatprep.subr.mxu0 %v8538_v58  ;;  %v7498_v58 = vld [vmem:[#allocation19 + $0x50] sm:$0xff] }
 0xb0c   :  { %9196 = vmatpush3.msra.mxu1 %v8522_v35  ;;  %9231 = vmatpush3.msra.mxu0 %v8522_v35  ;;  %v7497_v35 = vld [vmem:[#allocation19 + $0x48] sm:$0xff] }
 0xb0d   :  { %9197 = vmatprep.subr.mxu1 %v8537_v60  ;;  %9232 = vmatprep.subr.mxu0 %v8537_v60  ;;  %v7496_v60 = vld [vmem:[#allocation19 + $0x40] sm:$0xff] }
 0xb0e   :  { %9198 = vmatpush3.msra.mxu1 %v8521_v0  ;;  %9233 = vmatpush3.msra.mxu0 %v8521_v0  ;;  %v7495_v0 = vld [vmem:[#allocation19 + $0x38] sm:$0xff] }
 0xb0f   :  { %9199 = vmatprep.subr.mxu1 %v8536_v28  ;;  %9234 = vmatprep.subr.mxu0 %v8536_v28  ;;  %v7494_v28 = vld [vmem:[#allocation19 + $0x30] sm:$0xff] }
 0xb10   :  { %9200 = vmatpush3.msra.mxu1 %v8520_v61  ;;  %9235 = vmatpush3.msra.mxu0 %v8520_v61  ;;  %v7493_v61 = vld [vmem:[#allocation19 + $0x28] sm:$0xff] }
 0xb11   :  { %9201 = vmatprep.subr.mxu1 %v8535_v26  ;;  %9236 = vmatprep.subr.mxu0 %v8535_v26  ;;  %v7492_v26 = vld [vmem:[#allocation19 + $0x20] sm:$0xff] }
 0xb12   :  { %9202 = vmatpush3.msra.mxu1 %v8519_v54  ;;  %9237 = vmatpush3.msra.mxu0 %v8519_v54  ;;  %v7491_v54 = vld [vmem:[#allocation19 + $0x18] sm:$0xff] }
 0xb13   :  { %9203 = vmatprep.subr.mxu1 %v8534_v1  ;;  %9238 = vmatprep.subr.mxu0 %v8534_v1  ;;  %v7490_v1 = vld [vmem:[#allocation19 + $0x10] sm:$0xff] }
 0xb14   :  { %9204 = vmatpush3.msra.mxu1 %v8518_v53  ;;  %9239 = vmatpush3.msra.mxu0 %v8518_v53  ;;  %v7489_v53 = vld [vmem:[#allocation19 + $0x8] sm:$0xff] }
 0xb15   :  { %9205 = vmatprep.subr.mxu1 %v8533_v39  ;;  %9240 = vmatprep.subr.mxu0 %v8533_v39  ;;  %v7488_v39 = vld [vmem:[#allocation19] sm:$0xff] }
 0xb16   :  { %9206 = vmatpush3.msra.mxu1 %v8517_v5  ;;  %9241 = vmatpush3.msra.mxu0 %v8517_v5 }
 0xb17   :  { %9207 = vmatprep.subr.mxu1 %v8532_v21  ;;  %9242 = vmatprep.subr.mxu0 %v8532_v21 }
 0xb18   :  { %9208 = vmatpush3.msra.mxu1 %v8516_v38  ;;  %9243 = vmatpush3.msra.mxu0 %v8516_v38 }
 0xb19   :  { %9209 = vmatprep.subr.mxu1 %v8531_v29  ;;  %9244 = vmatprep.subr.mxu0 %v8531_v29 }
 0xb1a   :  { %9210 = vmatpush3.msra.mxu1 %v8515_v27  ;;  %9245 = vmatpush3.msra.mxu0 %v8515_v27 }
 0xb1b   :  { %9211 = vmatprep.subr.mxu1 %v8530_v31  ;;  %9246 = vmatprep.subr.mxu0 %v8530_v31 }
 0xb1c   :  { %9212 = vmatpush3.msra.mxu1 %v8514_v20  ;;  %9247 = vmatpush3.msra.mxu0 %v8514_v20 }
 0xb1d   :  { %9213 = vmatprep.subr.mxu1 %v8529_v16  ;;  %9248 = vmatprep.subr.mxu0 %v8529_v16 }
 0xb1e   :  { %9214 = vmatpush3.msra.mxu1 %v8513_v37  ;;  %9249 = vmatpush3.msra.mxu0 %v8513_v37 }
 0xb1f   :  { %7192 = vmatmul.mubr.f32.vlgmr.msra.gmra.mxu1 %v7123_v40  ;;  %7267 = vmatmul.mubr.f32.vlgmr.msra.gmra.mxu0 %v7198_v33 }
 0xb20   :  { %9253 = vmatprep.subr.mxu1 %v8576_v8  ;;  %9288 = vmatprep.subr.mxu0 %v8576_v8 }
 0xb21   :  { %9254 = vmatpush3.msra.mxu1 %v8560_v25  ;;  %7374 = vmatprep.mubr.f32.mxu1 %v7307_v47 }
 0xb22   :  { %9289 = vmatpush3.msra.mxu0 %v8560_v25  ;;  %7449 = vmatprep.mubr.f32.mxu0 %v7382_v41 }
 0xb23   :  { %9255 = vmatprep.subr.mxu1 %v8575_v36  ;;  %9290 = vmatprep.subr.mxu0 %v8575_v36 }
 0xb24   :  { %9256 = vmatpush3.msra.mxu1 %v8559_v48  ;;  %9291 = vmatpush3.msra.mxu0 %v8559_v48 }
 0xb25   :  { %9257 = vmatprep.subr.mxu1 %v8574_v24  ;;  %9292 = vmatprep.subr.mxu0 %v8574_v24 }
 0xb26   :  { %9258 = vmatpush3.msra.mxu1 %v8558_v15  ;;  %9293 = vmatpush3.msra.mxu0 %v8558_v15 }
 0xb27   :  { %9259 = vmatprep.subr.mxu1 %v8573_v11  ;;  %9294 = vmatprep.subr.mxu0 %v8573_v11 }
 0xb28   :  { %9260 = vmatpush3.msra.mxu1 %v8557_v7  ;;  %9295 = vmatpush3.msra.mxu0 %v8557_v7 }
 0xb29   :  { %9261 = vmatprep.subr.mxu1 %v8572_v42  ;;  %9296 = vmatprep.subr.mxu0 %v8572_v42 }
 0xb2a   :  { %9262 = vmatpush3.msra.mxu1 %v8556_v19  ;;  %9297 = vmatpush3.msra.mxu0 %v8556_v19 }
 0xb2b   :  { %9263 = vmatprep.subr.mxu1 %v8571_v63  ;;  %9298 = vmatprep.subr.mxu0 %v8571_v63 }
 0xb2c   :  { %9264 = vmatpush3.msra.mxu1 %v8555_v52  ;;  %9299 = vmatpush3.msra.mxu0 %v8555_v52 }
 0xb2d   :  { %9265 = vmatprep.subr.mxu1 %v8570_v12  ;;  %9300 = vmatprep.subr.mxu0 %v8570_v12 }
 0xb2e   :  { %9266 = vmatpush3.msra.mxu1 %v8554_v9  ;;  %9301 = vmatpush3.msra.mxu0 %v8554_v9 }
 0xb2f   :  { %9267 = vmatprep.subr.mxu1 %v8569_v62  ;;  %9302 = vmatprep.subr.mxu0 %v8569_v62 }
 0xb30   :  { %9268 = vmatpush3.msra.mxu1 %v8553_v6  ;;  %9303 = vmatpush3.msra.mxu0 %v8553_v6 }
 0xb31   :  { %9269 = vmatprep.subr.mxu1 %v8568_v2  ;;  %9304 = vmatprep.subr.mxu0 %v8568_v2 }
 0xb32   :  { %9270 = vmatpush3.msra.mxu1 %v8552_v23  ;;  %9305 = vmatpush3.msra.mxu0 %v8552_v23 }
 0xb33   :  { %9271 = vmatprep.subr.mxu1 %v8567_v17  ;;  %9306 = vmatprep.subr.mxu0 %v8567_v17 }
 0xb34   :  { %9272 = vmatpush3.msra.mxu1 %v8551_v59  ;;  %9307 = vmatpush3.msra.mxu0 %v8551_v59 }
 0xb35   :  { %9273 = vmatprep.subr.mxu1 %v8566_v3  ;;  %9308 = vmatprep.subr.mxu0 %v8566_v3 }
 0xb36   :  { %9274 = vmatpush3.msra.mxu1 %v8550_v30  ;;  %9309 = vmatpush3.msra.mxu0 %v8550_v30 }
 0xb37   :  { %9275 = vmatprep.subr.mxu1 %v8565_v56  ;;  %9310 = vmatprep.subr.mxu0 %v8565_v56 }
 0xb38   :  { %9276 = vmatpush3.msra.mxu1 %v8549_v55  ;;  %9311 = vmatpush3.msra.mxu0 %v8549_v55 }
 0xb39   :  { %9277 = vmatprep.subr.mxu1 %v8564_v46  ;;  %9312 = vmatprep.subr.mxu0 %v8564_v46 }
 0xb3a   :  { %9278 = vmatpush3.msra.mxu1 %v8548_v18  ;;  %9313 = vmatpush3.msra.mxu0 %v8548_v18 }
 0xb3b   :  { %9279 = vmatprep.subr.mxu1 %v8563_v57  ;;  %9314 = vmatprep.subr.mxu0 %v8563_v57 }
 0xb3c   :  { %9280 = vmatpush3.msra.mxu1 %v8547_v50  ;;  %9315 = vmatpush3.msra.mxu0 %v8547_v50 }
 0xb3d   :  { %9281 = vmatprep.subr.mxu1 %v8562_v34  ;;  %9316 = vmatprep.subr.mxu0 %v8562_v34 }
 0xb3e   :  { %9282 = vmatpush3.msra.mxu1 %v8546_v10  ;;  %9317 = vmatpush3.msra.mxu0 %v8546_v10 }
 0xb3f   :  { %9283 = vmatprep.subr.mxu1 %v8561_v51  ;;  %9318 = vmatprep.subr.mxu0 %v8561_v51 }
 0xb40   :  { %9284 = vmatpush3.msra.mxu1 %v8545_v43  ;;  %9319 = vmatpush3.msra.mxu0 %v8545_v43 }
 0xb41   :  { %7375 = vmatmul.mubr.f32.vlgmr.msra.gmra.mxu1 %v7306_v32  ;;  %7450 = vmatmul.mubr.f32.vlgmr.msra.gmra.mxu0 %v7381_v4 }
 0xb42   :  { %9965 = vmatprep.subr.mxu1 %v17603_v22  ;;  %10000 = vmatprep.subr.mxu0 %v17603_v22 }
 0xb43   :  { %9997 = vmatprep.mubr.msk.f32.mxu1 %vm10564_vm0, %v17603_v22  ;;  %10032 = vmatprep.mubr.msk.f32.mxu0 %vm10564_vm0, %v17603_v22 }
 0xb44   :  { %9966 = vmatpush3.msra.mxu1 %v7503_v45  ;;  %10001 = vmatpush3.msra.mxu0 %v7503_v45 }
 0xb45   :  { %9967 = vmatprep.subr.mxu1 %v17603_v22  ;;  %10002 = vmatprep.subr.mxu0 %v17603_v22 }
 0xb46   :  { %9968 = vmatpush3.msra.mxu1 %v7502_v49  ;;  %10003 = vmatpush3.msra.mxu0 %v7502_v49 }
 0xb47   :  { %9969 = vmatprep.subr.mxu1 %v17603_v22  ;;  %10004 = vmatprep.subr.mxu0 %v17603_v22 }
 0xb48   :  { %9970 = vmatpush3.msra.mxu1 %v7501_v13  ;;  %10005 = vmatpush3.msra.mxu0 %v7501_v13 }
 0xb49   :  { %9971 = vmatprep.subr.mxu1 %v17603_v22  ;;  %10006 = vmatprep.subr.mxu0 %v17603_v22 }
 0xb4a   :  { %9972 = vmatpush3.msra.mxu1 %v7500_v44  ;;  %10007 = vmatpush3.msra.mxu0 %v7500_v44 }
 0xb4b   :  { %9973 = vmatprep.subr.mxu1 %v17603_v22  ;;  %10008 = vmatprep.subr.mxu0 %v17603_v22 }
 0xb4c   :  { %9974 = vmatpush3.msra.mxu1 %v7499_v14  ;;  %10009 = vmatpush3.msra.mxu0 %v7499_v14 }
 0xb4d   :  { %9975 = vmatprep.subr.mxu1 %v17603_v22  ;;  %10010 = vmatprep.subr.mxu0 %v17603_v22 }
 0xb4e   :  { %9976 = vmatpush3.msra.mxu1 %v7498_v58  ;;  %10011 = vmatpush3.msra.mxu0 %v7498_v58 }
 0xb4f   :  { %9977 = vmatprep.subr.mxu1 %v17603_v22  ;;  %10012 = vmatprep.subr.mxu0 %v17603_v22 }
 0xb50   :  { %9978 = vmatpush3.msra.mxu1 %v7497_v35  ;;  %10013 = vmatpush3.msra.mxu0 %v7497_v35 }
 0xb51   :  { %9979 = vmatprep.subr.mxu1 %v17603_v22  ;;  %10014 = vmatprep.subr.mxu0 %v17603_v22 }
 0xb52   :  { %9980 = vmatpush3.msra.mxu1 %v7496_v60  ;;  %10015 = vmatpush3.msra.mxu0 %v7496_v60 }
 0xb53   :  { %9981 = vmatprep.subr.mxu1 %v17603_v22  ;;  %10016 = vmatprep.subr.mxu0 %v17603_v22 }
 0xb54   :  { %9982 = vmatpush3.msra.mxu1 %v7495_v0  ;;  %10017 = vmatpush3.msra.mxu0 %v7495_v0 }
 0xb55   :  { %9983 = vmatprep.subr.mxu1 %v17603_v22  ;;  %10018 = vmatprep.subr.mxu0 %v17603_v22 }
 0xb56   :  { %9984 = vmatpush3.msra.mxu1 %v7494_v28  ;;  %10019 = vmatpush3.msra.mxu0 %v7494_v28 }
 0xb57   :  { %9985 = vmatprep.subr.mxu1 %v17603_v22  ;;  %10020 = vmatprep.subr.mxu0 %v17603_v22 }
 0xb58   :  { %9986 = vmatpush3.msra.mxu1 %v7493_v61  ;;  %10021 = vmatpush3.msra.mxu0 %v7493_v61 }
 0xb59   :  { %9987 = vmatprep.subr.mxu1 %v17603_v22  ;;  %10022 = vmatprep.subr.mxu0 %v17603_v22 }
 0xb5a   :  { %9988 = vmatpush3.msra.mxu1 %v7492_v26  ;;  %10023 = vmatpush3.msra.mxu0 %v7492_v26 }
 0xb5b   :  { %9989 = vmatprep.subr.mxu1 %v17603_v22  ;;  %10024 = vmatprep.subr.mxu0 %v17603_v22 }
 0xb5c   :  { %9990 = vmatpush3.msra.mxu1 %v7491_v54  ;;  %10025 = vmatpush3.msra.mxu0 %v7491_v54 }
 0xb5d   :  { %9991 = vmatprep.subr.mxu1 %v17603_v22  ;;  %10026 = vmatprep.subr.mxu0 %v17603_v22 }
 0xb5e   :  { %9992 = vmatpush3.msra.mxu1 %v7490_v1  ;;  %10027 = vmatpush3.msra.mxu0 %v7490_v1 }
 0xb5f   :  { %9993 = vmatprep.subr.mxu1 %v17603_v22  ;;  %10028 = vmatprep.subr.mxu0 %v17603_v22 }
 0xb60   :  { %9994 = vmatpush3.msra.mxu1 %v7489_v53  ;;  %10029 = vmatpush3.msra.mxu0 %v7489_v53 }
 0xb61   :  { %9995 = vmatprep.subr.mxu1 %v17603_v22  ;;  %10030 = vmatprep.subr.mxu0 %v17603_v22 }
 0xb62   :  { %9996 = vmatpush3.msra.mxu1 %v7488_v39  ;;  %10031 = vmatpush3.msra.mxu0 %v7488_v39 }
 0xb63   :  { %10035 = vmatprep.subr.mxu1 %v17603_v22  ;;  %10046 = vmatprep.subr.mxu0 %v17603_v22 }
 0xb7a   :  { %v9005_v5 = vpop.f32.mrf.mxu1  ;;  %v9040_v21 = vpop.f32.mrf.mxu0 }
 0xb7c   :  { %v9006_v38 = vpop.f32.mrf.mxu1  ;;  %v9041_v29 = vpop.f32.mrf.mxu0 }
 0xb7d   :  { %v9007_v41 = vadd.f32 %v9006_v38, %v9005_v5  ;;  %v9042_v36 = vadd.f32 %v9041_v29, %v9040_v21 }
 0xb7f   :  { %v6757_v19 = vadd.f32 %v9042_v36, %v9007_v41 }
 0xb9b   :  { %v9075_v27 = vpop.f32.mrf.mxu1  ;;  %v9110_v31 = vpop.f32.mrf.mxu0 }
 0xb9d   :  { %v9076_v20 = vpop.f32.mrf.mxu1  ;;  %v9111_v16 = vpop.f32.mrf.mxu0 }
 0xb9e   :  { %v9077_v48 = vadd.f32 %v9076_v20, %v9075_v27  ;;  %v9112_v24 = vadd.f32 %v9111_v16, %v9110_v31  ;;  %v7658_v16 = vld [vmem:[#allocation21 + $0x18] sm:$0xff] }
 0xba0   :  { %v6904_v63 = vadd.f32 %v9112_v24, %v9077_v48 }
 0xbbd   :  { %v9145_v37 = vpop.f32.mrf.mxu1  ;;  %v9180_v40 = vpop.f32.mrf.mxu0 }
 0xbbf   :  { %v9146_v33 = vpop.f32.mrf.mxu1  ;;  %v9181_v8 = vpop.f32.mrf.mxu0 }
 0xbc0   :  { %v9147_v7 = vadd.f32 %v9146_v33, %v9145_v37  ;;  %v9182_v42 = vadd.f32 %v9181_v8, %v9180_v40  ;;  %v7657_v37 = vld [vmem:[#allocation21 + $0x10] sm:$0xff]  ;;  %v7656_v40 = vld [vmem:[#allocation21 + $0x8] sm:$0xff]  ;;  %v7655_v33 = vld [vmem:[#allocation21] sm:$0xff] }
 0xbc2   :  { %v7014_v6 = vadd.f32 %v9147_v7, %v6757_v19  ;;  %v7089_v2 = vadd.f32 %v9182_v42, %v6904_v63  ;;  %v7648_v7 = vld [vmem:[%s16581_s18] sm:$0x1]  ;;  %v16351_v63 = vld [vmem:[#allocation22 + $0x78] sm:$0xff]  ;;  %s10565_s18 = smov [#allocation25]  }
 0xbdf   :  { %v9215_v25 = vpop.f32.mrf.mxu1  ;;  %v9250_v47 = vpop.f32.mrf.mxu0 }
 0xbe1   :  { %v9216_v15 = vpop.f32.mrf.mxu1  ;;  %v9251_v11 = vpop.f32.mrf.mxu0 }
 0xbe2   :  { %v9217_v52 = vadd.f32 %v9216_v15, %v9215_v25  ;;  %v9252_v12 = vadd.f32 %v9251_v11, %v9250_v47 }
 0xbe4   :  { %v7197_v59 = vadd.f32 %v9217_v52, %v7014_v6  ;;  %v7272_v3 = vadd.f32 %v9252_v12, %v7089_v2  ;;  %v7652_v52 = vld [vmem:[%s16582_s19] sm:$0x1]  ;;  %v16363_v6 = vld [vmem:[#allocation22 + $0xf8] sm:$0xff]  ;;  %s8184_s19 = sshll.u32 %s10565_s18, 4  ;;  %s8185_s19 = int_to_ptr.vmem [resolvable:$true] %s8184_s19 }
 0xbe5   :  { %v16365_v2 = vld [vmem:[#allocation22 + $0x68] sm:$0xff]  ;;  %s10508_s4 = scalar_lea.vmem %s8185_s19, 32  ;;  %p10513_p10 = scmp.lt.s32.totalorder %s8185_s19, %s8185_s19 }
 0xbe6   :  { %p10509_p9 = scmp.ne.s32.totalorder %s8185_s19, %s10508_s4  ;;  %p10514_p11 = scmp.lt.s32.totalorder %s10508_s4, %s10508_s4 }
 0xbe8   :  { %p10515_p12 = por %p10514_p11, %p10513_p10 }
 0xbea   :  { %p10516_p13 = pnand %p10515_p12, %p10509_p9 }
 0xc01   :  { %v9285_v9 = vpop.f32.mrf.mxu1  ;;  %v9320_v62 = vpop.f32.mrf.mxu0 }
 0xc03   :  { %v9286_v23 = vpop.f32.mrf.mxu1  ;;  %v9321_v17 = vpop.f32.mrf.mxu0 }
 0xc04   :  { %v9287_v30 = vadd.f32 %v9286_v23, %v9285_v9  ;;  %v9322_v56 = vadd.f32 %v9321_v17, %v9320_v62  ;;  %v16357_v9 = vld [vmem:[#allocation22 + $0x70] sm:$0xff]  ;;  %v16372_v17 = vld [vmem:[#allocation22 + $0x60] sm:$0xff] }
 0xc05   :  { %v16370_v23 = vld [vmem:[#allocation22 + $0xf0] sm:$0xff] }
 0xc06   :  { %v16322_v55 = vadd.f32 %v9287_v30, %v7197_v59  ;;  %v16324_v46 = vadd.f32 %v9322_v56, %v7272_v3  ;;  %v16378_v59 = vld [vmem:[#allocation22 + $0xe8] sm:$0xff]  ;;  %v16380_v3 = vld [vmem:[#allocation22 + $0x58] sm:$0xff]  ;;  %v16386_v30 = vld [vmem:[#allocation22 + $0xe0] sm:$0xff] }
 0xc07   :  { %v16388_v56 = vld [vmem:[#allocation22 + $0x50] sm:$0xff] }
 0xc08   :  { %v7456_v18 = vsel %vm2248_vm3, %v16322_v55, 0.0  ;;  %v7463_v57 = vmul.f32 %v16322_v55, %v16322_v55  ;;  %v7471_v50 = vsel %vm2248_vm3, %v16324_v46, 0.0  ;;  %v7478_v34 = vmul.f32 %v16324_v46, %v16324_v46 }
 0xc09   :  { %v7457_v10 = vrot.slane %v7456_v18, 4  ;;  %v7472_v51 = vrot.slane %v7471_v50, 4 }
 0xc0a   :  { %v7464_v43 = vsel %vm2248_vm3, %v7463_v57, 0.0  ;;  %v7479_v32 = vsel %vm2248_vm3, %v7478_v34, 0.0  ;;  %v16396_v57 = vld [vmem:[#allocation22 + $0x48] sm:$0xff]  ;;  %v16404_v34 = vld [vmem:[#allocation22 + $0x40] sm:$0xff] }
 0xc0b   :  { %v7458_v4 = vadd.f32 %v7457_v10, %v7456_v18  ;;  %v7465_v45 = vrot.slane %v7464_v43, 4  ;;  %v7473_v49 = vadd.f32 %v7472_v51, %v7471_v50  ;;  %v7480_v13 = vrot.slane %v7479_v32, 4  ;;  %v16394_v18 = vld [vmem:[#allocation22 + $0xd8] sm:$0xff]  ;;  %v16402_v50 = vld [vmem:[#allocation22 + $0xd0] sm:$0xff]  ;;  %v16410_v10 = vld [vmem:[#allocation22 + $0xc8] sm:$0xff] }
 0xc0c   :  { %v16412_v51 = vld [vmem:[#allocation22 + $0x38] sm:$0xff] }
 0xc0d   :  { %v7459_v44 = vrot.slane %v7458_v4, 2  ;;  %v7466_v14 = vadd.f32 %v7465_v45, %v7464_v43  ;;  %v7474_v58 = vrot.slane %v7473_v49, 2  ;;  %v7481_v35 = vadd.f32 %v7480_v13, %v7479_v32  ;;  %v16418_v43 = vld [vmem:[#allocation22 + $0xc0] sm:$0xff]  ;;  %v16420_v32 = vld [vmem:[#allocation22 + $0x30] sm:$0xff]  ;;  %v16428_v45 = vld [vmem:[#allocation22 + $0x28] sm:$0xff] }
 0xc0e   :  { %v16444_v13 = vld [vmem:[#allocation22 + $0x20] sm:$0xff] }
 0xc0f   :  { %v7460_v60 = vadd.f32 %v7459_v44, %v7458_v4  ;;  %v7467_v0 = vrot.slane %v7466_v14, 2  ;;  %v7475_v28 = vadd.f32 %v7474_v58, %v7473_v49  ;;  %v7482_v61 = vrot.slane %v7481_v35, 2  ;;  %v16426_v4 = vld [vmem:[#allocation22 + $0xb8] sm:$0xff]  ;;  %v16434_v49 = vld [vmem:[#allocation22 + $0xb0] sm:$0xff]  ;;  %v16446_v44 = vld [vmem:[#allocation22 + $0xa8] sm:$0xff] }
 0xc10   :  { %v16454_v58 = vld [vmem:[#allocation22 + $0xa0] sm:$0xff] }
 0xc11   :  { %v7461_v26 = vrot.slane %v7460_v60, 1  ;;  %v7468_v54 = vadd.f32 %v7467_v0, %v7466_v14  ;;  %v7476_v1 = vrot.slane %v7475_v28, 1  ;;  %v7483_v53 = vadd.f32 %v7482_v61, %v7481_v35  ;;  %v16452_v14 = vld [vmem:[#allocation22 + $0x18] sm:$0xff]  ;;  %v16460_v35 = vld [vmem:[#allocation22 + $0x10] sm:$0xff]  ;;  %v16468_v0 = vld [vmem:[#allocation22 + $0x8] sm:$0xff] }
 0xc12   :  { %v16476_v61 = vld [vmem:[#allocation22] sm:$0xff] }
 0xc13   :  { %v7462_v39 = vadd.f32 %v7461_v26, %v7460_v60  ;;  %v7469_v5 = vrot.slane %v7468_v54, 1  ;;  %v7477_v21 = vadd.f32 %v7476_v1, %v7475_v28  ;;  %v7484_v38 = vrot.slane %v7483_v53, 1  ;;  %v16462_v60 = vld [vmem:[#allocation22 + $0x98] sm:$0xff]  ;;  %v16470_v28 = vld [vmem:[#allocation22 + $0x90] sm:$0xff]  ;;  %v16478_v26 = vld [vmem:[#allocation22 + $0x88] sm:$0xff] }
 0xc15   :  { %v7486_v29 = vadd.f32 %v7477_v21, %v7462_v39  ;;  %v7470_v27 = vadd.f32 %v7469_v5, %v7468_v54  ;;  %v7485_v31 = vadd.f32 %v7484_v38, %v7483_v53  ;;  %v16484_v54 = vld [vmem:[#allocation22 + $0x80] sm:$0xff] }
 0xc16   :  { %v17604_v53 = vld [vmem:[#allocation37_spill] sm:$0xff] }
 0xc17   :  { %9998 = vmatmul.mubr.f32.vlgmr.msra.gmra.mxu1 %v7486_v29  ;;  %v7487_v20 = vadd.f32 %v7485_v31, %v7470_v27 }
 0xc18   :  { %10043 = vmatprep.mubr.msk.f32.mxu1 %vm10564_vm0, %v17603_v22  ;;  %10036 = vmatpush3.msra.mxu1 %v7658_v16 }
 0xc19   :  { %10033 = vmatmul.mubr.f32.vlgmr.msra.gmra.mxu0 %v7487_v20  ;;  %10037 = vmatprep.subr.mxu1 %v17603_v22 }
 0xc1a   :  { %10054 = vmatprep.mubr.msk.f32.mxu0 %vm10564_vm0, %v17603_v22  ;;  %10047 = vmatpush3.msra.mxu0 %v7658_v16 }
 0xc1b   :  { %10048 = vmatprep.subr.mxu0 %v17603_v22  ;;  %10038 = vmatpush3.msra.mxu1 %v7657_v37 }
 0xc1c   :  { %10049 = vmatpush3.msra.mxu0 %v7657_v37  ;;  %10039 = vmatprep.subr.mxu1 %v17603_v22 }
 0xc1d   :  { %10050 = vmatprep.subr.mxu0 %v17603_v22  ;;  %10040 = vmatpush3.msra.mxu1 %v7656_v40 }
 0xc1e   :  { %10051 = vmatpush3.msra.mxu0 %v7656_v40  ;;  %10041 = vmatprep.subr.mxu1 %v17603_v22 }
 0xc1f   :  { %10052 = vmatprep.subr.mxu0 %v17603_v22  ;;  %10042 = vmatpush3.msra.mxu1 %v7655_v33 }
 0xc20   :  { %10053 = vmatpush3.msra.mxu0 %v7655_v33  ;;  %10057 = vmatprep.subr.mxu1 %v17603_v22  ;;  %v7819_v33 = vld [vmem:[#allocation24] sm:$0x1] }
 0xc21   :  { %10092 = vmatprep.subr.mxu0 %v17603_v22 }
 0xcd7   :  { %v7570_v8 = vpop.f32.mrf.mxu1 }
 0xcd8   :  { %v7644_v25 = vmul.f32 0.125, %v7570_v8 }
 0xcd9   :  { %v9999_v47 = vpop.f32.mrf.mxu1  ;;  %v7640_v41 = vpop.f32.mrf.mxu0 }
 0xcda   :  { %v7646_v36 = vmul.f32 %v7644_v25, %v7644_v25  ;;  %v7645_v48 = vmul.f32 0.125, %v7640_v41 }
 0xcdb   :  { %v10034_v24 = vpop.f32.mrf.mxu0 }
 0xcdc   :  { %v7647_v15 = vsub.f32 %v7645_v48, %v7646_v36  ;;  %v7999_v24 = vld [vmem:[#allocation24] sm:$0x1] }
 0xcde   :  { %v7649_v11 = vadd.f32 1e-05, %v7647_v15 }
 0xce0   :  { %10224 = vrsqrt.f32 %v7649_v11 }
 0xced   :  { %v10225_v42 = vpop.eup %10224 }
 0xcee   :  { %v7651_v19 = vmul.f32 %v10225_v42, %v7648_v7 }
 0xcf0   :  { %10044 = vmatmul.mubr.msk.f32.vlgmr.msra.gmra.mxu1 %vm6033_vm6, %v7651_v19  ;;  %v7653_v12 = vmul.f32 %v7651_v19, %v7644_v25 }
 0xcf1   :  { %10058 = vmatpush3.msra.mxu1 %v16351_v63  ;;  %10089 = vmatprep.mubr.msk.f32.mxu1 %vm10564_vm0, %v17603_v22 }
 0xcf2   :  { %v7654_v62 = vsub.f32 %v7652_v52, %v7653_v12  ;;  %10059 = vmatprep.subr.mxu1 %v17603_v22 }
 0xcf3   :  { %10060 = vmatpush3.msra.mxu1 %v16357_v9 }
 0xcf4   :  { %10055 = vmatmul.mubr.msk.f32.vlgmr.msra.gmra.mxu0 %vm6033_vm6, %v7654_v62  ;;  %10061 = vmatprep.subr.mxu1 %v17603_v22 }
 0xcf5   :  { %10093 = vmatpush3.msra.mxu0 %v16363_v6  ;;  %10062 = vmatpush3.msra.mxu1 %v16365_v2 }
 0xcf6   :  { %10094 = vmatprep.subr.mxu0 %v17603_v22  ;;  %10063 = vmatprep.subr.mxu1 %v17603_v22 }
 0xcf7   :  { %10095 = vmatpush3.msra.mxu0 %v16370_v23  ;;  %10064 = vmatpush3.msra.mxu1 %v16372_v17 }
 0xcf8   :  { %10096 = vmatprep.subr.mxu0 %v17603_v22  ;;  %10065 = vmatprep.subr.mxu1 %v17603_v22 }
 0xcf9   :  { %10097 = vmatpush3.msra.mxu0 %v16378_v59  ;;  %10066 = vmatpush3.msra.mxu1 %v16380_v3 }
 0xcfa   :  { %10098 = vmatprep.subr.mxu0 %v17603_v22  ;;  %10067 = vmatprep.subr.mxu1 %v17603_v22 }
 0xcfb   :  { %10099 = vmatpush3.msra.mxu0 %v16386_v30  ;;  %10068 = vmatpush3.msra.mxu1 %v16388_v56 }
 0xcfc   :  { %10100 = vmatprep.subr.mxu0 %v17603_v22  ;;  %10069 = vmatprep.subr.mxu1 %v17603_v22 }
 0xcfd   :  { %10101 = vmatpush3.msra.mxu0 %v16394_v18  ;;  %10070 = vmatpush3.msra.mxu1 %v16396_v57 }
 0xcfe   :  { %10102 = vmatprep.subr.mxu0 %v17603_v22  ;;  %10071 = vmatprep.subr.mxu1 %v17603_v22 }
 0xcff   :  { %10103 = vmatpush3.msra.mxu0 %v16402_v50  ;;  %10072 = vmatpush3.msra.mxu1 %v16404_v34 }
 0xd00   :  { %10104 = vmatprep.subr.mxu0 %v17603_v22  ;;  %10073 = vmatprep.subr.mxu1 %v17603_v22 }
 0xd01   :  { %10105 = vmatpush3.msra.mxu0 %v16410_v10  ;;  %10074 = vmatpush3.msra.mxu1 %v16412_v51 }
 0xd02   :  { %10106 = vmatprep.subr.mxu0 %v17603_v22  ;;  %10075 = vmatprep.subr.mxu1 %v17603_v22 }
 0xd03   :  { %10107 = vmatpush3.msra.mxu0 %v16418_v43  ;;  %10076 = vmatpush3.msra.mxu1 %v16420_v32 }
 0xd04   :  { %10108 = vmatprep.subr.mxu0 %v17603_v22  ;;  %10077 = vmatprep.subr.mxu1 %v17603_v22 }
 0xd05   :  { %10109 = vmatpush3.msra.mxu0 %v16426_v4  ;;  %10078 = vmatpush3.msra.mxu1 %v16428_v45 }
 0xd06   :  { %10110 = vmatprep.subr.mxu0 %v17603_v22  ;;  %10079 = vmatprep.subr.mxu1 %v17603_v22 }
 0xd07   :  { %10111 = vmatpush3.msra.mxu0 %v16434_v49  ;;  %10124 = vmatprep.mubr.msk.f32.mxu0 %vm10564_vm0, %v17603_v22 }
 0xd08   :  { %10112 = vmatprep.subr.mxu0 %v17603_v22  ;;  %10080 = vmatpush3.msra.mxu1 %v16444_v13 }
 0xd09   :  { %10113 = vmatpush3.msra.mxu0 %v16446_v44  ;;  %10081 = vmatprep.subr.mxu1 %v17603_v22 }
 0xd0a   :  { %10114 = vmatprep.subr.mxu0 %v17603_v22  ;;  %10082 = vmatpush3.msra.mxu1 %v16452_v14 }
 0xd0b   :  { %10115 = vmatpush3.msra.mxu0 %v16454_v58  ;;  %10083 = vmatprep.subr.mxu1 %v17603_v22 }
 0xd0c   :  { %10116 = vmatprep.subr.mxu0 %v17603_v22  ;;  %10084 = vmatpush3.msra.mxu1 %v16460_v35 }
 0xd0d   :  { %10117 = vmatpush3.msra.mxu0 %v16462_v60  ;;  %10085 = vmatprep.subr.mxu1 %v17603_v22 }
 0xd0e   :  { %10118 = vmatprep.subr.mxu0 %v17603_v22  ;;  %10086 = vmatpush3.msra.mxu1 %v16468_v0 }
 0xd0f   :  { %10119 = vmatpush3.msra.mxu0 %v16470_v28  ;;  %10087 = vmatprep.subr.mxu1 %v17603_v22 }
 0xd10   :  { %10120 = vmatprep.subr.mxu0 %v17603_v22  ;;  %10088 = vmatpush3.msra.mxu1 %v16476_v61 }
 0xd11   :  { %10121 = vmatpush3.msra.mxu0 %v16478_v26  ;;  %10127 = vmatprep.subr.mxu1 %v17603_v22 }
 0xd12   :  { %10122 = vmatprep.subr.mxu0 %v17603_v22 }
 0xd13   :  { %10123 = vmatpush3.msra.mxu0 %v16484_v54 }
 0xd14   :  { %10162 = vmatprep.subr.mxu0 %v17603_v22 }
 0xdb0   :  { %v7728_v1 = vpop.f32.mrf.mxu1 }
 0xdb1   :  { %v7808_v39 = vrot.slane %v7728_v1, %v17604_v53 }
 0xdb2   :  { %v10045_v5 = vpop.f32.mrf.mxu1 }
 0xdb3   :  { %v7809_v38 = vmul.f32 %v7808_v39, %v16322_v55  ;;  %v7816_v55 = vmul.f32 %v7808_v39, %v16324_v46 }
 0xdb4   :  { %v7801_v21 = vpop.f32.mrf.mxu0 }
 0xdb5   :  { %v7813_v29 = vrot.slane %v7801_v21, %v17604_v53 }
 0xdb6   :  { %v10056_v27 = vpop.f32.mrf.mxu0 }
 0xdb7   :  { %v7814_v31 = vadd.f32 %v7813_v29, %v7809_v38  ;;  %v7817_v37 = vadd.f32 %v7816_v55, %v7813_v29 }
 0xdb9   :  { %v7815_v20 = vmax.f32 %v7814_v31, 0.0  ;;  %v7818_v46 = vmax.f32 %v7817_v37, 0.0 }
 0xdbb   :  { %v7925_v16 = vrot.slane %v7815_v20, 1  ;;  %10090 = vmatmul.mubr.f32.vlgmr.msra.gmra.mxu1 %v7815_v20  ;;  %v8104_v40 = vrot.slane %v7818_v46, 1 }
 0xdbc   :  { %10128 = vmatpush3.msra.mxu1 %v16351_v63  ;;  %10159 = vmatprep.mubr.msk.f32.mxu1 %vm10564_vm0, %v17603_v22 }
 0xdbd   :  { %10129 = vmatprep.subr.mxu1 %v17603_v22  ;;  %10125 = vmatmul.mubr.f32.vlgmr.msra.gmra.mxu0 %v7925_v16 }
 0xdbe   :  { %10130 = vmatpush3.msra.mxu1 %v16357_v9  ;;  %10163 = vmatpush3.msra.mxu0 %v16363_v6 }
 0xdbf   :  { %10131 = vmatprep.subr.mxu1 %v17603_v22  ;;  %10164 = vmatprep.subr.mxu0 %v17603_v22 }
 0xdc0   :  { %10132 = vmatpush3.msra.mxu1 %v16365_v2  ;;  %10165 = vmatpush3.msra.mxu0 %v16370_v23 }
 0xdc1   :  { %10133 = vmatprep.subr.mxu1 %v17603_v22  ;;  %10166 = vmatprep.subr.mxu0 %v17603_v22 }
 0xdc2   :  { %10134 = vmatpush3.msra.mxu1 %v16372_v17  ;;  %10167 = vmatpush3.msra.mxu0 %v16378_v59 }
 0xdc3   :  { %10135 = vmatprep.subr.mxu1 %v17603_v22  ;;  %10168 = vmatprep.subr.mxu0 %v17603_v22 }
 0xdc4   :  { %10136 = vmatpush3.msra.mxu1 %v16380_v3  ;;  %10169 = vmatpush3.msra.mxu0 %v16386_v30 }
 0xdc5   :  { %10137 = vmatprep.subr.mxu1 %v17603_v22  ;;  %10170 = vmatprep.subr.mxu0 %v17603_v22 }
 0xdc6   :  { %10138 = vmatpush3.msra.mxu1 %v16388_v56  ;;  %10171 = vmatpush3.msra.mxu0 %v16394_v18 }
 0xdc7   :  { %10139 = vmatprep.subr.mxu1 %v17603_v22  ;;  %10172 = vmatprep.subr.mxu0 %v17603_v22 }
 0xdc8   :  { %10140 = vmatpush3.msra.mxu1 %v16396_v57  ;;  %10173 = vmatpush3.msra.mxu0 %v16402_v50 }
 0xdc9   :  { %10141 = vmatprep.subr.mxu1 %v17603_v22  ;;  %10174 = vmatprep.subr.mxu0 %v17603_v22 }
 0xdca   :  { %10142 = vmatpush3.msra.mxu1 %v16404_v34  ;;  %10175 = vmatpush3.msra.mxu0 %v16410_v10 }
 0xdcb   :  { %10143 = vmatprep.subr.mxu1 %v17603_v22  ;;  %10176 = vmatprep.subr.mxu0 %v17603_v22 }
 0xdcc   :  { %10144 = vmatpush3.msra.mxu1 %v16412_v51  ;;  %10177 = vmatpush3.msra.mxu0 %v16418_v43 }
 0xdcd   :  { %10145 = vmatprep.subr.mxu1 %v17603_v22  ;;  %10178 = vmatprep.subr.mxu0 %v17603_v22 }
 0xdce   :  { %10146 = vmatpush3.msra.mxu1 %v16420_v32  ;;  %10179 = vmatpush3.msra.mxu0 %v16426_v4 }
 0xdcf   :  { %10147 = vmatprep.subr.mxu1 %v17603_v22  ;;  %10180 = vmatprep.subr.mxu0 %v17603_v22 }
 0xdd0   :  { %10148 = vmatpush3.msra.mxu1 %v16428_v45  ;;  %10181 = vmatpush3.msra.mxu0 %v16434_v49 }
 0xdd1   :  { %10149 = vmatprep.subr.mxu1 %v17603_v22  ;;  %10182 = vmatprep.subr.mxu0 %v17603_v22 }
 0xdd2   :  { %10150 = vmatpush3.msra.mxu1 %v16444_v13  ;;  %10183 = vmatpush3.msra.mxu0 %v16446_v44 }
 0xdd3   :  { %10151 = vmatprep.subr.mxu1 %v17603_v22  ;;  %10184 = vmatprep.subr.mxu0 %v17603_v22 }
 0xdd4   :  { %10152 = vmatpush3.msra.mxu1 %v16452_v14  ;;  %10185 = vmatpush3.msra.mxu0 %v16454_v58 }
 0xdd5   :  { %10153 = vmatprep.subr.mxu1 %v17603_v22  ;;  %10186 = vmatprep.subr.mxu0 %v17603_v22 }
 0xdd6   :  { %10154 = vmatpush3.msra.mxu1 %v16460_v35  ;;  %10187 = vmatpush3.msra.mxu0 %v16462_v60 }
 0xdd7   :  { %10155 = vmatprep.subr.mxu1 %v17603_v22  ;;  %10188 = vmatprep.subr.mxu0 %v17603_v22 }
 0xdd8   :  { %10156 = vmatpush3.msra.mxu1 %v16468_v0  ;;  %10189 = vmatpush3.msra.mxu0 %v16470_v28 }
 0xdd9   :  { %10157 = vmatprep.subr.mxu1 %v17603_v22  ;;  %10190 = vmatprep.subr.mxu0 %v17603_v22 }
 0xdda   :  { %10158 = vmatpush3.msra.mxu1 %v16476_v61  ;;  %10191 = vmatpush3.msra.mxu0 %v16478_v26 }
 0xddb   :  { %10160 = vmatmul.mubr.f32.vlgmr.msra.gmra.mxu1 %v7818_v46  ;;  %10192 = vmatprep.subr.mxu0 %v17603_v22 }
 0xddc   :  { %10193 = vmatpush3.msra.mxu0 %v16484_v54  ;;  %10194 = vmatprep.mubr.msk.f32.mxu0 %vm10564_vm0, %v17603_v22 }
 0xddd   :  { %10195 = vmatmul.mubr.f32.vlgmr.msra.gmra.mxu0 %v8104_v40 }
 0xe7b   :  { %v7902_v8 = vpop.f32.mrf.mxu1 }
 0xe7c   :  { %v7906_v25 = vadd.f32 %v7902_v8, %v7819_v33 }
 0xe7d   :  { %v10091_v47 = vpop.f32.mrf.mxu1  ;;  %v7993_v41 = vpop.f32.mrf.mxu0 }
 0xe7e   :  { %v7997_v36 = vadd.f32 %v7993_v41, %v7906_v25 }
 0xe7f   :  { %v10126_v48 = vpop.f32.mrf.mxu0 }
 0xe80   :  { %7998 = vst [vmem:[#allocation25] sm:$0x1] %v7997_v36 }
 0xe9b   :  { %v8082_v15 = vpop.f32.mrf.mxu1 }
 0xe9c   :  { %v8086_v11 = vadd.f32 %v8082_v15, %v7999_v24 }
 0xe9d   :  { %v10161_v7 = vpop.f32.mrf.mxu1  ;;  %v8172_v42 = vpop.f32.mrf.mxu0 }
 0xe9e   :  { %v8176_v19 = vadd.f32 %v8172_v42, %v8086_v11 }
 0xe9f   :  { %v10196_v63 = vpop.f32.mrf.mxu0 }
 0xea0   :  { %8178 = vst [vmem:[#allocation25 + $0x1] sm:$0x1] %v8176_v19 }
 0xea1   :  { %10519 = shalt.err (!%p10516_p13)
}
 0xea2   :  { %s10566_s0 = smov 1  }
 0xea3   :  { %8190 = dma.vmem_to_hbm [thread:$0]  %s8185_s19, 32, %s16585_s22, [#allocation6], %s10558_s13, %s10558_s13, %s10566_s0  }
 0xea4   :  { %10542 = dma.done.wait [#allocation6], 32  }
 0xea5   :  { %10543 = vsyncadd [#allocation6], 4294967264 }
 0xea6   :  { %8194 = vsyncpa [#allocation5], 1 }
 0xea7   :  { %8195 = vsyncpa [#allocation8], 1 }
 0xea8   :  { %8196 = vsyncpa [#allocation11], 1 }
 0xea9   :  { %8197 = vsyncpa [#allocation14], 1 }
 0xeaa   :  { %8198 = vsyncpa [#allocation17], 1 }
 0xeab   :  { %8199 = vsyncpa [#allocation20], 1 }
 0xeac   :  { %8200 = vsyncpa [#allocation23], 1 }
 0xead   :  { %8201 = vsyncpa [#allocation6], 1 }

</bundles_post_ra>
